<compile_context>
chip_gen: v7x
topology: tpu7x:2x2x1
jax: 0.10.0
libtpu: 0.0.40
codegen_flags: <defaults>
</compile_context>

<pallas_src>
import functools

import jax
import jax.numpy as jnp
from jax.experimental import pallas as pl
from jax.experimental.pallas import tpu as pltpu

# Layer sizes (from the module's __init__)
D_IN = 3 * 32 * 32                  # 3072
DIMS = [D_IN, 1024, 512, 256, 128, 10]
D_OUT = DIMS[-1]                    # 10 real logits
D_OUT_PAD = 128                     # lane-dense padded logits width


def _round_up(n, m):
    return ((n + m - 1) // m) * m


@functools.lru_cache(maxsize=None)
def _tpu_config():
    """(vmem_capacity_bytes, num_tensorcores, max_batch_tile) for this generation."""
    kind = jax.devices()[0].device_kind.lower()
    is_v7 = "7" in kind
    try:
        vmem_cap = int(pltpu.get_tpu_info().vmem_capacity_bytes)
    except Exception:  # host-side query only; never masks kernel lowering errors
        vmem_cap = (64 << 20) if is_v7 else (128 << 20)
    if is_v7:
        vmem_cap = min(vmem_cap, 64 << 20)   # per-TensorCore VMEM on v7x
    num_cores = 2 if is_v7 else 1
    max_tb = 512 if is_v7 else 1024
    return vmem_cap, num_cores, max_tb


def mlp_kernel(x_ref,
               w1_ref, s1_ref, b1_ref,
               w2_ref, s2_ref, b2_ref,
               w3_ref, s3_ref, b3_ref,
               w4_ref, s4_ref, b4_ref,
               w5_ref, s5_ref, b5_ref,
               out_ref):
    """Whole MLP forward for one (TB, 3072) batch tile, fully in VMEM.

    Weights: int8 (in, out) dequantized to bf16 on the VPU; scales/biases: f32
    (1, out); accumulation: f32 on the MXU; hidden activations: bf16. The last
    layer is zero-padded to 128 output columns for a lane-dense unmasked store.
    """
    def layer(h_bf16, w_ref, s_ref, b_ref, relu):
        acc = jnp.dot(h_bf16, w_ref[...].astype(jnp.bfloat16),
                      preferred_element_type=jnp.float32)
        acc = acc * s_ref[...] + b_ref[...]
        if relu:
            return jnp.maximum(acc, 0.0).astype(jnp.bfloat16)
        return acc

    h = x_ref[...].astype(jnp.bfloat16)
    h = layer(h, w1_ref, s1_ref, b1_ref, relu=True)
    h = layer(h, w2_ref, s2_ref, b2_ref, relu=True)   # Dropout(0.1) == identity (eval)
    h = layer(h, w3_ref, s3_ref, b3_ref, relu=True)   # Dropout(0.2) == identity (eval)
    h = layer(h, w4_ref, s4_ref, b4_ref, relu=True)
    logits = layer(h, w5_ref, s5_ref, b5_ref, relu=False)
    out_ref[...] = logits.astype(out_ref.dtype)


def init_params(key):
    """Deterministic synthetic f32 params; weights (in, out), biases (1, out)."""
    params = []
    for i in range(len(DIMS) - 1):
        d_in, d_out = DIMS[i], DIMS[i + 1]
        key, kw, kb = jax.random.split(key, 3)
        bound = 1.0 / jnp.sqrt(d_in)             # mimic nn.Linear fan-in uniform init
        w = jax.random.uniform(kw, (d_in, d_out), jnp.float32, -bound, bound)
        b = jax.random.uniform(kb, (1, d_out), jnp.float32, -bound, bound)
        params.append((w, b))
    return params


def quantize_params(params):
    """Pad the last layer to 128 output cols, then int8-quantize per output channel.

    Returns [(w_int8 (in,out), scale_f32 (1,out), bias_f32 (1,out))] per layer.
    Note: weights are intentionally int8 (with f32 scales) while the original
    PyTorch module is f32 — acceptable for a classifier, stated explicitly here.
    """
    padded = list(params[:-1])
    w5, b5 = params[-1]
    w5p = jnp.zeros((w5.shape[0], D_OUT_PAD), w5.dtype).at[:, :D_OUT].set(w5)
    b5p = jnp.zeros((1, D_OUT_PAD), b5.dtype).at[:, :D_OUT].set(b5)
    padded.append((w5p, b5p))

    qparams = []
    for w, b in padded:
        max_abs = jnp.max(jnp.abs(w), axis=0, keepdims=True)        # (1, out)
        scale = jnp.maximum(max_abs, 1e-8) / 127.0
        w_q = jnp.clip(jnp.round(w / scale), -127, 127).astype(jnp.int8)
        qparams.append((w_q, scale.astype(jnp.float32), b.astype(jnp.float32)))
    return qparams


def _build_pallas_call(padded_b, tb, qparams):
    grid = (padded_b // tb,)

    x_spec = pl.BlockSpec((tb, D_IN), lambda i: (i, 0))

    def resident(shape):
        # Constant index_map => grid-resident; a second buffer is pure VMEM waste.
        return pl.BlockSpec(shape, lambda i: (0, 0), pipeline_mode=pl.Buffered(1))

    param_specs = []
    for w, s, b in qparams:
        param_specs += [resident(w.shape), resident(s.shape), resident(b.shape)]
    out_spec = pl.BlockSpec((tb, D_OUT_PAD), lambda i: (i, 0))

    vmem_cap, _, _ = _tpu_config()
    param_bytes = sum(w.size * w.dtype.itemsize + s.size * 4 + b.size * 4
                      for w, s, b in qparams)                        # ~3.7 MiB int8
    io_bytes = 2 * (tb * D_IN * 4 + tb * D_OUT_PAD * 2)              # x/out double-buffered
    # 32 MiB headroom for in-kernel intermediates (dequantized bf16 weight tiles,
    # f32 accumulators), capped per-generation below physical VMEM.
    vmem_limit = min(param_bytes + io_bytes + (32 << 20), int(vmem_cap * 0.85))

    flops = 2 * padded_b * sum(w.shape[0] * w.shape[1] for w, _, _ in qparams)
    bytes_accessed = param_bytes + padded_b * (D_IN * 4 + D_OUT_PAD * 2)

    return pl.pallas_call(
        mlp_kernel,
        out_shape=jax.ShapeDtypeStruct((padded_b, D_OUT_PAD), jnp.bfloat16),
        grid_spec=pl.GridSpec(
            grid=grid,
            in_specs=[x_spec] + param_specs,
            out_specs=out_spec,
        ),
        compiler_params=pltpu.CompilerParams(
            # Batch tiles are independent (no cross-iteration accumulator):
            # "parallel" lets v7x shard them across both TensorCores.
            dimension_semantics=("parallel",),
            vmem_limit_bytes=int(vmem_limit),
        ),
        cost_estimate=pl.CostEstimate(
            flops=int(flops), transcendentals=0, bytes_accessed=int(bytes_accessed)),
    )


def neural_network_forward(x_nchw, qparams):
    """x_nchw: (B, 3, 32, 32) float32 -> logits (B, 10) float32."""
    B = x_nchw.shape[0]
    x = x_nchw.reshape(B, -1).astype(jnp.float32)   # nn.Flatten (row-major on NCHW)
    assert x.shape[1] == D_IN

    vmem_cap, num_cores, max_tb = _tpu_config()
    b8 = _round_up(B, 8)
    if num_cores >= 2 and b8 > 256:
        # v7x: split large batches into >= 2 "parallel" grid steps so both
        # TensorCores are used. Tiny batches stay grid=(1,) to avoid duplicating
        # the weight DMA per core.
        tb = min(max_tb, _round_up((b8 + 1) // 2, 8))
    else:
        tb = min(max_tb, b8)
    padded_b = _round_up(b8, tb)
    if padded_b != B:
        x = jnp.pad(x, ((0, padded_b - B), (0, 0)))

    flat_params = []
    for w, s, b in qparams:
        flat_params += [w, s, b]

    out = _build_pallas_call(padded_b, tb, qparams)(x, *flat_params)
    return out[:B, :D_OUT].astype(jnp.float32)


def reference_forward(x_nchw, qparams):
    """Pure-JAX reference with the same int8-weight / bf16 / f32-accumulate numerics."""
    h = x_nchw.reshape(x_nchw.shape[0], -1).astype(jnp.bfloat16)
    n = len(qparams)
    acc = None
    for i, (w_q, s, b) in enumerate(qparams):
        acc = jnp.dot(h, w_q.astype(jnp.bfloat16),
                      preferred_element_type=jnp.float32) * s + b
        if i < n - 1:
            h = jnp.maximum(acc, 0.0).astype(jnp.bfloat16)
    logits = acc.astype(jnp.bfloat16).astype(jnp.float32)   # kernel stores bf16 logits
    return logits[:, :D_OUT]


if __name__ == "__main__":
    key = jax.random.PRNGKey(0)
    key, kx = jax.random.split(key)

    # Small-but-exact shapes: the module hard-codes 3*32*32 input features.
    B = 2
    x = jax.random.normal(kx, (B, 3, 32, 32), jnp.float32)
    params = init_params(jax.random.PRNGKey(42))
    qparams = quantize_params(params)

    out = jax.block_until_ready(neural_network_forward(x, qparams))
    ref = jax.block_until_ready(reference_forward(x, qparams))

    assert out.shape == (B, 10), out.shape
    max_err = float(jnp.max(jnp.abs(out - ref)))
    assert jnp.allclose(out, ref, atol=2e-2, rtol=2e-2), f"mismatch vs reference: {max_err}"

    print("KERNEL_OK")
</pallas_src>

<mosaic_0001>
module attributes {stable_mosaic.version = 11 : i64} {
  func.func @mlp_kernel(%arg0: i32, %arg1: memref<8x3072xf32, #tpu.memory_space<vmem>>, %arg2: memref<3072x1024xi8, #tpu.memory_space<vmem>>, %arg3: memref<1x1024xf32, #tpu.memory_space<vmem>>, %arg4: memref<1x1024xf32, #tpu.memory_space<vmem>>, %arg5: memref<1024x512xi8, #tpu.memory_space<vmem>>, %arg6: memref<1x512xf32, #tpu.memory_space<vmem>>, %arg7: memref<1x512xf32, #tpu.memory_space<vmem>>, %arg8: memref<512x256xi8, #tpu.memory_space<vmem>>, %arg9: memref<1x256xf32, #tpu.memory_space<vmem>>, %arg10: memref<1x256xf32, #tpu.memory_space<vmem>>, %arg11: memref<256x128xi8, #tpu.memory_space<vmem>>, %arg12: memref<1x128xf32, #tpu.memory_space<vmem>>, %arg13: memref<1x128xf32, #tpu.memory_space<vmem>>, %arg14: memref<128x128xi8, #tpu.memory_space<vmem>>, %arg15: memref<1x128xf32, #tpu.memory_space<vmem>>, %arg16: memref<1x128xf32, #tpu.memory_space<vmem>>, %arg17: memref<8x128xbf16, #tpu.memory_space<vmem>>) attributes {dimension_semantics = [#tpu.dimension_semantics<parallel>], iteration_bounds = array<i64: 1>, scalar_prefetch = 0 : i64, scratch_operands = 0 : i64, tpu.core_type = #tpu.core_type<tc>, window_params = [{transform_indices = @transform_0, window_bounds = array<i64: 8, 3072>}, {pipeline_mode = #tpu.pipeline_mode<synchronous>, transform_indices = @transform_1, window_bounds = array<i64: 3072, 1024>}, {pipeline_mode = #tpu.pipeline_mode<synchronous>, transform_indices = @transform_2, window_bounds = array<i64: 1, 1024>}, {pipeline_mode = #tpu.pipeline_mode<synchronous>, transform_indices = @transform_3, window_bounds = array<i64: 1, 1024>}, {pipeline_mode = #tpu.pipeline_mode<synchronous>, transform_indices = @transform_4, window_bounds = array<i64: 1024, 512>}, {pipeline_mode = #tpu.pipeline_mode<synchronous>, transform_indices = @transform_5, window_bounds = array<i64: 1, 512>}, {pipeline_mode = #tpu.pipeline_mode<synchronous>, transform_indices = @transform_6, window_bounds = array<i64: 1, 512>}, {pipeline_mode = #tpu.pipeline_mode<synchronous>, transform_indices = @transform_7, window_bounds = array<i64: 512, 256>}, {pipeline_mode = #tpu.pipeline_mode<synchronous>, transform_indices = @transform_8, window_bounds = array<i64: 1, 256>}, {pipeline_mode = #tpu.pipeline_mode<synchronous>, transform_indices = @transform_9, window_bounds = array<i64: 1, 256>}, {pipeline_mode = #tpu.pipeline_mode<synchronous>, transform_indices = @transform_10, window_bounds = array<i64: 256, 128>}, {pipeline_mode = #tpu.pipeline_mode<synchronous>, transform_indices = @transform_11, window_bounds = array<i64: 1, 128>}, {pipeline_mode = #tpu.pipeline_mode<synchronous>, transform_indices = @transform_12, window_bounds = array<i64: 1, 128>}, {pipeline_mode = #tpu.pipeline_mode<synchronous>, transform_indices = @transform_13, window_bounds = array<i64: 128, 128>}, {pipeline_mode = #tpu.pipeline_mode<synchronous>, transform_indices = @transform_14, window_bounds = array<i64: 1, 128>}, {pipeline_mode = #tpu.pipeline_mode<synchronous>, transform_indices = @transform_15, window_bounds = array<i64: 1, 128>}, {transform_indices = @transform_16, window_bounds = array<i64: 8, 128>}]} {
    %c0 = arith.constant 0 : index
    %c0_0 = arith.constant 0 : index
    %0 = vector.load %arg1[%c0, %c0_0] : memref<8x3072xf32, #tpu.memory_space<vmem>>, vector<8x3072xf32>
    %1 = arith.truncf %0 : vector<8x3072xf32> to vector<8x3072xbf16>
    %c0_1 = arith.constant 0 : index
    %c0_2 = arith.constant 0 : index
    %2 = vector.load %arg2[%c0_1, %c0_2] : memref<3072x1024xi8, #tpu.memory_space<vmem>>, vector<3072x1024xi8>
    %3 = arith.sitofp %2 : vector<3072x1024xi8> to vector<3072x1024xbf16>
    %cst = arith.constant dense<0.000000e+00> : vector<8x1024xf32>
    %4 = tpu.matmul %1, %3, %cst {dimension_numbers = #tpu.dot_dimension_numbers<[1], [0], [0], [1], [0, 0, 1, 1], [], []>} : vector<8x3072xbf16>, vector<3072x1024xbf16>, vector<8x1024xf32> -> vector<8x1024xf32>
    %c0_3 = arith.constant 0 : index
    %c0_4 = arith.constant 0 : index
    %5 = vector.load %arg3[%c0_3, %c0_4] : memref<1x1024xf32, #tpu.memory_space<vmem>>, vector<1x1024xf32>
    %6 = vector.broadcast %5 : vector<1x1024xf32> to vector<8x1024xf32>
    %7 = arith.mulf %4, %6 : vector<8x1024xf32>
    %c0_5 = arith.constant 0 : index
    %c0_6 = arith.constant 0 : index
    %8 = vector.load %arg4[%c0_5, %c0_6] : memref<1x1024xf32, #tpu.memory_space<vmem>>, vector<1x1024xf32>
    %9 = vector.broadcast %8 : vector<1x1024xf32> to vector<8x1024xf32>
    %10 = arith.addf %7, %9 : vector<8x1024xf32>
    %cst_7 = arith.constant 0.000000e+00 : f32
    %11 = vector.broadcast %cst_7 : f32 to vector<8x1024xf32>
    %12 = arith.maximumf %10, %11 : vector<8x1024xf32>
    %13 = arith.truncf %12 : vector<8x1024xf32> to vector<8x1024xbf16>
    %c0_8 = arith.constant 0 : index
    %c0_9 = arith.constant 0 : index
    %14 = vector.load %arg5[%c0_8, %c0_9] : memref<1024x512xi8, #tpu.memory_space<vmem>>, vector<1024x512xi8>
    %15 = arith.sitofp %14 : vector<1024x512xi8> to vector<1024x512xbf16>
    %cst_10 = arith.constant dense<0.000000e+00> : vector<8x512xf32>
    %16 = tpu.matmul %13, %15, %cst_10 {dimension_numbers = #tpu.dot_dimension_numbers<[1], [0], [0], [1], [0, 0, 1, 1], [], []>} : vector<8x1024xbf16>, vector<1024x512xbf16>, vector<8x512xf32> -> vector<8x512xf32>
    %c0_11 = arith.constant 0 : index
    %c0_12 = arith.constant 0 : index
    %17 = vector.load %arg6[%c0_11, %c0_12] : memref<1x512xf32, #tpu.memory_space<vmem>>, vector<1x512xf32>
    %18 = vector.broadcast %17 : vector<1x512xf32> to vector<8x512xf32>
    %19 = arith.mulf %16, %18 : vector<8x512xf32>
    %c0_13 = arith.constant 0 : index
    %c0_14 = arith.constant 0 : index
    %20 = vector.load %arg7[%c0_13, %c0_14] : memref<1x512xf32, #tpu.memory_space<vmem>>, vector<1x512xf32>
    %21 = vector.broadcast %20 : vector<1x512xf32> to vector<8x512xf32>
    %22 = arith.addf %19, %21 : vector<8x512xf32>
    %cst_15 = arith.constant 0.000000e+00 : f32
    %23 = vector.broadcast %cst_15 : f32 to vector<8x512xf32>
    %24 = arith.maximumf %22, %23 : vector<8x512xf32>
    %25 = arith.truncf %24 : vector<8x512xf32> to vector<8x512xbf16>
    %c0_16 = arith.constant 0 : index
    %c0_17 = arith.constant 0 : index
    %26 = vector.load %arg8[%c0_16, %c0_17] : memref<512x256xi8, #tpu.memory_space<vmem>>, vector<512x256xi8>
    %27 = arith.sitofp %26 : vector<512x256xi8> to vector<512x256xbf16>
    %cst_18 = arith.constant dense<0.000000e+00> : vector<8x256xf32>
    %28 = tpu.matmul %25, %27, %cst_18 {dimension_numbers = #tpu.dot_dimension_numbers<[1], [0], [0], [1], [0, 0, 1, 1], [], []>} : vector<8x512xbf16>, vector<512x256xbf16>, vector<8x256xf32> -> vector<8x256xf32>
    %c0_19 = arith.constant 0 : index
    %c0_20 = arith.constant 0 : index
    %29 = vector.load %arg9[%c0_19, %c0_20] : memref<1x256xf32, #tpu.memory_space<vmem>>, vector<1x256xf32>
    %30 = vector.broadcast %29 : vector<1x256xf32> to vector<8x256xf32>
    %31 = arith.mulf %28, %30 : vector<8x256xf32>
    %c0_21 = arith.constant 0 : index
    %c0_22 = arith.constant 0 : index
    %32 = vector.load %arg10[%c0_21, %c0_22] : memref<1x256xf32, #tpu.memory_space<vmem>>, vector<1x256xf32>
    %33 = vector.broadcast %32 : vector<1x256xf32> to vector<8x256xf32>
    %34 = arith.addf %31, %33 : vector<8x256xf32>
    %cst_23 = arith.constant 0.000000e+00 : f32
    %35 = vector.broadcast %cst_23 : f32 to vector<8x256xf32>
    %36 = arith.maximumf %34, %35 : vector<8x256xf32>
    %37 = arith.truncf %36 : vector<8x256xf32> to vector<8x256xbf16>
    %c0_24 = arith.constant 0 : index
    %c0_25 = arith.constant 0 : index
    %38 = vector.load %arg11[%c0_24, %c0_25] : memref<256x128xi8, #tpu.memory_space<vmem>>, vector<256x128xi8>
    %39 = arith.sitofp %38 : vector<256x128xi8> to vector<256x128xbf16>
    %cst_26 = arith.constant dense<0.000000e+00> : vector<8x128xf32>
    %40 = tpu.matmul %37, %39, %cst_26 {dimension_numbers = #tpu.dot_dimension_numbers<[1], [0], [0], [1], [0, 0, 1, 1], [], []>} : vector<8x256xbf16>, vector<256x128xbf16>, vector<8x128xf32> -> vector<8x128xf32>
    %c0_27 = arith.constant 0 : index
    %c0_28 = arith.constant 0 : index
    %41 = vector.load %arg12[%c0_27, %c0_28] : memref<1x128xf32, #tpu.memory_space<vmem>>, vector<1x128xf32>
    %42 = vector.broadcast %41 : vector<1x128xf32> to vector<8x128xf32>
    %43 = arith.mulf %40, %42 : vector<8x128xf32>
    %c0_29 = arith.constant 0 : index
    %c0_30 = arith.constant 0 : index
    %44 = vector.load %arg13[%c0_29, %c0_30] : memref<1x128xf32, #tpu.memory_space<vmem>>, vector<1x128xf32>
    %45 = vector.broadcast %44 : vector<1x128xf32> to vector<8x128xf32>
    %46 = arith.addf %43, %45 : vector<8x128xf32>
    %cst_31 = arith.constant 0.000000e+00 : f32
    %47 = vector.broadcast %cst_31 : f32 to vector<8x128xf32>
    %48 = arith.maximumf %46, %47 : vector<8x128xf32>
    %49 = arith.truncf %48 : vector<8x128xf32> to vector<8x128xbf16>
    %c0_32 = arith.constant 0 : index
    %c0_33 = arith.constant 0 : index
    %50 = vector.load %arg14[%c0_32, %c0_33] : memref<128x128xi8, #tpu.memory_space<vmem>>, vector<128x128xi8>
    %51 = arith.sitofp %50 : vector<128x128xi8> to vector<128x128xbf16>
    %cst_34 = arith.constant dense<0.000000e+00> : vector<8x128xf32>
    %52 = tpu.matmul %49, %51, %cst_34 {dimension_numbers = #tpu.dot_dimension_numbers<[1], [0], [0], [1], [0, 0, 1, 1], [], []>} : vector<8x128xbf16>, vector<128x128xbf16>, vector<8x128xf32> -> vector<8x128xf32>
    %c0_35 = arith.constant 0 : index
    %c0_36 = arith.constant 0 : index
    %53 = vector.load %arg15[%c0_35, %c0_36] : memref<1x128xf32, #tpu.memory_space<vmem>>, vector<1x128xf32>
    %54 = vector.broadcast %53 : vector<1x128xf32> to vector<8x128xf32>
    %55 = arith.mulf %52, %54 : vector<8x128xf32>
    %c0_37 = arith.constant 0 : index
    %c0_38 = arith.constant 0 : index
    %56 = vector.load %arg16[%c0_37, %c0_38] : memref<1x128xf32, #tpu.memory_space<vmem>>, vector<1x128xf32>
    %57 = vector.broadcast %56 : vector<1x128xf32> to vector<8x128xf32>
    %58 = arith.addf %55, %57 : vector<8x128xf32>
    %59 = arith.truncf %58 : vector<8x128xf32> to vector<8x128xbf16>
    %c0_39 = arith.constant 0 : index
    %c0_40 = arith.constant 0 : index
    %60 = vector.load %arg17[%c0_39, %c0_40] : memref<8x128xbf16, #tpu.memory_space<vmem>>, vector<8x128xbf16>
    tpu.vector_store %arg17[%c0_39, %c0_40], %59 {strides = array<i32>} : memref<8x128xbf16, #tpu.memory_space<vmem>>, vector<8x128xbf16>,
    return
  }
  func.func @transform_0(%arg0: i32) -> (i32, i32) {
    %c0_i32 = arith.constant 0 : i32
    %c0_i32_0 = arith.constant 0 : i32
    return %arg0, %c0_i32 : i32, i32
  }
  func.func @transform_1(%arg0: i32) -> (i32, i32) {
    %c0_i32 = arith.constant 0 : i32
    %c0_i32_0 = arith.constant 0 : i32
    %c0_i32_1 = arith.constant 0 : i32
    return %c0_i32, %c0_i32_0 : i32, i32
  }
  func.func @transform_2(%arg0: i32) -> (i32, i32) {
    %c0_i32 = arith.constant 0 : i32
    %c0_i32_0 = arith.constant 0 : i32
    %c0_i32_1 = arith.constant 0 : i32
    return %c0_i32, %c0_i32_0 : i32, i32
  }
  func.func @transform_3(%arg0: i32) -> (i32, i32) {
    %c0_i32 = arith.constant 0 : i32
    %c0_i32_0 = arith.constant 0 : i32
    %c0_i32_1 = arith.constant 0 : i32
    return %c0_i32, %c0_i32_0 : i32, i32
  }
  func.func @transform_4(%arg0: i32) -> (i32, i32) {
    %c0_i32 = arith.constant 0 : i32
    %c0_i32_0 = arith.constant 0 : i32
    %c0_i32_1 = arith.constant 0 : i32
    return %c0_i32, %c0_i32_0 : i32, i32
  }
  func.func @transform_5(%arg0: i32) -> (i32, i32) {
    %c0_i32 = arith.constant 0 : i32
    %c0_i32_0 = arith.constant 0 : i32
    %c0_i32_1 = arith.constant 0 : i32
    return %c0_i32, %c0_i32_0 : i32, i32
  }
  func.func @transform_6(%arg0: i32) -> (i32, i32) {
    %c0_i32 = arith.constant 0 : i32
    %c0_i32_0 = arith.constant 0 : i32
    %c0_i32_1 = arith.constant 0 : i32
    return %c0_i32, %c0_i32_0 : i32, i32
  }
  func.func @transform_7(%arg0: i32) -> (i32, i32) {
    %c0_i32 = arith.constant 0 : i32
    %c0_i32_0 = arith.constant 0 : i32
    %c0_i32_1 = arith.constant 0 : i32
    return %c0_i32, %c0_i32_0 : i32, i32
  }
  func.func @transform_8(%arg0: i32) -> (i32, i32) {
    %c0_i32 = arith.constant 0 : i32
    %c0_i32_0 = arith.constant 0 : i32
    %c0_i32_1 = arith.constant 0 : i32
    return %c0_i32, %c0_i32_0 : i32, i32
  }
  func.func @transform_9(%arg0: i32) -> (i32, i32) {
    %c0_i32 = arith.constant 0 : i32
    %c0_i32_0 = arith.constant 0 : i32
    %c0_i32_1 = arith.constant 0 : i32
    return %c0_i32, %c0_i32_0 : i32, i32
  }
  func.func @transform_10(%arg0: i32) -> (i32, i32) {
    %c0_i32 = arith.constant 0 : i32
    %c0_i32_0 = arith.constant 0 : i32
    %c0_i32_1 = arith.constant 0 : i32
    return %c0_i32, %c0_i32_0 : i32, i32
  }
  func.func @transform_11(%arg0: i32) -> (i32, i32) {
    %c0_i32 = arith.constant 0 : i32
    %c0_i32_0 = arith.constant 0 : i32
    %c0_i32_1 = arith.constant 0 : i32
    return %c0_i32, %c0_i32_0 : i32, i32
  }
  func.func @transform_12(%arg0: i32) -> (i32, i32) {
    %c0_i32 = arith.constant 0 : i32
    %c0_i32_0 = arith.constant 0 : i32
    %c0_i32_1 = arith.constant 0 : i32
    return %c0_i32, %c0_i32_0 : i32, i32
  }
  func.func @transform_13(%arg0: i32) -> (i32, i32) {
    %c0_i32 = arith.constant 0 : i32
    %c0_i32_0 = arith.constant 0 : i32
    %c0_i32_1 = arith.constant 0 : i32
    return %c0_i32, %c0_i32_0 : i32, i32
  }
  func.func @transform_14(%arg0: i32) -> (i32, i32) {
    %c0_i32 = arith.constant 0 : i32
    %c0_i32_0 = arith.constant 0 : i32
    %c0_i32_1 = arith.constant 0 : i32
    return %c0_i32, %c0_i32_0 : i32, i32
  }
  func.func @transform_15(%arg0: i32) -> (i32, i32) {
    %c0_i32 = arith.constant 0 : i32
    %c0_i32_0 = arith.constant 0 : i32
    %c0_i32_1 = arith.constant 0 : i32
    return %c0_i32, %c0_i32_0 : i32, i32
  }
  func.func @transform_16(%arg0: i32) -> (i32, i32) {
    %c0_i32 = arith.constant 0 : i32
    %c0_i32_0 = arith.constant 0 : i32
    return %arg0, %c0_i32 : i32, i32
  }
}

</mosaic_0001>

<bundles_post_ra>
// kernel: tpu_custom_call.1
= control target key start
LH: loop header
LB: loop body
LE: loop exit
PB: predicated region body
PF: predicated region fallthrough
CT: control target
= control target key end

     0   :  { %s7094_s0 = inlined_call_operand.hbm [shape: f32[8,3072], index: 0, kind: input, shape index: {}]   ;;  %s7095_s1 = inlined_call_operand.hbm [shape: s8[3072,1024], index: 1, kind: input, shape index: {}]   ;;  %s7096_s2 = inlined_call_operand.hbm [shape: f32[1,1024], index: 2, kind: input, shape index: {}]   ;;  %s7097_s3 = inlined_call_operand.hbm [shape: f32[1,1024], index: 3, kind: input, shape index: {}]   ;;  %s7098_s4 = inlined_call_operand.hbm [shape: s8[1024,512], index: 4, kind: input, shape index: {}]   ;;  %s7099_s5 = inlined_call_operand.hbm [shape: f32[1,512], index: 5, kind: input, shape index: {}]   ;;  %s7100_s6 = inlined_call_operand.hbm [shape: f32[1,512], index: 6, kind: input, shape index: {}]   ;;  %s7101_s7 = inlined_call_operand.hbm [shape: s8[512,256], index: 7, kind: input, shape index: {}]   ;;  %s7102_s8 = inlined_call_operand.hbm [shape: f32[1,256], index: 8, kind: input, shape index: {}]   ;;  %s7103_s9 = inlined_call_operand.hbm [shape: f32[1,256], index: 9, kind: input, shape index: {}]   ;;  %s7104_s10 = inlined_call_operand.hbm [shape: s8[256,128], index: 10, kind: input, shape index: {}]   ;;  %s7105_s11 = inlined_call_operand.hbm [shape: f32[1,128], index: 11, kind: input, shape index: {}]   ;;  %s7106_s12 = inlined_call_operand.hbm [shape: f32[1,128], index: 12, kind: input, shape index: {}]   ;;  %s7107_s13 = inlined_call_operand.hbm [shape: s8[128,128], index: 13, kind: input, shape index: {}]   ;;  %s7108_s14 = inlined_call_operand.hbm [shape: f32[1,128], index: 14, kind: input, shape index: {}]   ;;  %s7109_s15 = inlined_call_operand.hbm [shape: f32[1,128], index: 15, kind: input, shape index: {}]   ;;  %s7110_s16 = inlined_call_operand.hbm [shape: bf16[8,128], index: 16, kind: output, shape index: {}]  }
   0x1   :  { %7113 = sst [smem:[#allocation39_spill]] %s7094_s0 }
   0x2   :  { %7114 = sst [smem:[#allocation40_spill]] %s7110_s16 }
   0x3   :  { %21 = vsyncpa [#allocation3], 0 }
   0x4   :  { %22 = vsyncpa [#allocation6], 0 }
   0x5   :  { %23 = vsyncpa [#allocation9], 0 }
   0x6   :  { %24 = vsyncpa [#allocation12], 0 }
   0x7   :  { %25 = vsyncpa [#allocation15], 0 }
   0x8   :  { %26 = vsyncpa [#allocation18], 0 }
   0x9   :  { %27 = vsyncpa [#allocation21], 0 }
   0xa   :  { %28 = vsyncpa [#allocation24], 0 }
   0xb   :  { %29 = vsyncpa [#allocation27], 0 }
   0xc   :  { %30 = vsyncpa [#allocation4], 0  ;;  %s6525_s21 = smov [#allocation5]   ;;  %s6131_s25 = scalar_lea.hbm %s7095_s1, 98304 }
   0xd   :  { %s46_s22 = sshll.u32 %s6525_s21, 4  ;;  %p6132_p0 = scmp.ne.s32.totalorder %s7095_s1, %s6131_s25  ;;  %s47_s22 = int_to_ptr.vmem [resolvable:$true] %s46_s22 }
   0xe   :  { %p6135_p1 = scmp.lt.u32.totalorder %s6131_s25, %s7095_s1 }
  0x10   :  { %p6137_p2 = pnand %p6135_p1, %p6132_p0 }
  0x12   :  { %6140 = shalt.err (!%p6137_p2)
}
  0x13   :  { %s6141_s30 = scalar_lea.vmem %s47_s22, 98304  ;;  %p6146_p4 = scmp.lt.s32.totalorder %s47_s22, %s47_s22 }
  0x14   :  { %p6142_p3 = scmp.ne.s32.totalorder %s47_s22, %s6141_s30  ;;  %p6147_p5 = scmp.lt.s32.totalorder %s6141_s30, %s6141_s30 }
  0x16   :  { %p6148_p6 = por %p6147_p5, %p6146_p4 }
  0x18   :  { %p6149_p7 = pnand %p6148_p6, %p6142_p3 }
  0x1a   :  { %6152 = shalt.err (!%p6149_p7)
}
  0x1b   :  { %s6526_s0 = smov 1024   ;;  %s6527_s17 = smov 64  }
  0x1c   :  { %52 = dma.hbm_to_vmem [thread:$0]  %s7095_s1, 98304, %s47_s22, [#allocation6], %s6526_s0, %s6526_s0, %s6527_s17  }
  0x1d   :  { %s6528_s20 = smov [#allocation8]   ;;  %s6529_s23 = smov [#allocation11]  }
  0x1e   :  { %s69_s21 = sshll.u32 %s6528_s20, 4  ;;  %s91_s24 = sshll.u32 %s6529_s23, 4  ;;  %s70_s21 = int_to_ptr.vmem [resolvable:$true] %s69_s21  ;;  %s92_s24 = int_to_ptr.vmem [resolvable:$true] %s91_s24 }
  0x1f   :  { %s6153_s27 = scalar_lea.hbm %s7097_s3, 128 }
  0x20   :  { %p6154_p8 = scmp.ne.s32.totalorder %s7097_s3, %s6153_s27  ;;  %p6157_p9 = scmp.lt.u32.totalorder %s6153_s27, %s7097_s3 }
  0x22   :  { %p6159_p10 = pnand %p6157_p9, %p6154_p8 }
  0x24   :  { %6162 = shalt.err (!%p6159_p10)
}
  0x25   :  { %s6163_s1 = scalar_lea.vmem %s70_s21, 128  ;;  %p6168_p12 = scmp.lt.s32.totalorder %s70_s21, %s70_s21 }
  0x26   :  { %p6164_p11 = scmp.ne.s32.totalorder %s70_s21, %s6163_s1  ;;  %p6169_p13 = scmp.lt.s32.totalorder %s6163_s1, %s6163_s1 }
  0x28   :  { %p6170_p0 = por %p6169_p13, %p6168_p12 }
  0x2a   :  { %p6171_p1 = pnand %p6170_p0, %p6164_p11 }
  0x2c   :  { %6174 = shalt.err (!%p6171_p1)
}
  0x2d   :  { %72 = dma.hbm_to_vmem [thread:$0]  %s7097_s3, 128, %s70_s21, [#allocation9]  }
  0x2e   :  { %s6175_s19 = scalar_lea.hbm %s7099_s5, 64 }
  0x2f   :  { %p6176_p2 = scmp.ne.s32.totalorder %s7099_s5, %s6175_s19  ;;  %p6179_p3 = scmp.lt.u32.totalorder %s6175_s19, %s7099_s5 }
  0x31   :  { %p6181_p4 = pnand %p6179_p3, %p6176_p2 }
  0x33   :  { %6184 = shalt.err (!%p6181_p4)
}
  0x34   :  { %s6185_s26 = scalar_lea.vmem %s92_s24, 64  ;;  %p6190_p6 = scmp.lt.s32.totalorder %s92_s24, %s92_s24 }
  0x35   :  { %p6186_p5 = scmp.ne.s32.totalorder %s92_s24, %s6185_s26  ;;  %p6191_p7 = scmp.lt.s32.totalorder %s6185_s26, %s6185_s26 }
  0x37   :  { %p6192_p8 = por %p6191_p7, %p6190_p6 }
  0x39   :  { %p6193_p9 = pnand %p6192_p8, %p6186_p5 }
  0x3b   :  { %6196 = shalt.err (!%p6193_p9)
}
  0x3c   :  { %94 = dma.hbm_to_vmem [thread:$0]  %s7099_s5, 64, %s92_s24, [#allocation12]  }
  0x3d   :  { %s6530_s27 = smov [#allocation14]   ;;  %s6197_s1 = scalar_lea.hbm %s7101_s7, 4096 }
  0x3e   :  { %s110_s28 = sshll.u32 %s6530_s27, 4  ;;  %p6198_p10 = scmp.ne.s32.totalorder %s7101_s7, %s6197_s1  ;;  %s111_s28 = int_to_ptr.vmem [resolvable:$true] %s110_s28 }
  0x3f   :  { %p6201_p11 = scmp.lt.u32.totalorder %s6197_s1, %s7101_s7 }
  0x41   :  { %p6203_p12 = pnand %p6201_p11, %p6198_p10 }
  0x43   :  { %6206 = shalt.err (!%p6203_p12)
}
  0x44   :  { %s6207_s19 = scalar_lea.vmem %s111_s28, 4096  ;;  %p6212_p0 = scmp.lt.s32.totalorder %s111_s28, %s111_s28 }
  0x45   :  { %p6208_p13 = scmp.ne.s32.totalorder %s111_s28, %s6207_s19  ;;  %p6213_p1 = scmp.lt.s32.totalorder %s6207_s19, %s6207_s19 }
  0x47   :  { %p6214_p2 = por %p6213_p1, %p6212_p0 }
  0x49   :  { %p6215_p3 = pnand %p6214_p2, %p6208_p13 }
  0x4b   :  { %6218 = shalt.err (!%p6215_p3)
}
  0x4c   :  { %s6531_s5 = smov 256   ;;  %s6532_s24 = smov 16  }
  0x4d   :  { %116 = dma.hbm_to_vmem [thread:$0]  %s7101_s7, 4096, %s111_s28, [#allocation15], %s6531_s5, %s6531_s5, %s6532_s24  }
  0x4e   :  { %s6533_s23 = smov [#allocation17]   ;;  %s6534_s26 = smov [#allocation20]  }
  0x4f   :  { %s133_s25 = sshll.u32 %s6533_s23, 4  ;;  %s155_s3 = sshll.u32 %s6534_s26, 4  ;;  %s134_s25 = int_to_ptr.vmem [resolvable:$true] %s133_s25  ;;  %s156_s3 = int_to_ptr.vmem [resolvable:$true] %s155_s3 }
  0x50   :  { %s6219_s29 = scalar_lea.hbm %s7103_s9, 32 }
  0x51   :  { %p6220_p4 = scmp.ne.s32.totalorder %s7103_s9, %s6219_s29  ;;  %p6223_p5 = scmp.lt.u32.totalorder %s6219_s29, %s7103_s9 }
  0x53   :  { %p6225_p6 = pnand %p6223_p5, %p6220_p4 }
  0x55   :  { %6228 = shalt.err (!%p6225_p6)
}
  0x56   :  { %s6229_s7 = scalar_lea.vmem %s134_s25, 32  ;;  %p6234_p8 = scmp.lt.s32.totalorder %s134_s25, %s134_s25 }
  0x57   :  { %p6230_p7 = scmp.ne.s32.totalorder %s134_s25, %s6229_s7  ;;  %p6235_p9 = scmp.lt.s32.totalorder %s6229_s7, %s6229_s7 }
  0x59   :  { %p6236_p10 = por %p6235_p9, %p6234_p8 }
  0x5b   :  { %p6237_p11 = pnand %p6236_p10, %p6230_p7 }
  0x5d   :  { %6240 = shalt.err (!%p6237_p11)
}
  0x5e   :  { %136 = dma.hbm_to_vmem [thread:$0]  %s7103_s9, 32, %s134_s25, [#allocation18]  }
  0x5f   :  { %s6241_s5 = scalar_lea.hbm %s7105_s11, 16 }
  0x60   :  { %p6242_p12 = scmp.ne.s32.totalorder %s7105_s11, %s6241_s5  ;;  %p6245_p13 = scmp.lt.u32.totalorder %s6241_s5, %s7105_s11 }
  0x62   :  { %p6247_p0 = pnand %p6245_p13, %p6242_p12 }
  0x64   :  { %6250 = shalt.err (!%p6247_p0)
}
  0x65   :  { %s6251_s26 = scalar_lea.vmem %s156_s3, 16  ;;  %s6255_s21 = scalar_lea.vmem %s156_s3, 32 }
  0x66   :  { %p6252_p1 = scmp.ne.s32.totalorder %s156_s3, %s6251_s26  ;;  %p6256_p2 = scmp.lt.s32.totalorder %s156_s3, %s156_s3 }
  0x67   :  { %p6257_p3 = scmp.lt.s32.totalorder %s6255_s21, %s6251_s26 }
  0x69   :  { %p6258_p4 = por %p6257_p3, %p6256_p2 }
  0x6b   :  { %p6259_p5 = pnand %p6258_p4, %p6252_p1 }
  0x6d   :  { %6262 = shalt.err (!%p6259_p5)
}
  0x6e   :  { %158 = dma.hbm_to_vmem [thread:$0]  %s7105_s11, 16, %s156_s3, [#allocation21]  }
  0x6f   :  { %s6535_s27 = smov [#allocation23]   ;;  %s6536_s30 = smov [#allocation2]  }
  0x70   :  { %s174_s29 = sshll.u32 %s6535_s27, 4  ;;  %s37_s1 = sshll.u32 %s6536_s30, 4  ;;  %s175_s29 = int_to_ptr.vmem [resolvable:$true] %s174_s29  ;;  %s38_s1 = int_to_ptr.vmem [resolvable:$true] %s37_s1 }
  0x71   :  { %s6263_s7 = scalar_lea.hbm %s7107_s13, 512 }
  0x72   :  { %p6264_p6 = scmp.ne.s32.totalorder %s7107_s13, %s6263_s7  ;;  %p6267_p7 = scmp.lt.u32.totalorder %s6263_s7, %s7107_s13 }
  0x74   :  { %p6269_p8 = pnand %p6267_p7, %p6264_p6 }
  0x76   :  { %6272 = shalt.err (!%p6269_p8)
}
  0x77   :  { %s6273_s11 = scalar_lea.vmem %s175_s29, 512  ;;  %p6278_p10 = scmp.lt.s32.totalorder %s175_s29, %s175_s29 }
  0x78   :  { %p6274_p9 = scmp.ne.s32.totalorder %s175_s29, %s6273_s11  ;;  %p6279_p11 = scmp.lt.s32.totalorder %s6273_s11, %s6273_s11 }
  0x7a   :  { %p6280_p12 = por %p6279_p11, %p6278_p10 }
  0x7c   :  { %p6281_p13 = pnand %p6280_p12, %p6274_p9 }
  0x7e   :  { %6284 = shalt.err (!%p6281_p13)
}
  0x7f   :  { %s6537_s3 = smov 128   ;;  %s6538_s5 = smov 8  }
  0x80   :  { %180 = dma.hbm_to_vmem [thread:$0]  %s7107_s13, 512, %s175_s29, [#allocation24], %s6537_s3, %s6537_s3, %s6538_s5  }
  0x81   :  { %s7115_s26 = sld [smem:[#allocation39_spill]] }
  0x87   :  { %s6285_s21 = scalar_lea.hbm %s7115_s26, 3072 }
  0x88   :  { %p6286_p0 = scmp.ne.s32.totalorder %s7115_s26, %s6285_s21  ;;  %p6289_p1 = scmp.lt.u32.totalorder %s6285_s21, %s7115_s26 }
  0x8a   :  { %p6291_p2 = pnand %p6289_p1, %p6286_p0 }
  0x8c   :  { %6294 = shalt.err (!%p6291_p2)
}
  0x8d   :  { %s6295_s22 = scalar_lea.vmem %s38_s1, 3072  ;;  %p6300_p4 = scmp.lt.s32.totalorder %s38_s1, %s38_s1 }
  0x8e   :  { %p6296_p3 = scmp.ne.s32.totalorder %s38_s1, %s6295_s22  ;;  %p6301_p5 = scmp.lt.s32.totalorder %s6295_s22, %s6295_s22 }
  0x90   :  { %p6302_p6 = por %p6301_p5, %p6300_p4 }
  0x92   :  { %p6303_p7 = pnand %p6302_p6, %p6296_p3 }
  0x94   :  { %6306 = shalt.err (!%p6303_p7)
}
  0x95   :  { %40 = dma.hbm_to_vmem [thread:$0]  %s7115_s26, 3072, %s38_s1, [#allocation3]  }
  0x96   :  { %s6539_s0 = smov [#allocation7]   ;;  %s6540_s28 = smov [#allocation10]  }
  0x97   :  { %s59_s7 = sshll.u32 %s6539_s0, 4  ;;  %s78_s17 = sshll.u32 %s6540_s28, 4  ;;  %s60_s7 = int_to_ptr.vmem [resolvable:$true] %s59_s7  ;;  %s6736_s17 = int_to_ptr.vmem [resolvable:$true] %s78_s17 }
  0x98   :  { %s6307_s11 = scalar_lea.hbm %s7096_s2, 128 }
  0x99   :  { %p6308_p8 = scmp.ne.s32.totalorder %s7096_s2, %s6307_s11  ;;  %p6311_p9 = scmp.lt.u32.totalorder %s6307_s11, %s7096_s2 }
  0x9b   :  { %p6313_p10 = pnand %p6311_p9, %p6308_p8 }
  0x9d   :  { %6316 = shalt.err (!%p6313_p10)
}
  0x9e   :  { %s6317_s1 = scalar_lea.vmem %s60_s7, 128  ;;  %p6322_p12 = scmp.lt.s32.totalorder %s60_s7, %s60_s7 }
  0x9f   :  { %p6318_p11 = scmp.ne.s32.totalorder %s60_s7, %s6317_s1  ;;  %p6323_p13 = scmp.lt.s32.totalorder %s6317_s1, %s6317_s1 }
  0xa1   :  { %p6324_p0 = por %p6323_p13, %p6322_p12 }
  0xa3   :  { %p6325_p1 = pnand %p6324_p0, %p6318_p11 }
  0xa5   :  { %6328 = shalt.err (!%p6325_p1)
}
  0xa6   :  { %62 = dma.hbm_to_vmem [thread:$0]  %s7096_s2, 128, %s60_s7, [#allocation6]  }
  0xa7   :  { %s6329_s27 = scalar_lea.hbm %s7098_s4, 16384 }
  0xa8   :  { %p6330_p2 = scmp.ne.s32.totalorder %s7098_s4, %s6329_s27  ;;  %p6333_p3 = scmp.lt.u32.totalorder %s6329_s27, %s7098_s4 }
  0xaa   :  { %p6335_p4 = pnand %p6333_p3, %p6330_p2 }
  0xac   :  { %6338 = shalt.err (!%p6335_p4)
}
  0xad   :  { %s6339_s0 = scalar_lea.vmem %s6736_s17, 16384  ;;  %p6344_p6 = scmp.lt.s32.totalorder %s6736_s17, %s6736_s17 }
  0xae   :  { %p6340_p5 = scmp.ne.s32.totalorder %s6736_s17, %s6339_s0  ;;  %p6345_p7 = scmp.lt.s32.totalorder %s6339_s0, %s6339_s0 }
  0xb0   :  { %p6346_p8 = por %p6345_p7, %p6344_p6 }
  0xb2   :  { %p6347_p9 = pnand %p6346_p8, %p6340_p5 }
  0xb4   :  { %6350 = shalt.err (!%p6347_p9)
}
  0xb5   :  { %s6541_s2 = smov 512   ;;  %s6542_s7 = smov 32  }
  0xb6   :  { %84 = dma.hbm_to_vmem [thread:$0]  %s7098_s4, 16384, %s6736_s17, [#allocation9], %s6541_s2, %s6541_s2, %s6542_s7  }
  0xb7   :  { %s6543_s19 = smov [#allocation13]   ;;  %s6544_s24 = smov [#allocation16]  }
  0xb8   :  { %s101_s11 = sshll.u32 %s6543_s19, 4  ;;  %s123_s16 = sshll.u32 %s6544_s24, 4  ;;  %s102_s11 = int_to_ptr.vmem [resolvable:$true] %s101_s11  ;;  %s124_s16 = int_to_ptr.vmem [resolvable:$true] %s123_s16 }
  0xb9   :  { %s6351_s1 = scalar_lea.hbm %s7100_s6, 64 }
  0xba   :  { %p6352_p10 = scmp.ne.s32.totalorder %s7100_s6, %s6351_s1  ;;  %p6355_p11 = scmp.lt.u32.totalorder %s6351_s1, %s7100_s6 }
  0xbc   :  { %p6357_p12 = pnand %p6355_p11, %p6352_p10 }
  0xbe   :  { %6360 = shalt.err (!%p6357_p12)
}
  0xbf   :  { %s6361_s4 = scalar_lea.vmem %s102_s11, 64  ;;  %p6366_p0 = scmp.lt.s32.totalorder %s102_s11, %s102_s11 }
  0xc0   :  { %p6362_p13 = scmp.ne.s32.totalorder %s102_s11, %s6361_s4  ;;  %p6367_p1 = scmp.lt.s32.totalorder %s6361_s4, %s6361_s4 }
  0xc2   :  { %p6368_p2 = por %p6367_p1, %p6366_p0 }
  0xc4   :  { %p6369_p3 = pnand %p6368_p2, %p6362_p13 }
  0xc6   :  { %6372 = shalt.err (!%p6369_p3)
}
  0xc7   :  { %104 = dma.hbm_to_vmem [thread:$0]  %s7100_s6, 64, %s102_s11, [#allocation12]  }
  0xc8   :  { %s6373_s13 = scalar_lea.hbm %s7102_s8, 32 }
  0xc9   :  { %p6374_p4 = scmp.ne.s32.totalorder %s7102_s8, %s6373_s13  ;;  %p6377_p5 = scmp.lt.u32.totalorder %s6373_s13, %s7102_s8 }
  0xcb   :  { %p6379_p6 = pnand %p6377_p5, %p6374_p4 }
  0xcd   :  { %6382 = shalt.err (!%p6379_p6)
}
  0xce   :  { %s6383_s28 = scalar_lea.vmem %s124_s16, 32  ;;  %p6388_p8 = scmp.lt.s32.totalorder %s124_s16, %s124_s16 }
  0xcf   :  { %p6384_p7 = scmp.ne.s32.totalorder %s124_s16, %s6383_s28  ;;  %p6389_p9 = scmp.lt.s32.totalorder %s6383_s28, %s6383_s28 }
  0xd1   :  { %p6390_p10 = por %p6389_p9, %p6388_p8 }
  0xd3   :  { %p6391_p11 = pnand %p6390_p10, %p6384_p7 }
  0xd5   :  { %6394 = shalt.err (!%p6391_p11)
}
  0xd6   :  { %126 = dma.hbm_to_vmem [thread:$0]  %s7102_s8, 32, %s124_s16, [#allocation15]  }
  0xd7   :  { %s6545_s19 = smov [#allocation19]   ;;  %s6546_s24 = smov [#allocation22]  }
  0xd8   :  { %s142_s11 = sshll.u32 %s6545_s19, 4  ;;  %s165_s20 = sshll.u32 %s6546_s24, 4  ;;  %s143_s11 = int_to_ptr.vmem [resolvable:$true] %s142_s11  ;;  %s166_s20 = int_to_ptr.vmem [resolvable:$true] %s165_s20 }
  0xd9   :  { %s6395_s26 = scalar_lea.hbm %s7104_s10, 1024 }
  0xda   :  { %p6396_p12 = scmp.ne.s32.totalorder %s7104_s10, %s6395_s26  ;;  %p6399_p13 = scmp.lt.u32.totalorder %s6395_s26, %s7104_s10 }
  0xdc   :  { %p6401_p0 = pnand %p6399_p13, %p6396_p12 }
  0xde   :  { %6404 = shalt.err (!%p6401_p0)
}
  0xdf   :  { %s6405_s8 = scalar_lea.vmem %s143_s11, 1024  ;;  %p6410_p2 = scmp.lt.s32.totalorder %s143_s11, %s143_s11 }
  0xe0   :  { %p6406_p1 = scmp.ne.s32.totalorder %s143_s11, %s6405_s8  ;;  %p6411_p3 = scmp.lt.s32.totalorder %s6405_s8, %s6405_s8 }
  0xe2   :  { %p6412_p4 = por %p6411_p3, %p6410_p2 }
  0xe4   :  { %p6413_p5 = pnand %p6412_p4, %p6406_p1 }
  0xe6   :  { %6416 = shalt.err (!%p6413_p5)
}
  0xe7   :  { %148 = dma.hbm_to_vmem [thread:$0]  %s7104_s10, 1024, %s143_s11, [#allocation18], %s6537_s3, %s6537_s3, %s6538_s5  }
  0xe8   :  { %s6417_s22 = scalar_lea.hbm %s7106_s12, 16 }
  0xe9   :  { %p6418_p6 = scmp.ne.s32.totalorder %s7106_s12, %s6417_s22  ;;  %p6421_p7 = scmp.lt.u32.totalorder %s6417_s22, %s7106_s12 }
  0xeb   :  { %p6423_p8 = pnand %p6421_p7, %p6418_p6 }
  0xed   :  { %6426 = shalt.err (!%p6423_p8)
}
  0xee   :  { %s6427_s7 = scalar_lea.vmem %s166_s20, 16  ;;  %s6431_s28 = scalar_lea.vmem %s166_s20, 32 }
  0xef   :  { %p6428_p9 = scmp.ne.s32.totalorder %s166_s20, %s6427_s7  ;;  %p6432_p10 = scmp.lt.s32.totalorder %s166_s20, %s166_s20 }
  0xf0   :  { %p6433_p11 = scmp.lt.s32.totalorder %s6431_s28, %s6427_s7 }
  0xf2   :  { %p6434_p12 = por %p6433_p11, %p6432_p10 }
  0xf4   :  { %p6435_p13 = pnand %p6434_p12, %p6428_p9 }
  0xf6   :  { %6438 = shalt.err (!%p6435_p13)
}
  0xf7   :  { %168 = dma.hbm_to_vmem [thread:$0]  %s7106_s12, 16, %s166_s20, [#allocation21]  }
  0xf8   :  { %s6547_s5 = smov [#allocation25]   ;;  %s6548_s18 = smov [#allocation26]  }
  0xf9   :  { %s187_s6 = sshll.u32 %s6547_s5, 4  ;;  %s197_s19 = sshll.u32 %s6548_s18, 4  ;;  %s188_s6 = int_to_ptr.vmem [resolvable:$true] %s187_s6  ;;  %s198_s19 = int_to_ptr.vmem [resolvable:$true] %s197_s19 }
  0xfa   :  { %s6439_s23 = scalar_lea.hbm %s7108_s14, 16 }
  0xfb   :  { %p6440_p0 = scmp.ne.s32.totalorder %s7108_s14, %s6439_s23  ;;  %p6443_p1 = scmp.lt.u32.totalorder %s6439_s23, %s7108_s14 }
  0xfd   :  { %p6445_p2 = pnand %p6443_p1, %p6440_p0 }
  0xff   :  { %6448 = shalt.err (!%p6445_p2)
}
 0x100   :  { %s6449_s12 = scalar_lea.vmem %s188_s6, 16  ;;  %s6453_s20 = scalar_lea.vmem %s188_s6, 32 }
 0x101   :  { %p6450_p3 = scmp.ne.s32.totalorder %s188_s6, %s6449_s12  ;;  %p6454_p4 = scmp.lt.s32.totalorder %s188_s6, %s188_s6 }
 0x102   :  { %p6455_p5 = scmp.lt.s32.totalorder %s6453_s20, %s6449_s12 }
 0x104   :  { %p6456_p6 = por %p6455_p5, %p6454_p4 }
 0x106   :  { %p6457_p7 = pnand %p6456_p6, %p6450_p3 }
 0x108   :  { %6460 = shalt.err (!%p6457_p7)
}
 0x109   :  { %190 = dma.hbm_to_vmem [thread:$0]  %s7108_s14, 16, %s188_s6, [#allocation24]  }
 0x10a   :  { %s6461_s17 = scalar_lea.hbm %s7109_s15, 16 }
 0x10b   :  { %p6462_p8 = scmp.ne.s32.totalorder %s7109_s15, %s6461_s17  ;;  %p6465_p9 = scmp.lt.u32.totalorder %s6461_s17, %s7109_s15 }
 0x10d   :  { %p6467_p10 = pnand %p6465_p9, %p6462_p8 }
 0x10f   :  { %6470 = shalt.err (!%p6467_p10)
}
 0x110   :  { %s6471_s29 = scalar_lea.vmem %s198_s19, 16  ;;  %s6475_s0 = scalar_lea.vmem %s198_s19, 32 }
 0x111   :  { %p6472_p11 = scmp.ne.s32.totalorder %s198_s19, %s6471_s29  ;;  %p6476_p12 = scmp.lt.s32.totalorder %s198_s19, %s198_s19 }
 0x112   :  { %p6477_p13 = scmp.lt.s32.totalorder %s6475_s0, %s6471_s29 }
 0x114   :  { %p6478_p0 = por %p6477_p13, %p6476_p12 }
 0x116   :  { %p6479_p1 = pnand %p6478_p0, %p6472_p11 }
 0x118   :  { %6482 = shalt.err (!%p6479_p1)
}
 0x119   :  { %200 = dma.hbm_to_vmem [thread:$0]  %s7109_s15, 16, %s198_s19, [#allocation27]  }
 0x11a   :  { %6505 = dma.done.wait [#allocation3], 3072  }
 0x11b   :  { %6506 = vsyncadd [#allocation3], 4294964224 }
 0x11c   :  { %6507 = dma.done.wait [#allocation6], 98432  }
 0x11d   :  { %6508 = vsyncadd [#allocation6], 4294868864 }
 0x11e   :  { %6509 = dma.done.wait [#allocation9], 16512  }
 0x11f   :  { %6510 = vsyncadd [#allocation9], 4294950784 }
 0x120   :  { %6511 = dma.done.wait [#allocation12], 128  }
 0x121   :  { %6512 = vsyncadd [#allocation12], 4294967168 }
 0x122   :  { %6513 = dma.done.wait [#allocation15], 4128  }
 0x123   :  { %6514 = vsyncadd [#allocation15], 4294963168 }
 0x124   :  { %6515 = dma.done.wait [#allocation18], 1056  }
 0x125   :  { %6516 = vsyncadd [#allocation18], 4294966240 }
 0x126   :  { %6517 = dma.done.wait [#allocation21], 32  }
 0x127   :  { %6518 = vsyncadd [#allocation21], 4294967264 }
 0x128   :  { %6519 = dma.done.wait [#allocation24], 528  }
 0x129   :  { %6520 = vsyncadd [#allocation24], 4294966768 }
 0x12a   :  { %6521 = dma.done.wait [#allocation27], 16  }
 0x12b   :  { %6522 = vsyncadd [#allocation27], 4294967280  ;;  %v299_v0 = vld [vmem:[#allocation5 + $0x8] sm:$0xff]  ;;  %v301_v1 = vld [vmem:[#allocation5 + $0x18] sm:$0xff]  ;;  %vm6550_vm0 = vmmov 0   ;;  %s6551_s15 = smov [#allocation28]  }
 0x12c   :  { %v298_v2 = vld [vmem:[#allocation5] sm:$0xff]  ;;  %v1067_v3 = vunpack.c.l.s8.bf16 %v299_v0  ;;  %v1075_v4 = vunpack.c.h.s8.bf16 %v299_v0  ;;  %v1069_v5 = vunpack.c.l.s8.bf16 %v301_v1  ;;  %v1077_v6 = vunpack.c.h.s8.bf16 %v301_v1  ;;  %v300_v7 = vld [vmem:[#allocation5 + $0x10] sm:$0xff]  ;;  %v307_v10 = vld [vmem:[#allocation5 + $0x48] sm:$0xff]  ;;  %s5826_s7 = sshll.u32 %s6551_s15, 4  ;;  %s5827_s7 = int_to_ptr.vmem [resolvable:$true] %s5826_s7 }
 0x12d   :  { %v1066_v8 = vunpack.c.l.s8.bf16 %v298_v2  ;;  %v1068_v9 = vunpack.c.l.s8.bf16 %v300_v7  ;;  %v309_v11 = vld [vmem:[#allocation5 + $0x58] sm:$0xff]  ;;  %v1074_v12 = vunpack.c.h.s8.bf16 %v298_v2  ;;  %v1076_v13 = vunpack.c.h.s8.bf16 %v300_v7  ;;  %v306_v16 = vld [vmem:[#allocation5 + $0x40] sm:$0xff]  ;;  %v308_v17 = vld [vmem:[#allocation5 + $0x50] sm:$0xff]  ;;  %s6483_s28 = scalar_lea.vmem %s5827_s7, 64  ;;  %p6488_p3 = scmp.lt.s32.totalorder %s5827_s7, %s5827_s7 }
 0x12e   :  { %2602 = vmatprep.subr.bf16.mxu0 %v1067_v3  ;;  %3094 = vmatprep.subr.bf16.mxu1 %v1069_v5  ;;  %v1083_v14 = vunpack.c.l.s8.bf16 %v307_v10  ;;  %v1085_v15 = vunpack.c.l.s8.bf16 %v309_v11  ;;  %v1082_v18 = vunpack.c.l.s8.bf16 %v306_v16  ;;  %v1084_v19 = vunpack.c.l.s8.bf16 %v308_v17  ;;  %v315_v22 = vld [vmem:[#allocation5 + $0x88] sm:$0xff]  ;;  %v317_v23 = vld [vmem:[#allocation5 + $0x98] sm:$0xff]  ;;  %v314_v28 = vld [vmem:[#allocation5 + $0x80] sm:$0xff]  ;;  %p6484_p2 = scmp.ne.s32.totalorder %s5827_s7, %s6483_s28  ;;  %p6489_p4 = scmp.lt.s32.totalorder %s6483_s28, %s6483_s28 }
 0x12f   :  { %2603 = vmatpush1.bf16.msra.mxu0 %v1066_v8  ;;  %3095 = vmatpush1.bf16.msra.mxu1 %v1068_v9  ;;  %v1091_v20 = vunpack.c.h.s8.bf16 %v307_v10  ;;  %v1093_v21 = vunpack.c.h.s8.bf16 %v309_v11  ;;  %v1090_v24 = vunpack.c.h.s8.bf16 %v306_v16  ;;  %v1092_v25 = vunpack.c.h.s8.bf16 %v308_v17  ;;  %v316_v29 = vld [vmem:[#allocation5 + $0x90] sm:$0xff]  ;;  %v251_v30 = vld [vmem:[#allocation2 + $0x8] sm:$0xff]  ;;  %v325_v37 = vld [vmem:[#allocation5 + $0xd8] sm:$0xff] }
 0x130   :  { %2604 = vmatprep.subr.bf16.mxu0 %v1075_v4  ;;  %3096 = vmatprep.subr.bf16.mxu1 %v1077_v6  ;;  %v1099_v26 = vunpack.c.l.s8.bf16 %v315_v22  ;;  %v1101_v27 = vunpack.c.l.s8.bf16 %v317_v23  ;;  %v1098_v31 = vunpack.c.l.s8.bf16 %v314_v28  ;;  %v1100_v32 = vunpack.c.l.s8.bf16 %v316_v29  ;;  %v323_v36 = vld [vmem:[#allocation5 + $0xc8] sm:$0xff]  ;;  %v322_v42 = vld [vmem:[#allocation5 + $0xc0] sm:$0xff]  ;;  %v324_v43 = vld [vmem:[#allocation5 + $0xd0] sm:$0xff]  ;;  %p6490_p5 = por %p6489_p4, %p6488_p3 }
 0x131   :  { %v1107_v33 = vunpack.c.h.s8.bf16 %v315_v22  ;;  %v1109_v34 = vunpack.c.h.s8.bf16 %v317_v23  ;;  %v6842_v35 = vpack.c.bf16 %v251_v30, %v251_v30  ;;  %v1106_v38 = vunpack.c.h.s8.bf16 %v314_v28  ;;  %v331_v48 = vld [vmem:[#allocation5 + $0x108] sm:$0xff]  ;;  %v333_v49 = vld [vmem:[#allocation5 + $0x118] sm:$0xff]  ;;  %v330_v54 = vld [vmem:[#allocation5 + $0x100] sm:$0xff] }
 0x132   :  { %v1108_v39 = vunpack.c.h.s8.bf16 %v316_v29  ;;  %v1115_v40 = vunpack.c.l.s8.bf16 %v323_v36  ;;  %v1117_v41 = vunpack.c.l.s8.bf16 %v325_v37  ;;  %v1114_v44 = vunpack.c.l.s8.bf16 %v322_v42  ;;  %v332_v55 = vld [vmem:[#allocation5 + $0x110] sm:$0xff]  ;;  %v339_v60 = vld [vmem:[#allocation5 + $0x148] sm:$0xff]  ;;  %v341_v61 = vld [vmem:[#allocation5 + $0x158] sm:$0xff]  ;;  %p6491_p6 = pnand %p6490_p5, %p6484_p2 }
 0x133   :  { %2605 = vmatpush1.bf16.msra.mxu0 %v1074_v12  ;;  %3097 = vmatpush1.bf16.msra.mxu1 %v1076_v13  ;;  %v1116_v45 = vunpack.c.l.s8.bf16 %v324_v43  ;;  %v1123_v46 = vunpack.c.h.s8.bf16 %v323_v36  ;;  %v1125_v47 = vunpack.c.h.s8.bf16 %v325_v37  ;;  %v1122_v50 = vunpack.c.h.s8.bf16 %v322_v42  ;;  %v338_v2 = vld [vmem:[#allocation5 + $0x140] sm:$0xff]  ;;  %v340_v3 = vld [vmem:[#allocation5 + $0x150] sm:$0xff]  ;;  %v347_v8 = vld [vmem:[#allocation5 + $0x188] sm:$0xff] }
 0x134   :  { %2606 = vmatprep.subr.bf16.mxu0 %v1083_v14  ;;  %3098 = vmatprep.subr.bf16.mxu1 %v1085_v15  ;;  %v1124_v51 = vunpack.c.h.s8.bf16 %v324_v43  ;;  %v1131_v52 = vunpack.c.l.s8.bf16 %v331_v48  ;;  %v1133_v53 = vunpack.c.l.s8.bf16 %v333_v49  ;;  %v1130_v56 = vunpack.c.l.s8.bf16 %v330_v54  ;;  %v349_v9 = vld [vmem:[#allocation5 + $0x198] sm:$0xff]  ;;  %v346_v14 = vld [vmem:[#allocation5 + $0x180] sm:$0xff]  ;;  %v348_v15 = vld [vmem:[#allocation5 + $0x190] sm:$0xff] }
 0x135   :  { %2634 = vmatprep.mubr.bf16.mxu0 %v6842_v35  ;;  %3126 = vmatprep.mubr.bf16.mxu1 %v6842_v35  ;;  %v1132_v57 = vunpack.c.l.s8.bf16 %v332_v55  ;;  %v1139_v58 = vunpack.c.h.s8.bf16 %v331_v48  ;;  %v1141_v59 = vunpack.c.h.s8.bf16 %v333_v49  ;;  %v1138_v62 = vunpack.c.h.s8.bf16 %v330_v54  ;;  %v250_v37 = vld [vmem:[#allocation2] sm:$0xff]  ;;  %v253_v43 = vld [vmem:[#allocation2 + $0x18] sm:$0xff]  ;;  %v371_v48 = vld [vmem:[#allocation5 + $0x248] sm:$0xff] }
 0x136   :  { %v1140_v63 = vunpack.c.h.s8.bf16 %v332_v55  ;;  %v1147_v0 = vunpack.c.l.s8.bf16 %v339_v60  ;;  %v1149_v1 = vunpack.c.l.s8.bf16 %v341_v61  ;;  %v1146_v4 = vunpack.c.l.s8.bf16 %v338_v2  ;;  %v373_v49 = vld [vmem:[#allocation5 + $0x258] sm:$0xff]  ;;  %v370_v55 = vld [vmem:[#allocation5 + $0x240] sm:$0xff] }
 0x137   :  { %2607 = vmatpush1.bf16.msra.mxu0 %v1082_v18  ;;  %3099 = vmatpush1.bf16.msra.mxu1 %v1084_v19  ;;  %v1148_v5 = vunpack.c.l.s8.bf16 %v340_v3  ;;  %v1155_v6 = vunpack.c.h.s8.bf16 %v339_v60  ;;  %v1157_v7 = vunpack.c.h.s8.bf16 %v341_v61  ;;  %v1154_v10 = vunpack.c.h.s8.bf16 %v338_v2  ;;  %v379_v61 = vld [vmem:[#allocation5 + $0x288] sm:$0xff] }
 0x138   :  { %2608 = vmatprep.subr.bf16.mxu0 %v1091_v20  ;;  %3100 = vmatprep.subr.bf16.mxu1 %v1093_v21  ;;  %v1156_v11 = vunpack.c.h.s8.bf16 %v340_v3  ;;  %v1163_v12 = vunpack.c.l.s8.bf16 %v347_v8  ;;  %v1165_v13 = vunpack.c.l.s8.bf16 %v349_v9  ;;  %v1162_v16 = vunpack.c.l.s8.bf16 %v346_v14  ;;  %v355_v20 = vld [vmem:[#allocation5 + $0x1c8] sm:$0xff]  ;;  %v357_v21 = vld [vmem:[#allocation5 + $0x1d8] sm:$0xff]  ;;  %v378_v3 = vld [vmem:[#allocation5 + $0x280] sm:$0xff] }
 0x139   :  { %v1164_v17 = vunpack.c.l.s8.bf16 %v348_v15  ;;  %v1171_v18 = vunpack.c.h.s8.bf16 %v347_v8  ;;  %v1173_v19 = vunpack.c.h.s8.bf16 %v349_v9  ;;  %v1170_v22 = vunpack.c.h.s8.bf16 %v346_v14  ;;  %v387_v9 = vld [vmem:[#allocation5 + $0x2c8] sm:$0xff] }
 0x13a   :  { %v1172_v23 = vunpack.c.h.s8.bf16 %v348_v15  ;;  %v1187_v30 = vunpack.c.h.s8.bf16 %v355_v20  ;;  %v6846_v42 = vpack.c.bf16 %v250_v37, %v250_v37  ;;  %v1213_v54 = vunpack.c.l.s8.bf16 %v373_v49  ;;  %v386_v15 = vld [vmem:[#allocation5 + $0x2c0] sm:$0xff] }
 0x13b   :  { %2609 = vmatpush1.bf16.msra.mxu0 %v1090_v24  ;;  %3101 = vmatpush1.bf16.msra.mxu1 %v1092_v25  ;;  %v1179_v24 = vunpack.c.l.s8.bf16 %v355_v20  ;;  %v1181_v25 = vunpack.c.l.s8.bf16 %v357_v21  ;;  %v1221_v60 = vunpack.c.h.s8.bf16 %v373_v49 }
 0x13c   :  { %2610 = vmatprep.subr.bf16.mxu0 %v1099_v26  ;;  %3102 = vmatprep.subr.bf16.mxu1 %v1101_v27  ;;  %v354_v26 = vld [vmem:[#allocation5 + $0x1c0] sm:$0xff]  ;;  %v356_v27 = vld [vmem:[#allocation5 + $0x1d0] sm:$0xff] }
 0x13d   :  { %v1178_v28 = vunpack.c.l.s8.bf16 %v354_v26  ;;  %v1180_v29 = vunpack.c.l.s8.bf16 %v356_v27  ;;  %v1188_v36 = vunpack.c.h.s8.bf16 %v356_v27  ;;  %v394_v27 = vld [vmem:[#allocation5 + $0x300] sm:$0xff] }
 0x13f   :  { %2611 = vmatpush1.bf16.msra.mxu0 %v1098_v31  ;;  %3103 = vmatpush1.bf16.msra.mxu1 %v1100_v32  ;;  %v1189_v31 = vunpack.c.h.s8.bf16 %v357_v21  ;;  %v363_v32 = vld [vmem:[#allocation5 + $0x208] sm:$0xff] }
 0x140   :  { %2612 = vmatprep.subr.bf16.mxu0 %v1107_v33  ;;  %3104 = vmatprep.subr.bf16.mxu1 %v1109_v34  ;;  %v365_v33 = vld [vmem:[#allocation5 + $0x218] sm:$0xff]  ;;  %v1186_v34 = vunpack.c.h.s8.bf16 %v354_v26  ;;  %v395_v21 = vld [vmem:[#allocation5 + $0x308] sm:$0xff] }
 0x143   :  { %2613 = vmatpush1.bf16.msra.mxu0 %v1106_v38  ;;  %3105 = vmatpush1.bf16.msra.mxu1 %v1108_v39  ;;  %v1195_v38 = vunpack.c.l.s8.bf16 %v363_v32  ;;  %v1197_v39 = vunpack.c.l.s8.bf16 %v365_v33 }
 0x144   :  { %2614 = vmatprep.subr.bf16.mxu0 %v1115_v40  ;;  %3106 = vmatprep.subr.bf16.mxu1 %v1117_v41  ;;  %v362_v40 = vld [vmem:[#allocation5 + $0x200] sm:$0xff]  ;;  %v364_v41 = vld [vmem:[#allocation5 + $0x210] sm:$0xff] }
 0x147   :  { %2615 = vmatpush1.bf16.msra.mxu0 %v1114_v44  ;;  %3107 = vmatpush1.bf16.msra.mxu1 %v1116_v45  ;;  %v1194_v44 = vunpack.c.l.s8.bf16 %v362_v40  ;;  %v1196_v45 = vunpack.c.l.s8.bf16 %v364_v41 }
 0x148   :  { %2616 = vmatprep.subr.bf16.mxu0 %v1123_v46  ;;  %3108 = vmatprep.subr.bf16.mxu1 %v1125_v47  ;;  %v1203_v46 = vunpack.c.h.s8.bf16 %v363_v32  ;;  %v1205_v47 = vunpack.c.h.s8.bf16 %v365_v33  ;;  %v403_v33 = vld [vmem:[#allocation5 + $0x348] sm:$0xff] }
 0x14b   :  { %2617 = vmatpush1.bf16.msra.mxu0 %v1122_v50  ;;  %3109 = vmatpush1.bf16.msra.mxu1 %v1124_v51  ;;  %v6848_v50 = vpack.c.bf16 %v253_v43, %v253_v43  ;;  %v1202_v51 = vunpack.c.h.s8.bf16 %v362_v40  ;;  %v402_v40 = vld [vmem:[#allocation5 + $0x340] sm:$0xff] }
 0x14c   :  { %2618 = vmatprep.subr.bf16.mxu0 %v1131_v52  ;;  %3110 = vmatprep.subr.bf16.mxu1 %v1133_v53  ;;  %v1204_v52 = vunpack.c.h.s8.bf16 %v364_v41  ;;  %v1211_v53 = vunpack.c.l.s8.bf16 %v371_v48  ;;  %v404_v41 = vld [vmem:[#allocation5 + $0x350] sm:$0xff]  ;;  %v1274_v43 = vunpack.c.l.s8.bf16 %v402_v40  ;;  %v1282_v49 = vunpack.c.h.s8.bf16 %v402_v40 }
 0x14f   :  { %2619 = vmatpush1.bf16.msra.mxu0 %v1130_v56  ;;  %3111 = vmatpush1.bf16.msra.mxu1 %v1132_v57  ;;  %v372_v56 = vld [vmem:[#allocation5 + $0x250] sm:$0xff]  ;;  %v1210_v57 = vunpack.c.l.s8.bf16 %v370_v55 }
 0x150   :  { %2620 = vmatprep.subr.bf16.mxu0 %v1139_v58  ;;  %3112 = vmatprep.subr.bf16.mxu1 %v1141_v59  ;;  %v1212_v58 = vunpack.c.l.s8.bf16 %v372_v56  ;;  %v1219_v59 = vunpack.c.h.s8.bf16 %v371_v48  ;;  %v413_v48 = vld [vmem:[#allocation5 + $0x398] sm:$0xff] }
 0x153   :  { %2621 = vmatpush1.bf16.msra.mxu0 %v1138_v62  ;;  %3113 = vmatpush1.bf16.msra.mxu1 %v1140_v63  ;;  %v381_v62 = vld [vmem:[#allocation5 + $0x298] sm:$0xff]  ;;  %v1218_v63 = vunpack.c.h.s8.bf16 %v370_v55  ;;  %v412_v55 = vld [vmem:[#allocation5 + $0x390] sm:$0xff] }
 0x154   :  { %2622 = vmatprep.subr.bf16.mxu0 %v1147_v0  ;;  %3114 = vmatprep.subr.bf16.mxu1 %v1149_v1  ;;  %v1220_v0 = vunpack.c.h.s8.bf16 %v372_v56  ;;  %v1227_v1 = vunpack.c.l.s8.bf16 %v379_v61  ;;  %v1229_v2 = vunpack.c.l.s8.bf16 %v381_v62  ;;  %v1237_v8 = vunpack.c.h.s8.bf16 %v381_v62 }
 0x157   :  { %2623 = vmatpush1.bf16.msra.mxu0 %v1146_v4  ;;  %3115 = vmatpush1.bf16.msra.mxu1 %v1148_v5  ;;  %v380_v4 = vld [vmem:[#allocation5 + $0x290] sm:$0xff]  ;;  %v1226_v5 = vunpack.c.l.s8.bf16 %v378_v3 }
 0x158   :  { %2624 = vmatprep.subr.bf16.mxu0 %v1155_v6  ;;  %3116 = vmatprep.subr.bf16.mxu1 %v1157_v7  ;;  %v1228_v6 = vunpack.c.l.s8.bf16 %v380_v4  ;;  %v1235_v7 = vunpack.c.h.s8.bf16 %v379_v61  ;;  %v421_v61 = vld [vmem:[#allocation5 + $0x3d8] sm:$0xff] }
 0x15b   :  { %2625 = vmatpush1.bf16.msra.mxu0 %v1154_v10  ;;  %3117 = vmatpush1.bf16.msra.mxu1 %v1156_v11  ;;  %v389_v10 = vld [vmem:[#allocation5 + $0x2d8] sm:$0xff]  ;;  %v1234_v11 = vunpack.c.h.s8.bf16 %v378_v3  ;;  %v420_v3 = vld [vmem:[#allocation5 + $0x3d0] sm:$0xff] }
 0x15c   :  { %2626 = vmatprep.subr.bf16.mxu0 %v1163_v12  ;;  %3118 = vmatprep.subr.bf16.mxu1 %v1165_v13  ;;  %v1236_v12 = vunpack.c.h.s8.bf16 %v380_v4  ;;  %v1243_v13 = vunpack.c.l.s8.bf16 %v387_v9  ;;  %v1245_v14 = vunpack.c.l.s8.bf16 %v389_v10  ;;  %v1253_v20 = vunpack.c.h.s8.bf16 %v389_v10 }
 0x15f   :  { %2627 = vmatpush1.bf16.msra.mxu0 %v1162_v16  ;;  %3119 = vmatpush1.bf16.msra.mxu1 %v1164_v17  ;;  %v388_v16 = vld [vmem:[#allocation5 + $0x2d0] sm:$0xff]  ;;  %v1242_v17 = vunpack.c.l.s8.bf16 %v386_v15 }
 0x160   :  { %2628 = vmatprep.subr.bf16.mxu0 %v1171_v18  ;;  %3120 = vmatprep.subr.bf16.mxu1 %v1173_v19  ;;  %v1244_v18 = vunpack.c.l.s8.bf16 %v388_v16  ;;  %v1251_v19 = vunpack.c.h.s8.bf16 %v387_v9  ;;  %v429_v9 = vld [vmem:[#allocation5 + $0x418] sm:$0xff] }
 0x163   :  { %2629 = vmatpush1.bf16.msra.mxu0 %v1170_v22  ;;  %3121 = vmatpush1.bf16.msra.mxu1 %v1172_v23  ;;  %v397_v22 = vld [vmem:[#allocation5 + $0x318] sm:$0xff]  ;;  %v1250_v23 = vunpack.c.h.s8.bf16 %v386_v15  ;;  %v426_v15 = vld [vmem:[#allocation5 + $0x400] sm:$0xff] }
 0x164   :  { %2630 = vmatprep.subr.bf16.mxu0 %v1179_v24  ;;  %3122 = vmatprep.subr.bf16.mxu1 %v1181_v25  ;;  %v1252_v24 = vunpack.c.h.s8.bf16 %v388_v16  ;;  %v1259_v25 = vunpack.c.l.s8.bf16 %v395_v21  ;;  %v1261_v26 = vunpack.c.l.s8.bf16 %v397_v22  ;;  %v1269_v32 = vunpack.c.h.s8.bf16 %v397_v22  ;;  %v428_v16 = vld [vmem:[#allocation5 + $0x410] sm:$0xff] }
 0x165   :  { %v1333_v22 = vunpack.c.h.s8.bf16 %v429_v9 }
 0x167   :  { %2631 = vmatpush1.bf16.msra.mxu0 %v1178_v28  ;;  %3123 = vmatpush1.bf16.msra.mxu1 %v1180_v29  ;;  %v396_v28 = vld [vmem:[#allocation5 + $0x310] sm:$0xff]  ;;  %v1258_v29 = vunpack.c.l.s8.bf16 %v394_v27 }
 0x168   :  { %2632 = vmatprep.subr.bf16.mxu0 %v1187_v30  ;;  %3124 = vmatprep.subr.bf16.mxu1 %v1189_v31  ;;  %v1260_v30 = vunpack.c.l.s8.bf16 %v396_v28  ;;  %v1267_v31 = vunpack.c.h.s8.bf16 %v395_v21  ;;  %v1268_v37 = vunpack.c.h.s8.bf16 %v396_v28 }
 0x16b   :  { %2633 = vmatpush1.bf16.msra.mxu0 %v1186_v34  ;;  %3125 = vmatpush1.bf16.msra.mxu1 %v1188_v36  ;;  %v405_v34 = vld [vmem:[#allocation5 + $0x358] sm:$0xff]  ;;  %v1266_v36 = vunpack.c.h.s8.bf16 %v394_v27  ;;  %v1332_v27 = vunpack.c.h.s8.bf16 %v428_v16 }
 0x16c   :  { %2643 = vmatprep.subr.bf16.mxu0 %v1195_v38  ;;  %3135 = vmatprep.subr.bf16.mxu1 %v1197_v39  ;;  %v1275_v38 = vunpack.c.l.s8.bf16 %v403_v33  ;;  %v1277_v39 = vunpack.c.l.s8.bf16 %v405_v34 }
 0x16e   :  { %2635 = vmatmul.mubr.bf16.vlgmr.msra.gmra.mrb[0].mxu0 %v6846_v42  ;;  %3127 = vmatmul.mubr.bf16.vlgmr.msra.gmra.mrb[0].mxu1 %v6846_v42 }
 0x16f   :  { %2644 = vmatpush1.bf16.msra.mxu0 %v1194_v44  ;;  %3136 = vmatpush1.bf16.msra.mxu1 %v1196_v45  ;;  %v1276_v44 = vunpack.c.l.s8.bf16 %v404_v41  ;;  %v1283_v45 = vunpack.c.h.s8.bf16 %v403_v33 }
 0x170   :  { %2645 = vmatprep.subr.bf16.mxu0 %v1203_v46  ;;  %3137 = vmatprep.subr.bf16.mxu1 %v1205_v47  ;;  %v1285_v46 = vunpack.c.h.s8.bf16 %v405_v34  ;;  %v411_v47 = vld [vmem:[#allocation5 + $0x388] sm:$0xff] }
 0x171   :  { %2675 = vmatprep.mubr.bf16.mxu0 %v6848_v50  ;;  %3167 = vmatprep.mubr.bf16.mxu1 %v6848_v50 }
 0x173   :  { %2646 = vmatpush1.bf16.msra.mxu0 %v1202_v51  ;;  %3138 = vmatpush1.bf16.msra.mxu1 %v1204_v52  ;;  %v1284_v51 = vunpack.c.h.s8.bf16 %v404_v41  ;;  %v1291_v52 = vunpack.c.l.s8.bf16 %v411_v47 }
 0x174   :  { %2647 = vmatprep.subr.bf16.mxu0 %v1211_v53  ;;  %3139 = vmatprep.subr.bf16.mxu1 %v1213_v54  ;;  %v1293_v53 = vunpack.c.l.s8.bf16 %v413_v48  ;;  %v410_v54 = vld [vmem:[#allocation5 + $0x380] sm:$0xff] }
 0x175   :  { %v1290_v56 = vunpack.c.l.s8.bf16 %v410_v54  ;;  %v1298_v62 = vunpack.c.h.s8.bf16 %v410_v54 }
 0x177   :  { %2648 = vmatpush1.bf16.msra.mxu0 %v1210_v57  ;;  %3140 = vmatpush1.bf16.msra.mxu1 %v1212_v58  ;;  %v1292_v57 = vunpack.c.l.s8.bf16 %v412_v55  ;;  %v1299_v58 = vunpack.c.h.s8.bf16 %v411_v47 }
 0x178   :  { %2649 = vmatprep.subr.bf16.mxu0 %v1219_v59  ;;  %3141 = vmatprep.subr.bf16.mxu1 %v1221_v60  ;;  %v1301_v59 = vunpack.c.h.s8.bf16 %v413_v48  ;;  %v419_v60 = vld [vmem:[#allocation5 + $0x3c8] sm:$0xff] }
 0x17b   :  { %2650 = vmatpush1.bf16.msra.mxu0 %v1218_v63  ;;  %3142 = vmatpush1.bf16.msra.mxu1 %v1220_v0  ;;  %v1300_v63 = vunpack.c.h.s8.bf16 %v412_v55  ;;  %v1307_v0 = vunpack.c.l.s8.bf16 %v419_v60 }
 0x17c   :  { %2651 = vmatprep.subr.bf16.mxu0 %v1227_v1  ;;  %3143 = vmatprep.subr.bf16.mxu1 %v1229_v2  ;;  %v1309_v1 = vunpack.c.l.s8.bf16 %v421_v61  ;;  %v418_v2 = vld [vmem:[#allocation5 + $0x3c0] sm:$0xff] }
 0x17d   :  { %v1306_v4 = vunpack.c.l.s8.bf16 %v418_v2  ;;  %v1314_v10 = vunpack.c.h.s8.bf16 %v418_v2 }
 0x17f   :  { %2652 = vmatpush1.bf16.msra.mxu0 %v1226_v5  ;;  %3144 = vmatpush1.bf16.msra.mxu1 %v1228_v6  ;;  %v1308_v5 = vunpack.c.l.s8.bf16 %v420_v3  ;;  %v1315_v6 = vunpack.c.h.s8.bf16 %v419_v60 }
 0x180   :  { %2653 = vmatprep.subr.bf16.mxu0 %v1235_v7  ;;  %3145 = vmatprep.subr.bf16.mxu1 %v1237_v8  ;;  %v1317_v7 = vunpack.c.h.s8.bf16 %v421_v61  ;;  %v427_v8 = vld [vmem:[#allocation5 + $0x408] sm:$0xff] }
 0x181   :  { %v1331_v21 = vunpack.c.h.s8.bf16 %v427_v8 }
 0x183   :  { %2654 = vmatpush1.bf16.msra.mxu0 %v1234_v11  ;;  %3146 = vmatpush1.bf16.msra.mxu1 %v1236_v12  ;;  %v1316_v11 = vunpack.c.h.s8.bf16 %v420_v3  ;;  %v252_v12 = vld [vmem:[#allocation2 + $0x10] sm:$0xff] }
 0x184   :  { %2655 = vmatprep.subr.bf16.mxu0 %v1243_v13  ;;  %3147 = vmatprep.subr.bf16.mxu1 %v1245_v14  ;;  %v1323_v13 = vunpack.c.l.s8.bf16 %v427_v8  ;;  %v1325_v14 = vunpack.c.l.s8.bf16 %v429_v9 }
 0x187   :  { %2656 = vmatpush1.bf16.msra.mxu0 %v1242_v17  ;;  %3148 = vmatpush1.bf16.msra.mxu1 %v1244_v18  ;;  %v6854_v17 = vpack.c.bf16 %v252_v12, %v252_v12  ;;  %v255_v18 = vld [vmem:[#allocation2 + $0x28] sm:$0xff]  ;;  %v469_v12 = vld [vmem:[#allocation5 + $0x558] sm:$0xff] }
 0x188   :  { %2657 = vmatprep.subr.bf16.mxu0 %v1251_v19  ;;  %3149 = vmatprep.subr.bf16.mxu1 %v1253_v20  ;;  %v1322_v19 = vunpack.c.l.s8.bf16 %v426_v15  ;;  %v1324_v20 = vunpack.c.l.s8.bf16 %v428_v16  ;;  %v1405_v16 = vunpack.c.l.s8.bf16 %v469_v12 }
 0x18b   :  { %2658 = vmatpush1.bf16.msra.mxu0 %v1250_v23  ;;  %3150 = vmatpush1.bf16.msra.mxu1 %v1252_v24  ;;  %v435_v23 = vld [vmem:[#allocation5 + $0x448] sm:$0xff]  ;;  %v437_v24 = vld [vmem:[#allocation5 + $0x458] sm:$0xff] }
 0x18c   :  { %2659 = vmatprep.subr.bf16.mxu0 %v1259_v25  ;;  %3151 = vmatprep.subr.bf16.mxu1 %v1261_v26  ;;  %v6856_v25 = vpack.c.bf16 %v255_v18, %v255_v18  ;;  %v1330_v26 = vunpack.c.h.s8.bf16 %v426_v15  ;;  %v1339_v28 = vunpack.c.l.s8.bf16 %v435_v23  ;;  %v1347_v34 = vunpack.c.h.s8.bf16 %v435_v23  ;;  %v466_v18 = vld [vmem:[#allocation5 + $0x540] sm:$0xff] }
 0x18d   :  { %v1413_v23 = vunpack.c.h.s8.bf16 %v469_v12 }
 0x18f   :  { %2660 = vmatpush1.bf16.msra.mxu0 %v1258_v29  ;;  %3152 = vmatpush1.bf16.msra.mxu1 %v1260_v30  ;;  %v1341_v29 = vunpack.c.l.s8.bf16 %v437_v24  ;;  %v434_v30 = vld [vmem:[#allocation5 + $0x440] sm:$0xff] }
 0x190   :  { %2661 = vmatprep.subr.bf16.mxu0 %v1267_v31  ;;  %3153 = vmatprep.subr.bf16.mxu1 %v1269_v32  ;;  %v436_v31 = vld [vmem:[#allocation5 + $0x450] sm:$0xff]  ;;  %v1338_v32 = vunpack.c.l.s8.bf16 %v434_v30 }
 0x191   :  { %v1340_v33 = vunpack.c.l.s8.bf16 %v436_v31  ;;  %v1348_v40 = vunpack.c.h.s8.bf16 %v436_v31  ;;  %v474_v31 = vld [vmem:[#allocation5 + $0x580] sm:$0xff] }
 0x193   :  { %2662 = vmatpush1.bf16.msra.mxu0 %v1266_v36  ;;  %3154 = vmatpush1.bf16.msra.mxu1 %v1268_v37  ;;  %v1349_v36 = vunpack.c.h.s8.bf16 %v437_v24  ;;  %v443_v37 = vld [vmem:[#allocation5 + $0x488] sm:$0xff] }
 0x194   :  { %2663 = vmatprep.subr.bf16.mxu0 %v1275_v38  ;;  %3155 = vmatprep.subr.bf16.mxu1 %v1277_v39  ;;  %v445_v38 = vld [vmem:[#allocation5 + $0x498] sm:$0xff]  ;;  %v1346_v39 = vunpack.c.h.s8.bf16 %v434_v30  ;;  %v1355_v41 = vunpack.c.l.s8.bf16 %v443_v37  ;;  %v1363_v48 = vunpack.c.h.s8.bf16 %v443_v37  ;;  %v475_v24 = vld [vmem:[#allocation5 + $0x588] sm:$0xff] }
 0x197   :  { %2664 = vmatpush1.bf16.msra.mxu0 %v1274_v43  ;;  %3156 = vmatpush1.bf16.msra.mxu1 %v1276_v44  ;;  %v1357_v43 = vunpack.c.l.s8.bf16 %v445_v38  ;;  %v442_v44 = vld [vmem:[#allocation5 + $0x480] sm:$0xff] }
 0x198   :  { %2665 = vmatprep.subr.bf16.mxu0 %v1283_v45  ;;  %3157 = vmatprep.subr.bf16.mxu1 %v1285_v46  ;;  %v444_v45 = vld [vmem:[#allocation5 + $0x490] sm:$0xff]  ;;  %v1354_v46 = vunpack.c.l.s8.bf16 %v442_v44 }
 0x199   :  { %v1356_v47 = vunpack.c.l.s8.bf16 %v444_v45  ;;  %v1364_v54 = vunpack.c.h.s8.bf16 %v444_v45  ;;  %v482_v45 = vld [vmem:[#allocation5 + $0x5c0] sm:$0xff] }
 0x19b   :  { %2666 = vmatpush1.bf16.msra.mxu0 %v1282_v49  ;;  %3158 = vmatpush1.bf16.msra.mxu1 %v1284_v51  ;;  %v1365_v49 = vunpack.c.h.s8.bf16 %v445_v38  ;;  %v451_v51 = vld [vmem:[#allocation5 + $0x4c8] sm:$0xff] }
 0x19c   :  { %2667 = vmatprep.subr.bf16.mxu0 %v1291_v52  ;;  %3159 = vmatprep.subr.bf16.mxu1 %v1293_v53  ;;  %v453_v52 = vld [vmem:[#allocation5 + $0x4d8] sm:$0xff]  ;;  %v1362_v53 = vunpack.c.h.s8.bf16 %v442_v44  ;;  %v1371_v55 = vunpack.c.l.s8.bf16 %v451_v51  ;;  %v1379_v61 = vunpack.c.h.s8.bf16 %v451_v51  ;;  %v483_v38 = vld [vmem:[#allocation5 + $0x5c8] sm:$0xff] }
 0x19f   :  { %2668 = vmatpush1.bf16.msra.mxu0 %v1290_v56  ;;  %3160 = vmatpush1.bf16.msra.mxu1 %v1292_v57  ;;  %v1373_v56 = vunpack.c.l.s8.bf16 %v453_v52  ;;  %v450_v57 = vld [vmem:[#allocation5 + $0x4c0] sm:$0xff] }
 0x1a0   :  { %2669 = vmatprep.subr.bf16.mxu0 %v1299_v58  ;;  %3161 = vmatprep.subr.bf16.mxu1 %v1301_v59  ;;  %v452_v58 = vld [vmem:[#allocation5 + $0x4d0] sm:$0xff]  ;;  %v1370_v59 = vunpack.c.l.s8.bf16 %v450_v57 }
 0x1a1   :  { %v1372_v60 = vunpack.c.l.s8.bf16 %v452_v58  ;;  %v1380_v2 = vunpack.c.h.s8.bf16 %v452_v58 }
 0x1a3   :  { %2670 = vmatpush1.bf16.msra.mxu0 %v1298_v62  ;;  %3162 = vmatpush1.bf16.msra.mxu1 %v1300_v63  ;;  %v1381_v62 = vunpack.c.h.s8.bf16 %v453_v52  ;;  %v459_v63 = vld [vmem:[#allocation5 + $0x508] sm:$0xff] }
 0x1a4   :  { %2671 = vmatprep.subr.bf16.mxu0 %v1307_v0  ;;  %3163 = vmatprep.subr.bf16.mxu1 %v1309_v1  ;;  %v461_v0 = vld [vmem:[#allocation5 + $0x518] sm:$0xff]  ;;  %v1378_v1 = vunpack.c.h.s8.bf16 %v450_v57  ;;  %v1387_v3 = vunpack.c.l.s8.bf16 %v459_v63  ;;  %v1395_v9 = vunpack.c.h.s8.bf16 %v459_v63  ;;  %v491_v52 = vld [vmem:[#allocation5 + $0x608] sm:$0xff] }
 0x1a5   :  { %v1451_v57 = vunpack.c.l.s8.bf16 %v491_v52 }
 0x1a7   :  { %2672 = vmatpush1.bf16.msra.mxu0 %v1306_v4  ;;  %3164 = vmatpush1.bf16.msra.mxu1 %v1308_v5  ;;  %v1389_v4 = vunpack.c.l.s8.bf16 %v461_v0  ;;  %v458_v5 = vld [vmem:[#allocation5 + $0x500] sm:$0xff] }
 0x1a8   :  { %2673 = vmatprep.subr.bf16.mxu0 %v1315_v6  ;;  %3165 = vmatprep.subr.bf16.mxu1 %v1317_v7  ;;  %v460_v6 = vld [vmem:[#allocation5 + $0x510] sm:$0xff]  ;;  %v1386_v7 = vunpack.c.l.s8.bf16 %v458_v5 }
 0x1a9   :  { %v1388_v8 = vunpack.c.l.s8.bf16 %v460_v6 }
 0x1ab   :  { %2674 = vmatpush1.bf16.msra.mxu0 %v1314_v10  ;;  %3166 = vmatpush1.bf16.msra.mxu1 %v1316_v11  ;;  %v1397_v10 = vunpack.c.h.s8.bf16 %v461_v0  ;;  %v467_v11 = vld [vmem:[#allocation5 + $0x548] sm:$0xff] }
 0x1ac   :  { %2684 = vmatprep.subr.bf16.mxu0 %v1323_v13  ;;  %3176 = vmatprep.subr.bf16.mxu1 %v1325_v14  ;;  %v1394_v13 = vunpack.c.h.s8.bf16 %v458_v5  ;;  %v1396_v14 = vunpack.c.h.s8.bf16 %v460_v6  ;;  %v1403_v15 = vunpack.c.l.s8.bf16 %v467_v11 }
 0x1ae   :  { %2676 = vmatmul.mubr.bf16.vlgmr.msra.gmra.mrb[0].mxu0 %v6854_v17  ;;  %3168 = vmatmul.mubr.bf16.vlgmr.msra.gmra.mrb[0].mxu1 %v6854_v17 }
 0x1af   :  { %2685 = vmatpush1.bf16.msra.mxu0 %v1322_v19  ;;  %3177 = vmatpush1.bf16.msra.mxu1 %v1324_v20  ;;  %v468_v19 = vld [vmem:[#allocation5 + $0x550] sm:$0xff]  ;;  %v1402_v20 = vunpack.c.l.s8.bf16 %v466_v18 }
 0x1b0   :  { %2686 = vmatprep.subr.bf16.mxu0 %v1331_v21  ;;  %3178 = vmatprep.subr.bf16.mxu1 %v1333_v22  ;;  %v1404_v21 = vunpack.c.l.s8.bf16 %v468_v19  ;;  %v1411_v22 = vunpack.c.h.s8.bf16 %v467_v11  ;;  %v500_v11 = vld [vmem:[#allocation5 + $0x650] sm:$0xff] }
 0x1b1   :  { %2716 = vmatprep.mubr.bf16.mxu0 %v6856_v25  ;;  %3208 = vmatprep.mubr.bf16.mxu1 %v6856_v25 }
 0x1b3   :  { %2687 = vmatpush1.bf16.msra.mxu0 %v1330_v26  ;;  %3179 = vmatpush1.bf16.msra.mxu1 %v1332_v27  ;;  %v477_v26 = vld [vmem:[#allocation5 + $0x598] sm:$0xff]  ;;  %v1410_v27 = vunpack.c.h.s8.bf16 %v466_v18 }
 0x1b4   :  { %2688 = vmatprep.subr.bf16.mxu0 %v1339_v28  ;;  %3180 = vmatprep.subr.bf16.mxu1 %v1341_v29  ;;  %v1412_v28 = vunpack.c.h.s8.bf16 %v468_v19  ;;  %v1419_v29 = vunpack.c.l.s8.bf16 %v475_v24  ;;  %v1421_v30 = vunpack.c.l.s8.bf16 %v477_v26  ;;  %v1429_v37 = vunpack.c.h.s8.bf16 %v477_v26  ;;  %v509_v18 = vld [vmem:[#allocation5 + $0x698] sm:$0xff] }
 0x1b7   :  { %2689 = vmatpush1.bf16.msra.mxu0 %v1338_v32  ;;  %3181 = vmatpush1.bf16.msra.mxu1 %v1340_v33  ;;  %v476_v32 = vld [vmem:[#allocation5 + $0x590] sm:$0xff]  ;;  %v1418_v33 = vunpack.c.l.s8.bf16 %v474_v31 }
 0x1b8   :  { %2690 = vmatprep.subr.bf16.mxu0 %v1347_v34  ;;  %3182 = vmatprep.subr.bf16.mxu1 %v1349_v36  ;;  %v1420_v34 = vunpack.c.l.s8.bf16 %v476_v32  ;;  %v1427_v36 = vunpack.c.h.s8.bf16 %v475_v24  ;;  %v508_v24 = vld [vmem:[#allocation5 + $0x690] sm:$0xff] }
 0x1bb   :  { %2691 = vmatpush1.bf16.msra.mxu0 %v1346_v39  ;;  %3183 = vmatpush1.bf16.msra.mxu1 %v1348_v40  ;;  %v485_v39 = vld [vmem:[#allocation5 + $0x5d8] sm:$0xff]  ;;  %v1426_v40 = vunpack.c.h.s8.bf16 %v474_v31 }
 0x1bc   :  { %2692 = vmatprep.subr.bf16.mxu0 %v1355_v41  ;;  %3184 = vmatprep.subr.bf16.mxu1 %v1357_v43  ;;  %v1428_v41 = vunpack.c.h.s8.bf16 %v476_v32  ;;  %v1435_v43 = vunpack.c.l.s8.bf16 %v483_v38  ;;  %v1437_v44 = vunpack.c.l.s8.bf16 %v485_v39  ;;  %v1445_v51 = vunpack.c.h.s8.bf16 %v485_v39  ;;  %v517_v31 = vld [vmem:[#allocation5 + $0x6d8] sm:$0xff] }
 0x1bf   :  { %2693 = vmatpush1.bf16.msra.mxu0 %v1354_v46  ;;  %3185 = vmatpush1.bf16.msra.mxu1 %v1356_v47  ;;  %v484_v46 = vld [vmem:[#allocation5 + $0x5d0] sm:$0xff]  ;;  %v1434_v47 = vunpack.c.l.s8.bf16 %v482_v45 }
 0x1c0   :  { %2694 = vmatprep.subr.bf16.mxu0 %v1363_v48  ;;  %3186 = vmatprep.subr.bf16.mxu1 %v1365_v49  ;;  %v1436_v48 = vunpack.c.l.s8.bf16 %v484_v46  ;;  %v1443_v49 = vunpack.c.h.s8.bf16 %v483_v38  ;;  %v516_v38 = vld [vmem:[#allocation5 + $0x6d0] sm:$0xff] }
 0x1c3   :  { %2695 = vmatpush1.bf16.msra.mxu0 %v1362_v53  ;;  %3187 = vmatpush1.bf16.msra.mxu1 %v1364_v54  ;;  %v493_v53 = vld [vmem:[#allocation5 + $0x618] sm:$0xff]  ;;  %v1442_v54 = vunpack.c.h.s8.bf16 %v482_v45 }
 0x1c4   :  { %2696 = vmatprep.subr.bf16.mxu0 %v1371_v55  ;;  %3188 = vmatprep.subr.bf16.mxu1 %v1373_v56  ;;  %v1444_v55 = vunpack.c.h.s8.bf16 %v484_v46  ;;  %v254_v56 = vld [vmem:[#allocation2 + $0x20] sm:$0xff]  ;;  %v1453_v58 = vunpack.c.l.s8.bf16 %v493_v53  ;;  %v525_v45 = vld [vmem:[#allocation5 + $0x718] sm:$0xff] }
 0x1c7   :  { %2697 = vmatpush1.bf16.msra.mxu0 %v1370_v59  ;;  %3189 = vmatpush1.bf16.msra.mxu1 %v1372_v60  ;;  %v490_v59 = vld [vmem:[#allocation5 + $0x600] sm:$0xff]  ;;  %v492_v60 = vld [vmem:[#allocation5 + $0x610] sm:$0xff] }
 0x1c8   :  { %2698 = vmatprep.subr.bf16.mxu0 %v1379_v61  ;;  %3190 = vmatprep.subr.bf16.mxu1 %v1381_v62  ;;  %v6862_v61 = vpack.c.bf16 %v254_v56, %v254_v56  ;;  %v257_v62 = vld [vmem:[#allocation2 + $0x38] sm:$0xff]  ;;  %v1450_v63 = vunpack.c.l.s8.bf16 %v490_v59  ;;  %v1452_v0 = vunpack.c.l.s8.bf16 %v492_v60  ;;  %v1458_v6 = vunpack.c.h.s8.bf16 %v490_v59 }
 0x1c9   :  { %v6864_v5 = vpack.c.bf16 %v257_v62, %v257_v62  ;;  %v1525_v56 = vunpack.c.h.s8.bf16 %v525_v45 }
 0x1cb   :  { %2699 = vmatpush1.bf16.msra.mxu0 %v1378_v1  ;;  %3191 = vmatpush1.bf16.msra.mxu1 %v1380_v2  ;;  %v1459_v1 = vunpack.c.h.s8.bf16 %v491_v52  ;;  %v1461_v2 = vunpack.c.h.s8.bf16 %v493_v53  ;;  %v524_v52 = vld [vmem:[#allocation5 + $0x710] sm:$0xff] }
 0x1cc   :  { %2700 = vmatprep.subr.bf16.mxu0 %v1387_v3  ;;  %3192 = vmatprep.subr.bf16.mxu1 %v1389_v4  ;;  %v499_v3 = vld [vmem:[#allocation5 + $0x648] sm:$0xff]  ;;  %v501_v4 = vld [vmem:[#allocation5 + $0x658] sm:$0xff] }
 0x1cf   :  { %2701 = vmatpush1.bf16.msra.mxu0 %v1386_v7  ;;  %3193 = vmatpush1.bf16.msra.mxu1 %v1388_v8  ;;  %v1460_v7 = vunpack.c.h.s8.bf16 %v492_v60  ;;  %v1467_v8 = vunpack.c.l.s8.bf16 %v499_v3  ;;  %v1524_v60 = vunpack.c.h.s8.bf16 %v524_v52 }
 0x1d0   :  { %2702 = vmatprep.subr.bf16.mxu0 %v1395_v9  ;;  %3194 = vmatprep.subr.bf16.mxu1 %v1397_v10  ;;  %v1469_v9 = vunpack.c.l.s8.bf16 %v501_v4  ;;  %v498_v10 = vld [vmem:[#allocation5 + $0x640] sm:$0xff] }
 0x1d1   :  { %v1466_v12 = vunpack.c.l.s8.bf16 %v498_v10  ;;  %v1474_v19 = vunpack.c.h.s8.bf16 %v498_v10 }
 0x1d3   :  { %2703 = vmatpush1.bf16.msra.mxu0 %v1394_v13  ;;  %3195 = vmatpush1.bf16.msra.mxu1 %v1396_v14  ;;  %v1468_v13 = vunpack.c.l.s8.bf16 %v500_v11  ;;  %v1475_v14 = vunpack.c.h.s8.bf16 %v499_v3 }
 0x1d4   :  { %2704 = vmatprep.subr.bf16.mxu0 %v1403_v15  ;;  %3196 = vmatprep.subr.bf16.mxu1 %v1405_v16  ;;  %v1477_v15 = vunpack.c.h.s8.bf16 %v501_v4  ;;  %v507_v16 = vld [vmem:[#allocation5 + $0x688] sm:$0xff] }
 0x1d7   :  { %2705 = vmatpush1.bf16.msra.mxu0 %v1402_v20  ;;  %3197 = vmatpush1.bf16.msra.mxu1 %v1404_v21  ;;  %v1476_v20 = vunpack.c.h.s8.bf16 %v500_v11  ;;  %v1483_v21 = vunpack.c.l.s8.bf16 %v507_v16 }
 0x1d8   :  { %2706 = vmatprep.subr.bf16.mxu0 %v1411_v22  ;;  %3198 = vmatprep.subr.bf16.mxu1 %v1413_v23  ;;  %v1485_v22 = vunpack.c.l.s8.bf16 %v509_v18  ;;  %v506_v23 = vld [vmem:[#allocation5 + $0x680] sm:$0xff] }
 0x1d9   :  { %v1482_v26 = vunpack.c.l.s8.bf16 %v506_v23  ;;  %v1490_v32 = vunpack.c.h.s8.bf16 %v506_v23 }
 0x1db   :  { %2707 = vmatpush1.bf16.msra.mxu0 %v1410_v27  ;;  %3199 = vmatpush1.bf16.msra.mxu1 %v1412_v28  ;;  %v1484_v27 = vunpack.c.l.s8.bf16 %v508_v24  ;;  %v1491_v28 = vunpack.c.h.s8.bf16 %v507_v16 }
 0x1dc   :  { %2708 = vmatprep.subr.bf16.mxu0 %v1419_v29  ;;  %3200 = vmatprep.subr.bf16.mxu1 %v1421_v30  ;;  %v1493_v29 = vunpack.c.h.s8.bf16 %v509_v18  ;;  %v515_v30 = vld [vmem:[#allocation5 + $0x6c8] sm:$0xff] }
 0x1df   :  { %2709 = vmatpush1.bf16.msra.mxu0 %v1418_v33  ;;  %3201 = vmatpush1.bf16.msra.mxu1 %v1420_v34  ;;  %v1492_v33 = vunpack.c.h.s8.bf16 %v508_v24  ;;  %v1499_v34 = vunpack.c.l.s8.bf16 %v515_v30 }
 0x1e0   :  { %2710 = vmatprep.subr.bf16.mxu0 %v1427_v36  ;;  %3202 = vmatprep.subr.bf16.mxu1 %v1429_v37  ;;  %v1501_v36 = vunpack.c.l.s8.bf16 %v517_v31  ;;  %v514_v37 = vld [vmem:[#allocation5 + $0x6c0] sm:$0xff] }
 0x1e1   :  { %v1498_v39 = vunpack.c.l.s8.bf16 %v514_v37  ;;  %v1506_v46 = vunpack.c.h.s8.bf16 %v514_v37 }
 0x1e3   :  { %2711 = vmatpush1.bf16.msra.mxu0 %v1426_v40  ;;  %3203 = vmatpush1.bf16.msra.mxu1 %v1428_v41  ;;  %v1500_v40 = vunpack.c.l.s8.bf16 %v516_v38  ;;  %v1507_v41 = vunpack.c.h.s8.bf16 %v515_v30 }
 0x1e4   :  { %2712 = vmatprep.subr.bf16.mxu0 %v1435_v43  ;;  %3204 = vmatprep.subr.bf16.mxu1 %v1437_v44  ;;  %v1509_v43 = vunpack.c.h.s8.bf16 %v517_v31  ;;  %v523_v44 = vld [vmem:[#allocation5 + $0x708] sm:$0xff] }
 0x1e7   :  { %2713 = vmatpush1.bf16.msra.mxu0 %v1434_v47  ;;  %3205 = vmatpush1.bf16.msra.mxu1 %v1436_v48  ;;  %v1508_v47 = vunpack.c.h.s8.bf16 %v516_v38  ;;  %v1515_v48 = vunpack.c.l.s8.bf16 %v523_v44  ;;  %v256_v38 = vld [vmem:[#allocation2 + $0x30] sm:$0xff] }
 0x1e8   :  { %2714 = vmatprep.subr.bf16.mxu0 %v1443_v49  ;;  %3206 = vmatprep.subr.bf16.mxu1 %v1445_v51  ;;  %v1517_v49 = vunpack.c.l.s8.bf16 %v525_v45  ;;  %v522_v51 = vld [vmem:[#allocation5 + $0x700] sm:$0xff]  ;;  %v259_v45 = vld [vmem:[#allocation2 + $0x48] sm:$0xff] }
 0x1e9   :  { %v1514_v53 = vunpack.c.l.s8.bf16 %v522_v51  ;;  %v1522_v59 = vunpack.c.h.s8.bf16 %v522_v51  ;;  %v563_v51 = vld [vmem:[#allocation5 + $0x848] sm:$0xff] }
 0x1eb   :  { %2715 = vmatpush1.bf16.msra.mxu0 %v1442_v54  ;;  %3207 = vmatpush1.bf16.msra.mxu1 %v1444_v55  ;;  %v1516_v54 = vunpack.c.l.s8.bf16 %v524_v52  ;;  %v1523_v55 = vunpack.c.h.s8.bf16 %v523_v44  ;;  %v6870_v44 = vpack.c.bf16 %v256_v38, %v256_v38  ;;  %v565_v52 = vld [vmem:[#allocation5 + $0x858] sm:$0xff] }
 0x1ec   :  { %2725 = vmatprep.subr.bf16.mxu0 %v1451_v57  ;;  %3217 = vmatprep.subr.bf16.mxu1 %v1453_v58  ;;  %v531_v57 = vld [vmem:[#allocation5 + $0x748] sm:$0xff]  ;;  %v533_v58 = vld [vmem:[#allocation5 + $0x758] sm:$0xff] }
 0x1ed   :  { %v1531_v62 = vunpack.c.l.s8.bf16 %v531_v57  ;;  %v1539_v4 = vunpack.c.h.s8.bf16 %v531_v57  ;;  %v1597_v57 = vunpack.c.l.s8.bf16 %v565_v52 }
 0x1ee   :  { %2717 = vmatmul.mubr.bf16.vlgmr.msra.gmra.mrb[0].mxu0 %v6862_v61  ;;  %3209 = vmatmul.mubr.bf16.vlgmr.msra.gmra.mrb[0].mxu1 %v6862_v61 }
 0x1ef   :  { %2726 = vmatpush1.bf16.msra.mxu0 %v1450_v63  ;;  %3218 = vmatpush1.bf16.msra.mxu1 %v1452_v0  ;;  %v1533_v63 = vunpack.c.l.s8.bf16 %v533_v58  ;;  %v530_v0 = vld [vmem:[#allocation5 + $0x740] sm:$0xff] }
 0x1f0   :  { %2727 = vmatprep.subr.bf16.mxu0 %v1459_v1  ;;  %3219 = vmatprep.subr.bf16.mxu1 %v1461_v2  ;;  %v532_v1 = vld [vmem:[#allocation5 + $0x750] sm:$0xff]  ;;  %v1530_v2 = vunpack.c.l.s8.bf16 %v530_v0 }
 0x1f1   :  { %2757 = vmatprep.mubr.bf16.mxu0 %v6864_v5  ;;  %3249 = vmatprep.mubr.bf16.mxu1 %v6864_v5  ;;  %v1532_v3 = vunpack.c.l.s8.bf16 %v532_v1  ;;  %v1540_v10 = vunpack.c.h.s8.bf16 %v532_v1  ;;  %v571_v1 = vld [vmem:[#allocation5 + $0x888] sm:$0xff] }
 0x1f3   :  { %2728 = vmatpush1.bf16.msra.mxu0 %v1458_v6  ;;  %3220 = vmatpush1.bf16.msra.mxu1 %v1460_v7  ;;  %v1541_v6 = vunpack.c.h.s8.bf16 %v533_v58  ;;  %v539_v7 = vld [vmem:[#allocation5 + $0x788] sm:$0xff]  ;;  %v562_v58 = vld [vmem:[#allocation5 + $0x840] sm:$0xff] }
 0x1f4   :  { %2729 = vmatprep.subr.bf16.mxu0 %v1467_v8  ;;  %3221 = vmatprep.subr.bf16.mxu1 %v1469_v9  ;;  %v541_v8 = vld [vmem:[#allocation5 + $0x798] sm:$0xff]  ;;  %v1538_v9 = vunpack.c.h.s8.bf16 %v530_v0  ;;  %v1547_v11 = vunpack.c.l.s8.bf16 %v539_v7  ;;  %v1555_v18 = vunpack.c.h.s8.bf16 %v539_v7  ;;  %v1605_v0 = vunpack.c.h.s8.bf16 %v565_v52 }
 0x1f7   :  { %2730 = vmatpush1.bf16.msra.mxu0 %v1466_v12  ;;  %3222 = vmatpush1.bf16.msra.mxu1 %v1468_v13  ;;  %v1549_v12 = vunpack.c.l.s8.bf16 %v541_v8  ;;  %v538_v13 = vld [vmem:[#allocation5 + $0x780] sm:$0xff] }
 0x1f8   :  { %2731 = vmatprep.subr.bf16.mxu0 %v1475_v14  ;;  %3223 = vmatprep.subr.bf16.mxu1 %v1477_v15  ;;  %v540_v14 = vld [vmem:[#allocation5 + $0x790] sm:$0xff]  ;;  %v1546_v15 = vunpack.c.l.s8.bf16 %v538_v13 }
 0x1f9   :  { %v1548_v16 = vunpack.c.l.s8.bf16 %v540_v14  ;;  %v1556_v23 = vunpack.c.h.s8.bf16 %v540_v14  ;;  %v579_v14 = vld [vmem:[#allocation5 + $0x8c8] sm:$0xff] }
 0x1fb   :  { %2732 = vmatpush1.bf16.msra.mxu0 %v1474_v19  ;;  %3224 = vmatpush1.bf16.msra.mxu1 %v1476_v20  ;;  %v1557_v19 = vunpack.c.h.s8.bf16 %v541_v8  ;;  %v547_v20 = vld [vmem:[#allocation5 + $0x7c8] sm:$0xff]  ;;  %v570_v8 = vld [vmem:[#allocation5 + $0x880] sm:$0xff] }
 0x1fc   :  { %2733 = vmatprep.subr.bf16.mxu0 %v1483_v21  ;;  %3225 = vmatprep.subr.bf16.mxu1 %v1485_v22  ;;  %v549_v21 = vld [vmem:[#allocation5 + $0x7d8] sm:$0xff]  ;;  %v1554_v22 = vunpack.c.h.s8.bf16 %v538_v13  ;;  %v1563_v24 = vunpack.c.l.s8.bf16 %v547_v20  ;;  %v1571_v31 = vunpack.c.h.s8.bf16 %v547_v20 }
 0x1ff   :  { %2734 = vmatpush1.bf16.msra.mxu0 %v1482_v26  ;;  %3226 = vmatpush1.bf16.msra.mxu1 %v1484_v27  ;;  %v1565_v26 = vunpack.c.l.s8.bf16 %v549_v21  ;;  %v546_v27 = vld [vmem:[#allocation5 + $0x7c0] sm:$0xff] }
 0x200   :  { %2735 = vmatprep.subr.bf16.mxu0 %v1491_v28  ;;  %3227 = vmatprep.subr.bf16.mxu1 %v1493_v29  ;;  %v548_v28 = vld [vmem:[#allocation5 + $0x7d0] sm:$0xff]  ;;  %v1562_v29 = vunpack.c.l.s8.bf16 %v546_v27 }
 0x201   :  { %v1564_v30 = vunpack.c.l.s8.bf16 %v548_v28  ;;  %v1572_v37 = vunpack.c.h.s8.bf16 %v548_v28  ;;  %v587_v28 = vld [vmem:[#allocation5 + $0x908] sm:$0xff] }
 0x203   :  { %2736 = vmatpush1.bf16.msra.mxu0 %v1490_v32  ;;  %3228 = vmatpush1.bf16.msra.mxu1 %v1492_v33  ;;  %v1573_v32 = vunpack.c.h.s8.bf16 %v549_v21  ;;  %v555_v33 = vld [vmem:[#allocation5 + $0x808] sm:$0xff]  ;;  %v578_v21 = vld [vmem:[#allocation5 + $0x8c0] sm:$0xff] }
 0x204   :  { %2737 = vmatprep.subr.bf16.mxu0 %v1499_v34  ;;  %3229 = vmatprep.subr.bf16.mxu1 %v1501_v36  ;;  %v557_v34 = vld [vmem:[#allocation5 + $0x818] sm:$0xff]  ;;  %v1570_v36 = vunpack.c.h.s8.bf16 %v546_v27 }
 0x207   :  { %2738 = vmatpush1.bf16.msra.mxu0 %v1498_v39  ;;  %3230 = vmatpush1.bf16.msra.mxu1 %v1500_v40  ;;  %v1579_v39 = vunpack.c.l.s8.bf16 %v555_v33  ;;  %v1581_v40 = vunpack.c.l.s8.bf16 %v557_v34 }
 0x208   :  { %2739 = vmatprep.subr.bf16.mxu0 %v1507_v41  ;;  %3231 = vmatprep.subr.bf16.mxu1 %v1509_v43  ;;  %v554_v41 = vld [vmem:[#allocation5 + $0x800] sm:$0xff]  ;;  %v556_v43 = vld [vmem:[#allocation5 + $0x810] sm:$0xff] }
 0x20b   :  { %2740 = vmatpush1.bf16.msra.mxu0 %v1506_v46  ;;  %3232 = vmatpush1.bf16.msra.mxu1 %v1508_v47  ;;  %v1578_v46 = vunpack.c.l.s8.bf16 %v554_v41  ;;  %v1580_v47 = vunpack.c.l.s8.bf16 %v556_v43 }
 0x20c   :  { %2741 = vmatprep.subr.bf16.mxu0 %v1515_v48  ;;  %3233 = vmatprep.subr.bf16.mxu1 %v1517_v49  ;;  %v1587_v48 = vunpack.c.h.s8.bf16 %v555_v33  ;;  %v1589_v49 = vunpack.c.h.s8.bf16 %v557_v34  ;;  %v586_v34 = vld [vmem:[#allocation5 + $0x900] sm:$0xff] }
 0x20f   :  { %2742 = vmatpush1.bf16.msra.mxu0 %v1514_v53  ;;  %3234 = vmatpush1.bf16.msra.mxu1 %v1516_v54  ;;  %v6872_v53 = vpack.c.bf16 %v259_v45, %v259_v45  ;;  %v1586_v54 = vunpack.c.h.s8.bf16 %v554_v41  ;;  %v595_v41 = vld [vmem:[#allocation5 + $0x948] sm:$0xff]  ;;  %v1650_v45 = vunpack.c.h.s8.bf16 %v586_v34 }
 0x210   :  { %2743 = vmatprep.subr.bf16.mxu0 %v1523_v55  ;;  %3235 = vmatprep.subr.bf16.mxu1 %v1525_v56  ;;  %v1588_v55 = vunpack.c.h.s8.bf16 %v556_v43  ;;  %v1595_v56 = vunpack.c.l.s8.bf16 %v563_v51  ;;  %v597_v43 = vld [vmem:[#allocation5 + $0x958] sm:$0xff] }
 0x213   :  { %2744 = vmatpush1.bf16.msra.mxu0 %v1522_v59  ;;  %3236 = vmatpush1.bf16.msra.mxu1 %v1524_v60  ;;  %v564_v59 = vld [vmem:[#allocation5 + $0x850] sm:$0xff]  ;;  %v1594_v60 = vunpack.c.l.s8.bf16 %v562_v58 }
 0x214   :  { %2745 = vmatprep.subr.bf16.mxu0 %v1531_v62  ;;  %3237 = vmatprep.subr.bf16.mxu1 %v1533_v63  ;;  %v1596_v62 = vunpack.c.l.s8.bf16 %v564_v59  ;;  %v1603_v63 = vunpack.c.h.s8.bf16 %v563_v51  ;;  %v596_v51 = vld [vmem:[#allocation5 + $0x950] sm:$0xff] }
 0x217   :  { %2746 = vmatpush1.bf16.msra.mxu0 %v1530_v2  ;;  %3238 = vmatpush1.bf16.msra.mxu1 %v1532_v3  ;;  %v573_v2 = vld [vmem:[#allocation5 + $0x898] sm:$0xff]  ;;  %v1602_v3 = vunpack.c.h.s8.bf16 %v562_v58 }
 0x218   :  { %2747 = vmatprep.subr.bf16.mxu0 %v1539_v4  ;;  %3239 = vmatprep.subr.bf16.mxu1 %v1541_v6  ;;  %v1604_v4 = vunpack.c.h.s8.bf16 %v564_v59  ;;  %v1611_v6 = vunpack.c.l.s8.bf16 %v571_v1  ;;  %v1613_v7 = vunpack.c.l.s8.bf16 %v573_v2  ;;  %v1621_v13 = vunpack.c.h.s8.bf16 %v573_v2  ;;  %v605_v58 = vld [vmem:[#allocation5 + $0x998] sm:$0xff] }
 0x21b   :  { %2748 = vmatpush1.bf16.msra.mxu0 %v1538_v9  ;;  %3240 = vmatpush1.bf16.msra.mxu1 %v1540_v10  ;;  %v572_v9 = vld [vmem:[#allocation5 + $0x890] sm:$0xff]  ;;  %v1610_v10 = vunpack.c.l.s8.bf16 %v570_v8 }
 0x21c   :  { %2749 = vmatprep.subr.bf16.mxu0 %v1547_v11  ;;  %3241 = vmatprep.subr.bf16.mxu1 %v1549_v12  ;;  %v1612_v11 = vunpack.c.l.s8.bf16 %v572_v9  ;;  %v1619_v12 = vunpack.c.h.s8.bf16 %v571_v1  ;;  %v604_v1 = vld [vmem:[#allocation5 + $0x990] sm:$0xff] }
 0x21f   :  { %2750 = vmatpush1.bf16.msra.mxu0 %v1546_v15  ;;  %3242 = vmatpush1.bf16.msra.mxu1 %v1548_v16  ;;  %v581_v15 = vld [vmem:[#allocation5 + $0x8d8] sm:$0xff]  ;;  %v1618_v16 = vunpack.c.h.s8.bf16 %v570_v8 }
 0x220   :  { %2751 = vmatprep.subr.bf16.mxu0 %v1555_v18  ;;  %3243 = vmatprep.subr.bf16.mxu1 %v1557_v19  ;;  %v1620_v18 = vunpack.c.h.s8.bf16 %v572_v9  ;;  %v1627_v19 = vunpack.c.l.s8.bf16 %v579_v14  ;;  %v1629_v20 = vunpack.c.l.s8.bf16 %v581_v15  ;;  %v1637_v27 = vunpack.c.h.s8.bf16 %v581_v15  ;;  %v613_v8 = vld [vmem:[#allocation5 + $0x9d8] sm:$0xff] }
 0x223   :  { %2752 = vmatpush1.bf16.msra.mxu0 %v1554_v22  ;;  %3244 = vmatpush1.bf16.msra.mxu1 %v1556_v23  ;;  %v580_v22 = vld [vmem:[#allocation5 + $0x8d0] sm:$0xff]  ;;  %v1626_v23 = vunpack.c.l.s8.bf16 %v578_v21 }
 0x224   :  { %2753 = vmatprep.subr.bf16.mxu0 %v1563_v24  ;;  %3245 = vmatprep.subr.bf16.mxu1 %v1565_v26  ;;  %v1628_v24 = vunpack.c.l.s8.bf16 %v580_v22  ;;  %v1635_v26 = vunpack.c.h.s8.bf16 %v579_v14  ;;  %v612_v14 = vld [vmem:[#allocation5 + $0x9d0] sm:$0xff] }
 0x227   :  { %2754 = vmatpush1.bf16.msra.mxu0 %v1562_v29  ;;  %3246 = vmatpush1.bf16.msra.mxu1 %v1564_v30  ;;  %v589_v29 = vld [vmem:[#allocation5 + $0x918] sm:$0xff]  ;;  %v1634_v30 = vunpack.c.h.s8.bf16 %v578_v21 }
 0x228   :  { %2755 = vmatprep.subr.bf16.mxu0 %v1571_v31  ;;  %3247 = vmatprep.subr.bf16.mxu1 %v1573_v32  ;;  %v1636_v31 = vunpack.c.h.s8.bf16 %v580_v22  ;;  %v1643_v32 = vunpack.c.l.s8.bf16 %v587_v28  ;;  %v1645_v33 = vunpack.c.l.s8.bf16 %v589_v29  ;;  %v621_v21 = vld [vmem:[#allocation5 + $0xa18] sm:$0xff] }
 0x22b   :  { %2756 = vmatpush1.bf16.msra.mxu0 %v1570_v36  ;;  %3248 = vmatpush1.bf16.msra.mxu1 %v1572_v37  ;;  %v588_v36 = vld [vmem:[#allocation5 + $0x910] sm:$0xff]  ;;  %v1642_v37 = vunpack.c.l.s8.bf16 %v586_v34 }
 0x22c   :  { %2766 = vmatprep.subr.bf16.mxu0 %v1579_v39  ;;  %3258 = vmatprep.subr.bf16.mxu1 %v1581_v40  ;;  %v1644_v38 = vunpack.c.l.s8.bf16 %v588_v36  ;;  %v1651_v39 = vunpack.c.h.s8.bf16 %v587_v28  ;;  %v1653_v40 = vunpack.c.h.s8.bf16 %v589_v29  ;;  %v618_v28 = vld [vmem:[#allocation5 + $0xa00] sm:$0xff]  ;;  %v620_v29 = vld [vmem:[#allocation5 + $0xa10] sm:$0xff] }
 0x22e   :  { %2758 = vmatmul.mubr.bf16.vlgmr.msra.gmra.mrb[0].mxu0 %v6870_v44  ;;  %3250 = vmatmul.mubr.bf16.vlgmr.msra.gmra.mrb[0].mxu1 %v6870_v44 }
 0x22f   :  { %2767 = vmatpush1.bf16.msra.mxu0 %v1578_v46  ;;  %3259 = vmatpush1.bf16.msra.mxu1 %v1580_v47  ;;  %v1652_v46 = vunpack.c.h.s8.bf16 %v588_v36  ;;  %v1659_v47 = vunpack.c.l.s8.bf16 %v595_v41  ;;  %v1717_v36 = vunpack.c.h.s8.bf16 %v621_v21 }
 0x230   :  { %2768 = vmatprep.subr.bf16.mxu0 %v1587_v48  ;;  %3260 = vmatprep.subr.bf16.mxu1 %v1589_v49  ;;  %v1661_v48 = vunpack.c.l.s8.bf16 %v597_v43  ;;  %v594_v49 = vld [vmem:[#allocation5 + $0x940] sm:$0xff] }
 0x231   :  { %2798 = vmatprep.mubr.bf16.mxu0 %v6872_v53  ;;  %3290 = vmatprep.mubr.bf16.mxu1 %v6872_v53  ;;  %v1658_v52 = vunpack.c.l.s8.bf16 %v594_v49  ;;  %v1666_v59 = vunpack.c.h.s8.bf16 %v594_v49 }
 0x233   :  { %2769 = vmatpush1.bf16.msra.mxu0 %v1586_v54  ;;  %3261 = vmatpush1.bf16.msra.mxu1 %v1588_v55  ;;  %v1660_v54 = vunpack.c.l.s8.bf16 %v596_v51  ;;  %v1667_v55 = vunpack.c.h.s8.bf16 %v595_v41  ;;  %v1716_v41 = vunpack.c.h.s8.bf16 %v620_v29 }
 0x234   :  { %2770 = vmatprep.subr.bf16.mxu0 %v1595_v56  ;;  %3262 = vmatprep.subr.bf16.mxu1 %v1597_v57  ;;  %v1669_v56 = vunpack.c.h.s8.bf16 %v597_v43  ;;  %v603_v57 = vld [vmem:[#allocation5 + $0x988] sm:$0xff] }
 0x237   :  { %2771 = vmatpush1.bf16.msra.mxu0 %v1594_v60  ;;  %3263 = vmatpush1.bf16.msra.mxu1 %v1596_v62  ;;  %v1668_v60 = vunpack.c.h.s8.bf16 %v596_v51  ;;  %v1675_v62 = vunpack.c.l.s8.bf16 %v603_v57 }
 0x238   :  { %2772 = vmatprep.subr.bf16.mxu0 %v1603_v63  ;;  %3264 = vmatprep.subr.bf16.mxu1 %v1605_v0  ;;  %v1677_v63 = vunpack.c.l.s8.bf16 %v605_v58  ;;  %v602_v0 = vld [vmem:[#allocation5 + $0x980] sm:$0xff] }
 0x239   :  { %v1674_v2 = vunpack.c.l.s8.bf16 %v602_v0  ;;  %v1682_v9 = vunpack.c.h.s8.bf16 %v602_v0 }
 0x23b   :  { %2773 = vmatpush1.bf16.msra.mxu0 %v1602_v3  ;;  %3265 = vmatpush1.bf16.msra.mxu1 %v1604_v4  ;;  %v1676_v3 = vunpack.c.l.s8.bf16 %v604_v1  ;;  %v1683_v4 = vunpack.c.h.s8.bf16 %v603_v57 }
 0x23c   :  { %2774 = vmatprep.subr.bf16.mxu0 %v1611_v6  ;;  %3266 = vmatprep.subr.bf16.mxu1 %v1613_v7  ;;  %v1685_v6 = vunpack.c.h.s8.bf16 %v605_v58  ;;  %v611_v7 = vld [vmem:[#allocation5 + $0x9c8] sm:$0xff] }
 0x23f   :  { %2775 = vmatpush1.bf16.msra.mxu0 %v1610_v10  ;;  %3267 = vmatpush1.bf16.msra.mxu1 %v1612_v11  ;;  %v1684_v10 = vunpack.c.h.s8.bf16 %v604_v1  ;;  %v1691_v11 = vunpack.c.l.s8.bf16 %v611_v7 }
 0x240   :  { %2776 = vmatprep.subr.bf16.mxu0 %v1619_v12  ;;  %3268 = vmatprep.subr.bf16.mxu1 %v1621_v13  ;;  %v1693_v12 = vunpack.c.l.s8.bf16 %v613_v8  ;;  %v610_v13 = vld [vmem:[#allocation5 + $0x9c0] sm:$0xff] }
 0x241   :  { %v1690_v15 = vunpack.c.l.s8.bf16 %v610_v13  ;;  %v1698_v22 = vunpack.c.h.s8.bf16 %v610_v13 }
 0x243   :  { %2777 = vmatpush1.bf16.msra.mxu0 %v1618_v16  ;;  %3269 = vmatpush1.bf16.msra.mxu1 %v1620_v18  ;;  %v1692_v16 = vunpack.c.l.s8.bf16 %v612_v14  ;;  %v1699_v18 = vunpack.c.h.s8.bf16 %v611_v7 }
 0x244   :  { %2778 = vmatprep.subr.bf16.mxu0 %v1627_v19  ;;  %3270 = vmatprep.subr.bf16.mxu1 %v1629_v20  ;;  %v1701_v19 = vunpack.c.h.s8.bf16 %v613_v8  ;;  %v619_v20 = vld [vmem:[#allocation5 + $0xa08] sm:$0xff] }
 0x245   :  { %v1715_v34 = vunpack.c.h.s8.bf16 %v619_v20 }
 0x247   :  { %2779 = vmatpush1.bf16.msra.mxu0 %v1626_v23  ;;  %3271 = vmatpush1.bf16.msra.mxu1 %v1628_v24  ;;  %v1700_v23 = vunpack.c.h.s8.bf16 %v612_v14  ;;  %v258_v24 = vld [vmem:[#allocation2 + $0x40] sm:$0xff] }
 0x248   :  { %2780 = vmatprep.subr.bf16.mxu0 %v1635_v26  ;;  %3272 = vmatprep.subr.bf16.mxu1 %v1637_v27  ;;  %v1707_v26 = vunpack.c.l.s8.bf16 %v619_v20  ;;  %v1709_v27 = vunpack.c.l.s8.bf16 %v621_v21 }
 0x24b   :  { %2781 = vmatpush1.bf16.msra.mxu0 %v1634_v30  ;;  %3273 = vmatpush1.bf16.msra.mxu1 %v1636_v31  ;;  %v6878_v30 = vpack.c.bf16 %v258_v24, %v258_v24  ;;  %v261_v31 = vld [vmem:[#allocation2 + $0x58] sm:$0xff]  ;;  %v652_v24 = vld [vmem:[#allocation5 + $0xb10] sm:$0xff] }
 0x24c   :  { %2782 = vmatprep.subr.bf16.mxu0 %v1643_v32  ;;  %3274 = vmatprep.subr.bf16.mxu1 %v1645_v33  ;;  %v1706_v32 = vunpack.c.l.s8.bf16 %v618_v28  ;;  %v1708_v33 = vunpack.c.l.s8.bf16 %v620_v29 }
 0x24f   :  { %2783 = vmatpush1.bf16.msra.mxu0 %v1642_v37  ;;  %3275 = vmatpush1.bf16.msra.mxu1 %v1644_v38  ;;  %v627_v37 = vld [vmem:[#allocation5 + $0xa48] sm:$0xff]  ;;  %v629_v38 = vld [vmem:[#allocation5 + $0xa58] sm:$0xff] }
 0x250   :  { %2784 = vmatprep.subr.bf16.mxu0 %v1651_v39  ;;  %3276 = vmatprep.subr.bf16.mxu1 %v1653_v40  ;;  %v6880_v39 = vpack.c.bf16 %v261_v31, %v261_v31  ;;  %v1714_v40 = vunpack.c.h.s8.bf16 %v618_v28  ;;  %v1723_v43 = vunpack.c.l.s8.bf16 %v627_v37  ;;  %v1731_v51 = vunpack.c.h.s8.bf16 %v627_v37  ;;  %v659_v31 = vld [vmem:[#allocation5 + $0xb48] sm:$0xff] }
 0x253   :  { %2785 = vmatpush1.bf16.msra.mxu0 %v1650_v45  ;;  %3277 = vmatpush1.bf16.msra.mxu1 %v1652_v46  ;;  %v1725_v45 = vunpack.c.l.s8.bf16 %v629_v38  ;;  %v626_v46 = vld [vmem:[#allocation5 + $0xa40] sm:$0xff] }
 0x254   :  { %2786 = vmatprep.subr.bf16.mxu0 %v1659_v47  ;;  %3278 = vmatprep.subr.bf16.mxu1 %v1661_v48  ;;  %v628_v47 = vld [vmem:[#allocation5 + $0xa50] sm:$0xff]  ;;  %v1722_v48 = vunpack.c.l.s8.bf16 %v626_v46 }
 0x255   :  { %v1724_v49 = vunpack.c.l.s8.bf16 %v628_v47  ;;  %v1732_v57 = vunpack.c.h.s8.bf16 %v628_v47  ;;  %v667_v47 = vld [vmem:[#allocation5 + $0xb88] sm:$0xff] }
 0x257   :  { %2787 = vmatpush1.bf16.msra.mxu0 %v1658_v52  ;;  %3279 = vmatpush1.bf16.msra.mxu1 %v1660_v54  ;;  %v1733_v52 = vunpack.c.h.s8.bf16 %v629_v38  ;;  %v635_v54 = vld [vmem:[#allocation5 + $0xa88] sm:$0xff]  ;;  %v658_v38 = vld [vmem:[#allocation5 + $0xb40] sm:$0xff] }
 0x258   :  { %2788 = vmatprep.subr.bf16.mxu0 %v1667_v55  ;;  %3280 = vmatprep.subr.bf16.mxu1 %v1669_v56  ;;  %v637_v55 = vld [vmem:[#allocation5 + $0xa98] sm:$0xff]  ;;  %v1730_v56 = vunpack.c.h.s8.bf16 %v626_v46  ;;  %v1739_v58 = vunpack.c.l.s8.bf16 %v635_v54  ;;  %v1747_v1 = vunpack.c.h.s8.bf16 %v635_v54 }
 0x25b   :  { %2789 = vmatpush1.bf16.msra.mxu0 %v1666_v59  ;;  %3281 = vmatpush1.bf16.msra.mxu1 %v1668_v60  ;;  %v1741_v59 = vunpack.c.l.s8.bf16 %v637_v55  ;;  %v634_v60 = vld [vmem:[#allocation5 + $0xa80] sm:$0xff] }
 0x25c   :  { %2790 = vmatprep.subr.bf16.mxu0 %v1675_v62  ;;  %3282 = vmatprep.subr.bf16.mxu1 %v1677_v63  ;;  %v636_v62 = vld [vmem:[#allocation5 + $0xa90] sm:$0xff]  ;;  %v1738_v63 = vunpack.c.l.s8.bf16 %v634_v60 }
 0x25d   :  { %v1740_v0 = vunpack.c.l.s8.bf16 %v636_v62  ;;  %v1748_v7 = vunpack.c.h.s8.bf16 %v636_v62  ;;  %v675_v62 = vld [vmem:[#allocation5 + $0xbc8] sm:$0xff] }
 0x25f   :  { %2791 = vmatpush1.bf16.msra.mxu0 %v1674_v2  ;;  %3283 = vmatpush1.bf16.msra.mxu1 %v1676_v3  ;;  %v1749_v2 = vunpack.c.h.s8.bf16 %v637_v55  ;;  %v643_v3 = vld [vmem:[#allocation5 + $0xac8] sm:$0xff]  ;;  %v666_v55 = vld [vmem:[#allocation5 + $0xb80] sm:$0xff] }
 0x260   :  { %2792 = vmatprep.subr.bf16.mxu0 %v1683_v4  ;;  %3284 = vmatprep.subr.bf16.mxu1 %v1685_v6  ;;  %v645_v4 = vld [vmem:[#allocation5 + $0xad8] sm:$0xff]  ;;  %v1746_v6 = vunpack.c.h.s8.bf16 %v634_v60  ;;  %v1755_v8 = vunpack.c.l.s8.bf16 %v643_v3  ;;  %v1763_v14 = vunpack.c.h.s8.bf16 %v643_v3 }
 0x263   :  { %2793 = vmatpush1.bf16.msra.mxu0 %v1682_v9  ;;  %3285 = vmatpush1.bf16.msra.mxu1 %v1684_v10  ;;  %v1757_v9 = vunpack.c.l.s8.bf16 %v645_v4  ;;  %v642_v10 = vld [vmem:[#allocation5 + $0xac0] sm:$0xff] }
 0x264   :  { %2794 = vmatprep.subr.bf16.mxu0 %v1691_v11  ;;  %3286 = vmatprep.subr.bf16.mxu1 %v1693_v12  ;;  %v644_v11 = vld [vmem:[#allocation5 + $0xad0] sm:$0xff]  ;;  %v1754_v12 = vunpack.c.l.s8.bf16 %v642_v10 }
 0x265   :  { %v1756_v13 = vunpack.c.l.s8.bf16 %v644_v11  ;;  %v1764_v20 = vunpack.c.h.s8.bf16 %v644_v11  ;;  %v683_v11 = vld [vmem:[#allocation5 + $0xc08] sm:$0xff] }
 0x267   :  { %2795 = vmatpush1.bf16.msra.mxu0 %v1690_v15  ;;  %3287 = vmatpush1.bf16.msra.mxu1 %v1692_v16  ;;  %v1765_v15 = vunpack.c.h.s8.bf16 %v645_v4  ;;  %v651_v16 = vld [vmem:[#allocation5 + $0xb08] sm:$0xff]  ;;  %v674_v4 = vld [vmem:[#allocation5 + $0xbc0] sm:$0xff] }
 0x268   :  { %2796 = vmatprep.subr.bf16.mxu0 %v1699_v18  ;;  %3288 = vmatprep.subr.bf16.mxu1 %v1701_v19  ;;  %v653_v18 = vld [vmem:[#allocation5 + $0xb18] sm:$0xff]  ;;  %v1762_v19 = vunpack.c.h.s8.bf16 %v642_v10  ;;  %v1771_v21 = vunpack.c.l.s8.bf16 %v651_v16  ;;  %v1779_v28 = vunpack.c.h.s8.bf16 %v651_v16  ;;  %v1835_v16 = vunpack.c.l.s8.bf16 %v683_v11 }
 0x269   :  { %v1781_v29 = vunpack.c.h.s8.bf16 %v653_v18 }
 0x26b   :  { %2797 = vmatpush1.bf16.msra.mxu0 %v1698_v22  ;;  %3289 = vmatpush1.bf16.msra.mxu1 %v1700_v23  ;;  %v1773_v22 = vunpack.c.l.s8.bf16 %v653_v18  ;;  %v650_v23 = vld [vmem:[#allocation5 + $0xb00] sm:$0xff] }
 0x26c   :  { %2807 = vmatprep.subr.bf16.mxu0 %v1707_v26  ;;  %3299 = vmatprep.subr.bf16.mxu1 %v1709_v27  ;;  %v1770_v26 = vunpack.c.l.s8.bf16 %v650_v23  ;;  %v1772_v27 = vunpack.c.l.s8.bf16 %v652_v24 }
 0x26e   :  { %2799 = vmatmul.mubr.bf16.vlgmr.msra.gmra.mrb[0].mxu0 %v6878_v30  ;;  %3291 = vmatmul.mubr.bf16.vlgmr.msra.gmra.mrb[0].mxu1 %v6878_v30 }
 0x26f   :  { %2808 = vmatpush1.bf16.msra.mxu0 %v1706_v32  ;;  %3300 = vmatpush1.bf16.msra.mxu1 %v1708_v33  ;;  %v661_v32 = vld [vmem:[#allocation5 + $0xb58] sm:$0xff]  ;;  %v1778_v33 = vunpack.c.h.s8.bf16 %v650_v23 }
 0x270   :  { %2809 = vmatprep.subr.bf16.mxu0 %v1715_v34  ;;  %3301 = vmatprep.subr.bf16.mxu1 %v1717_v36  ;;  %v1780_v34 = vunpack.c.h.s8.bf16 %v652_v24  ;;  %v1787_v36 = vunpack.c.l.s8.bf16 %v659_v31  ;;  %v1789_v37 = vunpack.c.l.s8.bf16 %v661_v32  ;;  %v1797_v46 = vunpack.c.h.s8.bf16 %v661_v32 }
 0x271   :  { %2839 = vmatprep.mubr.bf16.mxu0 %v6880_v39  ;;  %3331 = vmatprep.mubr.bf16.mxu1 %v6880_v39 }
 0x273   :  { %2810 = vmatpush1.bf16.msra.mxu0 %v1714_v40  ;;  %3302 = vmatpush1.bf16.msra.mxu1 %v1716_v41  ;;  %v660_v40 = vld [vmem:[#allocation5 + $0xb50] sm:$0xff]  ;;  %v1786_v41 = vunpack.c.l.s8.bf16 %v658_v38 }
 0x274   :  { %2811 = vmatprep.subr.bf16.mxu0 %v1723_v43  ;;  %3303 = vmatprep.subr.bf16.mxu1 %v1725_v45  ;;  %v1788_v43 = vunpack.c.l.s8.bf16 %v660_v40  ;;  %v1795_v45 = vunpack.c.h.s8.bf16 %v659_v31 }
 0x277   :  { %2812 = vmatpush1.bf16.msra.mxu0 %v1722_v48  ;;  %3304 = vmatpush1.bf16.msra.mxu1 %v1724_v49  ;;  %v669_v48 = vld [vmem:[#allocation5 + $0xb98] sm:$0xff]  ;;  %v1794_v49 = vunpack.c.h.s8.bf16 %v658_v38  ;;  %v692_v38 = vld [vmem:[#allocation5 + $0xc50] sm:$0xff] }
 0x278   :  { %2813 = vmatprep.subr.bf16.mxu0 %v1731_v51  ;;  %3305 = vmatprep.subr.bf16.mxu1 %v1733_v52  ;;  %v1796_v51 = vunpack.c.h.s8.bf16 %v660_v40  ;;  %v1803_v52 = vunpack.c.l.s8.bf16 %v667_v47  ;;  %v1805_v54 = vunpack.c.l.s8.bf16 %v669_v48  ;;  %v1813_v60 = vunpack.c.h.s8.bf16 %v669_v48 }
 0x27b   :  { %2814 = vmatpush1.bf16.msra.mxu0 %v1730_v56  ;;  %3306 = vmatpush1.bf16.msra.mxu1 %v1732_v57  ;;  %v668_v56 = vld [vmem:[#allocation5 + $0xb90] sm:$0xff]  ;;  %v1802_v57 = vunpack.c.l.s8.bf16 %v666_v55 }
 0x27c   :  { %2815 = vmatprep.subr.bf16.mxu0 %v1739_v58  ;;  %3307 = vmatprep.subr.bf16.mxu1 %v1741_v59  ;;  %v1804_v58 = vunpack.c.l.s8.bf16 %v668_v56  ;;  %v1811_v59 = vunpack.c.h.s8.bf16 %v667_v47  ;;  %v701_v47 = vld [vmem:[#allocation5 + $0xc98] sm:$0xff] }
 0x27f   :  { %2816 = vmatpush1.bf16.msra.mxu0 %v1738_v63  ;;  %3308 = vmatpush1.bf16.msra.mxu1 %v1740_v0  ;;  %v677_v63 = vld [vmem:[#allocation5 + $0xbd8] sm:$0xff]  ;;  %v1810_v0 = vunpack.c.h.s8.bf16 %v666_v55  ;;  %v700_v55 = vld [vmem:[#allocation5 + $0xc90] sm:$0xff] }
 0x280   :  { %2817 = vmatprep.subr.bf16.mxu0 %v1747_v1  ;;  %3309 = vmatprep.subr.bf16.mxu1 %v1749_v2  ;;  %v1812_v1 = vunpack.c.h.s8.bf16 %v668_v56  ;;  %v1819_v2 = vunpack.c.l.s8.bf16 %v675_v62  ;;  %v1821_v3 = vunpack.c.l.s8.bf16 %v677_v63  ;;  %v1829_v10 = vunpack.c.h.s8.bf16 %v677_v63 }
 0x283   :  { %2818 = vmatpush1.bf16.msra.mxu0 %v1746_v6  ;;  %3310 = vmatpush1.bf16.msra.mxu1 %v1748_v7  ;;  %v676_v6 = vld [vmem:[#allocation5 + $0xbd0] sm:$0xff]  ;;  %v1818_v7 = vunpack.c.l.s8.bf16 %v674_v4 }
 0x284   :  { %2819 = vmatprep.subr.bf16.mxu0 %v1755_v8  ;;  %3311 = vmatprep.subr.bf16.mxu1 %v1757_v9  ;;  %v1820_v8 = vunpack.c.l.s8.bf16 %v676_v6  ;;  %v1827_v9 = vunpack.c.h.s8.bf16 %v675_v62  ;;  %v709_v62 = vld [vmem:[#allocation5 + $0xcd8] sm:$0xff] }
 0x287   :  { %2820 = vmatpush1.bf16.msra.mxu0 %v1754_v12  ;;  %3312 = vmatpush1.bf16.msra.mxu1 %v1756_v13  ;;  %v685_v12 = vld [vmem:[#allocation5 + $0xc18] sm:$0xff]  ;;  %v1826_v13 = vunpack.c.h.s8.bf16 %v674_v4  ;;  %v708_v4 = vld [vmem:[#allocation5 + $0xcd0] sm:$0xff] }
 0x288   :  { %2821 = vmatprep.subr.bf16.mxu0 %v1763_v14  ;;  %3313 = vmatprep.subr.bf16.mxu1 %v1765_v15  ;;  %v1828_v14 = vunpack.c.h.s8.bf16 %v676_v6  ;;  %v260_v15 = vld [vmem:[#allocation2 + $0x50] sm:$0xff]  ;;  %v1837_v18 = vunpack.c.l.s8.bf16 %v685_v12 }
 0x28b   :  { %2822 = vmatpush1.bf16.msra.mxu0 %v1762_v19  ;;  %3314 = vmatpush1.bf16.msra.mxu1 %v1764_v20  ;;  %v682_v19 = vld [vmem:[#allocation5 + $0xc00] sm:$0xff]  ;;  %v684_v20 = vld [vmem:[#allocation5 + $0xc10] sm:$0xff] }
 0x28c   :  { %2823 = vmatprep.subr.bf16.mxu0 %v1771_v21  ;;  %3315 = vmatprep.subr.bf16.mxu1 %v1773_v22  ;;  %v6886_v21 = vpack.c.bf16 %v260_v15, %v260_v15  ;;  %v263_v22 = vld [vmem:[#allocation2 + $0x68] sm:$0xff]  ;;  %v1834_v23 = vunpack.c.l.s8.bf16 %v682_v19  ;;  %v1836_v24 = vunpack.c.l.s8.bf16 %v684_v20  ;;  %v1842_v32 = vunpack.c.h.s8.bf16 %v682_v19 }
 0x28d   :  { %v6888_v31 = vpack.c.bf16 %v263_v22, %v263_v22 }
 0x28f   :  { %2824 = vmatpush1.bf16.msra.mxu0 %v1770_v26  ;;  %3316 = vmatpush1.bf16.msra.mxu1 %v1772_v27  ;;  %v1843_v26 = vunpack.c.h.s8.bf16 %v683_v11  ;;  %v1845_v27 = vunpack.c.h.s8.bf16 %v685_v12  ;;  %v717_v11 = vld [vmem:[#allocation5 + $0xd18] sm:$0xff] }
 0x290   :  { %2825 = vmatprep.subr.bf16.mxu0 %v1779_v28  ;;  %3317 = vmatprep.subr.bf16.mxu1 %v1781_v29  ;;  %v691_v28 = vld [vmem:[#allocation5 + $0xc48] sm:$0xff]  ;;  %v693_v29 = vld [vmem:[#allocation5 + $0xc58] sm:$0xff]  ;;  %v1901_v15 = vunpack.c.l.s8.bf16 %v717_v11 }
 0x293   :  { %2826 = vmatpush1.bf16.msra.mxu0 %v1778_v33  ;;  %3318 = vmatpush1.bf16.msra.mxu1 %v1780_v34  ;;  %v1844_v33 = vunpack.c.h.s8.bf16 %v684_v20  ;;  %v1851_v34 = vunpack.c.l.s8.bf16 %v691_v28 }
 0x294   :  { %2827 = vmatprep.subr.bf16.mxu0 %v1787_v36  ;;  %3319 = vmatprep.subr.bf16.mxu1 %v1789_v37  ;;  %v1853_v36 = vunpack.c.l.s8.bf16 %v693_v29  ;;  %v690_v37 = vld [vmem:[#allocation5 + $0xc40] sm:$0xff] }
 0x295   :  { %v1850_v40 = vunpack.c.l.s8.bf16 %v690_v37  ;;  %v1858_v48 = vunpack.c.h.s8.bf16 %v690_v37 }
 0x297   :  { %2828 = vmatpush1.bf16.msra.mxu0 %v1786_v41  ;;  %3320 = vmatpush1.bf16.msra.mxu1 %v1788_v43  ;;  %v1852_v41 = vunpack.c.l.s8.bf16 %v692_v38  ;;  %v1859_v43 = vunpack.c.h.s8.bf16 %v691_v28 }
 0x298   :  { %2829 = vmatprep.subr.bf16.mxu0 %v1795_v45  ;;  %3321 = vmatprep.subr.bf16.mxu1 %v1797_v46  ;;  %v1861_v45 = vunpack.c.h.s8.bf16 %v693_v29  ;;  %v699_v46 = vld [vmem:[#allocation5 + $0xc88] sm:$0xff] }
 0x29b   :  { %2830 = vmatpush1.bf16.msra.mxu0 %v1794_v49  ;;  %3322 = vmatpush1.bf16.msra.mxu1 %v1796_v51  ;;  %v1860_v49 = vunpack.c.h.s8.bf16 %v692_v38  ;;  %v1867_v51 = vunpack.c.l.s8.bf16 %v699_v46 }
 0x29c   :  { %2831 = vmatprep.subr.bf16.mxu0 %v1803_v52  ;;  %3323 = vmatprep.subr.bf16.mxu1 %v1805_v54  ;;  %v1869_v52 = vunpack.c.l.s8.bf16 %v701_v47  ;;  %v698_v54 = vld [vmem:[#allocation5 + $0xc80] sm:$0xff] }
 0x29d   :  { %v1866_v56 = vunpack.c.l.s8.bf16 %v698_v54  ;;  %v1874_v63 = vunpack.c.h.s8.bf16 %v698_v54 }
 0x29f   :  { %2832 = vmatpush1.bf16.msra.mxu0 %v1802_v57  ;;  %3324 = vmatpush1.bf16.msra.mxu1 %v1804_v58  ;;  %v1868_v57 = vunpack.c.l.s8.bf16 %v700_v55  ;;  %v1875_v58 = vunpack.c.h.s8.bf16 %v699_v46 }
 0x2a0   :  { %2833 = vmatprep.subr.bf16.mxu0 %v1811_v59  ;;  %3325 = vmatprep.subr.bf16.mxu1 %v1813_v60  ;;  %v1877_v59 = vunpack.c.h.s8.bf16 %v701_v47  ;;  %v707_v60 = vld [vmem:[#allocation5 + $0xcc8] sm:$0xff] }
 0x2a3   :  { %2834 = vmatpush1.bf16.msra.mxu0 %v1810_v0  ;;  %3326 = vmatpush1.bf16.msra.mxu1 %v1812_v1  ;;  %v1876_v0 = vunpack.c.h.s8.bf16 %v700_v55  ;;  %v1883_v1 = vunpack.c.l.s8.bf16 %v707_v60 }
 0x2a4   :  { %2835 = vmatprep.subr.bf16.mxu0 %v1819_v2  ;;  %3327 = vmatprep.subr.bf16.mxu1 %v1821_v3  ;;  %v1885_v2 = vunpack.c.l.s8.bf16 %v709_v62  ;;  %v706_v3 = vld [vmem:[#allocation5 + $0xcc0] sm:$0xff] }
 0x2a5   :  { %v1882_v6 = vunpack.c.l.s8.bf16 %v706_v3  ;;  %v1890_v12 = vunpack.c.h.s8.bf16 %v706_v3 }
 0x2a7   :  { %2836 = vmatpush1.bf16.msra.mxu0 %v1818_v7  ;;  %3328 = vmatpush1.bf16.msra.mxu1 %v1820_v8  ;;  %v1884_v7 = vunpack.c.l.s8.bf16 %v708_v4  ;;  %v1891_v8 = vunpack.c.h.s8.bf16 %v707_v60 }
 0x2a8   :  { %2837 = vmatprep.subr.bf16.mxu0 %v1827_v9  ;;  %3329 = vmatprep.subr.bf16.mxu1 %v1829_v10  ;;  %v1893_v9 = vunpack.c.h.s8.bf16 %v709_v62  ;;  %v715_v10 = vld [vmem:[#allocation5 + $0xd08] sm:$0xff] }
 0x2a9   :  { %v1907_v22 = vunpack.c.h.s8.bf16 %v715_v10 }
 0x2ab   :  { %2838 = vmatpush1.bf16.msra.mxu0 %v1826_v13  ;;  %3330 = vmatpush1.bf16.msra.mxu1 %v1828_v14  ;;  %v1892_v13 = vunpack.c.h.s8.bf16 %v708_v4  ;;  %v1899_v14 = vunpack.c.l.s8.bf16 %v715_v10 }
 0x2ac   :  { %2848 = vmatprep.subr.bf16.mxu0 %v1835_v16  ;;  %3340 = vmatprep.subr.bf16.mxu1 %v1837_v18  ;;  %v714_v16 = vld [vmem:[#allocation5 + $0xd00] sm:$0xff]  ;;  %v716_v18 = vld [vmem:[#allocation5 + $0xd10] sm:$0xff] }
 0x2ad   :  { %v1898_v19 = vunpack.c.l.s8.bf16 %v714_v16  ;;  %v1900_v20 = vunpack.c.l.s8.bf16 %v716_v18  ;;  %v1908_v28 = vunpack.c.h.s8.bf16 %v716_v18  ;;  %v265_v18 = vld [vmem:[#allocation2 + $0x78] sm:$0xff] }
 0x2ae   :  { %2840 = vmatmul.mubr.bf16.vlgmr.msra.gmra.mrb[0].mxu0 %v6886_v21  ;;  %3332 = vmatmul.mubr.bf16.vlgmr.msra.gmra.mrb[0].mxu1 %v6886_v21 }
 0x2af   :  { %2849 = vmatpush1.bf16.msra.mxu0 %v1834_v23  ;;  %3341 = vmatpush1.bf16.msra.mxu1 %v1836_v24  ;;  %v1909_v23 = vunpack.c.h.s8.bf16 %v717_v11  ;;  %v723_v24 = vld [vmem:[#allocation5 + $0xd48] sm:$0xff]  ;;  %v262_v11 = vld [vmem:[#allocation2 + $0x60] sm:$0xff] }
 0x2b0   :  { %2850 = vmatprep.subr.bf16.mxu0 %v1843_v26  ;;  %3342 = vmatprep.subr.bf16.mxu1 %v1845_v27  ;;  %v725_v26 = vld [vmem:[#allocation5 + $0xd58] sm:$0xff]  ;;  %v1906_v27 = vunpack.c.h.s8.bf16 %v714_v16  ;;  %v1915_v29 = vunpack.c.l.s8.bf16 %v723_v24  ;;  %v1923_v38 = vunpack.c.h.s8.bf16 %v723_v24  ;;  %v6894_v16 = vpack.c.bf16 %v262_v11, %v262_v11  ;;  %v755_v24 = vld [vmem:[#allocation5 + $0xe48] sm:$0xff] }
 0x2b1   :  { %2880 = vmatprep.mubr.bf16.mxu0 %v6888_v31  ;;  %3372 = vmatprep.mubr.bf16.mxu1 %v6888_v31 }
 0x2b3   :  { %2851 = vmatpush1.bf16.msra.mxu0 %v1842_v32  ;;  %3343 = vmatpush1.bf16.msra.mxu1 %v1844_v33  ;;  %v1917_v32 = vunpack.c.l.s8.bf16 %v725_v26  ;;  %v722_v33 = vld [vmem:[#allocation5 + $0xd40] sm:$0xff] }
 0x2b4   :  { %2852 = vmatprep.subr.bf16.mxu0 %v1851_v34  ;;  %3344 = vmatprep.subr.bf16.mxu1 %v1853_v36  ;;  %v724_v34 = vld [vmem:[#allocation5 + $0xd50] sm:$0xff]  ;;  %v1914_v36 = vunpack.c.l.s8.bf16 %v722_v33 }
 0x2b5   :  { %v1916_v37 = vunpack.c.l.s8.bf16 %v724_v34  ;;  %v1924_v46 = vunpack.c.h.s8.bf16 %v724_v34  ;;  %v754_v34 = vld [vmem:[#allocation5 + $0xe40] sm:$0xff] }
 0x2b7   :  { %2853 = vmatpush1.bf16.msra.mxu0 %v1850_v40  ;;  %3345 = vmatpush1.bf16.msra.mxu1 %v1852_v41  ;;  %v1925_v40 = vunpack.c.h.s8.bf16 %v725_v26  ;;  %v731_v41 = vld [vmem:[#allocation5 + $0xd88] sm:$0xff]  ;;  %v757_v26 = vld [vmem:[#allocation5 + $0xe58] sm:$0xff] }
 0x2b8   :  { %2854 = vmatprep.subr.bf16.mxu0 %v1859_v43  ;;  %3346 = vmatprep.subr.bf16.mxu1 %v1861_v45  ;;  %v733_v43 = vld [vmem:[#allocation5 + $0xd98] sm:$0xff]  ;;  %v1922_v45 = vunpack.c.h.s8.bf16 %v722_v33  ;;  %v1931_v47 = vunpack.c.l.s8.bf16 %v731_v41  ;;  %v1939_v55 = vunpack.c.h.s8.bf16 %v731_v41  ;;  %v1981_v33 = vunpack.c.l.s8.bf16 %v757_v26 }
 0x2b9   :  { %v1989_v41 = vunpack.c.h.s8.bf16 %v757_v26 }
 0x2bb   :  { %2855 = vmatpush1.bf16.msra.mxu0 %v1858_v48  ;;  %3347 = vmatpush1.bf16.msra.mxu1 %v1860_v49  ;;  %v1933_v48 = vunpack.c.l.s8.bf16 %v733_v43  ;;  %v730_v49 = vld [vmem:[#allocation5 + $0xd80] sm:$0xff] }
 0x2bc   :  { %2856 = vmatprep.subr.bf16.mxu0 %v1867_v51  ;;  %3348 = vmatprep.subr.bf16.mxu1 %v1869_v52  ;;  %v732_v51 = vld [vmem:[#allocation5 + $0xd90] sm:$0xff]  ;;  %v1930_v52 = vunpack.c.l.s8.bf16 %v730_v49 }
 0x2bd   :  { %v1932_v54 = vunpack.c.l.s8.bf16 %v732_v51  ;;  %v1940_v60 = vunpack.c.h.s8.bf16 %v732_v51  ;;  %v762_v51 = vld [vmem:[#allocation5 + $0xe80] sm:$0xff] }
 0x2bf   :  { %2857 = vmatpush1.bf16.msra.mxu0 %v1866_v56  ;;  %3349 = vmatpush1.bf16.msra.mxu1 %v1868_v57  ;;  %v1941_v56 = vunpack.c.h.s8.bf16 %v733_v43  ;;  %v739_v57 = vld [vmem:[#allocation5 + $0xdc8] sm:$0xff] }
 0x2c0   :  { %2858 = vmatprep.subr.bf16.mxu0 %v1875_v58  ;;  %3350 = vmatprep.subr.bf16.mxu1 %v1877_v59  ;;  %v741_v58 = vld [vmem:[#allocation5 + $0xdd8] sm:$0xff]  ;;  %v1938_v59 = vunpack.c.h.s8.bf16 %v730_v49  ;;  %v1947_v62 = vunpack.c.l.s8.bf16 %v739_v57  ;;  %v1955_v4 = vunpack.c.h.s8.bf16 %v739_v57  ;;  %v763_v43 = vld [vmem:[#allocation5 + $0xe88] sm:$0xff] }
 0x2c3   :  { %2859 = vmatpush1.bf16.msra.mxu0 %v1874_v63  ;;  %3351 = vmatpush1.bf16.msra.mxu1 %v1876_v0  ;;  %v1949_v63 = vunpack.c.l.s8.bf16 %v741_v58  ;;  %v738_v0 = vld [vmem:[#allocation5 + $0xdc0] sm:$0xff] }
 0x2c4   :  { %2860 = vmatprep.subr.bf16.mxu0 %v1883_v1  ;;  %3352 = vmatprep.subr.bf16.mxu1 %v1885_v2  ;;  %v740_v1 = vld [vmem:[#allocation5 + $0xdd0] sm:$0xff]  ;;  %v1946_v2 = vunpack.c.l.s8.bf16 %v738_v0 }
 0x2c5   :  { %v1948_v3 = vunpack.c.l.s8.bf16 %v740_v1  ;;  %v1956_v10 = vunpack.c.h.s8.bf16 %v740_v1  ;;  %v770_v1 = vld [vmem:[#allocation5 + $0xec0] sm:$0xff] }
 0x2c7   :  { %2861 = vmatpush1.bf16.msra.mxu0 %v1882_v6  ;;  %3353 = vmatpush1.bf16.msra.mxu1 %v1884_v7  ;;  %v1957_v6 = vunpack.c.h.s8.bf16 %v741_v58  ;;  %v747_v7 = vld [vmem:[#allocation5 + $0xe08] sm:$0xff] }
 0x2c8   :  { %2862 = vmatprep.subr.bf16.mxu0 %v1891_v8  ;;  %3354 = vmatprep.subr.bf16.mxu1 %v1893_v9  ;;  %v749_v8 = vld [vmem:[#allocation5 + $0xe18] sm:$0xff]  ;;  %v1954_v9 = vunpack.c.h.s8.bf16 %v738_v0  ;;  %v771_v58 = vld [vmem:[#allocation5 + $0xec8] sm:$0xff] }
 0x2cb   :  { %2863 = vmatpush1.bf16.msra.mxu0 %v1890_v12  ;;  %3355 = vmatpush1.bf16.msra.mxu1 %v1892_v13  ;;  %v1963_v12 = vunpack.c.l.s8.bf16 %v747_v7  ;;  %v1965_v13 = vunpack.c.l.s8.bf16 %v749_v8 }
 0x2cc   :  { %2864 = vmatprep.subr.bf16.mxu0 %v1899_v14  ;;  %3356 = vmatprep.subr.bf16.mxu1 %v1901_v15  ;;  %v746_v14 = vld [vmem:[#allocation5 + $0xe00] sm:$0xff]  ;;  %v748_v15 = vld [vmem:[#allocation5 + $0xe10] sm:$0xff] }
 0x2cf   :  { %2865 = vmatpush1.bf16.msra.mxu0 %v1898_v19  ;;  %3357 = vmatpush1.bf16.msra.mxu1 %v1900_v20  ;;  %v1962_v19 = vunpack.c.l.s8.bf16 %v746_v14  ;;  %v1964_v20 = vunpack.c.l.s8.bf16 %v748_v15 }
 0x2d0   :  { %2866 = vmatprep.subr.bf16.mxu0 %v1907_v22  ;;  %3358 = vmatprep.subr.bf16.mxu1 %v1909_v23  ;;  %v1971_v22 = vunpack.c.h.s8.bf16 %v747_v7  ;;  %v1973_v23 = vunpack.c.h.s8.bf16 %v749_v8  ;;  %v779_v8 = vld [vmem:[#allocation5 + $0xf08] sm:$0xff] }
 0x2d3   :  { %2867 = vmatpush1.bf16.msra.mxu0 %v1906_v27  ;;  %3359 = vmatpush1.bf16.msra.mxu1 %v1908_v28  ;;  %v6896_v27 = vpack.c.bf16 %v265_v18, %v265_v18  ;;  %v1970_v28 = vunpack.c.h.s8.bf16 %v746_v14  ;;  %v778_v14 = vld [vmem:[#allocation5 + $0xf00] sm:$0xff] }
 0x2d4   :  { %2868 = vmatprep.subr.bf16.mxu0 %v1915_v29  ;;  %3360 = vmatprep.subr.bf16.mxu1 %v1917_v32  ;;  %v1972_v29 = vunpack.c.h.s8.bf16 %v748_v15  ;;  %v1979_v32 = vunpack.c.l.s8.bf16 %v755_v24  ;;  %v780_v15 = vld [vmem:[#allocation5 + $0xf10] sm:$0xff]  ;;  %v2026_v18 = vunpack.c.l.s8.bf16 %v778_v14  ;;  %v2034_v26 = vunpack.c.h.s8.bf16 %v778_v14  ;;  %v810_v14 = vld [vmem:[#allocation5 + $0x1000] sm:$0xff] }
 0x2d7   :  { %2869 = vmatpush1.bf16.msra.mxu0 %v1914_v36  ;;  %3361 = vmatpush1.bf16.msra.mxu1 %v1916_v37  ;;  %v756_v36 = vld [vmem:[#allocation5 + $0xe50] sm:$0xff]  ;;  %v1978_v37 = vunpack.c.l.s8.bf16 %v754_v34 }
 0x2d8   :  { %2870 = vmatprep.subr.bf16.mxu0 %v1923_v38  ;;  %3362 = vmatprep.subr.bf16.mxu1 %v1925_v40  ;;  %v1980_v38 = vunpack.c.l.s8.bf16 %v756_v36  ;;  %v1987_v40 = vunpack.c.h.s8.bf16 %v755_v24  ;;  %v789_v24 = vld [vmem:[#allocation5 + $0xf58] sm:$0xff] }
 0x2db   :  { %2871 = vmatpush1.bf16.msra.mxu0 %v1922_v45  ;;  %3363 = vmatpush1.bf16.msra.mxu1 %v1924_v46  ;;  %v765_v45 = vld [vmem:[#allocation5 + $0xe98] sm:$0xff]  ;;  %v1986_v46 = vunpack.c.h.s8.bf16 %v754_v34  ;;  %v788_v34 = vld [vmem:[#allocation5 + $0xf50] sm:$0xff] }
 0x2dc   :  { %2872 = vmatprep.subr.bf16.mxu0 %v1931_v47  ;;  %3364 = vmatprep.subr.bf16.mxu1 %v1933_v48  ;;  %v1988_v47 = vunpack.c.h.s8.bf16 %v756_v36  ;;  %v1995_v48 = vunpack.c.l.s8.bf16 %v763_v43  ;;  %v1997_v49 = vunpack.c.l.s8.bf16 %v765_v45  ;;  %v2005_v57 = vunpack.c.h.s8.bf16 %v765_v45 }
 0x2df   :  { %2873 = vmatpush1.bf16.msra.mxu0 %v1930_v52  ;;  %3365 = vmatpush1.bf16.msra.mxu1 %v1932_v54  ;;  %v764_v52 = vld [vmem:[#allocation5 + $0xe90] sm:$0xff]  ;;  %v1994_v54 = vunpack.c.l.s8.bf16 %v762_v51 }
 0x2e0   :  { %2874 = vmatprep.subr.bf16.mxu0 %v1939_v55  ;;  %3366 = vmatprep.subr.bf16.mxu1 %v1941_v56  ;;  %v1996_v55 = vunpack.c.l.s8.bf16 %v764_v52  ;;  %v2003_v56 = vunpack.c.h.s8.bf16 %v763_v43  ;;  %v797_v43 = vld [vmem:[#allocation5 + $0xf98] sm:$0xff] }
 0x2e3   :  { %2875 = vmatpush1.bf16.msra.mxu0 %v1938_v59  ;;  %3367 = vmatpush1.bf16.msra.mxu1 %v1940_v60  ;;  %v773_v59 = vld [vmem:[#allocation5 + $0xed8] sm:$0xff]  ;;  %v2002_v60 = vunpack.c.h.s8.bf16 %v762_v51  ;;  %v796_v51 = vld [vmem:[#allocation5 + $0xf90] sm:$0xff] }
 0x2e4   :  { %2876 = vmatprep.subr.bf16.mxu0 %v1947_v62  ;;  %3368 = vmatprep.subr.bf16.mxu1 %v1949_v63  ;;  %v2004_v62 = vunpack.c.h.s8.bf16 %v764_v52  ;;  %v2011_v63 = vunpack.c.l.s8.bf16 %v771_v58  ;;  %v2013_v0 = vunpack.c.l.s8.bf16 %v773_v59  ;;  %v2021_v7 = vunpack.c.h.s8.bf16 %v773_v59 }
 0x2e7   :  { %2877 = vmatpush1.bf16.msra.mxu0 %v1946_v2  ;;  %3369 = vmatpush1.bf16.msra.mxu1 %v1948_v3  ;;  %v772_v2 = vld [vmem:[#allocation5 + $0xed0] sm:$0xff]  ;;  %v2010_v3 = vunpack.c.l.s8.bf16 %v770_v1 }
 0x2e8   :  { %2878 = vmatprep.subr.bf16.mxu0 %v1955_v4  ;;  %3370 = vmatprep.subr.bf16.mxu1 %v1957_v6  ;;  %v2012_v4 = vunpack.c.l.s8.bf16 %v772_v2  ;;  %v2019_v6 = vunpack.c.h.s8.bf16 %v771_v58  ;;  %v2020_v11 = vunpack.c.h.s8.bf16 %v772_v2  ;;  %v805_v58 = vld [vmem:[#allocation5 + $0xfd8] sm:$0xff] }
 0x2eb   :  { %2879 = vmatpush1.bf16.msra.mxu0 %v1954_v9  ;;  %3371 = vmatpush1.bf16.msra.mxu1 %v1956_v10  ;;  %v781_v9 = vld [vmem:[#allocation5 + $0xf18] sm:$0xff]  ;;  %v2018_v10 = vunpack.c.h.s8.bf16 %v770_v1  ;;  %v804_v1 = vld [vmem:[#allocation5 + $0xfd0] sm:$0xff] }
 0x2ec   :  { %2889 = vmatprep.subr.bf16.mxu0 %v1963_v12  ;;  %3381 = vmatprep.subr.bf16.mxu1 %v1965_v13  ;;  %v2027_v12 = vunpack.c.l.s8.bf16 %v779_v8  ;;  %v2029_v13 = vunpack.c.l.s8.bf16 %v781_v9 }
 0x2ee   :  { %2881 = vmatmul.mubr.bf16.vlgmr.msra.gmra.mrb[0].mxu0 %v6894_v16  ;;  %3373 = vmatmul.mubr.bf16.vlgmr.msra.gmra.mrb[0].mxu1 %v6894_v16 }
 0x2ef   :  { %2890 = vmatpush1.bf16.msra.mxu0 %v1962_v19  ;;  %3382 = vmatpush1.bf16.msra.mxu1 %v1964_v20  ;;  %v2028_v19 = vunpack.c.l.s8.bf16 %v780_v15  ;;  %v2035_v20 = vunpack.c.h.s8.bf16 %v779_v8  ;;  %v813_v8 = vld [vmem:[#allocation5 + $0x1018] sm:$0xff] }
 0x2f0   :  { %2891 = vmatprep.subr.bf16.mxu0 %v1971_v22  ;;  %3383 = vmatprep.subr.bf16.mxu1 %v1973_v23  ;;  %v2037_v22 = vunpack.c.h.s8.bf16 %v781_v9  ;;  %v787_v23 = vld [vmem:[#allocation5 + $0xf48] sm:$0xff] }
 0x2f1   :  { %2921 = vmatprep.mubr.bf16.mxu0 %v6896_v27  ;;  %3413 = vmatprep.mubr.bf16.mxu1 %v6896_v27 }
 0x2f3   :  { %2892 = vmatpush1.bf16.msra.mxu0 %v1970_v28  ;;  %3384 = vmatpush1.bf16.msra.mxu1 %v1972_v29  ;;  %v2036_v28 = vunpack.c.h.s8.bf16 %v780_v15  ;;  %v2043_v29 = vunpack.c.l.s8.bf16 %v787_v23  ;;  %v812_v15 = vld [vmem:[#allocation5 + $0x1010] sm:$0xff] }
 0x2f4   :  { %2893 = vmatprep.subr.bf16.mxu0 %v1979_v32  ;;  %3385 = vmatprep.subr.bf16.mxu1 %v1981_v33  ;;  %v2045_v32 = vunpack.c.l.s8.bf16 %v789_v24  ;;  %v786_v33 = vld [vmem:[#allocation5 + $0xf40] sm:$0xff] }
 0x2f5   :  { %v2042_v36 = vunpack.c.l.s8.bf16 %v786_v33  ;;  %v2050_v45 = vunpack.c.h.s8.bf16 %v786_v33  ;;  %v2100_v33 = vunpack.c.h.s8.bf16 %v812_v15 }
 0x2f7   :  { %2894 = vmatpush1.bf16.msra.mxu0 %v1978_v37  ;;  %3386 = vmatpush1.bf16.msra.mxu1 %v1980_v38  ;;  %v2044_v37 = vunpack.c.l.s8.bf16 %v788_v34  ;;  %v2051_v38 = vunpack.c.h.s8.bf16 %v787_v23 }
 0x2f8   :  { %2895 = vmatprep.subr.bf16.mxu0 %v1987_v40  ;;  %3387 = vmatprep.subr.bf16.mxu1 %v1989_v41  ;;  %v2053_v40 = vunpack.c.h.s8.bf16 %v789_v24  ;;  %v795_v41 = vld [vmem:[#allocation5 + $0xf88] sm:$0xff]  ;;  %v2101_v24 = vunpack.c.h.s8.bf16 %v813_v8 }
 0x2fb   :  { %2896 = vmatpush1.bf16.msra.mxu0 %v1986_v46  ;;  %3388 = vmatpush1.bf16.msra.mxu1 %v1988_v47  ;;  %v2052_v46 = vunpack.c.h.s8.bf16 %v788_v34  ;;  %v2059_v47 = vunpack.c.l.s8.bf16 %v795_v41 }
 0x2fc   :  { %2897 = vmatprep.subr.bf16.mxu0 %v1995_v48  ;;  %3389 = vmatprep.subr.bf16.mxu1 %v1997_v49  ;;  %v2061_v48 = vunpack.c.l.s8.bf16 %v797_v43  ;;  %v794_v49 = vld [vmem:[#allocation5 + $0xf80] sm:$0xff] }
 0x2fd   :  { %v2058_v52 = vunpack.c.l.s8.bf16 %v794_v49  ;;  %v2066_v59 = vunpack.c.h.s8.bf16 %v794_v49 }
 0x2ff   :  { %2898 = vmatpush1.bf16.msra.mxu0 %v1994_v54  ;;  %3390 = vmatpush1.bf16.msra.mxu1 %v1996_v55  ;;  %v2060_v54 = vunpack.c.l.s8.bf16 %v796_v51  ;;  %v2067_v55 = vunpack.c.h.s8.bf16 %v795_v41 }
 0x300   :  { %2899 = vmatprep.subr.bf16.mxu0 %v2003_v56  ;;  %3391 = vmatprep.subr.bf16.mxu1 %v2005_v57  ;;  %v2069_v56 = vunpack.c.h.s8.bf16 %v797_v43  ;;  %v803_v57 = vld [vmem:[#allocation5 + $0xfc8] sm:$0xff] }
 0x303   :  { %2900 = vmatpush1.bf16.msra.mxu0 %v2002_v60  ;;  %3392 = vmatpush1.bf16.msra.mxu1 %v2004_v62  ;;  %v2068_v60 = vunpack.c.h.s8.bf16 %v796_v51  ;;  %v2075_v62 = vunpack.c.l.s8.bf16 %v803_v57 }
 0x304   :  { %2901 = vmatprep.subr.bf16.mxu0 %v2011_v63  ;;  %3393 = vmatprep.subr.bf16.mxu1 %v2013_v0  ;;  %v2077_v63 = vunpack.c.l.s8.bf16 %v805_v58  ;;  %v802_v0 = vld [vmem:[#allocation5 + $0xfc0] sm:$0xff] }
 0x305   :  { %v2074_v2 = vunpack.c.l.s8.bf16 %v802_v0  ;;  %v2082_v9 = vunpack.c.h.s8.bf16 %v802_v0 }
 0x307   :  { %2902 = vmatpush1.bf16.msra.mxu0 %v2010_v3  ;;  %3394 = vmatpush1.bf16.msra.mxu1 %v2012_v4  ;;  %v2076_v3 = vunpack.c.l.s8.bf16 %v804_v1  ;;  %v2083_v4 = vunpack.c.h.s8.bf16 %v803_v57 }
 0x308   :  { %2903 = vmatprep.subr.bf16.mxu0 %v2019_v6  ;;  %3395 = vmatprep.subr.bf16.mxu1 %v2021_v7  ;;  %v2085_v6 = vunpack.c.h.s8.bf16 %v805_v58  ;;  %v811_v7 = vld [vmem:[#allocation5 + $0x1008] sm:$0xff] }
 0x309   :  { %v2099_v23 = vunpack.c.h.s8.bf16 %v811_v7 }
 0x30b   :  { %2904 = vmatpush1.bf16.msra.mxu0 %v2018_v10  ;;  %3396 = vmatpush1.bf16.msra.mxu1 %v2020_v11  ;;  %v2084_v10 = vunpack.c.h.s8.bf16 %v804_v1  ;;  %v264_v11 = vld [vmem:[#allocation2 + $0x70] sm:$0xff] }
 0x30c   :  { %2905 = vmatprep.subr.bf16.mxu0 %v2027_v12  ;;  %3397 = vmatprep.subr.bf16.mxu1 %v2029_v13  ;;  %v2091_v12 = vunpack.c.l.s8.bf16 %v811_v7  ;;  %v2093_v13 = vunpack.c.l.s8.bf16 %v813_v8 }
 0x30f   :  { %2906 = vmatpush1.bf16.msra.mxu0 %v2026_v18  ;;  %3398 = vmatpush1.bf16.msra.mxu1 %v2028_v19  ;;  %v6902_v18 = vpack.c.bf16 %v264_v11, %v264_v11  ;;  %v267_v19 = vld [vmem:[#allocation2 + $0x88] sm:$0xff]  ;;  %v845_v11 = vld [vmem:[#allocation5 + $0x1118] sm:$0xff] }
 0x310   :  { %2907 = vmatprep.subr.bf16.mxu0 %v2035_v20  ;;  %3399 = vmatprep.subr.bf16.mxu1 %v2037_v22  ;;  %v2090_v20 = vunpack.c.l.s8.bf16 %v810_v14  ;;  %v2092_v22 = vunpack.c.l.s8.bf16 %v812_v15  ;;  %v2157_v15 = vunpack.c.l.s8.bf16 %v845_v11 }
 0x313   :  { %2908 = vmatpush1.bf16.msra.mxu0 %v2034_v26  ;;  %3400 = vmatpush1.bf16.msra.mxu1 %v2036_v28  ;;  %v819_v26 = vld [vmem:[#allocation5 + $0x1048] sm:$0xff]  ;;  %v821_v28 = vld [vmem:[#allocation5 + $0x1058] sm:$0xff] }
 0x314   :  { %2909 = vmatprep.subr.bf16.mxu0 %v2043_v29  ;;  %3401 = vmatprep.subr.bf16.mxu1 %v2045_v32  ;;  %v6904_v29 = vpack.c.bf16 %v267_v19, %v267_v19  ;;  %v2098_v32 = vunpack.c.h.s8.bf16 %v810_v14  ;;  %v2107_v34 = vunpack.c.l.s8.bf16 %v819_v26  ;;  %v2115_v43 = vunpack.c.h.s8.bf16 %v819_v26  ;;  %v842_v19 = vld [vmem:[#allocation5 + $0x1100] sm:$0xff] }
 0x315   :  { %v2165_v26 = vunpack.c.h.s8.bf16 %v845_v11  ;;  %v875_v11 = vld [vmem:[#allocation5 + $0x1208] sm:$0xff] }
 0x317   :  { %2910 = vmatpush1.bf16.msra.mxu0 %v2042_v36  ;;  %3402 = vmatpush1.bf16.msra.mxu1 %v2044_v37  ;;  %v2109_v36 = vunpack.c.l.s8.bf16 %v821_v28  ;;  %v818_v37 = vld [vmem:[#allocation5 + $0x1040] sm:$0xff] }
 0x318   :  { %2911 = vmatprep.subr.bf16.mxu0 %v2051_v38  ;;  %3403 = vmatprep.subr.bf16.mxu1 %v2053_v40  ;;  %v820_v38 = vld [vmem:[#allocation5 + $0x1050] sm:$0xff]  ;;  %v2106_v40 = vunpack.c.l.s8.bf16 %v818_v37 }
 0x319   :  { %v2108_v41 = vunpack.c.l.s8.bf16 %v820_v38  ;;  %v2116_v49 = vunpack.c.h.s8.bf16 %v820_v38  ;;  %v850_v38 = vld [vmem:[#allocation5 + $0x1140] sm:$0xff] }
 0x31b   :  { %2912 = vmatpush1.bf16.msra.mxu0 %v2050_v45  ;;  %3404 = vmatpush1.bf16.msra.mxu1 %v2052_v46  ;;  %v2117_v45 = vunpack.c.h.s8.bf16 %v821_v28  ;;  %v827_v46 = vld [vmem:[#allocation5 + $0x1088] sm:$0xff] }
 0x31c   :  { %2913 = vmatprep.subr.bf16.mxu0 %v2059_v47  ;;  %3405 = vmatprep.subr.bf16.mxu1 %v2061_v48  ;;  %v829_v47 = vld [vmem:[#allocation5 + $0x1098] sm:$0xff]  ;;  %v2114_v48 = vunpack.c.h.s8.bf16 %v818_v37  ;;  %v2123_v51 = vunpack.c.l.s8.bf16 %v827_v46  ;;  %v2131_v58 = vunpack.c.h.s8.bf16 %v827_v46  ;;  %v851_v28 = vld [vmem:[#allocation5 + $0x1148] sm:$0xff] }
 0x31f   :  { %2914 = vmatpush1.bf16.msra.mxu0 %v2058_v52  ;;  %3406 = vmatpush1.bf16.msra.mxu1 %v2060_v54  ;;  %v2125_v52 = vunpack.c.l.s8.bf16 %v829_v47  ;;  %v826_v54 = vld [vmem:[#allocation5 + $0x1080] sm:$0xff] }
 0x320   :  { %2915 = vmatprep.subr.bf16.mxu0 %v2067_v55  ;;  %3407 = vmatprep.subr.bf16.mxu1 %v2069_v56  ;;  %v828_v55 = vld [vmem:[#allocation5 + $0x1090] sm:$0xff]  ;;  %v2122_v56 = vunpack.c.l.s8.bf16 %v826_v54 }
 0x321   :  { %v2124_v57 = vunpack.c.l.s8.bf16 %v828_v55  ;;  %v2132_v0 = vunpack.c.h.s8.bf16 %v828_v55  ;;  %v858_v55 = vld [vmem:[#allocation5 + $0x1180] sm:$0xff] }
 0x323   :  { %2916 = vmatpush1.bf16.msra.mxu0 %v2066_v59  ;;  %3408 = vmatpush1.bf16.msra.mxu1 %v2068_v60  ;;  %v2133_v59 = vunpack.c.h.s8.bf16 %v829_v47  ;;  %v835_v60 = vld [vmem:[#allocation5 + $0x10c8] sm:$0xff] }
 0x324   :  { %2917 = vmatprep.subr.bf16.mxu0 %v2075_v62  ;;  %3409 = vmatprep.subr.bf16.mxu1 %v2077_v63  ;;  %v837_v62 = vld [vmem:[#allocation5 + $0x10d8] sm:$0xff]  ;;  %v2130_v63 = vunpack.c.h.s8.bf16 %v826_v54  ;;  %v2139_v1 = vunpack.c.l.s8.bf16 %v835_v60  ;;  %v2147_v8 = vunpack.c.h.s8.bf16 %v835_v60  ;;  %v859_v47 = vld [vmem:[#allocation5 + $0x1188] sm:$0xff] }
 0x327   :  { %2918 = vmatpush1.bf16.msra.mxu0 %v2074_v2  ;;  %3410 = vmatpush1.bf16.msra.mxu1 %v2076_v3  ;;  %v2141_v2 = vunpack.c.l.s8.bf16 %v837_v62  ;;  %v834_v3 = vld [vmem:[#allocation5 + $0x10c0] sm:$0xff] }
 0x328   :  { %2919 = vmatprep.subr.bf16.mxu0 %v2083_v4  ;;  %3411 = vmatprep.subr.bf16.mxu1 %v2085_v6  ;;  %v836_v4 = vld [vmem:[#allocation5 + $0x10d0] sm:$0xff]  ;;  %v2138_v6 = vunpack.c.l.s8.bf16 %v834_v3 }
 0x329   :  { %v2140_v7 = vunpack.c.l.s8.bf16 %v836_v4 }
 0x32b   :  { %2920 = vmatpush1.bf16.msra.mxu0 %v2082_v9  ;;  %3412 = vmatpush1.bf16.msra.mxu1 %v2084_v10  ;;  %v2149_v9 = vunpack.c.h.s8.bf16 %v837_v62  ;;  %v843_v10 = vld [vmem:[#allocation5 + $0x1108] sm:$0xff] }
 0x32c   :  { %2930 = vmatprep.subr.bf16.mxu0 %v2091_v12  ;;  %3422 = vmatprep.subr.bf16.mxu1 %v2093_v13  ;;  %v2146_v12 = vunpack.c.h.s8.bf16 %v834_v3  ;;  %v2148_v13 = vunpack.c.h.s8.bf16 %v836_v4  ;;  %v2155_v14 = vunpack.c.l.s8.bf16 %v843_v10  ;;  %v867_v62 = vld [vmem:[#allocation5 + $0x11c8] sm:$0xff]  ;;  %v866_v4 = vld [vmem:[#allocation5 + $0x11c0] sm:$0xff] }
 0x32e   :  { %2922 = vmatmul.mubr.bf16.vlgmr.msra.gmra.mrb[0].mxu0 %v6902_v18  ;;  %3414 = vmatmul.mubr.bf16.vlgmr.msra.gmra.mrb[0].mxu1 %v6902_v18 }
 0x32f   :  { %2931 = vmatpush1.bf16.msra.mxu0 %v2090_v20  ;;  %3423 = vmatpush1.bf16.msra.mxu1 %v2092_v22  ;;  %v844_v20 = vld [vmem:[#allocation5 + $0x1110] sm:$0xff]  ;;  %v2154_v22 = vunpack.c.l.s8.bf16 %v842_v19 }
 0x330   :  { %2932 = vmatprep.subr.bf16.mxu0 %v2099_v23  ;;  %3424 = vmatprep.subr.bf16.mxu1 %v2101_v24  ;;  %v2156_v23 = vunpack.c.l.s8.bf16 %v844_v20  ;;  %v2163_v24 = vunpack.c.h.s8.bf16 %v843_v10 }
 0x331   :  { %2962 = vmatprep.mubr.bf16.mxu0 %v6904_v29  ;;  %3454 = vmatprep.mubr.bf16.mxu1 %v6904_v29 }
 0x333   :  { %2933 = vmatpush1.bf16.msra.mxu0 %v2098_v32  ;;  %3425 = vmatpush1.bf16.msra.mxu1 %v2100_v33  ;;  %v853_v32 = vld [vmem:[#allocation5 + $0x1158] sm:$0xff]  ;;  %v2162_v33 = vunpack.c.h.s8.bf16 %v842_v19  ;;  %v2219_v19 = vunpack.c.l.s8.bf16 %v875_v11 }
 0x334   :  { %2934 = vmatprep.subr.bf16.mxu0 %v2107_v34  ;;  %3426 = vmatprep.subr.bf16.mxu1 %v2109_v36  ;;  %v2164_v34 = vunpack.c.h.s8.bf16 %v844_v20  ;;  %v2171_v36 = vunpack.c.l.s8.bf16 %v851_v28  ;;  %v2173_v37 = vunpack.c.l.s8.bf16 %v853_v32  ;;  %v2181_v46 = vunpack.c.h.s8.bf16 %v853_v32 }
 0x337   :  { %2935 = vmatpush1.bf16.msra.mxu0 %v2106_v40  ;;  %3427 = vmatpush1.bf16.msra.mxu1 %v2108_v41  ;;  %v852_v40 = vld [vmem:[#allocation5 + $0x1150] sm:$0xff]  ;;  %v2170_v41 = vunpack.c.l.s8.bf16 %v850_v38 }
 0x338   :  { %2936 = vmatprep.subr.bf16.mxu0 %v2115_v43  ;;  %3428 = vmatprep.subr.bf16.mxu1 %v2117_v45  ;;  %v2172_v43 = vunpack.c.l.s8.bf16 %v852_v40  ;;  %v2179_v45 = vunpack.c.h.s8.bf16 %v851_v28 }
 0x33b   :  { %2937 = vmatpush1.bf16.msra.mxu0 %v2114_v48  ;;  %3429 = vmatpush1.bf16.msra.mxu1 %v2116_v49  ;;  %v861_v48 = vld [vmem:[#allocation5 + $0x1198] sm:$0xff]  ;;  %v2178_v49 = vunpack.c.h.s8.bf16 %v850_v38 }
 0x33c   :  { %2938 = vmatprep.subr.bf16.mxu0 %v2123_v51  ;;  %3430 = vmatprep.subr.bf16.mxu1 %v2125_v52  ;;  %v2180_v51 = vunpack.c.h.s8.bf16 %v852_v40  ;;  %v2187_v52 = vunpack.c.l.s8.bf16 %v859_v47  ;;  %v2189_v54 = vunpack.c.l.s8.bf16 %v861_v48  ;;  %v2197_v60 = vunpack.c.h.s8.bf16 %v861_v48 }
 0x33f   :  { %2939 = vmatpush1.bf16.msra.mxu0 %v2122_v56  ;;  %3431 = vmatpush1.bf16.msra.mxu1 %v2124_v57  ;;  %v860_v56 = vld [vmem:[#allocation5 + $0x1190] sm:$0xff]  ;;  %v2186_v57 = vunpack.c.l.s8.bf16 %v858_v55 }
 0x340   :  { %2940 = vmatprep.subr.bf16.mxu0 %v2131_v58  ;;  %3432 = vmatprep.subr.bf16.mxu1 %v2133_v59  ;;  %v2188_v58 = vunpack.c.l.s8.bf16 %v860_v56  ;;  %v2195_v59 = vunpack.c.h.s8.bf16 %v859_v47  ;;  %v884_v47 = vld [vmem:[#allocation5 + $0x1250] sm:$0xff] }
 0x343   :  { %2941 = vmatpush1.bf16.msra.mxu0 %v2130_v63  ;;  %3433 = vmatpush1.bf16.msra.mxu1 %v2132_v0  ;;  %v869_v63 = vld [vmem:[#allocation5 + $0x11d8] sm:$0xff]  ;;  %v2194_v0 = vunpack.c.h.s8.bf16 %v858_v55 }
 0x344   :  { %2942 = vmatprep.subr.bf16.mxu0 %v2139_v1  ;;  %3434 = vmatprep.subr.bf16.mxu1 %v2141_v2  ;;  %v2196_v1 = vunpack.c.h.s8.bf16 %v860_v56  ;;  %v2203_v2 = vunpack.c.l.s8.bf16 %v867_v62  ;;  %v2205_v3 = vunpack.c.l.s8.bf16 %v869_v63  ;;  %v2213_v10 = vunpack.c.h.s8.bf16 %v869_v63  ;;  %v893_v55 = vld [vmem:[#allocation5 + $0x1298] sm:$0xff] }
 0x347   :  { %2943 = vmatpush1.bf16.msra.mxu0 %v2138_v6  ;;  %3435 = vmatpush1.bf16.msra.mxu1 %v2140_v7  ;;  %v868_v6 = vld [vmem:[#allocation5 + $0x11d0] sm:$0xff]  ;;  %v2202_v7 = vunpack.c.l.s8.bf16 %v866_v4 }
 0x348   :  { %2944 = vmatprep.subr.bf16.mxu0 %v2147_v8  ;;  %3436 = vmatprep.subr.bf16.mxu1 %v2149_v9  ;;  %v2204_v8 = vunpack.c.l.s8.bf16 %v868_v6  ;;  %v2211_v9 = vunpack.c.h.s8.bf16 %v867_v62  ;;  %v892_v62 = vld [vmem:[#allocation5 + $0x1290] sm:$0xff] }
 0x34b   :  { %2945 = vmatpush1.bf16.msra.mxu0 %v2146_v12  ;;  %3437 = vmatpush1.bf16.msra.mxu1 %v2148_v13  ;;  %v877_v12 = vld [vmem:[#allocation5 + $0x1218] sm:$0xff]  ;;  %v2210_v13 = vunpack.c.h.s8.bf16 %v866_v4 }
 0x34c   :  { %2946 = vmatprep.subr.bf16.mxu0 %v2155_v14  ;;  %3438 = vmatprep.subr.bf16.mxu1 %v2157_v15  ;;  %v2212_v14 = vunpack.c.h.s8.bf16 %v868_v6  ;;  %v266_v15 = vld [vmem:[#allocation2 + $0x80] sm:$0xff]  ;;  %v2221_v20 = vunpack.c.l.s8.bf16 %v877_v12  ;;  %v901_v4 = vld [vmem:[#allocation5 + $0x12d8] sm:$0xff] }
 0x34f   :  { %2947 = vmatpush1.bf16.msra.mxu0 %v2154_v22  ;;  %3439 = vmatpush1.bf16.msra.mxu1 %v2156_v23  ;;  %v874_v22 = vld [vmem:[#allocation5 + $0x1200] sm:$0xff]  ;;  %v876_v23 = vld [vmem:[#allocation5 + $0x1210] sm:$0xff] }
 0x350   :  { %2948 = vmatprep.subr.bf16.mxu0 %v2163_v24  ;;  %3440 = vmatprep.subr.bf16.mxu1 %v2165_v26  ;;  %v6910_v24 = vpack.c.bf16 %v266_v15, %v266_v15  ;;  %v269_v26 = vld [vmem:[#allocation2 + $0x98] sm:$0xff]  ;;  %v2218_v28 = vunpack.c.l.s8.bf16 %v874_v22  ;;  %v2220_v32 = vunpack.c.l.s8.bf16 %v876_v23  ;;  %v2226_v40 = vunpack.c.h.s8.bf16 %v874_v22 }
 0x351   :  { %v6912_v38 = vpack.c.bf16 %v269_v26, %v269_v26  ;;  %v2277_v15 = vunpack.c.h.s8.bf16 %v901_v4 }
 0x353   :  { %2949 = vmatpush1.bf16.msra.mxu0 %v2162_v33  ;;  %3441 = vmatpush1.bf16.msra.mxu1 %v2164_v34  ;;  %v2227_v33 = vunpack.c.h.s8.bf16 %v875_v11  ;;  %v2229_v34 = vunpack.c.h.s8.bf16 %v877_v12  ;;  %v900_v11 = vld [vmem:[#allocation5 + $0x12d0] sm:$0xff] }
 0x354   :  { %2950 = vmatprep.subr.bf16.mxu0 %v2171_v36  ;;  %3442 = vmatprep.subr.bf16.mxu1 %v2173_v37  ;;  %v883_v36 = vld [vmem:[#allocation5 + $0x1248] sm:$0xff]  ;;  %v885_v37 = vld [vmem:[#allocation5 + $0x1258] sm:$0xff] }
 0x357   :  { %2951 = vmatpush1.bf16.msra.mxu0 %v2170_v41  ;;  %3443 = vmatpush1.bf16.msra.mxu1 %v2172_v43  ;;  %v2228_v41 = vunpack.c.h.s8.bf16 %v876_v23  ;;  %v2235_v43 = vunpack.c.l.s8.bf16 %v883_v36  ;;  %v2276_v23 = vunpack.c.h.s8.bf16 %v900_v11 }
 0x358   :  { %2952 = vmatprep.subr.bf16.mxu0 %v2179_v45  ;;  %3444 = vmatprep.subr.bf16.mxu1 %v2181_v46  ;;  %v2237_v45 = vunpack.c.l.s8.bf16 %v885_v37  ;;  %v882_v46 = vld [vmem:[#allocation5 + $0x1240] sm:$0xff] }
 0x359   :  { %v2234_v48 = vunpack.c.l.s8.bf16 %v882_v46  ;;  %v2242_v56 = vunpack.c.h.s8.bf16 %v882_v46 }
 0x35b   :  { %2953 = vmatpush1.bf16.msra.mxu0 %v2178_v49  ;;  %3445 = vmatpush1.bf16.msra.mxu1 %v2180_v51  ;;  %v2236_v49 = vunpack.c.l.s8.bf16 %v884_v47  ;;  %v2243_v51 = vunpack.c.h.s8.bf16 %v883_v36 }
 0x35c   :  { %2954 = vmatprep.subr.bf16.mxu0 %v2187_v52  ;;  %3446 = vmatprep.subr.bf16.mxu1 %v2189_v54  ;;  %v2245_v52 = vunpack.c.h.s8.bf16 %v885_v37  ;;  %v891_v54 = vld [vmem:[#allocation5 + $0x1288] sm:$0xff] }
 0x35f   :  { %2955 = vmatpush1.bf16.msra.mxu0 %v2186_v57  ;;  %3447 = vmatpush1.bf16.msra.mxu1 %v2188_v58  ;;  %v2244_v57 = vunpack.c.h.s8.bf16 %v884_v47  ;;  %v2251_v58 = vunpack.c.l.s8.bf16 %v891_v54 }
 0x360   :  { %2956 = vmatprep.subr.bf16.mxu0 %v2195_v59  ;;  %3448 = vmatprep.subr.bf16.mxu1 %v2197_v60  ;;  %v2253_v59 = vunpack.c.l.s8.bf16 %v893_v55  ;;  %v890_v60 = vld [vmem:[#allocation5 + $0x1280] sm:$0xff] }
 0x361   :  { %v2250_v63 = vunpack.c.l.s8.bf16 %v890_v60  ;;  %v2258_v6 = vunpack.c.h.s8.bf16 %v890_v60 }
 0x363   :  { %2957 = vmatpush1.bf16.msra.mxu0 %v2194_v0  ;;  %3449 = vmatpush1.bf16.msra.mxu1 %v2196_v1  ;;  %v2252_v0 = vunpack.c.l.s8.bf16 %v892_v62  ;;  %v2259_v1 = vunpack.c.h.s8.bf16 %v891_v54 }
 0x364   :  { %2958 = vmatprep.subr.bf16.mxu0 %v2203_v2  ;;  %3450 = vmatprep.subr.bf16.mxu1 %v2205_v3  ;;  %v2261_v2 = vunpack.c.h.s8.bf16 %v893_v55  ;;  %v899_v3 = vld [vmem:[#allocation5 + $0x12c8] sm:$0xff] }
 0x367   :  { %2959 = vmatpush1.bf16.msra.mxu0 %v2202_v7  ;;  %3451 = vmatpush1.bf16.msra.mxu1 %v2204_v8  ;;  %v2260_v7 = vunpack.c.h.s8.bf16 %v892_v62  ;;  %v2267_v8 = vunpack.c.l.s8.bf16 %v899_v3 }
 0x368   :  { %2960 = vmatprep.subr.bf16.mxu0 %v2211_v9  ;;  %3452 = vmatprep.subr.bf16.mxu1 %v2213_v10  ;;  %v2269_v9 = vunpack.c.l.s8.bf16 %v901_v4  ;;  %v898_v10 = vld [vmem:[#allocation5 + $0x12c0] sm:$0xff] }
 0x369   :  { %v2266_v12 = vunpack.c.l.s8.bf16 %v898_v10  ;;  %v2274_v22 = vunpack.c.h.s8.bf16 %v898_v10 }
 0x36b   :  { %2961 = vmatpush1.bf16.msra.mxu0 %v2210_v13  ;;  %3453 = vmatpush1.bf16.msra.mxu1 %v2212_v14  ;;  %v2268_v13 = vunpack.c.l.s8.bf16 %v900_v11  ;;  %v2275_v14 = vunpack.c.h.s8.bf16 %v899_v3 }
 0x36c   :  { %2971 = vmatprep.subr.bf16.mxu0 %v2219_v19  ;;  %3463 = vmatprep.subr.bf16.mxu1 %v2221_v20  ;;  %v907_v19 = vld [vmem:[#allocation5 + $0x1308] sm:$0xff]  ;;  %v909_v20 = vld [vmem:[#allocation5 + $0x1318] sm:$0xff] }
 0x36d   :  { %v2283_v26 = vunpack.c.l.s8.bf16 %v907_v19  ;;  %v2291_v37 = vunpack.c.h.s8.bf16 %v907_v19 }
 0x36e   :  { %2963 = vmatmul.mubr.bf16.vlgmr.msra.gmra.mrb[0].mxu0 %v6910_v24  ;;  %3455 = vmatmul.mubr.bf16.vlgmr.msra.gmra.mrb[0].mxu1 %v6910_v24 }
 0x36f   :  { %2972 = vmatpush1.bf16.msra.mxu0 %v2218_v28  ;;  %3464 = vmatpush1.bf16.msra.mxu1 %v2220_v32  ;;  %v2285_v28 = vunpack.c.l.s8.bf16 %v909_v20  ;;  %v906_v32 = vld [vmem:[#allocation5 + $0x1300] sm:$0xff] }
 0x370   :  { %2973 = vmatprep.subr.bf16.mxu0 %v2227_v33  ;;  %3465 = vmatprep.subr.bf16.mxu1 %v2229_v34  ;;  %v908_v33 = vld [vmem:[#allocation5 + $0x1310] sm:$0xff]  ;;  %v2282_v34 = vunpack.c.l.s8.bf16 %v906_v32 }
 0x371   :  { %3003 = vmatprep.mubr.bf16.mxu0 %v6912_v38  ;;  %3495 = vmatprep.mubr.bf16.mxu1 %v6912_v38  ;;  %v2284_v36 = vunpack.c.l.s8.bf16 %v908_v33  ;;  %v2292_v46 = vunpack.c.h.s8.bf16 %v908_v33  ;;  %v268_v33 = vld [vmem:[#allocation2 + $0x90] sm:$0xff] }
 0x373   :  { %2974 = vmatpush1.bf16.msra.mxu0 %v2226_v40  ;;  %3466 = vmatpush1.bf16.msra.mxu1 %v2228_v41  ;;  %v2293_v40 = vunpack.c.h.s8.bf16 %v909_v20  ;;  %v915_v41 = vld [vmem:[#allocation5 + $0x1348] sm:$0xff] }
 0x374   :  { %2975 = vmatprep.subr.bf16.mxu0 %v2235_v43  ;;  %3467 = vmatprep.subr.bf16.mxu1 %v2237_v45  ;;  %v917_v43 = vld [vmem:[#allocation5 + $0x1358] sm:$0xff]  ;;  %v2290_v45 = vunpack.c.h.s8.bf16 %v906_v32  ;;  %v2299_v47 = vunpack.c.l.s8.bf16 %v915_v41  ;;  %v2307_v55 = vunpack.c.h.s8.bf16 %v915_v41  ;;  %v6918_v41 = vpack.c.bf16 %v268_v33, %v268_v33 }
 0x377   :  { %2976 = vmatpush1.bf16.msra.mxu0 %v2234_v48  ;;  %3468 = vmatpush1.bf16.msra.mxu1 %v2236_v49  ;;  %v2301_v48 = vunpack.c.l.s8.bf16 %v917_v43  ;;  %v914_v49 = vld [vmem:[#allocation5 + $0x1340] sm:$0xff] }
 0x378   :  { %2977 = vmatprep.subr.bf16.mxu0 %v2243_v51  ;;  %3469 = vmatprep.subr.bf16.mxu1 %v2245_v52  ;;  %v916_v51 = vld [vmem:[#allocation5 + $0x1350] sm:$0xff]  ;;  %v2298_v52 = vunpack.c.l.s8.bf16 %v914_v49 }
 0x379   :  { %v2300_v54 = vunpack.c.l.s8.bf16 %v916_v51  ;;  %v2308_v60 = vunpack.c.h.s8.bf16 %v916_v51  ;;  %v949_v51 = vld [vmem:[#allocation5 + $0x1458] sm:$0xff] }
 0x37b   :  { %2978 = vmatpush1.bf16.msra.mxu0 %v2242_v56  ;;  %3470 = vmatpush1.bf16.msra.mxu1 %v2244_v57  ;;  %v2309_v56 = vunpack.c.h.s8.bf16 %v917_v43  ;;  %v923_v57 = vld [vmem:[#allocation5 + $0x1388] sm:$0xff] }
 0x37c   :  { %2979 = vmatprep.subr.bf16.mxu0 %v2251_v58  ;;  %3471 = vmatprep.subr.bf16.mxu1 %v2253_v59  ;;  %v925_v58 = vld [vmem:[#allocation5 + $0x1398] sm:$0xff]  ;;  %v2306_v59 = vunpack.c.h.s8.bf16 %v914_v49  ;;  %v2315_v62 = vunpack.c.l.s8.bf16 %v923_v57  ;;  %v2323_v4 = vunpack.c.h.s8.bf16 %v923_v57  ;;  %v271_v43 = vld [vmem:[#allocation2 + $0xa8] sm:$0xff]  ;;  %v2365_v57 = vunpack.c.l.s8.bf16 %v949_v51 }
 0x37d   :  { %v947_v49 = vld [vmem:[#allocation5 + $0x1448] sm:$0xff] }
 0x37f   :  { %2980 = vmatpush1.bf16.msra.mxu0 %v2250_v63  ;;  %3472 = vmatpush1.bf16.msra.mxu1 %v2252_v0  ;;  %v2317_v63 = vunpack.c.l.s8.bf16 %v925_v58  ;;  %v922_v0 = vld [vmem:[#allocation5 + $0x1380] sm:$0xff] }
 0x380   :  { %2981 = vmatprep.subr.bf16.mxu0 %v2259_v1  ;;  %3473 = vmatprep.subr.bf16.mxu1 %v2261_v2  ;;  %v924_v1 = vld [vmem:[#allocation5 + $0x1390] sm:$0xff]  ;;  %v2314_v2 = vunpack.c.l.s8.bf16 %v922_v0 }
 0x381   :  { %v2316_v3 = vunpack.c.l.s8.bf16 %v924_v1  ;;  %v2324_v10 = vunpack.c.h.s8.bf16 %v924_v1  ;;  %v955_v1 = vld [vmem:[#allocation5 + $0x1488] sm:$0xff] }
 0x383   :  { %2982 = vmatpush1.bf16.msra.mxu0 %v2258_v6  ;;  %3474 = vmatpush1.bf16.msra.mxu1 %v2260_v7  ;;  %v2325_v6 = vunpack.c.h.s8.bf16 %v925_v58  ;;  %v931_v7 = vld [vmem:[#allocation5 + $0x13c8] sm:$0xff]  ;;  %v946_v58 = vld [vmem:[#allocation5 + $0x1440] sm:$0xff] }
 0x384   :  { %2983 = vmatprep.subr.bf16.mxu0 %v2267_v8  ;;  %3475 = vmatprep.subr.bf16.mxu1 %v2269_v9  ;;  %v933_v8 = vld [vmem:[#allocation5 + $0x13d8] sm:$0xff]  ;;  %v2322_v9 = vunpack.c.h.s8.bf16 %v922_v0  ;;  %v2331_v11 = vunpack.c.l.s8.bf16 %v931_v7  ;;  %v2339_v20 = vunpack.c.h.s8.bf16 %v931_v7  ;;  %v2373_v0 = vunpack.c.h.s8.bf16 %v949_v51 }
 0x387   :  { %2984 = vmatpush1.bf16.msra.mxu0 %v2266_v12  ;;  %3476 = vmatpush1.bf16.msra.mxu1 %v2268_v13  ;;  %v2333_v12 = vunpack.c.l.s8.bf16 %v933_v8  ;;  %v930_v13 = vld [vmem:[#allocation5 + $0x13c0] sm:$0xff] }
 0x388   :  { %2985 = vmatprep.subr.bf16.mxu0 %v2275_v14  ;;  %3477 = vmatprep.subr.bf16.mxu1 %v2277_v15  ;;  %v932_v14 = vld [vmem:[#allocation5 + $0x13d0] sm:$0xff]  ;;  %v2330_v15 = vunpack.c.l.s8.bf16 %v930_v13 }
 0x389   :  { %v2332_v19 = vunpack.c.l.s8.bf16 %v932_v14  ;;  %v2340_v32 = vunpack.c.h.s8.bf16 %v932_v14  ;;  %v963_v14 = vld [vmem:[#allocation5 + $0x14c8] sm:$0xff] }
 0x38b   :  { %2986 = vmatpush1.bf16.msra.mxu0 %v2274_v22  ;;  %3478 = vmatpush1.bf16.msra.mxu1 %v2276_v23  ;;  %v2341_v22 = vunpack.c.h.s8.bf16 %v933_v8  ;;  %v939_v23 = vld [vmem:[#allocation5 + $0x1408] sm:$0xff]  ;;  %v954_v8 = vld [vmem:[#allocation5 + $0x1480] sm:$0xff] }
 0x38c   :  { %2987 = vmatprep.subr.bf16.mxu0 %v2283_v26  ;;  %3479 = vmatprep.subr.bf16.mxu1 %v2285_v28  ;;  %v941_v26 = vld [vmem:[#allocation5 + $0x1418] sm:$0xff]  ;;  %v2338_v28 = vunpack.c.h.s8.bf16 %v930_v13 }
 0x38f   :  { %2988 = vmatpush1.bf16.msra.mxu0 %v2282_v34  ;;  %3480 = vmatpush1.bf16.msra.mxu1 %v2284_v36  ;;  %v2347_v34 = vunpack.c.l.s8.bf16 %v939_v23  ;;  %v2349_v36 = vunpack.c.l.s8.bf16 %v941_v26 }
 0x390   :  { %2989 = vmatprep.subr.bf16.mxu0 %v2291_v37  ;;  %3481 = vmatprep.subr.bf16.mxu1 %v2293_v40  ;;  %v938_v37 = vld [vmem:[#allocation5 + $0x1400] sm:$0xff]  ;;  %v940_v40 = vld [vmem:[#allocation5 + $0x1410] sm:$0xff] }
 0x393   :  { %2990 = vmatpush1.bf16.msra.mxu0 %v2290_v45  ;;  %3482 = vmatpush1.bf16.msra.mxu1 %v2292_v46  ;;  %v2346_v45 = vunpack.c.l.s8.bf16 %v938_v37  ;;  %v2348_v46 = vunpack.c.l.s8.bf16 %v940_v40 }
 0x394   :  { %2991 = vmatprep.subr.bf16.mxu0 %v2299_v47  ;;  %3483 = vmatprep.subr.bf16.mxu1 %v2301_v48  ;;  %v2355_v47 = vunpack.c.h.s8.bf16 %v939_v23  ;;  %v2357_v48 = vunpack.c.h.s8.bf16 %v941_v26  ;;  %v962_v26 = vld [vmem:[#allocation5 + $0x14c0] sm:$0xff] }
 0x397   :  { %2992 = vmatpush1.bf16.msra.mxu0 %v2298_v52  ;;  %3484 = vmatpush1.bf16.msra.mxu1 %v2300_v54  ;;  %v6920_v52 = vpack.c.bf16 %v271_v43, %v271_v43  ;;  %v2354_v54 = vunpack.c.h.s8.bf16 %v938_v37  ;;  %v971_v37 = vld [vmem:[#allocation5 + $0x1508] sm:$0xff]  ;;  %v2402_v43 = vunpack.c.h.s8.bf16 %v962_v26 }
 0x398   :  { %2993 = vmatprep.subr.bf16.mxu0 %v2307_v55  ;;  %3485 = vmatprep.subr.bf16.mxu1 %v2309_v56  ;;  %v2356_v55 = vunpack.c.h.s8.bf16 %v940_v40  ;;  %v2363_v56 = vunpack.c.l.s8.bf16 %v947_v49  ;;  %v973_v40 = vld [vmem:[#allocation5 + $0x1518] sm:$0xff] }
 0x39b   :  { %2994 = vmatpush1.bf16.msra.mxu0 %v2306_v59  ;;  %3486 = vmatpush1.bf16.msra.mxu1 %v2308_v60  ;;  %v948_v59 = vld [vmem:[#allocation5 + $0x1450] sm:$0xff]  ;;  %v2362_v60 = vunpack.c.l.s8.bf16 %v946_v58 }
 0x39c   :  { %2995 = vmatprep.subr.bf16.mxu0 %v2315_v62  ;;  %3487 = vmatprep.subr.bf16.mxu1 %v2317_v63  ;;  %v2364_v62 = vunpack.c.l.s8.bf16 %v948_v59  ;;  %v2371_v63 = vunpack.c.h.s8.bf16 %v947_v49  ;;  %v972_v49 = vld [vmem:[#allocation5 + $0x1510] sm:$0xff] }
 0x39f   :  { %2996 = vmatpush1.bf16.msra.mxu0 %v2314_v2  ;;  %3488 = vmatpush1.bf16.msra.mxu1 %v2316_v3  ;;  %v957_v2 = vld [vmem:[#allocation5 + $0x1498] sm:$0xff]  ;;  %v2370_v3 = vunpack.c.h.s8.bf16 %v946_v58 }
 0x3a0   :  { %2997 = vmatprep.subr.bf16.mxu0 %v2323_v4  ;;  %3489 = vmatprep.subr.bf16.mxu1 %v2325_v6  ;;  %v2372_v4 = vunpack.c.h.s8.bf16 %v948_v59  ;;  %v2379_v6 = vunpack.c.l.s8.bf16 %v955_v1  ;;  %v2381_v7 = vunpack.c.l.s8.bf16 %v957_v2  ;;  %v2389_v13 = vunpack.c.h.s8.bf16 %v957_v2  ;;  %v981_v58 = vld [vmem:[#allocation5 + $0x1558] sm:$0xff] }
 0x3a3   :  { %2998 = vmatpush1.bf16.msra.mxu0 %v2322_v9  ;;  %3490 = vmatpush1.bf16.msra.mxu1 %v2324_v10  ;;  %v956_v9 = vld [vmem:[#allocation5 + $0x1490] sm:$0xff]  ;;  %v2378_v10 = vunpack.c.l.s8.bf16 %v954_v8 }
 0x3a4   :  { %2999 = vmatprep.subr.bf16.mxu0 %v2331_v11  ;;  %3491 = vmatprep.subr.bf16.mxu1 %v2333_v12  ;;  %v2380_v11 = vunpack.c.l.s8.bf16 %v956_v9  ;;  %v2387_v12 = vunpack.c.h.s8.bf16 %v955_v1  ;;  %v980_v1 = vld [vmem:[#allocation5 + $0x1550] sm:$0xff] }
 0x3a7   :  { %3000 = vmatpush1.bf16.msra.mxu0 %v2330_v15  ;;  %3492 = vmatpush1.bf16.msra.mxu1 %v2332_v19  ;;  %v965_v15 = vld [vmem:[#allocation5 + $0x14d8] sm:$0xff]  ;;  %v2386_v19 = vunpack.c.h.s8.bf16 %v954_v8 }
 0x3a8   :  { %3001 = vmatprep.subr.bf16.mxu0 %v2339_v20  ;;  %3493 = vmatprep.subr.bf16.mxu1 %v2341_v22  ;;  %v2388_v20 = vunpack.c.h.s8.bf16 %v956_v9  ;;  %v2395_v22 = vunpack.c.l.s8.bf16 %v963_v14  ;;  %v2397_v23 = vunpack.c.l.s8.bf16 %v965_v15  ;;  %v989_v8 = vld [vmem:[#allocation5 + $0x1598] sm:$0xff] }
 0x3ab   :  { %3002 = vmatpush1.bf16.msra.mxu0 %v2338_v28  ;;  %3494 = vmatpush1.bf16.msra.mxu1 %v2340_v32  ;;  %v964_v28 = vld [vmem:[#allocation5 + $0x14d0] sm:$0xff]  ;;  %v2394_v32 = vunpack.c.l.s8.bf16 %v962_v26  ;;  %v997_v26 = vld [vmem:[#allocation5 + $0x15d8] sm:$0xff] }
 0x3ac   :  { %3012 = vmatprep.subr.bf16.mxu0 %v2347_v34  ;;  %3504 = vmatprep.subr.bf16.mxu1 %v2349_v36  ;;  %v2396_v33 = vunpack.c.l.s8.bf16 %v964_v28  ;;  %v2403_v34 = vunpack.c.h.s8.bf16 %v963_v14  ;;  %v2405_v36 = vunpack.c.h.s8.bf16 %v965_v15  ;;  %v988_v14 = vld [vmem:[#allocation5 + $0x1590] sm:$0xff] }
 0x3ae   :  { %3004 = vmatmul.mubr.bf16.vlgmr.msra.gmra.mrb[0].mxu0 %v6918_v41  ;;  %3496 = vmatmul.mubr.bf16.vlgmr.msra.gmra.mrb[0].mxu1 %v6918_v41 }
 0x3af   :  { %3013 = vmatpush1.bf16.msra.mxu0 %v2346_v45  ;;  %3505 = vmatpush1.bf16.msra.mxu1 %v2348_v46  ;;  %v2404_v45 = vunpack.c.h.s8.bf16 %v964_v28  ;;  %v2411_v46 = vunpack.c.l.s8.bf16 %v971_v37 }
 0x3b0   :  { %3014 = vmatprep.subr.bf16.mxu0 %v2355_v47  ;;  %3506 = vmatprep.subr.bf16.mxu1 %v2357_v48  ;;  %v2413_v47 = vunpack.c.l.s8.bf16 %v973_v40  ;;  %v970_v48 = vld [vmem:[#allocation5 + $0x1500] sm:$0xff] }
 0x3b1   :  { %3044 = vmatprep.mubr.bf16.mxu0 %v6920_v52  ;;  %3536 = vmatprep.mubr.bf16.mxu1 %v6920_v52  ;;  %v2410_v51 = vunpack.c.l.s8.bf16 %v970_v48  ;;  %v2418_v59 = vunpack.c.h.s8.bf16 %v970_v48  ;;  %v1005_v48 = vld [vmem:[#allocation5 + $0x1618] sm:$0xff] }
 0x3b3   :  { %3015 = vmatpush1.bf16.msra.mxu0 %v2354_v54  ;;  %3507 = vmatpush1.bf16.msra.mxu1 %v2356_v55  ;;  %v2412_v54 = vunpack.c.l.s8.bf16 %v972_v49  ;;  %v2419_v55 = vunpack.c.h.s8.bf16 %v971_v37  ;;  %v996_v37 = vld [vmem:[#allocation5 + $0x15d0] sm:$0xff] }
 0x3b4   :  { %3016 = vmatprep.subr.bf16.mxu0 %v2363_v56  ;;  %3508 = vmatprep.subr.bf16.mxu1 %v2365_v57  ;;  %v2421_v56 = vunpack.c.h.s8.bf16 %v973_v40  ;;  %v979_v57 = vld [vmem:[#allocation5 + $0x1548] sm:$0xff] }
 0x3b7   :  { %3017 = vmatpush1.bf16.msra.mxu0 %v2362_v60  ;;  %3509 = vmatpush1.bf16.msra.mxu1 %v2364_v62  ;;  %v2420_v60 = vunpack.c.h.s8.bf16 %v972_v49  ;;  %v2427_v62 = vunpack.c.l.s8.bf16 %v979_v57 }
 0x3b8   :  { %3018 = vmatprep.subr.bf16.mxu0 %v2371_v63  ;;  %3510 = vmatprep.subr.bf16.mxu1 %v2373_v0  ;;  %v2429_v63 = vunpack.c.l.s8.bf16 %v981_v58  ;;  %v978_v0 = vld [vmem:[#allocation5 + $0x1540] sm:$0xff] }
 0x3b9   :  { %v2426_v2 = vunpack.c.l.s8.bf16 %v978_v0  ;;  %v2434_v9 = vunpack.c.h.s8.bf16 %v978_v0 }
 0x3bb   :  { %3019 = vmatpush1.bf16.msra.mxu0 %v2370_v3  ;;  %3511 = vmatpush1.bf16.msra.mxu1 %v2372_v4  ;;  %v2428_v3 = vunpack.c.l.s8.bf16 %v980_v1  ;;  %v2435_v4 = vunpack.c.h.s8.bf16 %v979_v57  ;;  %v1002_v57 = vld [vmem:[#allocation5 + $0x1600] sm:$0xff] }
 0x3bc   :  { %3020 = vmatprep.subr.bf16.mxu0 %v2379_v6  ;;  %3512 = vmatprep.subr.bf16.mxu1 %v2381_v7  ;;  %v2437_v6 = vunpack.c.h.s8.bf16 %v981_v58  ;;  %v987_v7 = vld [vmem:[#allocation5 + $0x1588] sm:$0xff]  ;;  %v1004_v58 = vld [vmem:[#allocation5 + $0x1610] sm:$0xff] }
 0x3bf   :  { %3021 = vmatpush1.bf16.msra.mxu0 %v2378_v10  ;;  %3513 = vmatpush1.bf16.msra.mxu1 %v2380_v11  ;;  %v2436_v10 = vunpack.c.h.s8.bf16 %v980_v1  ;;  %v2443_v11 = vunpack.c.l.s8.bf16 %v987_v7  ;;  %v2485_v1 = vunpack.c.h.s8.bf16 %v1005_v48 }
 0x3c0   :  { %3022 = vmatprep.subr.bf16.mxu0 %v2387_v12  ;;  %3514 = vmatprep.subr.bf16.mxu1 %v2389_v13  ;;  %v2445_v12 = vunpack.c.l.s8.bf16 %v989_v8  ;;  %v986_v13 = vld [vmem:[#allocation5 + $0x1580] sm:$0xff] }
 0x3c1   :  { %v2442_v15 = vunpack.c.l.s8.bf16 %v986_v13  ;;  %v2450_v28 = vunpack.c.h.s8.bf16 %v986_v13 }
 0x3c3   :  { %3023 = vmatpush1.bf16.msra.mxu0 %v2386_v19  ;;  %3515 = vmatpush1.bf16.msra.mxu1 %v2388_v20  ;;  %v2444_v19 = vunpack.c.l.s8.bf16 %v988_v14  ;;  %v2451_v20 = vunpack.c.h.s8.bf16 %v987_v7  ;;  %v2484_v7 = vunpack.c.h.s8.bf16 %v1004_v58 }
 0x3c4   :  { %3024 = vmatprep.subr.bf16.mxu0 %v2395_v22  ;;  %3516 = vmatprep.subr.bf16.mxu1 %v2397_v23  ;;  %v2453_v22 = vunpack.c.h.s8.bf16 %v989_v8  ;;  %v995_v23 = vld [vmem:[#allocation5 + $0x15c8] sm:$0xff] }
 0x3c7   :  { %3025 = vmatpush1.bf16.msra.mxu0 %v2394_v32  ;;  %3517 = vmatpush1.bf16.msra.mxu1 %v2396_v33  ;;  %v2452_v32 = vunpack.c.h.s8.bf16 %v988_v14  ;;  %v2459_v33 = vunpack.c.l.s8.bf16 %v995_v23 }
 0x3c8   :  { %3026 = vmatprep.subr.bf16.mxu0 %v2403_v34  ;;  %3518 = vmatprep.subr.bf16.mxu1 %v2405_v36  ;;  %v2461_v34 = vunpack.c.l.s8.bf16 %v997_v26  ;;  %v994_v36 = vld [vmem:[#allocation5 + $0x15c0] sm:$0xff] }
 0x3c9   :  { %v2458_v40 = vunpack.c.l.s8.bf16 %v994_v36  ;;  %v2466_v49 = vunpack.c.h.s8.bf16 %v994_v36 }
 0x3cb   :  { %3027 = vmatpush1.bf16.msra.mxu0 %v2402_v43  ;;  %3519 = vmatpush1.bf16.msra.mxu1 %v2404_v45  ;;  %v2460_v43 = vunpack.c.l.s8.bf16 %v996_v37  ;;  %v2467_v45 = vunpack.c.h.s8.bf16 %v995_v23 }
 0x3cc   :  { %3028 = vmatprep.subr.bf16.mxu0 %v2411_v46  ;;  %3520 = vmatprep.subr.bf16.mxu1 %v2413_v47  ;;  %v2469_v46 = vunpack.c.h.s8.bf16 %v997_v26  ;;  %v1003_v47 = vld [vmem:[#allocation5 + $0x1608] sm:$0xff] }
 0x3cd   :  { %v2483_v0 = vunpack.c.h.s8.bf16 %v1003_v47 }
 0x3cf   :  { %3029 = vmatpush1.bf16.msra.mxu0 %v2410_v51  ;;  %3521 = vmatpush1.bf16.msra.mxu1 %v2412_v54  ;;  %v2468_v51 = vunpack.c.h.s8.bf16 %v996_v37  ;;  %v270_v54 = vld [vmem:[#allocation2 + $0xa0] sm:$0xff] }
 0x3d0   :  { %3030 = vmatprep.subr.bf16.mxu0 %v2419_v55  ;;  %3522 = vmatprep.subr.bf16.mxu1 %v2421_v56  ;;  %v2475_v55 = vunpack.c.l.s8.bf16 %v1003_v47  ;;  %v2477_v56 = vunpack.c.l.s8.bf16 %v1005_v48 }
 0x3d3   :  { %3031 = vmatpush1.bf16.msra.mxu0 %v2418_v59  ;;  %3523 = vmatpush1.bf16.msra.mxu1 %v2420_v60  ;;  %v6926_v59 = vpack.c.bf16 %v270_v54, %v270_v54  ;;  %v273_v60 = vld [vmem:[#allocation2 + $0xb8] sm:$0xff]  ;;  %v1028_v54 = vld [vmem:[#allocation5 + $0x16d0] sm:$0xff] }
 0x3d4   :  { %3032 = vmatprep.subr.bf16.mxu0 %v2427_v62  ;;  %3524 = vmatprep.subr.bf16.mxu1 %v2429_v63  ;;  %v2474_v62 = vunpack.c.l.s8.bf16 %v1002_v57  ;;  %v2476_v63 = vunpack.c.l.s8.bf16 %v1004_v58 }
 0x3d7   :  { %3033 = vmatpush1.bf16.msra.mxu0 %v2426_v2  ;;  %3525 = vmatpush1.bf16.msra.mxu1 %v2428_v3  ;;  %v1011_v2 = vld [vmem:[#allocation5 + $0x1648] sm:$0xff]  ;;  %v1013_v3 = vld [vmem:[#allocation5 + $0x1658] sm:$0xff] }
 0x3d8   :  { %3034 = vmatprep.subr.bf16.mxu0 %v2435_v4  ;;  %3526 = vmatprep.subr.bf16.mxu1 %v2437_v6  ;;  %v6928_v4 = vpack.c.bf16 %v273_v60, %v273_v60  ;;  %v2482_v6 = vunpack.c.h.s8.bf16 %v1002_v57  ;;  %v2491_v8 = vunpack.c.l.s8.bf16 %v1011_v2  ;;  %v2499_v14 = vunpack.c.h.s8.bf16 %v1011_v2  ;;  %v1035_v60 = vld [vmem:[#allocation5 + $0x1708] sm:$0xff] }
 0x3db   :  { %3035 = vmatpush1.bf16.msra.mxu0 %v2434_v9  ;;  %3527 = vmatpush1.bf16.msra.mxu1 %v2436_v10  ;;  %v2493_v9 = vunpack.c.l.s8.bf16 %v1013_v3  ;;  %v1010_v10 = vld [vmem:[#allocation5 + $0x1640] sm:$0xff] }
 0x3dc   :  { %3036 = vmatprep.subr.bf16.mxu0 %v2443_v11  ;;  %3528 = vmatprep.subr.bf16.mxu1 %v2445_v12  ;;  %v1012_v11 = vld [vmem:[#allocation5 + $0x1650] sm:$0xff]  ;;  %v2490_v12 = vunpack.c.l.s8.bf16 %v1010_v10 }
 0x3dd   :  { %v2492_v13 = vunpack.c.l.s8.bf16 %v1012_v11  ;;  %v2500_v23 = vunpack.c.h.s8.bf16 %v1012_v11  ;;  %v1043_v11 = vld [vmem:[#allocation5 + $0x1748] sm:$0xff] }
 0x3df   :  { %3037 = vmatpush1.bf16.msra.mxu0 %v2442_v15  ;;  %3529 = vmatpush1.bf16.msra.mxu1 %v2444_v19  ;;  %v2501_v15 = vunpack.c.h.s8.bf16 %v1013_v3  ;;  %v1019_v19 = vld [vmem:[#allocation5 + $0x1688] sm:$0xff]  ;;  %v1034_v3 = vld [vmem:[#allocation5 + $0x1700] sm:$0xff] }
 0x3e0   :  { %3038 = vmatprep.subr.bf16.mxu0 %v2451_v20  ;;  %3530 = vmatprep.subr.bf16.mxu1 %v2453_v22  ;;  %v1021_v20 = vld [vmem:[#allocation5 + $0x1698] sm:$0xff]  ;;  %v2498_v22 = vunpack.c.h.s8.bf16 %v1010_v10  ;;  %v2507_v26 = vunpack.c.l.s8.bf16 %v1019_v19  ;;  %v2515_v37 = vunpack.c.h.s8.bf16 %v1019_v19 }
 0x3e3   :  { %3039 = vmatpush1.bf16.msra.mxu0 %v2450_v28  ;;  %3531 = vmatpush1.bf16.msra.mxu1 %v2452_v32  ;;  %v2509_v28 = vunpack.c.l.s8.bf16 %v1021_v20  ;;  %v1018_v32 = vld [vmem:[#allocation5 + $0x1680] sm:$0xff] }
 0x3e4   :  { %3040 = vmatprep.subr.bf16.mxu0 %v2459_v33  ;;  %3532 = vmatprep.subr.bf16.mxu1 %v2461_v34  ;;  %v1020_v33 = vld [vmem:[#allocation5 + $0x1690] sm:$0xff]  ;;  %v2506_v34 = vunpack.c.l.s8.bf16 %v1018_v32 }
 0x3e5   :  { %v2508_v36 = vunpack.c.l.s8.bf16 %v1020_v33  ;;  %v2516_v47 = vunpack.c.h.s8.bf16 %v1020_v33  ;;  %v1051_v33 = vld [vmem:[#allocation5 + $0x1788] sm:$0xff] }
 0x3e7   :  { %3041 = vmatpush1.bf16.msra.mxu0 %v2458_v40  ;;  %3533 = vmatpush1.bf16.msra.mxu1 %v2460_v43  ;;  %v2517_v40 = vunpack.c.h.s8.bf16 %v1021_v20  ;;  %v1027_v43 = vld [vmem:[#allocation5 + $0x16c8] sm:$0xff]  ;;  %v1042_v20 = vld [vmem:[#allocation5 + $0x1740] sm:$0xff] }
 0x3e8   :  { %3042 = vmatprep.subr.bf16.mxu0 %v2467_v45  ;;  %3534 = vmatprep.subr.bf16.mxu1 %v2469_v46  ;;  %v1029_v45 = vld [vmem:[#allocation5 + $0x16d8] sm:$0xff]  ;;  %v2514_v46 = vunpack.c.h.s8.bf16 %v1018_v32  ;;  %v2523_v48 = vunpack.c.l.s8.bf16 %v1027_v43  ;;  %v2531_v57 = vunpack.c.h.s8.bf16 %v1027_v43 }
 0x3e9   :  { %v2533_v58 = vunpack.c.h.s8.bf16 %v1029_v45 }
 0x3eb   :  { %3043 = vmatpush1.bf16.msra.mxu0 %v2466_v49  ;;  %3535 = vmatpush1.bf16.msra.mxu1 %v2468_v51  ;;  %v2525_v49 = vunpack.c.l.s8.bf16 %v1029_v45  ;;  %v1026_v51 = vld [vmem:[#allocation5 + $0x16c0] sm:$0xff] }
 0x3ec   :  { %3053 = vmatprep.subr.bf16.mxu0 %v2475_v55  ;;  %3545 = vmatprep.subr.bf16.mxu1 %v2477_v56  ;;  %v2522_v55 = vunpack.c.l.s8.bf16 %v1026_v51  ;;  %v2524_v56 = vunpack.c.l.s8.bf16 %v1028_v54  ;;  %v1050_v45 = vld [vmem:[#allocation5 + $0x1780] sm:$0xff] }
 0x3ee   :  { %3045 = vmatmul.mubr.bf16.vlgmr.msra.gmra.mrb[0].mxu0 %v6926_v59  ;;  %3537 = vmatmul.mubr.bf16.vlgmr.msra.gmra.mrb[0].mxu1 %v6926_v59 }
 0x3ef   :  { %3054 = vmatpush1.bf16.msra.mxu0 %v2474_v62  ;;  %3546 = vmatpush1.bf16.msra.mxu1 %v2476_v63  ;;  %v1037_v62 = vld [vmem:[#allocation5 + $0x1718] sm:$0xff]  ;;  %v2530_v63 = vunpack.c.h.s8.bf16 %v1026_v51 }
 0x3f0   :  { %3055 = vmatprep.subr.bf16.mxu0 %v2483_v0  ;;  %3547 = vmatprep.subr.bf16.mxu1 %v2485_v1  ;;  %v2532_v0 = vunpack.c.h.s8.bf16 %v1028_v54  ;;  %v2539_v1 = vunpack.c.l.s8.bf16 %v1035_v60  ;;  %v2541_v2 = vunpack.c.l.s8.bf16 %v1037_v62  ;;  %v2549_v10 = vunpack.c.h.s8.bf16 %v1037_v62  ;;  %v1059_v54 = vld [vmem:[#allocation5 + $0x17c8] sm:$0xff]  ;;  %v1058_v62 = vld [vmem:[#allocation5 + $0x17c0] sm:$0xff] }
 0x3f1   :  { %3085 = vmatprep.mubr.bf16.mxu0 %v6928_v4  ;;  %3577 = vmatprep.mubr.bf16.mxu1 %v6928_v4 }
 0x3f3   :  { %3056 = vmatpush1.bf16.msra.mxu0 %v2482_v6  ;;  %3548 = vmatpush1.bf16.msra.mxu1 %v2484_v7  ;;  %v1036_v6 = vld [vmem:[#allocation5 + $0x1710] sm:$0xff]  ;;  %v2538_v7 = vunpack.c.l.s8.bf16 %v1034_v3 }
 0x3f4   :  { %3057 = vmatprep.subr.bf16.mxu0 %v2491_v8  ;;  %3549 = vmatprep.subr.bf16.mxu1 %v2493_v9  ;;  %v2540_v8 = vunpack.c.l.s8.bf16 %v1036_v6  ;;  %v2547_v9 = vunpack.c.h.s8.bf16 %v1035_v60 }
 0x3f7   :  { %3058 = vmatpush1.bf16.msra.mxu0 %v2490_v12  ;;  %3550 = vmatpush1.bf16.msra.mxu1 %v2492_v13  ;;  %v1045_v12 = vld [vmem:[#allocation5 + $0x1758] sm:$0xff]  ;;  %v2546_v13 = vunpack.c.h.s8.bf16 %v1034_v3 }
 0x3f8   :  { %3059 = vmatprep.subr.bf16.mxu0 %v2499_v14  ;;  %3551 = vmatprep.subr.bf16.mxu1 %v2501_v15  ;;  %v2548_v14 = vunpack.c.h.s8.bf16 %v1036_v6  ;;  %v2555_v15 = vunpack.c.l.s8.bf16 %v1043_v11  ;;  %v2557_v19 = vunpack.c.l.s8.bf16 %v1045_v12  ;;  %v2565_v32 = vunpack.c.h.s8.bf16 %v1045_v12  ;;  %v303_v6 = vld [vmem:[#allocation5 + $0x28] sm:$0xff] }
 0x3fb   :  { %3060 = vmatpush1.bf16.msra.mxu0 %v2498_v22  ;;  %3552 = vmatpush1.bf16.msra.mxu1 %v2500_v23  ;;  %v1044_v22 = vld [vmem:[#allocation5 + $0x1750] sm:$0xff]  ;;  %v2554_v23 = vunpack.c.l.s8.bf16 %v1042_v20 }
 0x3fc   :  { %3061 = vmatprep.subr.bf16.mxu0 %v2507_v26  ;;  %3553 = vmatprep.subr.bf16.mxu1 %v2509_v28  ;;  %v2556_v26 = vunpack.c.l.s8.bf16 %v1044_v22  ;;  %v2563_v28 = vunpack.c.h.s8.bf16 %v1043_v11  ;;  %v1071_v11 = vunpack.c.l.s8.bf16 %v303_v6 }
 0x3ff   :  { %3062 = vmatpush1.bf16.msra.mxu0 %v2506_v34  ;;  %3554 = vmatpush1.bf16.msra.mxu1 %v2508_v36  ;;  %v1053_v34 = vld [vmem:[#allocation5 + $0x1798] sm:$0xff]  ;;  %v2562_v36 = vunpack.c.h.s8.bf16 %v1042_v20 }
 0x400   :  { %3063 = vmatprep.subr.bf16.mxu0 %v2515_v37  ;;  %3555 = vmatprep.subr.bf16.mxu1 %v2517_v40  ;;  %v2564_v37 = vunpack.c.h.s8.bf16 %v1044_v22  ;;  %v2571_v40 = vunpack.c.l.s8.bf16 %v1051_v33  ;;  %v2573_v43 = vunpack.c.l.s8.bf16 %v1053_v34  ;;  %v2581_v51 = vunpack.c.h.s8.bf16 %v1053_v34 }
 0x401   :  { %v1079_v22 = vunpack.c.h.s8.bf16 %v303_v6 }
 0x403   :  { %3064 = vmatpush1.bf16.msra.mxu0 %v2514_v46  ;;  %3556 = vmatpush1.bf16.msra.mxu1 %v2516_v47  ;;  %v1052_v46 = vld [vmem:[#allocation5 + $0x1790] sm:$0xff]  ;;  %v2570_v47 = vunpack.c.l.s8.bf16 %v1050_v45 }
 0x404   :  { %3065 = vmatprep.subr.bf16.mxu0 %v2523_v48  ;;  %3557 = vmatprep.subr.bf16.mxu1 %v2525_v49  ;;  %v2572_v48 = vunpack.c.l.s8.bf16 %v1052_v46  ;;  %v2579_v49 = vunpack.c.h.s8.bf16 %v1051_v33 }
 0x407   :  { %3066 = vmatpush1.bf16.msra.mxu0 %v2522_v55  ;;  %3558 = vmatpush1.bf16.msra.mxu1 %v2524_v56  ;;  %v1061_v55 = vld [vmem:[#allocation5 + $0x17d8] sm:$0xff]  ;;  %v2578_v56 = vunpack.c.h.s8.bf16 %v1050_v45 }
 0x408   :  { %3067 = vmatprep.subr.bf16.mxu0 %v2531_v57  ;;  %3559 = vmatprep.subr.bf16.mxu1 %v2533_v58  ;;  %v2580_v57 = vunpack.c.h.s8.bf16 %v1052_v46  ;;  %v2587_v58 = vunpack.c.l.s8.bf16 %v1059_v54  ;;  %v2589_v60 = vunpack.c.l.s8.bf16 %v1061_v55  ;;  %v2597_v3 = vunpack.c.h.s8.bf16 %v1061_v55 }
 0x40b   :  { %3068 = vmatpush1.bf16.msra.mxu0 %v2530_v63  ;;  %3560 = vmatpush1.bf16.msra.mxu1 %v2532_v0  ;;  %v1060_v63 = vld [vmem:[#allocation5 + $0x17d0] sm:$0xff]  ;;  %v2586_v0 = vunpack.c.l.s8.bf16 %v1058_v62 }
 0x40c   :  { %3069 = vmatprep.subr.bf16.mxu0 %v2539_v1  ;;  %3561 = vmatprep.subr.bf16.mxu1 %v2541_v2  ;;  %v2588_v1 = vunpack.c.l.s8.bf16 %v1060_v63  ;;  %v2595_v2 = vunpack.c.h.s8.bf16 %v1059_v54 }
 0x40f   :  { %3070 = vmatpush1.bf16.msra.mxu0 %v2538_v7  ;;  %3562 = vmatpush1.bf16.msra.mxu1 %v2540_v8  ;;  %v305_v7 = vld [vmem:[#allocation5 + $0x38] sm:$0xff]  ;;  %v2594_v8 = vunpack.c.h.s8.bf16 %v1058_v62 }
 0x410   :  { %3071 = vmatprep.subr.bf16.mxu0 %v2547_v9  ;;  %3563 = vmatprep.subr.bf16.mxu1 %v2549_v10  ;;  %v2596_v9 = vunpack.c.h.s8.bf16 %v1060_v63  ;;  %v272_v10 = vld [vmem:[#allocation2 + $0xb0] sm:$0xff]  ;;  %v1073_v12 = vunpack.c.l.s8.bf16 %v305_v7 }
 0x413   :  { %3072 = vmatpush1.bf16.msra.mxu0 %v2546_v13  ;;  %3564 = vmatpush1.bf16.msra.mxu1 %v2548_v14  ;;  %v302_v13 = vld [vmem:[#allocation5 + $0x20] sm:$0xff]  ;;  %v304_v14 = vld [vmem:[#allocation5 + $0x30] sm:$0xff] }
 0x414   :  { %3073 = vmatprep.subr.bf16.mxu0 %v2555_v15  ;;  %3565 = vmatprep.subr.bf16.mxu1 %v2557_v19  ;;  %v6934_v15 = vpack.c.bf16 %v272_v10, %v272_v10  ;;  %v1070_v19 = vunpack.c.l.s8.bf16 %v302_v13  ;;  %v1072_v20 = vunpack.c.l.s8.bf16 %v304_v14  ;;  %v1080_v33 = vunpack.c.h.s8.bf16 %v304_v14  ;;  %v335_v14 = vld [vmem:[#allocation5 + $0x128] sm:$0xff] }
 0x417   :  { %3074 = vmatpush1.bf16.msra.mxu0 %v2554_v23  ;;  %3566 = vmatpush1.bf16.msra.mxu1 %v2556_v26  ;;  %v1081_v23 = vunpack.c.h.s8.bf16 %v305_v7  ;;  %v311_v26 = vld [vmem:[#allocation5 + $0x68] sm:$0xff] }
 0x418   :  { %3075 = vmatprep.subr.bf16.mxu0 %v2563_v28  ;;  %3567 = vmatprep.subr.bf16.mxu1 %v2565_v32  ;;  %v313_v28 = vld [vmem:[#allocation5 + $0x78] sm:$0xff]  ;;  %v1078_v32 = vunpack.c.h.s8.bf16 %v302_v13  ;;  %v1087_v34 = vunpack.c.l.s8.bf16 %v311_v26  ;;  %v1095_v46 = vunpack.c.h.s8.bf16 %v311_v26 }
 0x41b   :  { %3076 = vmatpush1.bf16.msra.mxu0 %v2562_v36  ;;  %3568 = vmatpush1.bf16.msra.mxu1 %v2564_v37  ;;  %v1089_v36 = vunpack.c.l.s8.bf16 %v313_v28  ;;  %v310_v37 = vld [vmem:[#allocation5 + $0x60] sm:$0xff] }
 0x41c   :  { %3077 = vmatprep.subr.bf16.mxu0 %v2571_v40  ;;  %3569 = vmatprep.subr.bf16.mxu1 %v2573_v43  ;;  %v312_v40 = vld [vmem:[#allocation5 + $0x70] sm:$0xff]  ;;  %v1086_v43 = vunpack.c.l.s8.bf16 %v310_v37 }
 0x41d   :  { %v1088_v45 = vunpack.c.l.s8.bf16 %v312_v40  ;;  %v1096_v54 = vunpack.c.h.s8.bf16 %v312_v40  ;;  %v343_v40 = vld [vmem:[#allocation5 + $0x168] sm:$0xff] }
 0x41f   :  { %3078 = vmatpush1.bf16.msra.mxu0 %v2570_v47  ;;  %3570 = vmatpush1.bf16.msra.mxu1 %v2572_v48  ;;  %v1097_v47 = vunpack.c.h.s8.bf16 %v313_v28  ;;  %v319_v48 = vld [vmem:[#allocation5 + $0xa8] sm:$0xff]  ;;  %v334_v28 = vld [vmem:[#allocation5 + $0x120] sm:$0xff] }
 0x420   :  { %3079 = vmatprep.subr.bf16.mxu0 %v2579_v49  ;;  %3571 = vmatprep.subr.bf16.mxu1 %v2581_v51  ;;  %v321_v49 = vld [vmem:[#allocation5 + $0xb8] sm:$0xff]  ;;  %v1094_v51 = vunpack.c.h.s8.bf16 %v310_v37  ;;  %v1103_v55 = vunpack.c.l.s8.bf16 %v319_v48  ;;  %v1111_v62 = vunpack.c.h.s8.bf16 %v319_v48 }
 0x421   :  { %v1113_v63 = vunpack.c.h.s8.bf16 %v321_v49 }
 0x423   :  { %3080 = vmatpush1.bf16.msra.mxu0 %v2578_v56  ;;  %3572 = vmatpush1.bf16.msra.mxu1 %v2580_v57  ;;  %v1105_v56 = vunpack.c.l.s8.bf16 %v321_v49  ;;  %v318_v57 = vld [vmem:[#allocation5 + $0xa0] sm:$0xff] }
 0x424   :  { %3081 = vmatprep.subr.bf16.mxu0 %v2587_v58  ;;  %3573 = vmatprep.subr.bf16.mxu1 %v2589_v60  ;;  %v1102_v58 = vunpack.c.l.s8.bf16 %v318_v57  ;;  %v342_v49 = vld [vmem:[#allocation5 + $0x160] sm:$0xff] }
 0x427   :  { %3082 = vmatpush1.bf16.msra.mxu0 %v2586_v0  ;;  %3574 = vmatpush1.bf16.msra.mxu1 %v2588_v1  ;;  %v327_v0 = vld [vmem:[#allocation5 + $0xe8] sm:$0xff]  ;;  %v329_v1 = vld [vmem:[#allocation5 + $0xf8] sm:$0xff] }
 0x428   :  { %3083 = vmatprep.subr.bf16.mxu0 %v2595_v2  ;;  %3575 = vmatprep.subr.bf16.mxu1 %v2597_v3  ;;  %v1110_v2 = vunpack.c.h.s8.bf16 %v318_v57  ;;  %v1119_v6 = vunpack.c.l.s8.bf16 %v327_v0  ;;  %v1121_v7 = vunpack.c.l.s8.bf16 %v329_v1  ;;  %v1129_v13 = vunpack.c.h.s8.bf16 %v329_v1  ;;  %v350_v1 = vld [vmem:[#allocation5 + $0x1a0] sm:$0xff] }
 0x42b   :  { %3084 = vmatpush1.bf16.msra.mxu0 %v2594_v8  ;;  %3576 = vmatpush1.bf16.msra.mxu1 %v2596_v9  ;;  %v326_v8 = vld [vmem:[#allocation5 + $0xe0] sm:$0xff]  ;;  %v328_v9 = vld [vmem:[#allocation5 + $0xf0] sm:$0xff] }
 0x42c   :  { %3586 = vmatprep.subr.bf16.mxu0 %v1071_v11  ;;  %4078 = vmatprep.subr.bf16.mxu1 %v1073_v12  ;;  %v1118_v10 = vunpack.c.l.s8.bf16 %v326_v8  ;;  %v1120_v11 = vunpack.c.l.s8.bf16 %v328_v9  ;;  %v1127_v12 = vunpack.c.h.s8.bf16 %v327_v0 }
 0x42e   :  { %3086 = vmatmul.mubr.bf16.vlgmr.msra.gmra.mrb[0].mxu0 %v6934_v15  ;;  %3578 = vmatmul.mubr.bf16.vlgmr.msra.gmra.mrb[0].mxu1 %v6934_v15 }
 0x42f   :  { %3587 = vmatpush1.bf16.msra.mxu0 %v1070_v19  ;;  %4079 = vmatpush1.bf16.msra.mxu1 %v1072_v20  ;;  %v337_v19 = vld [vmem:[#allocation5 + $0x138] sm:$0xff]  ;;  %v1126_v20 = vunpack.c.h.s8.bf16 %v326_v8 }
 0x430   :  { %3588 = vmatprep.subr.bf16.mxu0 %v1079_v22  ;;  %4080 = vmatprep.subr.bf16.mxu1 %v1081_v23  ;;  %v1128_v22 = vunpack.c.h.s8.bf16 %v328_v9  ;;  %v1135_v23 = vunpack.c.l.s8.bf16 %v335_v14  ;;  %v1137_v26 = vunpack.c.l.s8.bf16 %v337_v19  ;;  %v1145_v37 = vunpack.c.h.s8.bf16 %v337_v19  ;;  %v359_v9 = vld [vmem:[#allocation5 + $0x1e8] sm:$0xff]  ;;  %v358_v19 = vld [vmem:[#allocation5 + $0x1e0] sm:$0xff] }
 0x431   :  { %3618 = vmatprep.mubr.bf16.mxu0 %v6842_v35  ;;  %4110 = vmatprep.mubr.bf16.mxu1 %v6842_v35  ;;  %v320_v35 = vld [vmem:[#allocation5 + $0xb0] sm:$0xff] }
 0x432   :  { %v1104_v60 = vunpack.c.l.s8.bf16 %v320_v35  ;;  %v1112_v3 = vunpack.c.h.s8.bf16 %v320_v35  ;;  %v351_v35 = vld [vmem:[#allocation5 + $0x1a8] sm:$0xff] }
 0x433   :  { %3589 = vmatpush1.bf16.msra.mxu0 %v1078_v32  ;;  %4081 = vmatpush1.bf16.msra.mxu1 %v1080_v33  ;;  %v336_v32 = vld [vmem:[#allocation5 + $0x130] sm:$0xff]  ;;  %v1134_v33 = vunpack.c.l.s8.bf16 %v334_v28 }
 0x434   :  { %3590 = vmatprep.subr.bf16.mxu0 %v1087_v34  ;;  %4082 = vmatprep.subr.bf16.mxu1 %v1089_v36  ;;  %v1136_v34 = vunpack.c.l.s8.bf16 %v336_v32  ;;  %v1143_v36 = vunpack.c.h.s8.bf16 %v335_v14 }
 0x437   :  { %3591 = vmatpush1.bf16.msra.mxu0 %v1086_v43  ;;  %4083 = vmatpush1.bf16.msra.mxu1 %v1088_v45  ;;  %v345_v43 = vld [vmem:[#allocation5 + $0x178] sm:$0xff]  ;;  %v1142_v45 = vunpack.c.h.s8.bf16 %v334_v28 }
 0x438   :  { %3592 = vmatprep.subr.bf16.mxu0 %v1095_v46  ;;  %4084 = vmatprep.subr.bf16.mxu1 %v1097_v47  ;;  %v1144_v46 = vunpack.c.h.s8.bf16 %v336_v32  ;;  %v1151_v47 = vunpack.c.l.s8.bf16 %v343_v40  ;;  %v1153_v48 = vunpack.c.l.s8.bf16 %v345_v43  ;;  %v1161_v57 = vunpack.c.h.s8.bf16 %v345_v43  ;;  %v367_v32 = vld [vmem:[#allocation5 + $0x228] sm:$0xff]  ;;  %v366_v43 = vld [vmem:[#allocation5 + $0x220] sm:$0xff] }
 0x43b   :  { %3593 = vmatpush1.bf16.msra.mxu0 %v1094_v51  ;;  %4085 = vmatpush1.bf16.msra.mxu1 %v1096_v54  ;;  %v344_v51 = vld [vmem:[#allocation5 + $0x170] sm:$0xff]  ;;  %v1150_v54 = vunpack.c.l.s8.bf16 %v342_v49 }
 0x43c   :  { %3594 = vmatprep.subr.bf16.mxu0 %v1103_v55  ;;  %4086 = vmatprep.subr.bf16.mxu1 %v1105_v56  ;;  %v1152_v55 = vunpack.c.l.s8.bf16 %v344_v51  ;;  %v1159_v56 = vunpack.c.h.s8.bf16 %v343_v40 }
 0x43f   :  { %3595 = vmatpush1.bf16.msra.mxu0 %v1102_v58  ;;  %4087 = vmatpush1.bf16.msra.mxu1 %v1104_v60  ;;  %v353_v58 = vld [vmem:[#allocation5 + $0x1b8] sm:$0xff]  ;;  %v1158_v60 = vunpack.c.h.s8.bf16 %v342_v49 }
 0x440   :  { %3596 = vmatprep.subr.bf16.mxu0 %v1111_v62  ;;  %4088 = vmatprep.subr.bf16.mxu1 %v1113_v63  ;;  %v1160_v62 = vunpack.c.h.s8.bf16 %v344_v51  ;;  %v1167_v63 = vunpack.c.l.s8.bf16 %v351_v35  ;;  %v1169_v0 = vunpack.c.l.s8.bf16 %v353_v58  ;;  %v1177_v8 = vunpack.c.h.s8.bf16 %v353_v58  ;;  %v375_v51 = vld [vmem:[#allocation5 + $0x268] sm:$0xff]  ;;  %v374_v58 = vld [vmem:[#allocation5 + $0x260] sm:$0xff] }
 0x443   :  { %3597 = vmatpush1.bf16.msra.mxu0 %v1110_v2  ;;  %4089 = vmatpush1.bf16.msra.mxu1 %v1112_v3  ;;  %v352_v2 = vld [vmem:[#allocation5 + $0x1b0] sm:$0xff]  ;;  %v1166_v3 = vunpack.c.l.s8.bf16 %v350_v1 }
 0x444   :  { %3598 = vmatprep.subr.bf16.mxu0 %v1119_v6  ;;  %4090 = vmatprep.subr.bf16.mxu1 %v1121_v7  ;;  %v1168_v6 = vunpack.c.l.s8.bf16 %v352_v2  ;;  %v1175_v7 = vunpack.c.h.s8.bf16 %v351_v35 }
 0x447   :  { %3599 = vmatpush1.bf16.msra.mxu0 %v1118_v10  ;;  %4091 = vmatpush1.bf16.msra.mxu1 %v1120_v11  ;;  %v361_v10 = vld [vmem:[#allocation5 + $0x1f8] sm:$0xff]  ;;  %v1174_v11 = vunpack.c.h.s8.bf16 %v350_v1  ;;  %v383_v1 = vld [vmem:[#allocation5 + $0x2a8] sm:$0xff] }
 0x448   :  { %3600 = vmatprep.subr.bf16.mxu0 %v1127_v12  ;;  %4092 = vmatprep.subr.bf16.mxu1 %v1129_v13  ;;  %v1176_v12 = vunpack.c.h.s8.bf16 %v352_v2  ;;  %v1183_v13 = vunpack.c.l.s8.bf16 %v359_v9  ;;  %v1185_v14 = vunpack.c.l.s8.bf16 %v361_v10  ;;  %v1193_v28 = vunpack.c.h.s8.bf16 %v361_v10  ;;  %v385_v2 = vld [vmem:[#allocation5 + $0x2b8] sm:$0xff] }
 0x44b   :  { %3601 = vmatpush1.bf16.msra.mxu0 %v1126_v20  ;;  %4093 = vmatpush1.bf16.msra.mxu1 %v1128_v22  ;;  %v360_v20 = vld [vmem:[#allocation5 + $0x1f0] sm:$0xff]  ;;  %v1182_v22 = vunpack.c.l.s8.bf16 %v358_v19 }
 0x44c   :  { %3602 = vmatprep.subr.bf16.mxu0 %v1135_v23  ;;  %4094 = vmatprep.subr.bf16.mxu1 %v1137_v26  ;;  %v1184_v23 = vunpack.c.l.s8.bf16 %v360_v20  ;;  %v1191_v26 = vunpack.c.h.s8.bf16 %v359_v9  ;;  %v382_v9 = vld [vmem:[#allocation5 + $0x2a0] sm:$0xff] }
 0x44d   :  { %v1230_v10 = vunpack.c.l.s8.bf16 %v382_v9 }
 0x44f   :  { %3603 = vmatpush1.bf16.msra.mxu0 %v1134_v33  ;;  %4095 = vmatpush1.bf16.msra.mxu1 %v1136_v34  ;;  %v369_v33 = vld [vmem:[#allocation5 + $0x238] sm:$0xff]  ;;  %v1190_v34 = vunpack.c.h.s8.bf16 %v358_v19 }
 0x450   :  { %3604 = vmatprep.subr.bf16.mxu0 %v1143_v36  ;;  %4096 = vmatprep.subr.bf16.mxu1 %v1145_v37  ;;  %v1192_v36 = vunpack.c.h.s8.bf16 %v360_v20  ;;  %v1199_v37 = vunpack.c.l.s8.bf16 %v367_v32  ;;  %v1201_v40 = vunpack.c.l.s8.bf16 %v369_v33  ;;  %v1209_v49 = vunpack.c.h.s8.bf16 %v369_v33  ;;  %v393_v19 = vld [vmem:[#allocation5 + $0x2f8] sm:$0xff] }
 0x451   :  { %v1238_v20 = vunpack.c.h.s8.bf16 %v382_v9  ;;  %v417_v9 = vld [vmem:[#allocation5 + $0x3b8] sm:$0xff] }
 0x453   :  { %3605 = vmatpush1.bf16.msra.mxu0 %v1142_v45  ;;  %4097 = vmatpush1.bf16.msra.mxu1 %v1144_v46  ;;  %v368_v45 = vld [vmem:[#allocation5 + $0x230] sm:$0xff]  ;;  %v1198_v46 = vunpack.c.l.s8.bf16 %v366_v43 }
 0x454   :  { %3606 = vmatprep.subr.bf16.mxu0 %v1151_v47  ;;  %4098 = vmatprep.subr.bf16.mxu1 %v1153_v48  ;;  %v1200_v47 = vunpack.c.l.s8.bf16 %v368_v45  ;;  %v1207_v48 = vunpack.c.h.s8.bf16 %v367_v32  ;;  %v392_v32 = vld [vmem:[#allocation5 + $0x2f0] sm:$0xff] }
 0x457   :  { %3607 = vmatpush1.bf16.msra.mxu0 %v1150_v54  ;;  %4099 = vmatpush1.bf16.msra.mxu1 %v1152_v55  ;;  %v377_v54 = vld [vmem:[#allocation5 + $0x278] sm:$0xff]  ;;  %v1206_v55 = vunpack.c.h.s8.bf16 %v366_v43 }
 0x458   :  { %3608 = vmatprep.subr.bf16.mxu0 %v1159_v56  ;;  %4100 = vmatprep.subr.bf16.mxu1 %v1161_v57  ;;  %v1208_v56 = vunpack.c.h.s8.bf16 %v368_v45  ;;  %v1215_v57 = vunpack.c.l.s8.bf16 %v375_v51  ;;  %v1217_v35 = vunpack.c.l.s8.bf16 %v377_v54  ;;  %v401_v43 = vld [vmem:[#allocation5 + $0x338] sm:$0xff] }
 0x45b   :  { %3609 = vmatpush1.bf16.msra.mxu0 %v1158_v60  ;;  %4101 = vmatpush1.bf16.msra.mxu1 %v1160_v62  ;;  %v376_v60 = vld [vmem:[#allocation5 + $0x270] sm:$0xff]  ;;  %v1214_v62 = vunpack.c.l.s8.bf16 %v374_v58 }
 0x45c   :  { %3610 = vmatprep.subr.bf16.mxu0 %v1167_v63  ;;  %4102 = vmatprep.subr.bf16.mxu1 %v1169_v0  ;;  %v1216_v63 = vunpack.c.l.s8.bf16 %v376_v60  ;;  %v1225_v0 = vunpack.c.h.s8.bf16 %v377_v54 }
 0x45f   :  { %3611 = vmatpush1.bf16.msra.mxu0 %v1166_v3  ;;  %4103 = vmatpush1.bf16.msra.mxu1 %v1168_v6  ;;  %v1222_v3 = vunpack.c.h.s8.bf16 %v374_v58  ;;  %v1224_v6 = vunpack.c.h.s8.bf16 %v376_v60  ;;  %v409_v58 = vld [vmem:[#allocation5 + $0x378] sm:$0xff] }
 0x460   :  { %3612 = vmatprep.subr.bf16.mxu0 %v1175_v7  ;;  %4104 = vmatprep.subr.bf16.mxu1 %v1177_v8  ;;  %v1231_v7 = vunpack.c.l.s8.bf16 %v383_v1  ;;  %v1233_v8 = vunpack.c.l.s8.bf16 %v385_v2 }
 0x463   :  { %3613 = vmatpush1.bf16.msra.mxu0 %v1174_v11  ;;  %4105 = vmatpush1.bf16.msra.mxu1 %v1176_v12  ;;  %v1239_v12 = vunpack.c.h.s8.bf16 %v383_v1  ;;  %v408_v1 = vld [vmem:[#allocation5 + $0x370] sm:$0xff] }
 0x464   :  { %3614 = vmatprep.subr.bf16.mxu0 %v1183_v13  ;;  %4106 = vmatprep.subr.bf16.mxu1 %v1185_v14  ;;  %v1241_v13 = vunpack.c.h.s8.bf16 %v385_v2  ;;  %v391_v14 = vld [vmem:[#allocation5 + $0x2e8] sm:$0xff] }
 0x467   :  { %3615 = vmatpush1.bf16.msra.mxu0 %v1182_v22  ;;  %4107 = vmatpush1.bf16.msra.mxu1 %v1184_v23  ;;  %v1247_v23 = vunpack.c.l.s8.bf16 %v391_v14 }
 0x468   :  { %3616 = vmatprep.subr.bf16.mxu0 %v1191_v26  ;;  %4108 = vmatprep.subr.bf16.mxu1 %v1193_v28  ;;  %v1249_v26 = vunpack.c.l.s8.bf16 %v393_v19  ;;  %v390_v28 = vld [vmem:[#allocation5 + $0x2e0] sm:$0xff] }
 0x469   :  { %v1246_v33 = vunpack.c.l.s8.bf16 %v390_v28  ;;  %v1254_v45 = vunpack.c.h.s8.bf16 %v390_v28  ;;  %v425_v28 = vld [vmem:[#allocation5 + $0x3f8] sm:$0xff] }
 0x46b   :  { %3617 = vmatpush1.bf16.msra.mxu0 %v1190_v34  ;;  %4109 = vmatpush1.bf16.msra.mxu1 %v1192_v36  ;;  %v1248_v34 = vunpack.c.l.s8.bf16 %v392_v32  ;;  %v1255_v36 = vunpack.c.h.s8.bf16 %v391_v14  ;;  %v416_v14 = vld [vmem:[#allocation5 + $0x3b0] sm:$0xff] }
 0x46c   :  { %3627 = vmatprep.subr.bf16.mxu0 %v1199_v37  ;;  %4119 = vmatprep.subr.bf16.mxu1 %v1201_v40  ;;  %v1257_v37 = vunpack.c.h.s8.bf16 %v393_v19  ;;  %v399_v40 = vld [vmem:[#allocation5 + $0x328] sm:$0xff] }
 0x46e   :  { %3619 = vmatmul.mubr.bf16.vlgmr.msra.gmra.mrb[4].mxu0 %v6846_v42  ;;  %4111 = vmatmul.mubr.bf16.vlgmr.msra.gmra.mrb[4].mxu1 %v6846_v42  ;;  %v1223_v42 = vunpack.c.h.s8.bf16 %v375_v51  ;;  %v400_v51 = vld [vmem:[#allocation5 + $0x330] sm:$0xff] }
 0x46f   :  { %3628 = vmatpush1.bf16.msra.mxu0 %v1198_v46  ;;  %4120 = vmatpush1.bf16.msra.mxu1 %v1200_v47  ;;  %v1256_v46 = vunpack.c.h.s8.bf16 %v392_v32  ;;  %v1263_v47 = vunpack.c.l.s8.bf16 %v399_v40 }
 0x470   :  { %3629 = vmatprep.subr.bf16.mxu0 %v1207_v48  ;;  %4121 = vmatprep.subr.bf16.mxu1 %v1209_v49  ;;  %v1265_v48 = vunpack.c.l.s8.bf16 %v401_v43  ;;  %v398_v49 = vld [vmem:[#allocation5 + $0x320] sm:$0xff] }
 0x471   :  { %3659 = vmatprep.mubr.bf16.mxu0 %v6848_v50  ;;  %4151 = vmatprep.mubr.bf16.mxu1 %v6848_v50  ;;  %v384_v50 = vld [vmem:[#allocation5 + $0x2b0] sm:$0xff]  ;;  %v1262_v54 = vunpack.c.l.s8.bf16 %v398_v49  ;;  %v1270_v60 = vunpack.c.h.s8.bf16 %v398_v49  ;;  %v433_v49 = vld [vmem:[#allocation5 + $0x438] sm:$0xff] }
 0x472   :  { %v1232_v11 = vunpack.c.l.s8.bf16 %v384_v50  ;;  %v1240_v22 = vunpack.c.h.s8.bf16 %v384_v50 }
 0x473   :  { %3630 = vmatpush1.bf16.msra.mxu0 %v1206_v55  ;;  %4122 = vmatpush1.bf16.msra.mxu1 %v1208_v56  ;;  %v1264_v55 = vunpack.c.l.s8.bf16 %v400_v51  ;;  %v1271_v56 = vunpack.c.h.s8.bf16 %v399_v40  ;;  %v424_v40 = vld [vmem:[#allocation5 + $0x3f0] sm:$0xff] }
 0x474   :  { %3631 = vmatprep.subr.bf16.mxu0 %v1215_v57  ;;  %4123 = vmatprep.subr.bf16.mxu1 %v1217_v35  ;;  %v1273_v57 = vunpack.c.h.s8.bf16 %v401_v43  ;;  %v407_v35 = vld [vmem:[#allocation5 + $0x368] sm:$0xff] }
 0x477   :  { %3632 = vmatpush1.bf16.msra.mxu0 %v1214_v62  ;;  %4124 = vmatpush1.bf16.msra.mxu1 %v1216_v63  ;;  %v1272_v62 = vunpack.c.h.s8.bf16 %v400_v51  ;;  %v1279_v63 = vunpack.c.l.s8.bf16 %v407_v35 }
 0x478   :  { %3633 = vmatprep.subr.bf16.mxu0 %v1223_v42  ;;  %4125 = vmatprep.subr.bf16.mxu1 %v1225_v0  ;;  %v1281_v42 = vunpack.c.l.s8.bf16 %v409_v58  ;;  %v406_v0 = vld [vmem:[#allocation5 + $0x360] sm:$0xff] }
 0x479   :  { %v1278_v2 = vunpack.c.l.s8.bf16 %v406_v0  ;;  %v1286_v50 = vunpack.c.h.s8.bf16 %v406_v0  ;;  %v441_v0 = vld [vmem:[#allocation5 + $0x478] sm:$0xff] }
 0x47b   :  { %3634 = vmatpush1.bf16.msra.mxu0 %v1222_v3  ;;  %4126 = vmatpush1.bf16.msra.mxu1 %v1224_v6  ;;  %v1280_v3 = vunpack.c.l.s8.bf16 %v408_v1  ;;  %v1287_v6 = vunpack.c.h.s8.bf16 %v407_v35  ;;  %v432_v35 = vld [vmem:[#allocation5 + $0x430] sm:$0xff] }
 0x47c   :  { %3635 = vmatprep.subr.bf16.mxu0 %v1231_v7  ;;  %4127 = vmatprep.subr.bf16.mxu1 %v1233_v8  ;;  %v1289_v7 = vunpack.c.h.s8.bf16 %v409_v58  ;;  %v415_v8 = vld [vmem:[#allocation5 + $0x3a8] sm:$0xff] }
 0x47f   :  { %3636 = vmatpush1.bf16.msra.mxu0 %v1230_v10  ;;  %4128 = vmatpush1.bf16.msra.mxu1 %v1232_v11  ;;  %v1288_v10 = vunpack.c.h.s8.bf16 %v408_v1  ;;  %v1295_v11 = vunpack.c.l.s8.bf16 %v415_v8 }
 0x480   :  { %3637 = vmatprep.subr.bf16.mxu0 %v1239_v12  ;;  %4129 = vmatprep.subr.bf16.mxu1 %v1241_v13  ;;  %v1297_v12 = vunpack.c.l.s8.bf16 %v417_v9  ;;  %v414_v13 = vld [vmem:[#allocation5 + $0x3a0] sm:$0xff] }
 0x481   :  { %v1294_v19 = vunpack.c.l.s8.bf16 %v414_v13  ;;  %v1302_v32 = vunpack.c.h.s8.bf16 %v414_v13 }
 0x483   :  { %3638 = vmatpush1.bf16.msra.mxu0 %v1238_v20  ;;  %4130 = vmatpush1.bf16.msra.mxu1 %v1240_v22  ;;  %v1296_v20 = vunpack.c.l.s8.bf16 %v416_v14  ;;  %v1303_v22 = vunpack.c.h.s8.bf16 %v415_v8  ;;  %v440_v8 = vld [vmem:[#allocation5 + $0x470] sm:$0xff] }
 0x484   :  { %3639 = vmatprep.subr.bf16.mxu0 %v1247_v23  ;;  %4131 = vmatprep.subr.bf16.mxu1 %v1249_v26  ;;  %v1305_v23 = vunpack.c.h.s8.bf16 %v417_v9  ;;  %v423_v26 = vld [vmem:[#allocation5 + $0x3e8] sm:$0xff] }
 0x487   :  { %3640 = vmatpush1.bf16.msra.mxu0 %v1246_v33  ;;  %4132 = vmatpush1.bf16.msra.mxu1 %v1248_v34  ;;  %v1304_v33 = vunpack.c.h.s8.bf16 %v416_v14  ;;  %v1311_v34 = vunpack.c.l.s8.bf16 %v423_v26  ;;  %v1352_v14 = vunpack.c.h.s8.bf16 %v440_v8 }
 0x488   :  { %3641 = vmatprep.subr.bf16.mxu0 %v1255_v36  ;;  %4133 = vmatprep.subr.bf16.mxu1 %v1257_v37  ;;  %v1313_v36 = vunpack.c.l.s8.bf16 %v425_v28  ;;  %v422_v37 = vld [vmem:[#allocation5 + $0x3e0] sm:$0xff] }
 0x489   :  { %v1310_v43 = vunpack.c.l.s8.bf16 %v422_v37  ;;  %v1318_v51 = vunpack.c.h.s8.bf16 %v422_v37 }
 0x48b   :  { %3642 = vmatpush1.bf16.msra.mxu0 %v1254_v45  ;;  %4134 = vmatpush1.bf16.msra.mxu1 %v1256_v46  ;;  %v1312_v45 = vunpack.c.l.s8.bf16 %v424_v40  ;;  %v1319_v46 = vunpack.c.h.s8.bf16 %v423_v26 }
 0x48c   :  { %3643 = vmatprep.subr.bf16.mxu0 %v1263_v47  ;;  %4135 = vmatprep.subr.bf16.mxu1 %v1265_v48  ;;  %v1321_v47 = vunpack.c.h.s8.bf16 %v425_v28  ;;  %v431_v48 = vld [vmem:[#allocation5 + $0x428] sm:$0xff] }
 0x48f   :  { %3644 = vmatpush1.bf16.msra.mxu0 %v1262_v54  ;;  %4136 = vmatpush1.bf16.msra.mxu1 %v1264_v55  ;;  %v1320_v54 = vunpack.c.h.s8.bf16 %v424_v40  ;;  %v1327_v55 = vunpack.c.l.s8.bf16 %v431_v48 }
 0x490   :  { %3645 = vmatprep.subr.bf16.mxu0 %v1271_v56  ;;  %4137 = vmatprep.subr.bf16.mxu1 %v1273_v57  ;;  %v1329_v56 = vunpack.c.l.s8.bf16 %v433_v49  ;;  %v430_v57 = vld [vmem:[#allocation5 + $0x420] sm:$0xff] }
 0x491   :  { %v1326_v58 = vunpack.c.l.s8.bf16 %v430_v57  ;;  %v1334_v1 = vunpack.c.h.s8.bf16 %v430_v57 }
 0x493   :  { %3646 = vmatpush1.bf16.msra.mxu0 %v1270_v60  ;;  %4138 = vmatpush1.bf16.msra.mxu1 %v1272_v62  ;;  %v1328_v60 = vunpack.c.l.s8.bf16 %v432_v35  ;;  %v1335_v62 = vunpack.c.h.s8.bf16 %v431_v48 }
 0x494   :  { %3647 = vmatprep.subr.bf16.mxu0 %v1279_v63  ;;  %4139 = vmatprep.subr.bf16.mxu1 %v1281_v42  ;;  %v1337_v63 = vunpack.c.h.s8.bf16 %v433_v49  ;;  %v439_v42 = vld [vmem:[#allocation5 + $0x468] sm:$0xff] }
 0x497   :  { %3648 = vmatpush1.bf16.msra.mxu0 %v1278_v2  ;;  %4140 = vmatpush1.bf16.msra.mxu1 %v1280_v3  ;;  %v1336_v2 = vunpack.c.h.s8.bf16 %v432_v35  ;;  %v1343_v3 = vunpack.c.l.s8.bf16 %v439_v42 }
 0x498   :  { %3649 = vmatprep.subr.bf16.mxu0 %v1287_v6  ;;  %4141 = vmatprep.subr.bf16.mxu1 %v1289_v7  ;;  %v1345_v6 = vunpack.c.l.s8.bf16 %v441_v0  ;;  %v438_v7 = vld [vmem:[#allocation5 + $0x460] sm:$0xff] }
 0x499   :  { %v1342_v9 = vunpack.c.l.s8.bf16 %v438_v7  ;;  %v1350_v13 = vunpack.c.h.s8.bf16 %v438_v7 }
 0x49b   :  { %3650 = vmatpush1.bf16.msra.mxu0 %v1286_v50  ;;  %4142 = vmatpush1.bf16.msra.mxu1 %v1288_v10  ;;  %v1344_v50 = vunpack.c.l.s8.bf16 %v440_v8  ;;  %v1353_v10 = vunpack.c.h.s8.bf16 %v441_v0 }
 0x49c   :  { %3651 = vmatprep.subr.bf16.mxu0 %v1295_v11  ;;  %4143 = vmatprep.subr.bf16.mxu1 %v1297_v12  ;;  %v447_v11 = vld [vmem:[#allocation5 + $0x4a8] sm:$0xff]  ;;  %v449_v12 = vld [vmem:[#allocation5 + $0x4b8] sm:$0xff] }
 0x49d   :  { %v1367_v28 = vunpack.c.h.s8.bf16 %v447_v11 }
 0x49f   :  { %3652 = vmatpush1.bf16.msra.mxu0 %v1294_v19  ;;  %4144 = vmatpush1.bf16.msra.mxu1 %v1296_v20  ;;  %v1359_v19 = vunpack.c.l.s8.bf16 %v447_v11  ;;  %v1361_v20 = vunpack.c.l.s8.bf16 %v449_v12 }
 0x4a0   :  { %3653 = vmatprep.subr.bf16.mxu0 %v1303_v22  ;;  %4145 = vmatprep.subr.bf16.mxu1 %v1305_v23  ;;  %v446_v22 = vld [vmem:[#allocation5 + $0x4a0] sm:$0xff] }
 0x4a1   :  { %v1358_v23 = vunpack.c.l.s8.bf16 %v446_v22 }
 0x4a3   :  { %3654 = vmatpush1.bf16.msra.mxu0 %v1302_v32  ;;  %4146 = vmatpush1.bf16.msra.mxu1 %v1304_v33  ;;  %v1369_v32 = vunpack.c.h.s8.bf16 %v449_v12  ;;  %v455_v33 = vld [vmem:[#allocation5 + $0x4e8] sm:$0xff] }
 0x4a4   :  { %3655 = vmatprep.subr.bf16.mxu0 %v1311_v34  ;;  %4147 = vmatprep.subr.bf16.mxu1 %v1313_v36  ;;  %v457_v34 = vld [vmem:[#allocation5 + $0x4f8] sm:$0xff]  ;;  %v1366_v36 = vunpack.c.h.s8.bf16 %v446_v22  ;;  %v1375_v40 = vunpack.c.l.s8.bf16 %v455_v33  ;;  %v1383_v49 = vunpack.c.h.s8.bf16 %v455_v33 }
 0x4a7   :  { %3656 = vmatpush1.bf16.msra.mxu0 %v1310_v43  ;;  %4148 = vmatpush1.bf16.msra.mxu1 %v1312_v45  ;;  %v1377_v43 = vunpack.c.l.s8.bf16 %v457_v34  ;;  %v454_v45 = vld [vmem:[#allocation5 + $0x4e0] sm:$0xff] }
 0x4a8   :  { %3657 = vmatprep.subr.bf16.mxu0 %v1319_v46  ;;  %4149 = vmatprep.subr.bf16.mxu1 %v1321_v47  ;;  %v456_v46 = vld [vmem:[#allocation5 + $0x4f0] sm:$0xff]  ;;  %v1374_v47 = vunpack.c.l.s8.bf16 %v454_v45 }
 0x4a9   :  { %v1376_v48 = vunpack.c.l.s8.bf16 %v456_v46  ;;  %v1384_v57 = vunpack.c.h.s8.bf16 %v456_v46 }
 0x4ab   :  { %3658 = vmatpush1.bf16.msra.mxu0 %v1318_v51  ;;  %4150 = vmatpush1.bf16.msra.mxu1 %v1320_v54  ;;  %v1385_v51 = vunpack.c.h.s8.bf16 %v457_v34  ;;  %v463_v54 = vld [vmem:[#allocation5 + $0x528] sm:$0xff] }
 0x4ac   :  { %3668 = vmatprep.subr.bf16.mxu0 %v1327_v55  ;;  %4160 = vmatprep.subr.bf16.mxu1 %v1329_v56  ;;  %v465_v55 = vld [vmem:[#allocation5 + $0x538] sm:$0xff]  ;;  %v1382_v56 = vunpack.c.h.s8.bf16 %v454_v45  ;;  %v1391_v35 = vunpack.c.l.s8.bf16 %v463_v54  ;;  %v1399_v0 = vunpack.c.h.s8.bf16 %v463_v54 }
 0x4ae   :  { %3660 = vmatmul.mubr.bf16.vlgmr.msra.gmra.mrb[4].mxu0 %v6854_v17  ;;  %4152 = vmatmul.mubr.bf16.vlgmr.msra.gmra.mrb[4].mxu1 %v6854_v17  ;;  %v1351_v17 = vunpack.c.h.s8.bf16 %v439_v42 }
 0x4af   :  { %3669 = vmatpush1.bf16.msra.mxu0 %v1326_v58  ;;  %4161 = vmatpush1.bf16.msra.mxu1 %v1328_v60  ;;  %v1393_v58 = vunpack.c.l.s8.bf16 %v465_v55  ;;  %v462_v60 = vld [vmem:[#allocation5 + $0x520] sm:$0xff] }
 0x4b0   :  { %3670 = vmatprep.subr.bf16.mxu0 %v1335_v62  ;;  %4162 = vmatprep.subr.bf16.mxu1 %v1337_v63  ;;  %v464_v62 = vld [vmem:[#allocation5 + $0x530] sm:$0xff]  ;;  %v1390_v63 = vunpack.c.l.s8.bf16 %v462_v60 }
 0x4b1   :  { %3700 = vmatprep.mubr.bf16.mxu0 %v6856_v25  ;;  %4192 = vmatprep.mubr.bf16.mxu1 %v6856_v25  ;;  %v448_v25 = vld [vmem:[#allocation5 + $0x4b0] sm:$0xff]  ;;  %v1392_v42 = vunpack.c.l.s8.bf16 %v464_v62  ;;  %v1400_v7 = vunpack.c.h.s8.bf16 %v464_v62 }
 0x4b2   :  { %v1360_v26 = vunpack.c.l.s8.bf16 %v448_v25  ;;  %v1368_v37 = vunpack.c.h.s8.bf16 %v448_v25 }
 0x4b3   :  { %3671 = vmatpush1.bf16.msra.mxu0 %v1334_v1  ;;  %4163 = vmatpush1.bf16.msra.mxu1 %v1336_v2  ;;  %v1401_v1 = vunpack.c.h.s8.bf16 %v465_v55  ;;  %v471_v2 = vld [vmem:[#allocation5 + $0x568] sm:$0xff] }
 0x4b4   :  { %3672 = vmatprep.subr.bf16.mxu0 %v1343_v3  ;;  %4164 = vmatprep.subr.bf16.mxu1 %v1345_v6  ;;  %v473_v3 = vld [vmem:[#allocation5 + $0x578] sm:$0xff]  ;;  %v1398_v6 = vunpack.c.h.s8.bf16 %v462_v60  ;;  %v1407_v8 = vunpack.c.l.s8.bf16 %v471_v2  ;;  %v1415_v12 = vunpack.c.h.s8.bf16 %v471_v2 }
 0x4b7   :  { %3673 = vmatpush1.bf16.msra.mxu0 %v1342_v9  ;;  %4165 = vmatpush1.bf16.msra.mxu1 %v1344_v50  ;;  %v1409_v9 = vunpack.c.l.s8.bf16 %v473_v3  ;;  %v470_v50 = vld [vmem:[#allocation5 + $0x560] sm:$0xff] }
 0x4b8   :  { %3674 = vmatprep.subr.bf16.mxu0 %v1351_v17  ;;  %4166 = vmatprep.subr.bf16.mxu1 %v1353_v10  ;;  %v472_v17 = vld [vmem:[#allocation5 + $0x570] sm:$0xff]  ;;  %v1406_v10 = vunpack.c.l.s8.bf16 %v470_v50 }
 0x4b9   :  { %v1408_v11 = vunpack.c.l.s8.bf16 %v472_v17  ;;  %v1416_v22 = vunpack.c.h.s8.bf16 %v472_v17 }
 0x4bb   :  { %3675 = vmatpush1.bf16.msra.mxu0 %v1350_v13  ;;  %4167 = vmatpush1.bf16.msra.mxu1 %v1352_v14  ;;  %v1417_v13 = vunpack.c.h.s8.bf16 %v473_v3  ;;  %v479_v14 = vld [vmem:[#allocation5 + $0x5a8] sm:$0xff] }
 0x4bc   :  { %3676 = vmatprep.subr.bf16.mxu0 %v1359_v19  ;;  %4168 = vmatprep.subr.bf16.mxu1 %v1361_v20  ;;  %v481_v19 = vld [vmem:[#allocation5 + $0x5b8] sm:$0xff]  ;;  %v1414_v20 = vunpack.c.h.s8.bf16 %v470_v50  ;;  %v1423_v25 = vunpack.c.l.s8.bf16 %v479_v14  ;;  %v1431_v34 = vunpack.c.h.s8.bf16 %v479_v14 }
 0x4bf   :  { %3677 = vmatpush1.bf16.msra.mxu0 %v1358_v23  ;;  %4169 = vmatpush1.bf16.msra.mxu1 %v1360_v26  ;;  %v1425_v23 = vunpack.c.l.s8.bf16 %v481_v19  ;;  %v478_v26 = vld [vmem:[#allocation5 + $0x5a0] sm:$0xff] }
 0x4c0   :  { %3678 = vmatprep.subr.bf16.mxu0 %v1367_v28  ;;  %4170 = vmatprep.subr.bf16.mxu1 %v1369_v32  ;;  %v480_v28 = vld [vmem:[#allocation5 + $0x5b0] sm:$0xff]  ;;  %v1422_v32 = vunpack.c.l.s8.bf16 %v478_v26 }
 0x4c1   :  { %v1424_v33 = vunpack.c.l.s8.bf16 %v480_v28  ;;  %v1432_v45 = vunpack.c.h.s8.bf16 %v480_v28 }
 0x4c3   :  { %3679 = vmatpush1.bf16.msra.mxu0 %v1366_v36  ;;  %4171 = vmatpush1.bf16.msra.mxu1 %v1368_v37  ;;  %v1433_v36 = vunpack.c.h.s8.bf16 %v481_v19  ;;  %v487_v37 = vld [vmem:[#allocation5 + $0x5e8] sm:$0xff] }
 0x4c4   :  { %3680 = vmatprep.subr.bf16.mxu0 %v1375_v40  ;;  %4172 = vmatprep.subr.bf16.mxu1 %v1377_v43  ;;  %v489_v40 = vld [vmem:[#allocation5 + $0x5f8] sm:$0xff]  ;;  %v1430_v43 = vunpack.c.h.s8.bf16 %v478_v26  ;;  %v1439_v46 = vunpack.c.l.s8.bf16 %v487_v37  ;;  %v1447_v55 = vunpack.c.h.s8.bf16 %v487_v37 }
 0x4c7   :  { %3681 = vmatpush1.bf16.msra.mxu0 %v1374_v47  ;;  %4173 = vmatpush1.bf16.msra.mxu1 %v1376_v48  ;;  %v1441_v47 = vunpack.c.l.s8.bf16 %v489_v40  ;;  %v486_v48 = vld [vmem:[#allocation5 + $0x5e0] sm:$0xff] }
 0x4c8   :  { %3682 = vmatprep.subr.bf16.mxu0 %v1383_v49  ;;  %4174 = vmatprep.subr.bf16.mxu1 %v1385_v51  ;;  %v488_v49 = vld [vmem:[#allocation5 + $0x5f0] sm:$0xff]  ;;  %v1438_v51 = vunpack.c.l.s8.bf16 %v486_v48 }
 0x4c9   :  { %v1440_v54 = vunpack.c.l.s8.bf16 %v488_v49  ;;  %v1448_v60 = vunpack.c.h.s8.bf16 %v488_v49  ;;  %v518_v49 = vld [vmem:[#allocation5 + $0x6e0] sm:$0xff] }
 0x4cb   :  { %3683 = vmatpush1.bf16.msra.mxu0 %v1382_v56  ;;  %4175 = vmatpush1.bf16.msra.mxu1 %v1384_v57  ;;  %v1449_v56 = vunpack.c.h.s8.bf16 %v489_v40  ;;  %v495_v57 = vld [vmem:[#allocation5 + $0x628] sm:$0xff] }
 0x4cc   :  { %3684 = vmatprep.subr.bf16.mxu0 %v1391_v35  ;;  %4176 = vmatprep.subr.bf16.mxu1 %v1393_v58  ;;  %v497_v35 = vld [vmem:[#allocation5 + $0x638] sm:$0xff]  ;;  %v1446_v58 = vunpack.c.h.s8.bf16 %v486_v48  ;;  %v1455_v62 = vunpack.c.l.s8.bf16 %v495_v57  ;;  %v1463_v3 = vunpack.c.h.s8.bf16 %v495_v57  ;;  %v519_v40 = vld [vmem:[#allocation5 + $0x6e8] sm:$0xff] }
 0x4cf   :  { %3685 = vmatpush1.bf16.msra.mxu0 %v1390_v63  ;;  %4177 = vmatpush1.bf16.msra.mxu1 %v1392_v42  ;;  %v1457_v63 = vunpack.c.l.s8.bf16 %v497_v35  ;;  %v494_v42 = vld [vmem:[#allocation5 + $0x620] sm:$0xff] }
 0x4d0   :  { %3686 = vmatprep.subr.bf16.mxu0 %v1399_v0  ;;  %4178 = vmatprep.subr.bf16.mxu1 %v1401_v1  ;;  %v496_v0 = vld [vmem:[#allocation5 + $0x630] sm:$0xff]  ;;  %v1454_v1 = vunpack.c.l.s8.bf16 %v494_v42 }
 0x4d1   :  { %v1456_v2 = vunpack.c.l.s8.bf16 %v496_v0  ;;  %v1464_v50 = vunpack.c.h.s8.bf16 %v496_v0  ;;  %v1511_v0 = vunpack.c.h.s8.bf16 %v519_v40 }
 0x4d3   :  { %3687 = vmatpush1.bf16.msra.mxu0 %v1398_v6  ;;  %4179 = vmatpush1.bf16.msra.mxu1 %v1400_v7  ;;  %v1465_v6 = vunpack.c.h.s8.bf16 %v497_v35  ;;  %v503_v7 = vld [vmem:[#allocation5 + $0x668] sm:$0xff] }
 0x4d4   :  { %3688 = vmatprep.subr.bf16.mxu0 %v1407_v8  ;;  %4180 = vmatprep.subr.bf16.mxu1 %v1409_v9  ;;  %v505_v8 = vld [vmem:[#allocation5 + $0x678] sm:$0xff]  ;;  %v1462_v9 = vunpack.c.h.s8.bf16 %v494_v42  ;;  %v1471_v17 = vunpack.c.l.s8.bf16 %v503_v7 }
 0x4d5   :  { %v1481_v19 = vunpack.c.h.s8.bf16 %v505_v8 }
 0x4d7   :  { %3689 = vmatpush1.bf16.msra.mxu0 %v1406_v10  ;;  %4181 = vmatpush1.bf16.msra.mxu1 %v1408_v11  ;;  %v1473_v10 = vunpack.c.l.s8.bf16 %v505_v8  ;;  %v502_v11 = vld [vmem:[#allocation5 + $0x660] sm:$0xff] }
 0x4d8   :  { %3690 = vmatprep.subr.bf16.mxu0 %v1415_v12  ;;  %4182 = vmatprep.subr.bf16.mxu1 %v1417_v13  ;;  %v504_v12 = vld [vmem:[#allocation5 + $0x670] sm:$0xff]  ;;  %v1470_v13 = vunpack.c.l.s8.bf16 %v502_v11 }
 0x4d9   :  { %v1472_v14 = vunpack.c.l.s8.bf16 %v504_v12 }
 0x4db   :  { %3691 = vmatpush1.bf16.msra.mxu0 %v1414_v20  ;;  %4183 = vmatpush1.bf16.msra.mxu1 %v1416_v22  ;;  %v511_v20 = vld [vmem:[#allocation5 + $0x6a8] sm:$0xff]  ;;  %v513_v22 = vld [vmem:[#allocation5 + $0x6b8] sm:$0xff] }
 0x4dc   :  { %3692 = vmatprep.subr.bf16.mxu0 %v1423_v25  ;;  %4184 = vmatprep.subr.bf16.mxu1 %v1425_v23  ;;  %v1478_v25 = vunpack.c.h.s8.bf16 %v502_v11  ;;  %v1480_v23 = vunpack.c.h.s8.bf16 %v504_v12  ;;  %v1487_v26 = vunpack.c.l.s8.bf16 %v511_v20  ;;  %v1489_v28 = vunpack.c.l.s8.bf16 %v513_v22 }
 0x4dd   :  { %v1497_v37 = vunpack.c.h.s8.bf16 %v513_v22 }
 0x4df   :  { %3693 = vmatpush1.bf16.msra.mxu0 %v1422_v32  ;;  %4185 = vmatpush1.bf16.msra.mxu1 %v1424_v33  ;;  %v510_v32 = vld [vmem:[#allocation5 + $0x6a0] sm:$0xff] }
 0x4e0   :  { %3694 = vmatprep.subr.bf16.mxu0 %v1431_v34  ;;  %4186 = vmatprep.subr.bf16.mxu1 %v1433_v36  ;;  %v1486_v33 = vunpack.c.l.s8.bf16 %v510_v32  ;;  %v1495_v36 = vunpack.c.h.s8.bf16 %v511_v20 }
 0x4e3   :  { %3695 = vmatpush1.bf16.msra.mxu0 %v1430_v43  ;;  %4187 = vmatpush1.bf16.msra.mxu1 %v1432_v45  ;;  %v521_v43 = vld [vmem:[#allocation5 + $0x6f8] sm:$0xff]  ;;  %v1494_v45 = vunpack.c.h.s8.bf16 %v510_v32 }
 0x4e4   :  { %3696 = vmatprep.subr.bf16.mxu0 %v1439_v46  ;;  %4188 = vmatprep.subr.bf16.mxu1 %v1441_v47  ;;  %v1503_v47 = vunpack.c.l.s8.bf16 %v519_v40  ;;  %v1505_v48 = vunpack.c.l.s8.bf16 %v521_v43 }
 0x4e7   :  { %3697 = vmatpush1.bf16.msra.mxu0 %v1438_v51  ;;  %4189 = vmatpush1.bf16.msra.mxu1 %v1440_v54  ;;  %v520_v51 = vld [vmem:[#allocation5 + $0x6f0] sm:$0xff] }
 0x4e8   :  { %3698 = vmatprep.subr.bf16.mxu0 %v1447_v55  ;;  %4190 = vmatprep.subr.bf16.mxu1 %v1449_v56 }
 0x4eb   :  { %3699 = vmatpush1.bf16.msra.mxu0 %v1446_v58  ;;  %4191 = vmatpush1.bf16.msra.mxu1 %v1448_v60  ;;  %v1502_v60 = vunpack.c.l.s8.bf16 %v518_v49 }
 0x4ec   :  { %3709 = vmatprep.subr.bf16.mxu0 %v1455_v62  ;;  %4201 = vmatprep.subr.bf16.mxu1 %v1457_v63  ;;  %v1504_v62 = vunpack.c.l.s8.bf16 %v520_v51 }
 0x4ee   :  { %3701 = vmatmul.mubr.bf16.vlgmr.msra.gmra.mrb[4].mxu0 %v6862_v61  ;;  %4193 = vmatmul.mubr.bf16.vlgmr.msra.gmra.mrb[4].mxu1 %v6862_v61  ;;  %v1479_v61 = vunpack.c.h.s8.bf16 %v503_v7  ;;  %v1512_v7 = vunpack.c.h.s8.bf16 %v520_v51 }
 0x4ef   :  { %3710 = vmatpush1.bf16.msra.mxu0 %v1454_v1  ;;  %4202 = vmatpush1.bf16.msra.mxu1 %v1456_v2  ;;  %v1513_v1 = vunpack.c.h.s8.bf16 %v521_v43  ;;  %v527_v2 = vld [vmem:[#allocation5 + $0x728] sm:$0xff] }
 0x4f0   :  { %3711 = vmatprep.subr.bf16.mxu0 %v1463_v3  ;;  %4203 = vmatprep.subr.bf16.mxu1 %v1465_v6  ;;  %v529_v3 = vld [vmem:[#allocation5 + $0x738] sm:$0xff]  ;;  %v1510_v6 = vunpack.c.h.s8.bf16 %v518_v49  ;;  %v1519_v8 = vunpack.c.l.s8.bf16 %v527_v2  ;;  %v1527_v12 = vunpack.c.h.s8.bf16 %v527_v2  ;;  %v552_v2 = vld [vmem:[#allocation5 + $0x7f0] sm:$0xff] }
 0x4f1   :  { %3741 = vmatprep.mubr.bf16.mxu0 %v6864_v5  ;;  %4233 = vmatprep.mubr.bf16.mxu1 %v6864_v5  ;;  %v512_v5 = vld [vmem:[#allocation5 + $0x6b0] sm:$0xff] }
 0x4f2   :  { %v1488_v34 = vunpack.c.l.s8.bf16 %v512_v5  ;;  %v1496_v46 = vunpack.c.h.s8.bf16 %v512_v5 }
 0x4f3   :  { %3712 = vmatpush1.bf16.msra.mxu0 %v1462_v9  ;;  %4204 = vmatpush1.bf16.msra.mxu1 %v1464_v50  ;;  %v1521_v9 = vunpack.c.l.s8.bf16 %v529_v3  ;;  %v526_v50 = vld [vmem:[#allocation5 + $0x720] sm:$0xff] }
 0x4f4   :  { %3713 = vmatprep.subr.bf16.mxu0 %v1471_v17  ;;  %4205 = vmatprep.subr.bf16.mxu1 %v1473_v10  ;;  %v528_v17 = vld [vmem:[#allocation5 + $0x730] sm:$0xff]  ;;  %v1518_v10 = vunpack.c.l.s8.bf16 %v526_v50 }
 0x4f5   :  { %v1520_v11 = vunpack.c.l.s8.bf16 %v528_v17  ;;  %v1528_v20 = vunpack.c.h.s8.bf16 %v528_v17 }
 0x4f7   :  { %3714 = vmatpush1.bf16.msra.mxu0 %v1470_v13  ;;  %4206 = vmatpush1.bf16.msra.mxu1 %v1472_v14  ;;  %v1529_v13 = vunpack.c.h.s8.bf16 %v529_v3  ;;  %v535_v14 = vld [vmem:[#allocation5 + $0x768] sm:$0xff] }
 0x4f8   :  { %3715 = vmatprep.subr.bf16.mxu0 %v1479_v61  ;;  %4207 = vmatprep.subr.bf16.mxu1 %v1481_v19  ;;  %v537_v61 = vld [vmem:[#allocation5 + $0x778] sm:$0xff]  ;;  %v1526_v19 = vunpack.c.h.s8.bf16 %v526_v50  ;;  %v1535_v22 = vunpack.c.l.s8.bf16 %v535_v14  ;;  %v1543_v5 = vunpack.c.h.s8.bf16 %v535_v14  ;;  %v560_v14 = vld [vmem:[#allocation5 + $0x830] sm:$0xff] }
 0x4f9   :  { %v561_v50 = vld [vmem:[#allocation5 + $0x838] sm:$0xff] }
 0x4fb   :  { %3716 = vmatpush1.bf16.msra.mxu0 %v1478_v25  ;;  %4208 = vmatpush1.bf16.msra.mxu1 %v1480_v23  ;;  %v1537_v25 = vunpack.c.l.s8.bf16 %v537_v61  ;;  %v534_v23 = vld [vmem:[#allocation5 + $0x760] sm:$0xff] }
 0x4fc   :  { %3717 = vmatprep.subr.bf16.mxu0 %v1487_v26  ;;  %4209 = vmatprep.subr.bf16.mxu1 %v1489_v28  ;;  %v536_v26 = vld [vmem:[#allocation5 + $0x770] sm:$0xff]  ;;  %v1534_v28 = vunpack.c.l.s8.bf16 %v534_v23 }
 0x4fd   :  { %v1536_v32 = vunpack.c.l.s8.bf16 %v536_v26  ;;  %v1544_v40 = vunpack.c.h.s8.bf16 %v536_v26 }
 0x4ff   :  { %3718 = vmatpush1.bf16.msra.mxu0 %v1486_v33  ;;  %4210 = vmatpush1.bf16.msra.mxu1 %v1488_v34  ;;  %v1545_v33 = vunpack.c.h.s8.bf16 %v537_v61  ;;  %v543_v34 = vld [vmem:[#allocation5 + $0x7a8] sm:$0xff] }
 0x500   :  { %3719 = vmatprep.subr.bf16.mxu0 %v1495_v36  ;;  %4211 = vmatprep.subr.bf16.mxu1 %v1497_v37  ;;  %v545_v36 = vld [vmem:[#allocation5 + $0x7b8] sm:$0xff]  ;;  %v1542_v37 = vunpack.c.h.s8.bf16 %v534_v23  ;;  %v1551_v43 = vunpack.c.l.s8.bf16 %v543_v34  ;;  %v1559_v51 = vunpack.c.h.s8.bf16 %v543_v34  ;;  %v568_v34 = vld [vmem:[#allocation5 + $0x870] sm:$0xff] }
 0x501   :  { %v6952_v54 = vpop.f32.mrb[0].mxu0  ;;  %v6954_v55 = vpop.f32.mrb[0].mxu1  ;;  %v569_v23 = vld [vmem:[#allocation5 + $0x878] sm:$0xff] }
 0x502   :  { %v6956_v56 = vpop.f32.mrb[1].mxu0  ;;  %v6958_v57 = vpop.f32.mrb[1].mxu1 }
 0x503   :  { %v3091_v35 = vpop.f32.mrb[2].mxu0  ;;  %v3583_v58 = vpop.f32.mrb[2].mxu1  ;;  %3720 = vmatpush1.bf16.msra.mxu0 %v1494_v45  ;;  %4212 = vmatpush1.bf16.msra.mxu1 %v1496_v46  ;;  %v1553_v45 = vunpack.c.l.s8.bf16 %v545_v36  ;;  %v542_v46 = vld [vmem:[#allocation5 + $0x7a0] sm:$0xff] }
 0x504   :  { %v3092_v63 = vpop.f32.mrb[3].mxu0  ;;  %v3584_v42 = vpop.f32.mrb[3].mxu1  ;;  %3721 = vmatprep.subr.bf16.mxu0 %v1503_v47  ;;  %4213 = vmatprep.subr.bf16.mxu1 %v1505_v48  ;;  %v544_v47 = vld [vmem:[#allocation5 + $0x7b0] sm:$0xff]  ;;  %v1550_v48 = vunpack.c.l.s8.bf16 %v542_v46  ;;  %v1561_v35 = vunpack.c.h.s8.bf16 %v545_v36  ;;  %v551_v58 = vld [vmem:[#allocation5 + $0x7e8] sm:$0xff] }
 0x505   :  { %v1552_v49 = vunpack.c.l.s8.bf16 %v544_v47  ;;  %v1560_v63 = vunpack.c.h.s8.bf16 %v544_v47  ;;  %v1567_v42 = vunpack.c.l.s8.bf16 %v551_v58  ;;  %v1608_v47 = vunpack.c.h.s8.bf16 %v568_v34 }
 0x507   :  { %3722 = vmatpush1.bf16.msra.mxu0 %v1502_v60  ;;  %4214 = vmatpush1.bf16.msra.mxu1 %v1504_v62  ;;  %v553_v60 = vld [vmem:[#allocation5 + $0x7f8] sm:$0xff]  ;;  %v1558_v62 = vunpack.c.h.s8.bf16 %v542_v46 }
 0x508   :  { %3723 = vmatprep.subr.bf16.mxu0 %v1511_v0  ;;  %4215 = vmatprep.subr.bf16.mxu1 %v1513_v1  ;;  %v1569_v0 = vunpack.c.l.s8.bf16 %v553_v60  ;;  %v550_v1 = vld [vmem:[#allocation5 + $0x7e0] sm:$0xff] }
 0x509   :  { %v1566_v3 = vunpack.c.l.s8.bf16 %v550_v1  ;;  %v1574_v17 = vunpack.c.h.s8.bf16 %v550_v1 }
 0x50b   :  { %3724 = vmatpush1.bf16.msra.mxu0 %v1510_v6  ;;  %4216 = vmatpush1.bf16.msra.mxu1 %v1512_v7  ;;  %v1568_v6 = vunpack.c.l.s8.bf16 %v552_v2  ;;  %v1575_v7 = vunpack.c.h.s8.bf16 %v551_v58 }
 0x50c   :  { %3725 = vmatprep.subr.bf16.mxu0 %v1519_v8  ;;  %4217 = vmatprep.subr.bf16.mxu1 %v1521_v9  ;;  %v1577_v8 = vunpack.c.h.s8.bf16 %v553_v60  ;;  %v559_v9 = vld [vmem:[#allocation5 + $0x828] sm:$0xff] }
 0x50f   :  { %3726 = vmatpush1.bf16.msra.mxu0 %v1518_v10  ;;  %4218 = vmatpush1.bf16.msra.mxu1 %v1520_v11  ;;  %v1576_v10 = vunpack.c.h.s8.bf16 %v552_v2  ;;  %v1583_v11 = vunpack.c.l.s8.bf16 %v559_v9 }
 0x510   :  { %3727 = vmatprep.subr.bf16.mxu0 %v1527_v12  ;;  %4219 = vmatprep.subr.bf16.mxu1 %v1529_v13  ;;  %v1585_v12 = vunpack.c.l.s8.bf16 %v561_v50  ;;  %v558_v13 = vld [vmem:[#allocation5 + $0x820] sm:$0xff] }
 0x511   :  { %v1582_v61 = vunpack.c.l.s8.bf16 %v558_v13  ;;  %v1590_v26 = vunpack.c.h.s8.bf16 %v558_v13 }
 0x513   :  { %3728 = vmatpush1.bf16.msra.mxu0 %v1526_v19  ;;  %4220 = vmatpush1.bf16.msra.mxu1 %v1528_v20  ;;  %v1584_v19 = vunpack.c.l.s8.bf16 %v560_v14  ;;  %v1591_v20 = vunpack.c.h.s8.bf16 %v559_v9 }
 0x514   :  { %3729 = vmatprep.subr.bf16.mxu0 %v1535_v22  ;;  %4221 = vmatprep.subr.bf16.mxu1 %v1537_v25  ;;  %v1593_v22 = vunpack.c.h.s8.bf16 %v561_v50  ;;  %v567_v25 = vld [vmem:[#allocation5 + $0x868] sm:$0xff] }
 0x517   :  { %3730 = vmatpush1.bf16.msra.mxu0 %v1534_v28  ;;  %4222 = vmatpush1.bf16.msra.mxu1 %v1536_v32  ;;  %v1592_v28 = vunpack.c.h.s8.bf16 %v560_v14  ;;  %v1599_v32 = vunpack.c.l.s8.bf16 %v567_v25 }
 0x518   :  { %3731 = vmatprep.subr.bf16.mxu0 %v1543_v5  ;;  %4223 = vmatprep.subr.bf16.mxu1 %v1545_v33  ;;  %v1601_v5 = vunpack.c.l.s8.bf16 %v569_v23  ;;  %v566_v33 = vld [vmem:[#allocation5 + $0x860] sm:$0xff] }
 0x519   :  { %v1598_v36 = vunpack.c.l.s8.bf16 %v566_v33  ;;  %v1606_v46 = vunpack.c.h.s8.bf16 %v566_v33 }
 0x51b   :  { %3732 = vmatpush1.bf16.msra.mxu0 %v1542_v37  ;;  %4224 = vmatpush1.bf16.msra.mxu1 %v1544_v40  ;;  %v1600_v37 = vunpack.c.l.s8.bf16 %v568_v34  ;;  %v1609_v40 = vunpack.c.h.s8.bf16 %v569_v23 }
 0x51c   :  { %3733 = vmatprep.subr.bf16.mxu0 %v1551_v43  ;;  %4225 = vmatprep.subr.bf16.mxu1 %v1553_v45  ;;  %v575_v43 = vld [vmem:[#allocation5 + $0x8a8] sm:$0xff]  ;;  %v577_v45 = vld [vmem:[#allocation5 + $0x8b8] sm:$0xff] }
 0x51d   :  { %v1623_v60 = vunpack.c.h.s8.bf16 %v575_v43 }
 0x51f   :  { %3734 = vmatpush1.bf16.msra.mxu0 %v1550_v48  ;;  %4226 = vmatpush1.bf16.msra.mxu1 %v1552_v49  ;;  %v1615_v48 = vunpack.c.l.s8.bf16 %v575_v43  ;;  %v1617_v49 = vunpack.c.l.s8.bf16 %v577_v45 }
 0x520   :  { %3735 = vmatprep.subr.bf16.mxu0 %v1559_v51  ;;  %4227 = vmatprep.subr.bf16.mxu1 %v1561_v35  ;;  %v574_v51 = vld [vmem:[#allocation5 + $0x8a0] sm:$0xff] }
 0x521   :  { %v1614_v35 = vunpack.c.l.s8.bf16 %v574_v51 }
 0x523   :  { %3736 = vmatpush1.bf16.msra.mxu0 %v1558_v62  ;;  %4228 = vmatpush1.bf16.msra.mxu1 %v1560_v63  ;;  %v1625_v62 = vunpack.c.h.s8.bf16 %v577_v45  ;;  %v583_v63 = vld [vmem:[#allocation5 + $0x8e8] sm:$0xff] }
 0x524   :  { %3737 = vmatprep.subr.bf16.mxu0 %v1567_v42  ;;  %4229 = vmatprep.subr.bf16.mxu1 %v1569_v0  ;;  %v585_v42 = vld [vmem:[#allocation5 + $0x8f8] sm:$0xff]  ;;  %v1622_v0 = vunpack.c.h.s8.bf16 %v574_v51  ;;  %v1631_v2 = vunpack.c.l.s8.bf16 %v583_v63  ;;  %v1639_v50 = vunpack.c.h.s8.bf16 %v583_v63 }
 0x527   :  { %3738 = vmatpush1.bf16.msra.mxu0 %v1566_v3  ;;  %4230 = vmatpush1.bf16.msra.mxu1 %v1568_v6  ;;  %v1633_v3 = vunpack.c.l.s8.bf16 %v585_v42  ;;  %v582_v6 = vld [vmem:[#allocation5 + $0x8e0] sm:$0xff] }
 0x528   :  { %3739 = vmatprep.subr.bf16.mxu0 %v1575_v7  ;;  %4231 = vmatprep.subr.bf16.mxu1 %v1577_v8  ;;  %v584_v7 = vld [vmem:[#allocation5 + $0x8f0] sm:$0xff]  ;;  %v1630_v8 = vunpack.c.l.s8.bf16 %v582_v6 }
 0x529   :  { %v1632_v9 = vunpack.c.l.s8.bf16 %v584_v7  ;;  %v1640_v13 = vunpack.c.h.s8.bf16 %v584_v7 }
 0x52b   :  { %3740 = vmatpush1.bf16.msra.mxu0 %v1574_v17  ;;  %4232 = vmatpush1.bf16.msra.mxu1 %v1576_v10  ;;  %v1641_v17 = vunpack.c.h.s8.bf16 %v585_v42  ;;  %v591_v10 = vld [vmem:[#allocation5 + $0x928] sm:$0xff] }
 0x52c   :  { %3750 = vmatprep.subr.bf16.mxu0 %v1583_v11  ;;  %4242 = vmatprep.subr.bf16.mxu1 %v1585_v12  ;;  %v593_v11 = vld [vmem:[#allocation5 + $0x938] sm:$0xff]  ;;  %v1638_v12 = vunpack.c.h.s8.bf16 %v582_v6  ;;  %v1647_v14 = vunpack.c.l.s8.bf16 %v591_v10  ;;  %v1655_v23 = vunpack.c.h.s8.bf16 %v591_v10 }
 0x52e   :  { %3742 = vmatmul.mubr.bf16.vlgmr.msra.gmra.mrb[4].mxu0 %v6870_v44  ;;  %4234 = vmatmul.mubr.bf16.vlgmr.msra.gmra.mrb[4].mxu1 %v6870_v44  ;;  %v1607_v44 = vunpack.c.h.s8.bf16 %v567_v25 }
 0x52f   :  { %3751 = vmatpush1.bf16.msra.mxu0 %v1582_v61  ;;  %4243 = vmatpush1.bf16.msra.mxu1 %v1584_v19  ;;  %v1649_v61 = vunpack.c.l.s8.bf16 %v593_v11  ;;  %v590_v19 = vld [vmem:[#allocation5 + $0x920] sm:$0xff] }
 0x530   :  { %3752 = vmatprep.subr.bf16.mxu0 %v1591_v20  ;;  %4244 = vmatprep.subr.bf16.mxu1 %v1593_v22  ;;  %v592_v20 = vld [vmem:[#allocation5 + $0x930] sm:$0xff]  ;;  %v1646_v22 = vunpack.c.l.s8.bf16 %v590_v19 }
 0x531   :  { %3782 = vmatprep.mubr.bf16.mxu0 %v6872_v53  ;;  %4274 = vmatprep.mubr.bf16.mxu1 %v6872_v53  ;;  %v576_v53 = vld [vmem:[#allocation5 + $0x8b0] sm:$0xff]  ;;  %v1648_v25 = vunpack.c.l.s8.bf16 %v592_v20  ;;  %v1656_v33 = vunpack.c.h.s8.bf16 %v592_v20 }
 0x532   :  { %v1616_v58 = vunpack.c.l.s8.bf16 %v576_v53  ;;  %v1624_v1 = vunpack.c.h.s8.bf16 %v576_v53 }
 0x533   :  { %3753 = vmatpush1.bf16.msra.mxu0 %v1590_v26  ;;  %4245 = vmatpush1.bf16.msra.mxu1 %v1592_v28  ;;  %v1657_v26 = vunpack.c.h.s8.bf16 %v593_v11  ;;  %v599_v28 = vld [vmem:[#allocation5 + $0x968] sm:$0xff] }
 0x534   :  { %3754 = vmatprep.subr.bf16.mxu0 %v1599_v32  ;;  %4246 = vmatprep.subr.bf16.mxu1 %v1601_v5  ;;  %v601_v32 = vld [vmem:[#allocation5 + $0x978] sm:$0xff]  ;;  %v1654_v5 = vunpack.c.h.s8.bf16 %v590_v19  ;;  %v1663_v34 = vunpack.c.l.s8.bf16 %v599_v28  ;;  %v1671_v45 = vunpack.c.h.s8.bf16 %v599_v28 }
 0x537   :  { %3755 = vmatpush1.bf16.msra.mxu0 %v1598_v36  ;;  %4247 = vmatpush1.bf16.msra.mxu1 %v1600_v37  ;;  %v1665_v36 = vunpack.c.l.s8.bf16 %v601_v32  ;;  %v598_v37 = vld [vmem:[#allocation5 + $0x960] sm:$0xff] }
 0x538   :  { %3756 = vmatprep.subr.bf16.mxu0 %v1607_v44  ;;  %4248 = vmatprep.subr.bf16.mxu1 %v1609_v40  ;;  %v600_v44 = vld [vmem:[#allocation5 + $0x970] sm:$0xff]  ;;  %v1662_v40 = vunpack.c.l.s8.bf16 %v598_v37 }
 0x539   :  { %v1664_v43 = vunpack.c.l.s8.bf16 %v600_v44  ;;  %v1672_v51 = vunpack.c.h.s8.bf16 %v600_v44 }
 0x53b   :  { %3757 = vmatpush1.bf16.msra.mxu0 %v1606_v46  ;;  %4249 = vmatpush1.bf16.msra.mxu1 %v1608_v47  ;;  %v1673_v46 = vunpack.c.h.s8.bf16 %v601_v32  ;;  %v607_v47 = vld [vmem:[#allocation5 + $0x9a8] sm:$0xff] }
 0x53c   :  { %3758 = vmatprep.subr.bf16.mxu0 %v1615_v48  ;;  %4250 = vmatprep.subr.bf16.mxu1 %v1617_v49  ;;  %v609_v48 = vld [vmem:[#allocation5 + $0x9b8] sm:$0xff]  ;;  %v1670_v49 = vunpack.c.h.s8.bf16 %v598_v37  ;;  %v1679_v53 = vunpack.c.l.s8.bf16 %v607_v47  ;;  %v1687_v42 = vunpack.c.h.s8.bf16 %v607_v47 }
 0x53f   :  { %3759 = vmatpush1.bf16.msra.mxu0 %v1614_v35  ;;  %4251 = vmatpush1.bf16.msra.mxu1 %v1616_v58  ;;  %v1681_v35 = vunpack.c.l.s8.bf16 %v609_v48  ;;  %v606_v58 = vld [vmem:[#allocation5 + $0x9a0] sm:$0xff] }
 0x540   :  { %3760 = vmatprep.subr.bf16.mxu0 %v1623_v60  ;;  %4252 = vmatprep.subr.bf16.mxu1 %v1625_v62  ;;  %v608_v60 = vld [vmem:[#allocation5 + $0x9b0] sm:$0xff]  ;;  %v1678_v62 = vunpack.c.l.s8.bf16 %v606_v58 }
 0x541   :  { %v1680_v63 = vunpack.c.l.s8.bf16 %v608_v60  ;;  %v1688_v6 = vunpack.c.h.s8.bf16 %v608_v60 }
 0x543   :  { %3761 = vmatpush1.bf16.msra.mxu0 %v1622_v0  ;;  %4253 = vmatpush1.bf16.msra.mxu1 %v1624_v1  ;;  %v1689_v0 = vunpack.c.h.s8.bf16 %v609_v48  ;;  %v615_v1 = vld [vmem:[#allocation5 + $0x9e8] sm:$0xff] }
 0x544   :  { %3762 = vmatprep.subr.bf16.mxu0 %v1631_v2  ;;  %4254 = vmatprep.subr.bf16.mxu1 %v1633_v3  ;;  %v617_v2 = vld [vmem:[#allocation5 + $0x9f8] sm:$0xff]  ;;  %v1686_v3 = vunpack.c.h.s8.bf16 %v606_v58  ;;  %v1695_v7 = vunpack.c.l.s8.bf16 %v615_v1  ;;  %v1703_v11 = vunpack.c.h.s8.bf16 %v615_v1 }
 0x547   :  { %3763 = vmatpush1.bf16.msra.mxu0 %v1630_v8  ;;  %4255 = vmatpush1.bf16.msra.mxu1 %v1632_v9  ;;  %v1697_v8 = vunpack.c.l.s8.bf16 %v617_v2  ;;  %v614_v9 = vld [vmem:[#allocation5 + $0x9e0] sm:$0xff] }
 0x548   :  { %3764 = vmatprep.subr.bf16.mxu0 %v1639_v50  ;;  %4256 = vmatprep.subr.bf16.mxu1 %v1641_v17  ;;  %v616_v50 = vld [vmem:[#allocation5 + $0x9f0] sm:$0xff]  ;;  %v1694_v17 = vunpack.c.l.s8.bf16 %v614_v9 }
 0x549   :  { %v1696_v10 = vunpack.c.l.s8.bf16 %v616_v50  ;;  %v1704_v19 = vunpack.c.h.s8.bf16 %v616_v50  ;;  %v646_v50 = vld [vmem:[#allocation5 + $0xae0] sm:$0xff] }
 0x54b   :  { %3765 = vmatpush1.bf16.msra.mxu0 %v1638_v12  ;;  %4257 = vmatpush1.bf16.msra.mxu1 %v1640_v13  ;;  %v1705_v12 = vunpack.c.h.s8.bf16 %v617_v2  ;;  %v623_v13 = vld [vmem:[#allocation5 + $0xa28] sm:$0xff] }
 0x54c   :  { %3766 = vmatprep.subr.bf16.mxu0 %v1647_v14  ;;  %4258 = vmatprep.subr.bf16.mxu1 %v1649_v61  ;;  %v625_v14 = vld [vmem:[#allocation5 + $0xa38] sm:$0xff]  ;;  %v1702_v61 = vunpack.c.h.s8.bf16 %v614_v9  ;;  %v1711_v20 = vunpack.c.l.s8.bf16 %v623_v13  ;;  %v1719_v32 = vunpack.c.h.s8.bf16 %v623_v13  ;;  %v647_v2 = vld [vmem:[#allocation5 + $0xae8] sm:$0xff] }
 0x54f   :  { %3767 = vmatpush1.bf16.msra.mxu0 %v1646_v22  ;;  %4259 = vmatpush1.bf16.msra.mxu1 %v1648_v25  ;;  %v1713_v22 = vunpack.c.l.s8.bf16 %v625_v14  ;;  %v622_v25 = vld [vmem:[#allocation5 + $0xa20] sm:$0xff] }
 0x550   :  { %3768 = vmatprep.subr.bf16.mxu0 %v1655_v23  ;;  %4260 = vmatprep.subr.bf16.mxu1 %v1657_v26  ;;  %v624_v23 = vld [vmem:[#allocation5 + $0xa30] sm:$0xff]  ;;  %v1710_v26 = vunpack.c.l.s8.bf16 %v622_v25 }
 0x551   :  { %v1712_v28 = vunpack.c.l.s8.bf16 %v624_v23  ;;  %v1720_v37 = vunpack.c.h.s8.bf16 %v624_v23  ;;  %v654_v23 = vld [vmem:[#allocation5 + $0xb20] sm:$0xff] }
 0x553   :  { %3769 = vmatpush1.bf16.msra.mxu0 %v1654_v5  ;;  %4261 = vmatpush1.bf16.msra.mxu1 %v1656_v33  ;;  %v1721_v5 = vunpack.c.h.s8.bf16 %v625_v14  ;;  %v631_v33 = vld [vmem:[#allocation5 + $0xa68] sm:$0xff] }
 0x554   :  { %3770 = vmatprep.subr.bf16.mxu0 %v1663_v34  ;;  %4262 = vmatprep.subr.bf16.mxu1 %v1665_v36  ;;  %v633_v34 = vld [vmem:[#allocation5 + $0xa78] sm:$0xff]  ;;  %v1718_v36 = vunpack.c.h.s8.bf16 %v622_v25  ;;  %v1727_v44 = vunpack.c.l.s8.bf16 %v631_v33  ;;  %v655_v14 = vld [vmem:[#allocation5 + $0xb28] sm:$0xff] }
 0x555   :  { %v1737_v48 = vunpack.c.h.s8.bf16 %v633_v34 }
 0x557   :  { %3771 = vmatpush1.bf16.msra.mxu0 %v1662_v40  ;;  %4263 = vmatpush1.bf16.msra.mxu1 %v1664_v43  ;;  %v1729_v40 = vunpack.c.l.s8.bf16 %v633_v34  ;;  %v630_v43 = vld [vmem:[#allocation5 + $0xa60] sm:$0xff]  ;;  %v663_v34 = vld [vmem:[#allocation5 + $0xb68] sm:$0xff] }
 0x558   :  { %3772 = vmatprep.subr.bf16.mxu0 %v1671_v45  ;;  %4264 = vmatprep.subr.bf16.mxu1 %v1673_v46  ;;  %v632_v45 = vld [vmem:[#allocation5 + $0xa70] sm:$0xff]  ;;  %v1726_v46 = vunpack.c.l.s8.bf16 %v630_v43 }
 0x559   :  { %v1728_v47 = vunpack.c.l.s8.bf16 %v632_v45 }
 0x55b   :  { %3773 = vmatpush1.bf16.msra.mxu0 %v1670_v49  ;;  %4265 = vmatpush1.bf16.msra.mxu1 %v1672_v51  ;;  %v639_v49 = vld [vmem:[#allocation5 + $0xaa8] sm:$0xff]  ;;  %v641_v51 = vld [vmem:[#allocation5 + $0xab8] sm:$0xff] }
 0x55c   :  { %3774 = vmatprep.subr.bf16.mxu0 %v1679_v53  ;;  %4266 = vmatprep.subr.bf16.mxu1 %v1681_v35  ;;  %v1734_v53 = vunpack.c.h.s8.bf16 %v630_v43  ;;  %v1736_v35 = vunpack.c.h.s8.bf16 %v632_v45  ;;  %v1743_v58 = vunpack.c.l.s8.bf16 %v639_v49  ;;  %v1745_v60 = vunpack.c.l.s8.bf16 %v641_v51  ;;  %v662_v45 = vld [vmem:[#allocation5 + $0xb60] sm:$0xff] }
 0x55d   :  { %v1753_v1 = vunpack.c.h.s8.bf16 %v641_v51  ;;  %v671_v51 = vld [vmem:[#allocation5 + $0xba8] sm:$0xff] }
 0x55f   :  { %3775 = vmatpush1.bf16.msra.mxu0 %v1678_v62  ;;  %4267 = vmatpush1.bf16.msra.mxu1 %v1680_v63  ;;  %v638_v62 = vld [vmem:[#allocation5 + $0xaa0] sm:$0xff] }
 0x560   :  { %3776 = vmatprep.subr.bf16.mxu0 %v1687_v42  ;;  %4268 = vmatprep.subr.bf16.mxu1 %v1689_v0  ;;  %v1742_v63 = vunpack.c.l.s8.bf16 %v638_v62  ;;  %v1751_v0 = vunpack.c.h.s8.bf16 %v639_v49 }
 0x563   :  { %3777 = vmatpush1.bf16.msra.mxu0 %v1686_v3  ;;  %4269 = vmatpush1.bf16.msra.mxu1 %v1688_v6  ;;  %v649_v3 = vld [vmem:[#allocation5 + $0xaf8] sm:$0xff]  ;;  %v1750_v6 = vunpack.c.h.s8.bf16 %v638_v62 }
 0x564   :  { %3778 = vmatprep.subr.bf16.mxu0 %v1695_v7  ;;  %4270 = vmatprep.subr.bf16.mxu1 %v1697_v8  ;;  %v1759_v8 = vunpack.c.l.s8.bf16 %v647_v2  ;;  %v1761_v9 = vunpack.c.l.s8.bf16 %v649_v3  ;;  %v1769_v13 = vunpack.c.h.s8.bf16 %v649_v3  ;;  %v679_v3 = vld [vmem:[#allocation5 + $0xbe8] sm:$0xff] }
 0x567   :  { %3779 = vmatpush1.bf16.msra.mxu0 %v1694_v17  ;;  %4271 = vmatpush1.bf16.msra.mxu1 %v1696_v10  ;;  %v648_v17 = vld [vmem:[#allocation5 + $0xaf0] sm:$0xff]  ;;  %v1758_v10 = vunpack.c.l.s8.bf16 %v646_v50 }
 0x568   :  { %3780 = vmatprep.subr.bf16.mxu0 %v1703_v11  ;;  %4272 = vmatprep.subr.bf16.mxu1 %v1705_v12  ;;  %v1760_v11 = vunpack.c.l.s8.bf16 %v648_v17  ;;  %v1767_v12 = vunpack.c.h.s8.bf16 %v647_v2 }
 0x56b   :  { %3781 = vmatpush1.bf16.msra.mxu0 %v1702_v61  ;;  %4273 = vmatpush1.bf16.msra.mxu1 %v1704_v19  ;;  %v657_v61 = vld [vmem:[#allocation5 + $0xb38] sm:$0xff]  ;;  %v1766_v19 = vunpack.c.h.s8.bf16 %v646_v50 }
 0x56c   :  { %3791 = vmatprep.subr.bf16.mxu0 %v1711_v20  ;;  %4283 = vmatprep.subr.bf16.mxu1 %v1713_v22  ;;  %v1768_v20 = vunpack.c.h.s8.bf16 %v648_v17  ;;  %v1775_v22 = vunpack.c.l.s8.bf16 %v655_v14  ;;  %v1777_v25 = vunpack.c.l.s8.bf16 %v657_v61  ;;  %v678_v17 = vld [vmem:[#allocation5 + $0xbe0] sm:$0xff] }
 0x56e   :  { %3783 = vmatmul.mubr.bf16.vlgmr.msra.gmra.mrb[4].mxu0 %v6878_v30  ;;  %4275 = vmatmul.mubr.bf16.vlgmr.msra.gmra.mrb[4].mxu1 %v6878_v30  ;;  %v1735_v30 = vunpack.c.h.s8.bf16 %v631_v33  ;;  %v1785_v33 = vunpack.c.h.s8.bf16 %v657_v61  ;;  %v687_v61 = vld [vmem:[#allocation5 + $0xc28] sm:$0xff] }
 0x56f   :  { %3792 = vmatpush1.bf16.msra.mxu0 %v1710_v26  ;;  %4284 = vmatpush1.bf16.msra.mxu1 %v1712_v28  ;;  %v656_v26 = vld [vmem:[#allocation5 + $0xb30] sm:$0xff]  ;;  %v1774_v28 = vunpack.c.l.s8.bf16 %v654_v23 }
 0x570   :  { %3793 = vmatprep.subr.bf16.mxu0 %v1719_v32  ;;  %4285 = vmatprep.subr.bf16.mxu1 %v1721_v5  ;;  %v1776_v32 = vunpack.c.l.s8.bf16 %v656_v26  ;;  %v1783_v5 = vunpack.c.h.s8.bf16 %v655_v14 }
 0x571   :  { %3823 = vmatprep.mubr.bf16.mxu0 %v6880_v39  ;;  %4315 = vmatprep.mubr.bf16.mxu1 %v6880_v39  ;;  %v640_v39 = vld [vmem:[#allocation5 + $0xab0] sm:$0xff] }
 0x572   :  { %v1744_v42 = vunpack.c.l.s8.bf16 %v640_v39  ;;  %v1752_v7 = vunpack.c.h.s8.bf16 %v640_v39  ;;  %v670_v39 = vld [vmem:[#allocation5 + $0xba0] sm:$0xff] }
 0x573   :  { %3794 = vmatpush1.bf16.msra.mxu0 %v1718_v36  ;;  %4286 = vmatpush1.bf16.msra.mxu1 %v1720_v37  ;;  %v665_v36 = vld [vmem:[#allocation5 + $0xb78] sm:$0xff]  ;;  %v1782_v37 = vunpack.c.h.s8.bf16 %v654_v23 }
 0x574   :  { %3795 = vmatprep.subr.bf16.mxu0 %v1727_v44  ;;  %4287 = vmatprep.subr.bf16.mxu1 %v1729_v40  ;;  %v1784_v44 = vunpack.c.h.s8.bf16 %v656_v26  ;;  %v1791_v40 = vunpack.c.l.s8.bf16 %v663_v34  ;;  %v1793_v43 = vunpack.c.l.s8.bf16 %v665_v36  ;;  %v1801_v49 = vunpack.c.h.s8.bf16 %v665_v36  ;;  %v686_v26 = vld [vmem:[#allocation5 + $0xc20] sm:$0xff]  ;;  %v695_v36 = vld [vmem:[#allocation5 + $0xc68] sm:$0xff] }
 0x577   :  { %3796 = vmatpush1.bf16.msra.mxu0 %v1726_v46  ;;  %4288 = vmatpush1.bf16.msra.mxu1 %v1728_v47  ;;  %v664_v46 = vld [vmem:[#allocation5 + $0xb70] sm:$0xff]  ;;  %v1790_v47 = vunpack.c.l.s8.bf16 %v662_v45 }
 0x578   :  { %3797 = vmatprep.subr.bf16.mxu0 %v1735_v30  ;;  %4289 = vmatprep.subr.bf16.mxu1 %v1737_v48  ;;  %v1792_v30 = vunpack.c.l.s8.bf16 %v664_v46  ;;  %v1799_v48 = vunpack.c.h.s8.bf16 %v663_v34 }
 0x57b   :  { %3798 = vmatpush1.bf16.msra.mxu0 %v1734_v53  ;;  %4290 = vmatpush1.bf16.msra.mxu1 %v1736_v35  ;;  %v673_v53 = vld [vmem:[#allocation5 + $0xbb8] sm:$0xff]  ;;  %v1798_v35 = vunpack.c.h.s8.bf16 %v662_v45 }
 0x57c   :  { %3799 = vmatprep.subr.bf16.mxu0 %v1743_v58  ;;  %4291 = vmatprep.subr.bf16.mxu1 %v1745_v60  ;;  %v1800_v58 = vunpack.c.h.s8.bf16 %v664_v46  ;;  %v1807_v60 = vunpack.c.l.s8.bf16 %v671_v51  ;;  %v1809_v62 = vunpack.c.l.s8.bf16 %v673_v53  ;;  %v1817_v2 = vunpack.c.h.s8.bf16 %v673_v53  ;;  %v694_v46 = vld [vmem:[#allocation5 + $0xc60] sm:$0xff]  ;;  %v705_v53 = vld [vmem:[#allocation5 + $0xcb8] sm:$0xff] }
 0x57f   :  { %3800 = vmatpush1.bf16.msra.mxu0 %v1742_v63  ;;  %4292 = vmatpush1.bf16.msra.mxu1 %v1744_v42  ;;  %v672_v63 = vld [vmem:[#allocation5 + $0xbb0] sm:$0xff]  ;;  %v1806_v42 = vunpack.c.l.s8.bf16 %v670_v39 }
 0x580   :  { %3801 = vmatprep.subr.bf16.mxu0 %v1751_v0  ;;  %4293 = vmatprep.subr.bf16.mxu1 %v1753_v1  ;;  %v1808_v0 = vunpack.c.l.s8.bf16 %v672_v63  ;;  %v1815_v1 = vunpack.c.h.s8.bf16 %v671_v51  ;;  %v703_v51 = vld [vmem:[#allocation5 + $0xca8] sm:$0xff] }
 0x583   :  { %3802 = vmatpush1.bf16.msra.mxu0 %v1750_v6  ;;  %4294 = vmatpush1.bf16.msra.mxu1 %v1752_v7  ;;  %v681_v6 = vld [vmem:[#allocation5 + $0xbf8] sm:$0xff]  ;;  %v1814_v7 = vunpack.c.h.s8.bf16 %v670_v39  ;;  %v702_v39 = vld [vmem:[#allocation5 + $0xca0] sm:$0xff] }
 0x584   :  { %3803 = vmatprep.subr.bf16.mxu0 %v1759_v8  ;;  %4295 = vmatprep.subr.bf16.mxu1 %v1761_v9  ;;  %v1816_v8 = vunpack.c.h.s8.bf16 %v672_v63  ;;  %v1823_v9 = vunpack.c.l.s8.bf16 %v679_v3  ;;  %v1825_v50 = vunpack.c.l.s8.bf16 %v681_v6  ;;  %v1833_v14 = vunpack.c.h.s8.bf16 %v681_v6 }
 0x585   :  { %v1870_v63 = vunpack.c.l.s8.bf16 %v702_v39  ;;  %v1878_v6 = vunpack.c.h.s8.bf16 %v702_v39  ;;  %v736_v39 = vld [vmem:[#allocation5 + $0xdb0] sm:$0xff] }
 0x587   :  { %3804 = vmatpush1.bf16.msra.mxu0 %v1758_v10  ;;  %4296 = vmatpush1.bf16.msra.mxu1 %v1760_v11  ;;  %v680_v10 = vld [vmem:[#allocation5 + $0xbf0] sm:$0xff]  ;;  %v1822_v11 = vunpack.c.l.s8.bf16 %v678_v17 }
 0x588   :  { %3805 = vmatprep.subr.bf16.mxu0 %v1767_v12  ;;  %4297 = vmatprep.subr.bf16.mxu1 %v1769_v13  ;;  %v1824_v12 = vunpack.c.l.s8.bf16 %v680_v10  ;;  %v1831_v13 = vunpack.c.h.s8.bf16 %v679_v3  ;;  %v713_v3 = vld [vmem:[#allocation5 + $0xcf8] sm:$0xff] }
 0x58b   :  { %3806 = vmatpush1.bf16.msra.mxu0 %v1766_v19  ;;  %4298 = vmatpush1.bf16.msra.mxu1 %v1768_v20  ;;  %v689_v19 = vld [vmem:[#allocation5 + $0xc38] sm:$0xff]  ;;  %v1830_v20 = vunpack.c.h.s8.bf16 %v678_v17  ;;  %v712_v17 = vld [vmem:[#allocation5 + $0xcf0] sm:$0xff] }
 0x58c   :  { %3807 = vmatprep.subr.bf16.mxu0 %v1775_v22  ;;  %4299 = vmatprep.subr.bf16.mxu1 %v1777_v25  ;;  %v1832_v22 = vunpack.c.h.s8.bf16 %v680_v10  ;;  %v1839_v25 = vunpack.c.l.s8.bf16 %v687_v61  ;;  %v1841_v23 = vunpack.c.l.s8.bf16 %v689_v19  ;;  %v1849_v34 = vunpack.c.h.s8.bf16 %v689_v19 }
 0x58f   :  { %3808 = vmatpush1.bf16.msra.mxu0 %v1774_v28  ;;  %4300 = vmatpush1.bf16.msra.mxu1 %v1776_v32  ;;  %v688_v28 = vld [vmem:[#allocation5 + $0xc30] sm:$0xff]  ;;  %v1838_v32 = vunpack.c.l.s8.bf16 %v686_v26 }
 0x590   :  { %3809 = vmatprep.subr.bf16.mxu0 %v1783_v5  ;;  %4301 = vmatprep.subr.bf16.mxu1 %v1785_v33  ;;  %v1840_v5 = vunpack.c.l.s8.bf16 %v688_v28  ;;  %v1847_v33 = vunpack.c.h.s8.bf16 %v687_v61  ;;  %v721_v61 = vld [vmem:[#allocation5 + $0xd38] sm:$0xff] }
 0x593   :  { %3810 = vmatpush1.bf16.msra.mxu0 %v1782_v37  ;;  %4302 = vmatpush1.bf16.msra.mxu1 %v1784_v44  ;;  %v697_v37 = vld [vmem:[#allocation5 + $0xc78] sm:$0xff]  ;;  %v1846_v44 = vunpack.c.h.s8.bf16 %v686_v26  ;;  %v720_v26 = vld [vmem:[#allocation5 + $0xd30] sm:$0xff] }
 0x594   :  { %3811 = vmatprep.subr.bf16.mxu0 %v1791_v40  ;;  %4303 = vmatprep.subr.bf16.mxu1 %v1793_v43  ;;  %v1848_v40 = vunpack.c.h.s8.bf16 %v688_v28  ;;  %v1855_v43 = vunpack.c.l.s8.bf16 %v695_v36  ;;  %v1857_v45 = vunpack.c.l.s8.bf16 %v697_v37 }
 0x597   :  { %3812 = vmatpush1.bf16.msra.mxu0 %v1790_v47  ;;  %4304 = vmatpush1.bf16.msra.mxu1 %v1792_v30  ;;  %v696_v47 = vld [vmem:[#allocation5 + $0xc70] sm:$0xff]  ;;  %v1854_v30 = vunpack.c.l.s8.bf16 %v694_v46 }
 0x598   :  { %3813 = vmatprep.subr.bf16.mxu0 %v1799_v48  ;;  %4305 = vmatprep.subr.bf16.mxu1 %v1801_v49  ;;  %v1856_v48 = vunpack.c.l.s8.bf16 %v696_v47  ;;  %v1865_v49 = vunpack.c.h.s8.bf16 %v697_v37 }
 0x59b   :  { %3814 = vmatpush1.bf16.msra.mxu0 %v1798_v35  ;;  %4306 = vmatpush1.bf16.msra.mxu1 %v1800_v58  ;;  %v1862_v35 = vunpack.c.h.s8.bf16 %v694_v46  ;;  %v1864_v58 = vunpack.c.h.s8.bf16 %v696_v47  ;;  %v728_v46 = vld [vmem:[#allocation5 + $0xd70] sm:$0xff] }
 0x59c   :  { %3815 = vmatprep.subr.bf16.mxu0 %v1807_v60  ;;  %4307 = vmatprep.subr.bf16.mxu1 %v1809_v62  ;;  %v1871_v60 = vunpack.c.l.s8.bf16 %v703_v51  ;;  %v1873_v62 = vunpack.c.l.s8.bf16 %v705_v53 }
 0x59f   :  { %3816 = vmatpush1.bf16.msra.mxu0 %v1806_v42  ;;  %4308 = vmatpush1.bf16.msra.mxu1 %v1808_v0  ;;  %v1879_v0 = vunpack.c.h.s8.bf16 %v703_v51  ;;  %v737_v51 = vld [vmem:[#allocation5 + $0xdb8] sm:$0xff] }
 0x5a0   :  { %3817 = vmatprep.subr.bf16.mxu0 %v1815_v1  ;;  %4309 = vmatprep.subr.bf16.mxu1 %v1817_v2  ;;  %v1881_v1 = vunpack.c.h.s8.bf16 %v705_v53  ;;  %v711_v2 = vld [vmem:[#allocation5 + $0xce8] sm:$0xff] }
 0x5a3   :  { %3818 = vmatpush1.bf16.msra.mxu0 %v1814_v7  ;;  %4310 = vmatpush1.bf16.msra.mxu1 %v1816_v8  ;;  %v1887_v8 = vunpack.c.l.s8.bf16 %v711_v2 }
 0x5a4   :  { %3819 = vmatprep.subr.bf16.mxu0 %v1823_v9  ;;  %4311 = vmatprep.subr.bf16.mxu1 %v1825_v50  ;;  %v1889_v9 = vunpack.c.l.s8.bf16 %v713_v3  ;;  %v710_v50 = vld [vmem:[#allocation5 + $0xce0] sm:$0xff] }
 0x5a5   :  { %v1886_v10 = vunpack.c.l.s8.bf16 %v710_v50  ;;  %v1894_v19 = vunpack.c.h.s8.bf16 %v710_v50  ;;  %v744_v50 = vld [vmem:[#allocation5 + $0xdf0] sm:$0xff] }
 0x5a7   :  { %3820 = vmatpush1.bf16.msra.mxu0 %v1822_v11  ;;  %4312 = vmatpush1.bf16.msra.mxu1 %v1824_v12  ;;  %v1888_v11 = vunpack.c.l.s8.bf16 %v712_v17  ;;  %v1895_v12 = vunpack.c.h.s8.bf16 %v711_v2  ;;  %v745_v2 = vld [vmem:[#allocation5 + $0xdf8] sm:$0xff] }
 0x5a8   :  { %3821 = vmatprep.subr.bf16.mxu0 %v1831_v13  ;;  %4313 = vmatprep.subr.bf16.mxu1 %v1833_v14  ;;  %v1897_v13 = vunpack.c.h.s8.bf16 %v713_v3  ;;  %v719_v14 = vld [vmem:[#allocation5 + $0xd28] sm:$0xff] }
 0x5ab   :  { %3822 = vmatpush1.bf16.msra.mxu0 %v1830_v20  ;;  %4314 = vmatpush1.bf16.msra.mxu1 %v1832_v22  ;;  %v1896_v20 = vunpack.c.h.s8.bf16 %v712_v17  ;;  %v1903_v22 = vunpack.c.l.s8.bf16 %v719_v14 }
 0x5ac   :  { %3832 = vmatprep.subr.bf16.mxu0 %v1839_v25  ;;  %4324 = vmatprep.subr.bf16.mxu1 %v1841_v23  ;;  %v1905_v25 = vunpack.c.l.s8.bf16 %v721_v61  ;;  %v718_v23 = vld [vmem:[#allocation5 + $0xd20] sm:$0xff] }
 0x5ad   :  { %v1902_v28 = vunpack.c.l.s8.bf16 %v718_v23  ;;  %v1910_v37 = vunpack.c.h.s8.bf16 %v718_v23  ;;  %v752_v23 = vld [vmem:[#allocation5 + $0xe30] sm:$0xff] }
 0x5ae   :  { %3824 = vmatmul.mubr.bf16.vlgmr.msra.gmra.mrb[4].mxu0 %v6886_v21  ;;  %4316 = vmatmul.mubr.bf16.vlgmr.msra.gmra.mrb[4].mxu1 %v6886_v21  ;;  %v1863_v21 = vunpack.c.h.s8.bf16 %v695_v36  ;;  %v729_v36 = vld [vmem:[#allocation5 + $0xd78] sm:$0xff] }
 0x5af   :  { %3833 = vmatpush1.bf16.msra.mxu0 %v1838_v32  ;;  %4325 = vmatpush1.bf16.msra.mxu1 %v1840_v5  ;;  %v1904_v32 = vunpack.c.l.s8.bf16 %v720_v26  ;;  %v1911_v5 = vunpack.c.h.s8.bf16 %v719_v14  ;;  %v753_v14 = vld [vmem:[#allocation5 + $0xe38] sm:$0xff] }
 0x5b0   :  { %3834 = vmatprep.subr.bf16.mxu0 %v1847_v33  ;;  %4326 = vmatprep.subr.bf16.mxu1 %v1849_v34  ;;  %v1913_v33 = vunpack.c.h.s8.bf16 %v721_v61  ;;  %v727_v34 = vld [vmem:[#allocation5 + $0xd68] sm:$0xff] }
 0x5b1   :  { %3864 = vmatprep.mubr.bf16.mxu0 %v6888_v31  ;;  %4356 = vmatprep.mubr.bf16.mxu1 %v6888_v31  ;;  %v704_v31 = vld [vmem:[#allocation5 + $0xcb0] sm:$0xff] }
 0x5b2   :  { %v1872_v42 = vunpack.c.l.s8.bf16 %v704_v31  ;;  %v1880_v7 = vunpack.c.h.s8.bf16 %v704_v31 }
 0x5b3   :  { %3835 = vmatpush1.bf16.msra.mxu0 %v1846_v44  ;;  %4327 = vmatpush1.bf16.msra.mxu1 %v1848_v40  ;;  %v1912_v44 = vunpack.c.h.s8.bf16 %v720_v26  ;;  %v1919_v40 = vunpack.c.l.s8.bf16 %v727_v34 }
 0x5b4   :  { %3836 = vmatprep.subr.bf16.mxu0 %v1855_v43  ;;  %4328 = vmatprep.subr.bf16.mxu1 %v1857_v45  ;;  %v1921_v43 = vunpack.c.l.s8.bf16 %v729_v36  ;;  %v726_v45 = vld [vmem:[#allocation5 + $0xd60] sm:$0xff] }
 0x5b5   :  { %v1918_v47 = vunpack.c.l.s8.bf16 %v726_v45  ;;  %v1926_v53 = vunpack.c.h.s8.bf16 %v726_v45  ;;  %v760_v45 = vld [vmem:[#allocation5 + $0xe70] sm:$0xff] }
 0x5b7   :  { %3837 = vmatpush1.bf16.msra.mxu0 %v1854_v30  ;;  %4329 = vmatpush1.bf16.msra.mxu1 %v1856_v48  ;;  %v1920_v30 = vunpack.c.l.s8.bf16 %v728_v46  ;;  %v1927_v48 = vunpack.c.h.s8.bf16 %v727_v34  ;;  %v761_v34 = vld [vmem:[#allocation5 + $0xe78] sm:$0xff] }
 0x5b8   :  { %3838 = vmatprep.subr.bf16.mxu0 %v1863_v21  ;;  %4330 = vmatprep.subr.bf16.mxu1 %v1865_v49  ;;  %v1929_v21 = vunpack.c.h.s8.bf16 %v729_v36  ;;  %v735_v49 = vld [vmem:[#allocation5 + $0xda8] sm:$0xff] }
 0x5bb   :  { %3839 = vmatpush1.bf16.msra.mxu0 %v1862_v35  ;;  %4331 = vmatpush1.bf16.msra.mxu1 %v1864_v58  ;;  %v1928_v35 = vunpack.c.h.s8.bf16 %v728_v46  ;;  %v1935_v58 = vunpack.c.l.s8.bf16 %v735_v49 }
 0x5bc   :  { %3840 = vmatprep.subr.bf16.mxu0 %v1871_v60  ;;  %4332 = vmatprep.subr.bf16.mxu1 %v1873_v62  ;;  %v1937_v60 = vunpack.c.l.s8.bf16 %v737_v51  ;;  %v734_v62 = vld [vmem:[#allocation5 + $0xda0] sm:$0xff] }
 0x5bd   :  { %v1934_v31 = vunpack.c.l.s8.bf16 %v734_v62  ;;  %v1942_v3 = vunpack.c.h.s8.bf16 %v734_v62 }
 0x5bf   :  { %3841 = vmatpush1.bf16.msra.mxu0 %v1870_v63  ;;  %4333 = vmatpush1.bf16.msra.mxu1 %v1872_v42  ;;  %v1936_v63 = vunpack.c.l.s8.bf16 %v736_v39  ;;  %v1943_v42 = vunpack.c.h.s8.bf16 %v735_v49 }
 0x5c0   :  { %3842 = vmatprep.subr.bf16.mxu0 %v1879_v0  ;;  %4334 = vmatprep.subr.bf16.mxu1 %v1881_v1  ;;  %v1945_v0 = vunpack.c.h.s8.bf16 %v737_v51  ;;  %v743_v1 = vld [vmem:[#allocation5 + $0xde8] sm:$0xff]  ;;  %v1992_v51 = vunpack.c.h.s8.bf16 %v760_v45 }
 0x5c3   :  { %3843 = vmatpush1.bf16.msra.mxu0 %v1878_v6  ;;  %4335 = vmatpush1.bf16.msra.mxu1 %v1880_v7  ;;  %v1944_v6 = vunpack.c.h.s8.bf16 %v736_v39  ;;  %v1951_v7 = vunpack.c.l.s8.bf16 %v743_v1 }
 0x5c4   :  { %3844 = vmatprep.subr.bf16.mxu0 %v1887_v8  ;;  %4336 = vmatprep.subr.bf16.mxu1 %v1889_v9  ;;  %v1953_v8 = vunpack.c.l.s8.bf16 %v745_v2  ;;  %v742_v9 = vld [vmem:[#allocation5 + $0xde0] sm:$0xff] }
 0x5c5   :  { %v1950_v17 = vunpack.c.l.s8.bf16 %v742_v9  ;;  %v1958_v61 = vunpack.c.h.s8.bf16 %v742_v9 }
 0x5c7   :  { %3845 = vmatpush1.bf16.msra.mxu0 %v1886_v10  ;;  %4337 = vmatpush1.bf16.msra.mxu1 %v1888_v11  ;;  %v1952_v10 = vunpack.c.l.s8.bf16 %v744_v50  ;;  %v1959_v11 = vunpack.c.h.s8.bf16 %v743_v1 }
 0x5c8   :  { %3846 = vmatprep.subr.bf16.mxu0 %v1895_v12  ;;  %4338 = vmatprep.subr.bf16.mxu1 %v1897_v13  ;;  %v1961_v12 = vunpack.c.h.s8.bf16 %v745_v2  ;;  %v751_v13 = vld [vmem:[#allocation5 + $0xe28] sm:$0xff] }
 0x5cb   :  { %3847 = vmatpush1.bf16.msra.mxu0 %v1894_v19  ;;  %4339 = vmatpush1.bf16.msra.mxu1 %v1896_v20  ;;  %v1960_v19 = vunpack.c.h.s8.bf16 %v744_v50  ;;  %v1967_v20 = vunpack.c.l.s8.bf16 %v751_v13 }
 0x5cc   :  { %3848 = vmatprep.subr.bf16.mxu0 %v1903_v22  ;;  %4340 = vmatprep.subr.bf16.mxu1 %v1905_v25  ;;  %v1969_v22 = vunpack.c.l.s8.bf16 %v753_v14  ;;  %v750_v25 = vld [vmem:[#allocation5 + $0xe20] sm:$0xff] }
 0x5cd   :  { %v1966_v26 = vunpack.c.l.s8.bf16 %v750_v25  ;;  %v1974_v36 = vunpack.c.h.s8.bf16 %v750_v25 }
 0x5cf   :  { %3849 = vmatpush1.bf16.msra.mxu0 %v1902_v28  ;;  %4341 = vmatpush1.bf16.msra.mxu1 %v1904_v32  ;;  %v1968_v28 = vunpack.c.l.s8.bf16 %v752_v23  ;;  %v1975_v32 = vunpack.c.h.s8.bf16 %v751_v13 }
 0x5d0   :  { %3850 = vmatprep.subr.bf16.mxu0 %v1911_v5  ;;  %4342 = vmatprep.subr.bf16.mxu1 %v1913_v33  ;;  %v1977_v5 = vunpack.c.h.s8.bf16 %v753_v14  ;;  %v759_v33 = vld [vmem:[#allocation5 + $0xe68] sm:$0xff] }
 0x5d3   :  { %3851 = vmatpush1.bf16.msra.mxu0 %v1910_v37  ;;  %4343 = vmatpush1.bf16.msra.mxu1 %v1912_v44  ;;  %v1976_v37 = vunpack.c.h.s8.bf16 %v752_v23  ;;  %v1983_v44 = vunpack.c.l.s8.bf16 %v759_v33 }
 0x5d4   :  { %3852 = vmatprep.subr.bf16.mxu0 %v1919_v40  ;;  %4344 = vmatprep.subr.bf16.mxu1 %v1921_v43  ;;  %v1985_v40 = vunpack.c.l.s8.bf16 %v761_v34  ;;  %v758_v43 = vld [vmem:[#allocation5 + $0xe60] sm:$0xff] }
 0x5d5   :  { %v1982_v46 = vunpack.c.l.s8.bf16 %v758_v43  ;;  %v1990_v49 = vunpack.c.h.s8.bf16 %v758_v43 }
 0x5d7   :  { %3853 = vmatpush1.bf16.msra.mxu0 %v1918_v47  ;;  %4345 = vmatpush1.bf16.msra.mxu1 %v1920_v30  ;;  %v1984_v47 = vunpack.c.l.s8.bf16 %v760_v45  ;;  %v1993_v30 = vunpack.c.h.s8.bf16 %v761_v34 }
 0x5d8   :  { %3854 = vmatprep.subr.bf16.mxu0 %v1927_v48  ;;  %4346 = vmatprep.subr.bf16.mxu1 %v1929_v21  ;;  %v767_v48 = vld [vmem:[#allocation5 + $0xea8] sm:$0xff]  ;;  %v769_v21 = vld [vmem:[#allocation5 + $0xeb8] sm:$0xff] }
 0x5d9   :  { %v2007_v39 = vunpack.c.h.s8.bf16 %v767_v48 }
 0x5db   :  { %3855 = vmatpush1.bf16.msra.mxu0 %v1926_v53  ;;  %4347 = vmatpush1.bf16.msra.mxu1 %v1928_v35  ;;  %v1999_v53 = vunpack.c.l.s8.bf16 %v767_v48  ;;  %v2001_v35 = vunpack.c.l.s8.bf16 %v769_v21 }
 0x5dc   :  { %3856 = vmatprep.subr.bf16.mxu0 %v1935_v58  ;;  %4348 = vmatprep.subr.bf16.mxu1 %v1937_v60  ;;  %v766_v58 = vld [vmem:[#allocation5 + $0xea0] sm:$0xff] }
 0x5dd   :  { %v1998_v60 = vunpack.c.l.s8.bf16 %v766_v58 }
 0x5df   :  { %3857 = vmatpush1.bf16.msra.mxu0 %v1934_v31  ;;  %4349 = vmatpush1.bf16.msra.mxu1 %v1936_v63  ;;  %v2009_v31 = vunpack.c.h.s8.bf16 %v769_v21  ;;  %v775_v63 = vld [vmem:[#allocation5 + $0xee8] sm:$0xff] }
 0x5e0   :  { %3858 = vmatprep.subr.bf16.mxu0 %v1943_v42  ;;  %4350 = vmatprep.subr.bf16.mxu1 %v1945_v0  ;;  %v777_v42 = vld [vmem:[#allocation5 + $0xef8] sm:$0xff]  ;;  %v2006_v0 = vunpack.c.h.s8.bf16 %v766_v58  ;;  %v2015_v2 = vunpack.c.l.s8.bf16 %v775_v63  ;;  %v2023_v50 = vunpack.c.h.s8.bf16 %v775_v63 }
 0x5e3   :  { %3859 = vmatpush1.bf16.msra.mxu0 %v1942_v3  ;;  %4351 = vmatpush1.bf16.msra.mxu1 %v1944_v6  ;;  %v2017_v3 = vunpack.c.l.s8.bf16 %v777_v42  ;;  %v774_v6 = vld [vmem:[#allocation5 + $0xee0] sm:$0xff] }
 0x5e4   :  { %3860 = vmatprep.subr.bf16.mxu0 %v1951_v7  ;;  %4352 = vmatprep.subr.bf16.mxu1 %v1953_v8  ;;  %v776_v7 = vld [vmem:[#allocation5 + $0xef0] sm:$0xff]  ;;  %v2014_v8 = vunpack.c.l.s8.bf16 %v774_v6 }
 0x5e5   :  { %v2016_v9 = vunpack.c.l.s8.bf16 %v776_v7  ;;  %v2024_v13 = vunpack.c.h.s8.bf16 %v776_v7 }
 0x5e7   :  { %3861 = vmatpush1.bf16.msra.mxu0 %v1950_v17  ;;  %4353 = vmatpush1.bf16.msra.mxu1 %v1952_v10  ;;  %v2025_v17 = vunpack.c.h.s8.bf16 %v777_v42  ;;  %v783_v10 = vld [vmem:[#allocation5 + $0xf28] sm:$0xff] }
 0x5e8   :  { %3862 = vmatprep.subr.bf16.mxu0 %v1959_v11  ;;  %4354 = vmatprep.subr.bf16.mxu1 %v1961_v12  ;;  %v785_v11 = vld [vmem:[#allocation5 + $0xf38] sm:$0xff]  ;;  %v2022_v12 = vunpack.c.h.s8.bf16 %v774_v6  ;;  %v2031_v14 = vunpack.c.l.s8.bf16 %v783_v10  ;;  %v2039_v23 = vunpack.c.h.s8.bf16 %v783_v10 }
 0x5eb   :  { %3863 = vmatpush1.bf16.msra.mxu0 %v1958_v61  ;;  %4355 = vmatpush1.bf16.msra.mxu1 %v1960_v19  ;;  %v2033_v61 = vunpack.c.l.s8.bf16 %v785_v11  ;;  %v782_v19 = vld [vmem:[#allocation5 + $0xf20] sm:$0xff] }
 0x5ec   :  { %3873 = vmatprep.subr.bf16.mxu0 %v1967_v20  ;;  %4365 = vmatprep.subr.bf16.mxu1 %v1969_v22  ;;  %v784_v20 = vld [vmem:[#allocation5 + $0xf30] sm:$0xff]  ;;  %v2030_v22 = vunpack.c.l.s8.bf16 %v782_v19 }
 0x5ed   :  { %v2032_v25 = vunpack.c.l.s8.bf16 %v784_v20 }
 0x5ee   :  { %3865 = vmatmul.mubr.bf16.vlgmr.msra.gmra.mrb[4].mxu0 %v6894_v16  ;;  %4357 = vmatmul.mubr.bf16.vlgmr.msra.gmra.mrb[4].mxu1 %v6894_v16  ;;  %v1991_v16 = vunpack.c.h.s8.bf16 %v759_v33  ;;  %v2040_v33 = vunpack.c.h.s8.bf16 %v784_v20 }
 0x5ef   :  { %3874 = vmatpush1.bf16.msra.mxu0 %v1966_v26  ;;  %4366 = vmatpush1.bf16.msra.mxu1 %v1968_v28  ;;  %v2041_v26 = vunpack.c.h.s8.bf16 %v785_v11  ;;  %v791_v28 = vld [vmem:[#allocation5 + $0xf68] sm:$0xff] }
 0x5f0   :  { %3875 = vmatprep.subr.bf16.mxu0 %v1975_v32  ;;  %4367 = vmatprep.subr.bf16.mxu1 %v1977_v5  ;;  %v793_v32 = vld [vmem:[#allocation5 + $0xf78] sm:$0xff]  ;;  %v2038_v5 = vunpack.c.h.s8.bf16 %v782_v19  ;;  %v2047_v34 = vunpack.c.l.s8.bf16 %v791_v28  ;;  %v2055_v45 = vunpack.c.h.s8.bf16 %v791_v28 }
 0x5f1   :  { %3905 = vmatprep.mubr.bf16.mxu0 %v6896_v27  ;;  %4397 = vmatprep.mubr.bf16.mxu1 %v6896_v27  ;;  %v768_v27 = vld [vmem:[#allocation5 + $0xeb0] sm:$0xff] }
 0x5f2   :  { %v2000_v62 = vunpack.c.l.s8.bf16 %v768_v27  ;;  %v2008_v1 = vunpack.c.h.s8.bf16 %v768_v27 }
 0x5f3   :  { %3876 = vmatpush1.bf16.msra.mxu0 %v1974_v36  ;;  %4368 = vmatpush1.bf16.msra.mxu1 %v1976_v37  ;;  %v2049_v36 = vunpack.c.l.s8.bf16 %v793_v32  ;;  %v790_v37 = vld [vmem:[#allocation5 + $0xf60] sm:$0xff] }
 0x5f4   :  { %3877 = vmatprep.subr.bf16.mxu0 %v1983_v44  ;;  %4369 = vmatprep.subr.bf16.mxu1 %v1985_v40  ;;  %v792_v44 = vld [vmem:[#allocation5 + $0xf70] sm:$0xff]  ;;  %v2046_v40 = vunpack.c.l.s8.bf16 %v790_v37 }
 0x5f5   :  { %v2048_v43 = vunpack.c.l.s8.bf16 %v792_v44  ;;  %v2056_v48 = vunpack.c.h.s8.bf16 %v792_v44 }
 0x5f7   :  { %3878 = vmatpush1.bf16.msra.mxu0 %v1982_v46  ;;  %4370 = vmatpush1.bf16.msra.mxu1 %v1984_v47  ;;  %v2057_v46 = vunpack.c.h.s8.bf16 %v793_v32  ;;  %v799_v47 = vld [vmem:[#allocation5 + $0xfa8] sm:$0xff] }
 0x5f8   :  { %3879 = vmatprep.subr.bf16.mxu0 %v1991_v16  ;;  %4371 = vmatprep.subr.bf16.mxu1 %v1993_v30  ;;  %v801_v16 = vld [vmem:[#allocation5 + $0xfb8] sm:$0xff]  ;;  %v2054_v30 = vunpack.c.h.s8.bf16 %v790_v37  ;;  %v2063_v21 = vunpack.c.l.s8.bf16 %v799_v47  ;;  %v2071_v27 = vunpack.c.h.s8.bf16 %v799_v47 }
 0x5fb   :  { %3880 = vmatpush1.bf16.msra.mxu0 %v1990_v49  ;;  %4372 = vmatpush1.bf16.msra.mxu1 %v1992_v51  ;;  %v2065_v49 = vunpack.c.l.s8.bf16 %v801_v16  ;;  %v798_v51 = vld [vmem:[#allocation5 + $0xfa0] sm:$0xff] }
 0x5fc   :  { %3881 = vmatprep.subr.bf16.mxu0 %v1999_v53  ;;  %4373 = vmatprep.subr.bf16.mxu1 %v2001_v35  ;;  %v800_v53 = vld [vmem:[#allocation5 + $0xfb0] sm:$0xff]  ;;  %v2062_v35 = vunpack.c.l.s8.bf16 %v798_v51 }
 0x5fd   :  { %v2064_v58 = vunpack.c.l.s8.bf16 %v800_v53  ;;  %v2072_v63 = vunpack.c.h.s8.bf16 %v800_v53  ;;  %v839_v53 = vld [vmem:[#allocation5 + $0x10e8] sm:$0xff] }
 0x5ff   :  { %3882 = vmatpush1.bf16.msra.mxu0 %v1998_v60  ;;  %4374 = vmatpush1.bf16.msra.mxu1 %v2000_v62  ;;  %v2073_v60 = vunpack.c.h.s8.bf16 %v801_v16  ;;  %v807_v62 = vld [vmem:[#allocation5 + $0xfe8] sm:$0xff] }
 0x600   :  { %3883 = vmatprep.subr.bf16.mxu0 %v2007_v39  ;;  %4375 = vmatprep.subr.bf16.mxu1 %v2009_v31  ;;  %v809_v39 = vld [vmem:[#allocation5 + $0xff8] sm:$0xff]  ;;  %v2070_v31 = vunpack.c.h.s8.bf16 %v798_v51  ;;  %v2079_v42 = vunpack.c.l.s8.bf16 %v807_v62  ;;  %v2087_v7 = vunpack.c.h.s8.bf16 %v807_v62 }
 0x603   :  { %3884 = vmatpush1.bf16.msra.mxu0 %v2006_v0  ;;  %4376 = vmatpush1.bf16.msra.mxu1 %v2008_v1  ;;  %v2081_v0 = vunpack.c.l.s8.bf16 %v809_v39  ;;  %v806_v1 = vld [vmem:[#allocation5 + $0xfe0] sm:$0xff] }
 0x604   :  { %3885 = vmatprep.subr.bf16.mxu0 %v2015_v2  ;;  %4377 = vmatprep.subr.bf16.mxu1 %v2017_v3  ;;  %v808_v2 = vld [vmem:[#allocation5 + $0xff0] sm:$0xff]  ;;  %v2078_v3 = vunpack.c.l.s8.bf16 %v806_v1 }
 0x605   :  { %v2080_v6 = vunpack.c.l.s8.bf16 %v808_v2  ;;  %v2088_v10 = vunpack.c.h.s8.bf16 %v808_v2  ;;  %v847_v2 = vld [vmem:[#allocation5 + $0x1128] sm:$0xff] }
 0x607   :  { %3886 = vmatpush1.bf16.msra.mxu0 %v2014_v8  ;;  %4378 = vmatpush1.bf16.msra.mxu1 %v2016_v9  ;;  %v2089_v8 = vunpack.c.h.s8.bf16 %v809_v39  ;;  %v815_v9 = vld [vmem:[#allocation5 + $0x1028] sm:$0xff]  ;;  %v838_v39 = vld [vmem:[#allocation5 + $0x10e0] sm:$0xff] }
 0x608   :  { %3887 = vmatprep.subr.bf16.mxu0 %v2023_v50  ;;  %4379 = vmatprep.subr.bf16.mxu1 %v2025_v17  ;;  %v817_v50 = vld [vmem:[#allocation5 + $0x1038] sm:$0xff]  ;;  %v2086_v17 = vunpack.c.h.s8.bf16 %v806_v1  ;;  %v2095_v11 = vunpack.c.l.s8.bf16 %v815_v9  ;;  %v2103_v20 = vunpack.c.h.s8.bf16 %v815_v9 }
 0x60b   :  { %3888 = vmatpush1.bf16.msra.mxu0 %v2022_v12  ;;  %4380 = vmatpush1.bf16.msra.mxu1 %v2024_v13  ;;  %v2097_v12 = vunpack.c.l.s8.bf16 %v817_v50  ;;  %v814_v13 = vld [vmem:[#allocation5 + $0x1020] sm:$0xff] }
 0x60c   :  { %3889 = vmatprep.subr.bf16.mxu0 %v2031_v14  ;;  %4381 = vmatprep.subr.bf16.mxu1 %v2033_v61  ;;  %v816_v14 = vld [vmem:[#allocation5 + $0x1030] sm:$0xff]  ;;  %v2094_v61 = vunpack.c.l.s8.bf16 %v814_v13 }
 0x60d   :  { %v2096_v19 = vunpack.c.l.s8.bf16 %v816_v14  ;;  %v2104_v28 = vunpack.c.h.s8.bf16 %v816_v14  ;;  %v855_v14 = vld [vmem:[#allocation5 + $0x1168] sm:$0xff] }
 0x60f   :  { %3890 = vmatpush1.bf16.msra.mxu0 %v2030_v22  ;;  %4382 = vmatpush1.bf16.msra.mxu1 %v2032_v25  ;;  %v2105_v22 = vunpack.c.h.s8.bf16 %v817_v50  ;;  %v823_v25 = vld [vmem:[#allocation5 + $0x1068] sm:$0xff]  ;;  %v846_v50 = vld [vmem:[#allocation5 + $0x1120] sm:$0xff] }
 0x610   :  { %3891 = vmatprep.subr.bf16.mxu0 %v2039_v23  ;;  %4383 = vmatprep.subr.bf16.mxu1 %v2041_v26  ;;  %v825_v23 = vld [vmem:[#allocation5 + $0x1078] sm:$0xff]  ;;  %v2102_v26 = vunpack.c.h.s8.bf16 %v814_v13  ;;  %v2111_v32 = vunpack.c.l.s8.bf16 %v823_v25 }
 0x611   :  { %v2121_v44 = vunpack.c.h.s8.bf16 %v825_v23 }
 0x613   :  { %3892 = vmatpush1.bf16.msra.mxu0 %v2038_v5  ;;  %4384 = vmatpush1.bf16.msra.mxu1 %v2040_v33  ;;  %v2113_v5 = vunpack.c.l.s8.bf16 %v825_v23  ;;  %v822_v33 = vld [vmem:[#allocation5 + $0x1060] sm:$0xff] }
 0x614   :  { %3893 = vmatprep.subr.bf16.mxu0 %v2047_v34  ;;  %4385 = vmatprep.subr.bf16.mxu1 %v2049_v36  ;;  %v824_v34 = vld [vmem:[#allocation5 + $0x1070] sm:$0xff]  ;;  %v2110_v36 = vunpack.c.l.s8.bf16 %v822_v33  ;;  %v854_v23 = vld [vmem:[#allocation5 + $0x1160] sm:$0xff] }
 0x615   :  { %v2112_v37 = vunpack.c.l.s8.bf16 %v824_v34 }
 0x617   :  { %3894 = vmatpush1.bf16.msra.mxu0 %v2046_v40  ;;  %4386 = vmatpush1.bf16.msra.mxu1 %v2048_v43  ;;  %v831_v40 = vld [vmem:[#allocation5 + $0x10a8] sm:$0xff]  ;;  %v833_v43 = vld [vmem:[#allocation5 + $0x10b8] sm:$0xff] }
 0x618   :  { %3895 = vmatprep.subr.bf16.mxu0 %v2055_v45  ;;  %4387 = vmatprep.subr.bf16.mxu1 %v2057_v46  ;;  %v2118_v45 = vunpack.c.h.s8.bf16 %v822_v33  ;;  %v2120_v46 = vunpack.c.h.s8.bf16 %v824_v34  ;;  %v2127_v47 = vunpack.c.l.s8.bf16 %v831_v40  ;;  %v2129_v16 = vunpack.c.l.s8.bf16 %v833_v43  ;;  %v863_v34 = vld [vmem:[#allocation5 + $0x11a8] sm:$0xff] }
 0x619   :  { %v2137_v51 = vunpack.c.h.s8.bf16 %v833_v43  ;;  %v862_v43 = vld [vmem:[#allocation5 + $0x11a0] sm:$0xff] }
 0x61b   :  { %3896 = vmatpush1.bf16.msra.mxu0 %v2054_v30  ;;  %4388 = vmatpush1.bf16.msra.mxu1 %v2056_v48  ;;  %v830_v30 = vld [vmem:[#allocation5 + $0x10a0] sm:$0xff] }
 0x61c   :  { %3897 = vmatprep.subr.bf16.mxu0 %v2063_v21  ;;  %4389 = vmatprep.subr.bf16.mxu1 %v2065_v49  ;;  %v2126_v48 = vunpack.c.l.s8.bf16 %v830_v30  ;;  %v2135_v49 = vunpack.c.h.s8.bf16 %v831_v40 }
 0x61f   :  { %3898 = vmatpush1.bf16.msra.mxu0 %v2062_v35  ;;  %4390 = vmatpush1.bf16.msra.mxu1 %v2064_v58  ;;  %v841_v35 = vld [vmem:[#allocation5 + $0x10f8] sm:$0xff]  ;;  %v2134_v58 = vunpack.c.h.s8.bf16 %v830_v30 }
 0x620   :  { %3899 = vmatprep.subr.bf16.mxu0 %v2071_v27  ;;  %4391 = vmatprep.subr.bf16.mxu1 %v2073_v60  ;;  %v2143_v60 = vunpack.c.l.s8.bf16 %v839_v53  ;;  %v2145_v62 = vunpack.c.l.s8.bf16 %v841_v35  ;;  %v2153_v1 = vunpack.c.h.s8.bf16 %v841_v35  ;;  %v870_v35 = vld [vmem:[#allocation5 + $0x11e0] sm:$0xff] }
 0x623   :  { %3900 = vmatpush1.bf16.msra.mxu0 %v2070_v31  ;;  %4392 = vmatpush1.bf16.msra.mxu1 %v2072_v63  ;;  %v840_v31 = vld [vmem:[#allocation5 + $0x10f0] sm:$0xff]  ;;  %v2142_v63 = vunpack.c.l.s8.bf16 %v838_v39 }
 0x624   :  { %3901 = vmatprep.subr.bf16.mxu0 %v2079_v42  ;;  %4393 = vmatprep.subr.bf16.mxu1 %v2081_v0  ;;  %v2144_v42 = vunpack.c.l.s8.bf16 %v840_v31  ;;  %v2151_v0 = vunpack.c.h.s8.bf16 %v839_v53 }
 0x627   :  { %3902 = vmatpush1.bf16.msra.mxu0 %v2078_v3  ;;  %4394 = vmatpush1.bf16.msra.mxu1 %v2080_v6  ;;  %v849_v3 = vld [vmem:[#allocation5 + $0x1138] sm:$0xff]  ;;  %v2150_v6 = vunpack.c.h.s8.bf16 %v838_v39 }
 0x628   :  { %3903 = vmatprep.subr.bf16.mxu0 %v2087_v7  ;;  %4395 = vmatprep.subr.bf16.mxu1 %v2089_v8  ;;  %v2152_v7 = vunpack.c.h.s8.bf16 %v840_v31  ;;  %v2159_v8 = vunpack.c.l.s8.bf16 %v847_v2  ;;  %v2161_v9 = vunpack.c.l.s8.bf16 %v849_v3  ;;  %v2169_v13 = vunpack.c.h.s8.bf16 %v849_v3  ;;  %v879_v31 = vld [vmem:[#allocation5 + $0x1228] sm:$0xff]  ;;  %v878_v3 = vld [vmem:[#allocation5 + $0x1220] sm:$0xff] }
 0x62b   :  { %3904 = vmatpush1.bf16.msra.mxu0 %v2086_v17  ;;  %4396 = vmatpush1.bf16.msra.mxu1 %v2088_v10  ;;  %v848_v17 = vld [vmem:[#allocation5 + $0x1130] sm:$0xff]  ;;  %v2158_v10 = vunpack.c.l.s8.bf16 %v846_v50 }
 0x62c   :  { %3914 = vmatprep.subr.bf16.mxu0 %v2095_v11  ;;  %4406 = vmatprep.subr.bf16.mxu1 %v2097_v12  ;;  %v2160_v11 = vunpack.c.l.s8.bf16 %v848_v17  ;;  %v2167_v12 = vunpack.c.h.s8.bf16 %v847_v2 }
 0x62e   :  { %3906 = vmatmul.mubr.bf16.vlgmr.msra.gmra.mrb[4].mxu0 %v6902_v18  ;;  %4398 = vmatmul.mubr.bf16.vlgmr.msra.gmra.mrb[4].mxu1 %v6902_v18  ;;  %v2119_v18 = vunpack.c.h.s8.bf16 %v823_v25 }
 0x62f   :  { %3915 = vmatpush1.bf16.msra.mxu0 %v2094_v61  ;;  %4407 = vmatpush1.bf16.msra.mxu1 %v2096_v19  ;;  %v857_v61 = vld [vmem:[#allocation5 + $0x1178] sm:$0xff]  ;;  %v2166_v19 = vunpack.c.h.s8.bf16 %v846_v50 }
 0x630   :  { %3916 = vmatprep.subr.bf16.mxu0 %v2103_v20  ;;  %4408 = vmatprep.subr.bf16.mxu1 %v2105_v22  ;;  %v2168_v20 = vunpack.c.h.s8.bf16 %v848_v17  ;;  %v2175_v22 = vunpack.c.l.s8.bf16 %v855_v14  ;;  %v2177_v25 = vunpack.c.l.s8.bf16 %v857_v61  ;;  %v2185_v33 = vunpack.c.h.s8.bf16 %v857_v61  ;;  %v887_v17 = vld [vmem:[#allocation5 + $0x1268] sm:$0xff]  ;;  %v886_v61 = vld [vmem:[#allocation5 + $0x1260] sm:$0xff] }
 0x631   :  { %3946 = vmatprep.mubr.bf16.mxu0 %v6904_v29  ;;  %4438 = vmatprep.mubr.bf16.mxu1 %v6904_v29  ;;  %v832_v29 = vld [vmem:[#allocation5 + $0x10b0] sm:$0xff] }
 0x632   :  { %v2128_v21 = vunpack.c.l.s8.bf16 %v832_v29  ;;  %v2136_v27 = vunpack.c.h.s8.bf16 %v832_v29  ;;  %v871_v29 = vld [vmem:[#allocation5 + $0x11e8] sm:$0xff] }
 0x633   :  { %3917 = vmatpush1.bf16.msra.mxu0 %v2102_v26  ;;  %4409 = vmatpush1.bf16.msra.mxu1 %v2104_v28  ;;  %v856_v26 = vld [vmem:[#allocation5 + $0x1170] sm:$0xff]  ;;  %v2174_v28 = vunpack.c.l.s8.bf16 %v854_v23 }
 0x634   :  { %3918 = vmatprep.subr.bf16.mxu0 %v2111_v32  ;;  %4410 = vmatprep.subr.bf16.mxu1 %v2113_v5  ;;  %v2176_v32 = vunpack.c.l.s8.bf16 %v856_v26  ;;  %v2183_v5 = vunpack.c.h.s8.bf16 %v855_v14 }
 0x637   :  { %3919 = vmatpush1.bf16.msra.mxu0 %v2110_v36  ;;  %4411 = vmatpush1.bf16.msra.mxu1 %v2112_v37  ;;  %v865_v36 = vld [vmem:[#allocation5 + $0x11b8] sm:$0xff]  ;;  %v2182_v37 = vunpack.c.h.s8.bf16 %v854_v23  ;;  %v895_v23 = vld [vmem:[#allocation5 + $0x12a8] sm:$0xff] }
 0x638   :  { %3920 = vmatprep.subr.bf16.mxu0 %v2119_v18  ;;  %4412 = vmatprep.subr.bf16.mxu1 %v2121_v44  ;;  %v2184_v18 = vunpack.c.h.s8.bf16 %v856_v26  ;;  %v2191_v44 = vunpack.c.l.s8.bf16 %v863_v34  ;;  %v2193_v40 = vunpack.c.l.s8.bf16 %v865_v36  ;;  %v2201_v30 = vunpack.c.h.s8.bf16 %v865_v36  ;;  %v897_v26 = vld [vmem:[#allocation5 + $0x12b8] sm:$0xff] }
 0x63b   :  { %3921 = vmatpush1.bf16.msra.mxu0 %v2118_v45  ;;  %4413 = vmatpush1.bf16.msra.mxu1 %v2120_v46  ;;  %v864_v45 = vld [vmem:[#allocation5 + $0x11b0] sm:$0xff]  ;;  %v2190_v46 = vunpack.c.l.s8.bf16 %v862_v43 }
 0x63c   :  { %3922 = vmatprep.subr.bf16.mxu0 %v2127_v47  ;;  %4414 = vmatprep.subr.bf16.mxu1 %v2129_v16  ;;  %v2192_v47 = vunpack.c.l.s8.bf16 %v864_v45  ;;  %v2199_v16 = vunpack.c.h.s8.bf16 %v863_v34  ;;  %v894_v34 = vld [vmem:[#allocation5 + $0x12a0] sm:$0xff] }
 0x63d   :  { %v2254_v36 = vunpack.c.l.s8.bf16 %v894_v34 }
 0x63f   :  { %3923 = vmatpush1.bf16.msra.mxu0 %v2126_v48  ;;  %4415 = vmatpush1.bf16.msra.mxu1 %v2128_v21  ;;  %v873_v48 = vld [vmem:[#allocation5 + $0x11f8] sm:$0xff]  ;;  %v2198_v21 = vunpack.c.h.s8.bf16 %v862_v43 }
 0x640   :  { %3924 = vmatprep.subr.bf16.mxu0 %v2135_v49  ;;  %4416 = vmatprep.subr.bf16.mxu1 %v2137_v51  ;;  %v2200_v49 = vunpack.c.h.s8.bf16 %v864_v45  ;;  %v2207_v51 = vunpack.c.l.s8.bf16 %v871_v29  ;;  %v2209_v53 = vunpack.c.l.s8.bf16 %v873_v48  ;;  %v2217_v39 = vunpack.c.h.s8.bf16 %v873_v48  ;;  %v905_v43 = vld [vmem:[#allocation5 + $0x12f8] sm:$0xff] }
 0x641   :  { %v2262_v45 = vunpack.c.h.s8.bf16 %v894_v34  ;;  %v937_v34 = vld [vmem:[#allocation5 + $0x13f8] sm:$0xff] }
 0x643   :  { %3925 = vmatpush1.bf16.msra.mxu0 %v2134_v58  ;;  %4417 = vmatpush1.bf16.msra.mxu1 %v2136_v27  ;;  %v872_v58 = vld [vmem:[#allocation5 + $0x11f0] sm:$0xff]  ;;  %v2206_v27 = vunpack.c.l.s8.bf16 %v870_v35 }
 0x644   :  { %3926 = vmatprep.subr.bf16.mxu0 %v2143_v60  ;;  %4418 = vmatprep.subr.bf16.mxu1 %v2145_v62  ;;  %v2208_v60 = vunpack.c.l.s8.bf16 %v872_v58  ;;  %v2215_v62 = vunpack.c.h.s8.bf16 %v871_v29  ;;  %v904_v29 = vld [vmem:[#allocation5 + $0x12f0] sm:$0xff] }
 0x647   :  { %3927 = vmatpush1.bf16.msra.mxu0 %v2142_v63  ;;  %4419 = vmatpush1.bf16.msra.mxu1 %v2144_v42  ;;  %v881_v63 = vld [vmem:[#allocation5 + $0x1238] sm:$0xff]  ;;  %v2214_v42 = vunpack.c.h.s8.bf16 %v870_v35 }
 0x648   :  { %3928 = vmatprep.subr.bf16.mxu0 %v2151_v0  ;;  %4420 = vmatprep.subr.bf16.mxu1 %v2153_v1  ;;  %v2216_v0 = vunpack.c.h.s8.bf16 %v872_v58  ;;  %v2223_v1 = vunpack.c.l.s8.bf16 %v879_v31  ;;  %v2225_v2 = vunpack.c.l.s8.bf16 %v881_v63  ;;  %v2233_v50 = vunpack.c.h.s8.bf16 %v881_v63  ;;  %v913_v35 = vld [vmem:[#allocation5 + $0x1338] sm:$0xff] }
 0x64b   :  { %3929 = vmatpush1.bf16.msra.mxu0 %v2150_v6  ;;  %4421 = vmatpush1.bf16.msra.mxu1 %v2152_v7  ;;  %v880_v6 = vld [vmem:[#allocation5 + $0x1230] sm:$0xff]  ;;  %v2222_v7 = vunpack.c.l.s8.bf16 %v878_v3 }
 0x64c   :  { %3930 = vmatprep.subr.bf16.mxu0 %v2159_v8  ;;  %4422 = vmatprep.subr.bf16.mxu1 %v2161_v9  ;;  %v2224_v8 = vunpack.c.l.s8.bf16 %v880_v6  ;;  %v2231_v9 = vunpack.c.h.s8.bf16 %v879_v31  ;;  %v912_v31 = vld [vmem:[#allocation5 + $0x1330] sm:$0xff] }
 0x64f   :  { %3931 = vmatpush1.bf16.msra.mxu0 %v2158_v10  ;;  %4423 = vmatpush1.bf16.msra.mxu1 %v2160_v11  ;;  %v889_v10 = vld [vmem:[#allocation5 + $0x1278] sm:$0xff]  ;;  %v2230_v11 = vunpack.c.h.s8.bf16 %v878_v3 }
 0x650   :  { %3932 = vmatprep.subr.bf16.mxu0 %v2167_v12  ;;  %4424 = vmatprep.subr.bf16.mxu1 %v2169_v13  ;;  %v2232_v12 = vunpack.c.h.s8.bf16 %v880_v6  ;;  %v2239_v13 = vunpack.c.l.s8.bf16 %v887_v17  ;;  %v2241_v14 = vunpack.c.l.s8.bf16 %v889_v10  ;;  %v921_v3 = vld [vmem:[#allocation5 + $0x1378] sm:$0xff] }
 0x653   :  { %3933 = vmatpush1.bf16.msra.mxu0 %v2166_v19  ;;  %4425 = vmatpush1.bf16.msra.mxu1 %v2168_v20  ;;  %v888_v19 = vld [vmem:[#allocation5 + $0x1270] sm:$0xff]  ;;  %v2238_v20 = vunpack.c.l.s8.bf16 %v886_v61 }
 0x654   :  { %3934 = vmatprep.subr.bf16.mxu0 %v2175_v22  ;;  %4426 = vmatprep.subr.bf16.mxu1 %v2177_v25  ;;  %v2240_v22 = vunpack.c.l.s8.bf16 %v888_v19  ;;  %v2249_v25 = vunpack.c.h.s8.bf16 %v889_v10 }
 0x657   :  { %3935 = vmatpush1.bf16.msra.mxu0 %v2174_v28  ;;  %4427 = vmatpush1.bf16.msra.mxu1 %v2176_v32  ;;  %v2246_v28 = vunpack.c.h.s8.bf16 %v886_v61  ;;  %v2248_v32 = vunpack.c.h.s8.bf16 %v888_v19  ;;  %v929_v61 = vld [vmem:[#allocation5 + $0x13b8] sm:$0xff] }
 0x658   :  { %3936 = vmatprep.subr.bf16.mxu0 %v2183_v5  ;;  %4428 = vmatprep.subr.bf16.mxu1 %v2185_v33  ;;  %v2255_v5 = vunpack.c.l.s8.bf16 %v895_v23  ;;  %v2257_v33 = vunpack.c.l.s8.bf16 %v897_v26 }
 0x65b   :  { %3937 = vmatpush1.bf16.msra.mxu0 %v2182_v37  ;;  %4429 = vmatpush1.bf16.msra.mxu1 %v2184_v18  ;;  %v2263_v18 = vunpack.c.h.s8.bf16 %v895_v23  ;;  %v928_v23 = vld [vmem:[#allocation5 + $0x13b0] sm:$0xff] }
 0x65c   :  { %3938 = vmatprep.subr.bf16.mxu0 %v2191_v44  ;;  %4430 = vmatprep.subr.bf16.mxu1 %v2193_v40  ;;  %v2265_v44 = vunpack.c.h.s8.bf16 %v897_v26  ;;  %v903_v40 = vld [vmem:[#allocation5 + $0x12e8] sm:$0xff] }
 0x65f   :  { %3939 = vmatpush1.bf16.msra.mxu0 %v2190_v46  ;;  %4431 = vmatpush1.bf16.msra.mxu1 %v2192_v47  ;;  %v2271_v47 = vunpack.c.l.s8.bf16 %v903_v40 }
 0x660   :  { %3940 = vmatprep.subr.bf16.mxu0 %v2199_v16  ;;  %4432 = vmatprep.subr.bf16.mxu1 %v2201_v30  ;;  %v2273_v16 = vunpack.c.l.s8.bf16 %v905_v43  ;;  %v902_v30 = vld [vmem:[#allocation5 + $0x12e0] sm:$0xff] }
 0x661   :  { %v2270_v48 = vunpack.c.l.s8.bf16 %v902_v30  ;;  %v2278_v58 = vunpack.c.h.s8.bf16 %v902_v30  ;;  %v945_v30 = vld [vmem:[#allocation5 + $0x1438] sm:$0xff] }
 0x663   :  { %3941 = vmatpush1.bf16.msra.mxu0 %v2198_v21  ;;  %4433 = vmatpush1.bf16.msra.mxu1 %v2200_v49  ;;  %v2272_v21 = vunpack.c.l.s8.bf16 %v904_v29  ;;  %v2279_v49 = vunpack.c.h.s8.bf16 %v903_v40  ;;  %v936_v40 = vld [vmem:[#allocation5 + $0x13f0] sm:$0xff] }
 0x664   :  { %3942 = vmatprep.subr.bf16.mxu0 %v2207_v51  ;;  %4434 = vmatprep.subr.bf16.mxu1 %v2209_v53  ;;  %v2281_v51 = vunpack.c.h.s8.bf16 %v905_v43  ;;  %v911_v53 = vld [vmem:[#allocation5 + $0x1328] sm:$0xff] }
 0x667   :  { %3943 = vmatpush1.bf16.msra.mxu0 %v2206_v27  ;;  %4435 = vmatpush1.bf16.msra.mxu1 %v2208_v60  ;;  %v2280_v27 = vunpack.c.h.s8.bf16 %v904_v29  ;;  %v2287_v60 = vunpack.c.l.s8.bf16 %v911_v53 }
 0x668   :  { %3944 = vmatprep.subr.bf16.mxu0 %v2215_v62  ;;  %4436 = vmatprep.subr.bf16.mxu1 %v2217_v39  ;;  %v2289_v62 = vunpack.c.l.s8.bf16 %v913_v35  ;;  %v910_v39 = vld [vmem:[#allocation5 + $0x1320] sm:$0xff] }
 0x669   :  { %v2286_v63 = vunpack.c.l.s8.bf16 %v910_v39  ;;  %v2294_v6 = vunpack.c.h.s8.bf16 %v910_v39  ;;  %v953_v39 = vld [vmem:[#allocation5 + $0x1478] sm:$0xff] }
 0x66b   :  { %3945 = vmatpush1.bf16.msra.mxu0 %v2214_v42  ;;  %4437 = vmatpush1.bf16.msra.mxu1 %v2216_v0  ;;  %v2288_v42 = vunpack.c.l.s8.bf16 %v912_v31  ;;  %v2295_v0 = vunpack.c.h.s8.bf16 %v911_v53  ;;  %v944_v53 = vld [vmem:[#allocation5 + $0x1430] sm:$0xff] }
 0x66c   :  { %3955 = vmatprep.subr.bf16.mxu0 %v2223_v1  ;;  %4447 = vmatprep.subr.bf16.mxu1 %v2225_v2  ;;  %v2297_v1 = vunpack.c.h.s8.bf16 %v913_v35  ;;  %v919_v2 = vld [vmem:[#allocation5 + $0x1368] sm:$0xff] }
 0x66e   :  { %3947 = vmatmul.mubr.bf16.vlgmr.msra.gmra.mrb[4].mxu0 %v6910_v24  ;;  %4439 = vmatmul.mubr.bf16.vlgmr.msra.gmra.mrb[4].mxu1 %v6910_v24  ;;  %v2247_v24 = vunpack.c.h.s8.bf16 %v887_v17  ;;  %v920_v17 = vld [vmem:[#allocation5 + $0x1370] sm:$0xff] }
 0x66f   :  { %3956 = vmatpush1.bf16.msra.mxu0 %v2222_v7  ;;  %4448 = vmatpush1.bf16.msra.mxu1 %v2224_v8  ;;  %v2296_v7 = vunpack.c.h.s8.bf16 %v912_v31  ;;  %v2303_v8 = vunpack.c.l.s8.bf16 %v919_v2 }
 0x670   :  { %3957 = vmatprep.subr.bf16.mxu0 %v2231_v9  ;;  %4449 = vmatprep.subr.bf16.mxu1 %v2233_v50  ;;  %v2305_v9 = vunpack.c.l.s8.bf16 %v921_v3  ;;  %v918_v50 = vld [vmem:[#allocation5 + $0x1360] sm:$0xff] }
 0x671   :  { %3987 = vmatprep.mubr.bf16.mxu0 %v6912_v38  ;;  %4479 = vmatprep.mubr.bf16.mxu1 %v6912_v38  ;;  %v896_v38 = vld [vmem:[#allocation5 + $0x12b0] sm:$0xff]  ;;  %v2302_v10 = vunpack.c.l.s8.bf16 %v918_v50  ;;  %v2310_v19 = vunpack.c.h.s8.bf16 %v918_v50 }
 0x672   :  { %v2256_v37 = vunpack.c.l.s8.bf16 %v896_v38  ;;  %v2264_v46 = vunpack.c.h.s8.bf16 %v896_v38 }
 0x673   :  { %3958 = vmatpush1.bf16.msra.mxu0 %v2230_v11  ;;  %4450 = vmatpush1.bf16.msra.mxu1 %v2232_v12  ;;  %v2304_v11 = vunpack.c.l.s8.bf16 %v920_v17  ;;  %v2311_v12 = vunpack.c.h.s8.bf16 %v919_v2  ;;  %v952_v2 = vld [vmem:[#allocation5 + $0x1470] sm:$0xff] }
 0x674   :  { %3959 = vmatprep.subr.bf16.mxu0 %v2239_v13  ;;  %4451 = vmatprep.subr.bf16.mxu1 %v2241_v14  ;;  %v2313_v13 = vunpack.c.h.s8.bf16 %v921_v3  ;;  %v927_v14 = vld [vmem:[#allocation5 + $0x13a8] sm:$0xff] }
 0x677   :  { %3960 = vmatpush1.bf16.msra.mxu0 %v2238_v20  ;;  %4452 = vmatpush1.bf16.msra.mxu1 %v2240_v22  ;;  %v2312_v20 = vunpack.c.h.s8.bf16 %v920_v17  ;;  %v2319_v22 = vunpack.c.l.s8.bf16 %v927_v14  ;;  %v2376_v17 = vunpack.c.h.s8.bf16 %v952_v2 }
 0x678   :  { %3961 = vmatprep.subr.bf16.mxu0 %v2247_v24  ;;  %4453 = vmatprep.subr.bf16.mxu1 %v2249_v25  ;;  %v2321_v24 = vunpack.c.l.s8.bf16 %v929_v61  ;;  %v926_v25 = vld [vmem:[#allocation5 + $0x13a0] sm:$0xff] }
 0x679   :  { %v2318_v26 = vunpack.c.l.s8.bf16 %v926_v25  ;;  %v2326_v38 = vunpack.c.h.s8.bf16 %v926_v25 }
 0x67b   :  { %3962 = vmatpush1.bf16.msra.mxu0 %v2246_v28  ;;  %4454 = vmatpush1.bf16.msra.mxu1 %v2248_v32  ;;  %v2320_v28 = vunpack.c.l.s8.bf16 %v928_v23  ;;  %v2327_v32 = vunpack.c.h.s8.bf16 %v927_v14 }
 0x67c   :  { %3963 = vmatprep.subr.bf16.mxu0 %v2255_v5  ;;  %4455 = vmatprep.subr.bf16.mxu1 %v2257_v33  ;;  %v2329_v5 = vunpack.c.h.s8.bf16 %v929_v61  ;;  %v935_v33 = vld [vmem:[#allocation5 + $0x13e8] sm:$0xff] }
 0x67f   :  { %3964 = vmatpush1.bf16.msra.mxu0 %v2254_v36  ;;  %4456 = vmatpush1.bf16.msra.mxu1 %v2256_v37  ;;  %v2328_v36 = vunpack.c.h.s8.bf16 %v928_v23  ;;  %v2335_v37 = vunpack.c.l.s8.bf16 %v935_v33 }
 0x680   :  { %3965 = vmatprep.subr.bf16.mxu0 %v2263_v18  ;;  %4457 = vmatprep.subr.bf16.mxu1 %v2265_v44  ;;  %v2337_v18 = vunpack.c.l.s8.bf16 %v937_v34  ;;  %v934_v44 = vld [vmem:[#allocation5 + $0x13e0] sm:$0xff] }
 0x681   :  { %v2334_v43 = vunpack.c.l.s8.bf16 %v934_v44  ;;  %v2342_v29 = vunpack.c.h.s8.bf16 %v934_v44 }
 0x683   :  { %3966 = vmatpush1.bf16.msra.mxu0 %v2262_v45  ;;  %4458 = vmatpush1.bf16.msra.mxu1 %v2264_v46  ;;  %v2336_v45 = vunpack.c.l.s8.bf16 %v936_v40  ;;  %v2343_v46 = vunpack.c.h.s8.bf16 %v935_v33 }
 0x684   :  { %3967 = vmatprep.subr.bf16.mxu0 %v2271_v47  ;;  %4459 = vmatprep.subr.bf16.mxu1 %v2273_v16  ;;  %v2345_v47 = vunpack.c.h.s8.bf16 %v937_v34  ;;  %v943_v16 = vld [vmem:[#allocation5 + $0x1428] sm:$0xff] }
 0x687   :  { %3968 = vmatpush1.bf16.msra.mxu0 %v2270_v48  ;;  %4460 = vmatpush1.bf16.msra.mxu1 %v2272_v21  ;;  %v2344_v48 = vunpack.c.h.s8.bf16 %v936_v40  ;;  %v2351_v21 = vunpack.c.l.s8.bf16 %v943_v16 }
 0x688   :  { %3969 = vmatprep.subr.bf16.mxu0 %v2279_v49  ;;  %4461 = vmatprep.subr.bf16.mxu1 %v2281_v51  ;;  %v2353_v49 = vunpack.c.l.s8.bf16 %v945_v30  ;;  %v942_v51 = vld [vmem:[#allocation5 + $0x1420] sm:$0xff] }
 0x689   :  { %v2350_v35 = vunpack.c.l.s8.bf16 %v942_v51  ;;  %v2358_v31 = vunpack.c.h.s8.bf16 %v942_v51 }
 0x68b   :  { %3970 = vmatpush1.bf16.msra.mxu0 %v2278_v58  ;;  %4462 = vmatpush1.bf16.msra.mxu1 %v2280_v27  ;;  %v2352_v58 = vunpack.c.l.s8.bf16 %v944_v53  ;;  %v2359_v27 = vunpack.c.h.s8.bf16 %v943_v16 }
 0x68c   :  { %3971 = vmatprep.subr.bf16.mxu0 %v2287_v60  ;;  %4463 = vmatprep.subr.bf16.mxu1 %v2289_v62  ;;  %v2361_v60 = vunpack.c.h.s8.bf16 %v945_v30  ;;  %v951_v62 = vld [vmem:[#allocation5 + $0x1468] sm:$0xff] }
 0x68f   :  { %3972 = vmatpush1.bf16.msra.mxu0 %v2286_v63  ;;  %4464 = vmatpush1.bf16.msra.mxu1 %v2288_v42  ;;  %v2360_v63 = vunpack.c.h.s8.bf16 %v944_v53  ;;  %v2367_v42 = vunpack.c.l.s8.bf16 %v951_v62 }
 0x690   :  { %3973 = vmatprep.subr.bf16.mxu0 %v2295_v0  ;;  %4465 = vmatprep.subr.bf16.mxu1 %v2297_v1  ;;  %v2369_v0 = vunpack.c.l.s8.bf16 %v953_v39  ;;  %v950_v1 = vld [vmem:[#allocation5 + $0x1460] sm:$0xff] }
 0x691   :  { %v2366_v3 = vunpack.c.l.s8.bf16 %v950_v1  ;;  %v2374_v50 = vunpack.c.h.s8.bf16 %v950_v1 }
 0x693   :  { %3974 = vmatpush1.bf16.msra.mxu0 %v2294_v6  ;;  %4466 = vmatpush1.bf16.msra.mxu1 %v2296_v7  ;;  %v2368_v6 = vunpack.c.l.s8.bf16 %v952_v2  ;;  %v2377_v7 = vunpack.c.h.s8.bf16 %v953_v39 }
 0x694   :  { %3975 = vmatprep.subr.bf16.mxu0 %v2303_v8  ;;  %4467 = vmatprep.subr.bf16.mxu1 %v2305_v9  ;;  %v959_v8 = vld [vmem:[#allocation5 + $0x14a8] sm:$0xff]  ;;  %v961_v9 = vld [vmem:[#allocation5 + $0x14b8] sm:$0xff] }
 0x695   :  { %v2391_v61 = vunpack.c.h.s8.bf16 %v959_v8 }
 0x697   :  { %3976 = vmatpush1.bf16.msra.mxu0 %v2302_v10  ;;  %4468 = vmatpush1.bf16.msra.mxu1 %v2304_v11  ;;  %v2383_v10 = vunpack.c.l.s8.bf16 %v959_v8  ;;  %v2385_v11 = vunpack.c.l.s8.bf16 %v961_v9 }
 0x698   :  { %3977 = vmatprep.subr.bf16.mxu0 %v2311_v12  ;;  %4469 = vmatprep.subr.bf16.mxu1 %v2313_v13  ;;  %v958_v12 = vld [vmem:[#allocation5 + $0x14a0] sm:$0xff] }
 0x699   :  { %v2382_v13 = vunpack.c.l.s8.bf16 %v958_v12 }
 0x69b   :  { %3978 = vmatpush1.bf16.msra.mxu0 %v2310_v19  ;;  %4470 = vmatpush1.bf16.msra.mxu1 %v2312_v20  ;;  %v2393_v19 = vunpack.c.h.s8.bf16 %v961_v9  ;;  %v967_v20 = vld [vmem:[#allocation5 + $0x14e8] sm:$0xff] }
 0x69c   :  { %3979 = vmatprep.subr.bf16.mxu0 %v2319_v22  ;;  %4471 = vmatprep.subr.bf16.mxu1 %v2321_v24  ;;  %v969_v22 = vld [vmem:[#allocation5 + $0x14f8] sm:$0xff]  ;;  %v2390_v24 = vunpack.c.h.s8.bf16 %v958_v12  ;;  %v2399_v23 = vunpack.c.l.s8.bf16 %v967_v20  ;;  %v2407_v34 = vunpack.c.h.s8.bf16 %v967_v20 }
 0x69f   :  { %3980 = vmatpush1.bf16.msra.mxu0 %v2318_v26  ;;  %4472 = vmatpush1.bf16.msra.mxu1 %v2320_v28  ;;  %v2401_v26 = vunpack.c.l.s8.bf16 %v969_v22  ;;  %v966_v28 = vld [vmem:[#allocation5 + $0x14e0] sm:$0xff] }
 0x6a0   :  { %3981 = vmatprep.subr.bf16.mxu0 %v2327_v32  ;;  %4473 = vmatprep.subr.bf16.mxu1 %v2329_v5  ;;  %v968_v32 = vld [vmem:[#allocation5 + $0x14f0] sm:$0xff]  ;;  %v2398_v5 = vunpack.c.l.s8.bf16 %v966_v28 }
 0x6a1   :  { %v2400_v33 = vunpack.c.l.s8.bf16 %v968_v32  ;;  %v2408_v44 = vunpack.c.h.s8.bf16 %v968_v32 }
 0x6a3   :  { %3982 = vmatpush1.bf16.msra.mxu0 %v2326_v38  ;;  %4474 = vmatpush1.bf16.msra.mxu1 %v2328_v36  ;;  %v2409_v38 = vunpack.c.h.s8.bf16 %v969_v22  ;;  %v975_v36 = vld [vmem:[#allocation5 + $0x1528] sm:$0xff] }
 0x6a4   :  { %3983 = vmatprep.subr.bf16.mxu0 %v2335_v37  ;;  %4475 = vmatprep.subr.bf16.mxu1 %v2337_v18  ;;  %v977_v37 = vld [vmem:[#allocation5 + $0x1538] sm:$0xff]  ;;  %v2406_v18 = vunpack.c.h.s8.bf16 %v966_v28  ;;  %v2415_v40 = vunpack.c.l.s8.bf16 %v975_v36  ;;  %v2423_v30 = vunpack.c.h.s8.bf16 %v975_v36 }
 0x6a7   :  { %3984 = vmatpush1.bf16.msra.mxu0 %v2334_v43  ;;  %4476 = vmatpush1.bf16.msra.mxu1 %v2336_v45  ;;  %v2417_v43 = vunpack.c.l.s8.bf16 %v977_v37  ;;  %v974_v45 = vld [vmem:[#allocation5 + $0x1520] sm:$0xff] }
 0x6a8   :  { %3985 = vmatprep.subr.bf16.mxu0 %v2343_v46  ;;  %4477 = vmatprep.subr.bf16.mxu1 %v2345_v47  ;;  %v976_v46 = vld [vmem:[#allocation5 + $0x1530] sm:$0xff]  ;;  %v2414_v47 = vunpack.c.l.s8.bf16 %v974_v45 }
 0x6a9   :  { %v2416_v16 = vunpack.c.l.s8.bf16 %v976_v46  ;;  %v2424_v51 = vunpack.c.h.s8.bf16 %v976_v46 }
 0x6ab   :  { %3986 = vmatpush1.bf16.msra.mxu0 %v2342_v29  ;;  %4478 = vmatpush1.bf16.msra.mxu1 %v2344_v48  ;;  %v2425_v29 = vunpack.c.h.s8.bf16 %v977_v37  ;;  %v983_v48 = vld [vmem:[#allocation5 + $0x1568] sm:$0xff] }
 0x6ac   :  { %3996 = vmatprep.subr.bf16.mxu0 %v2351_v21  ;;  %4488 = vmatprep.subr.bf16.mxu1 %v2353_v49  ;;  %v985_v21 = vld [vmem:[#allocation5 + $0x1578] sm:$0xff]  ;;  %v2422_v49 = vunpack.c.h.s8.bf16 %v974_v45  ;;  %v2431_v53 = vunpack.c.l.s8.bf16 %v983_v48  ;;  %v2439_v39 = vunpack.c.h.s8.bf16 %v983_v48 }
 0x6ae   :  { %3988 = vmatmul.mubr.bf16.vlgmr.msra.gmra.mrb[4].mxu0 %v6918_v41  ;;  %4480 = vmatmul.mubr.bf16.vlgmr.msra.gmra.mrb[4].mxu1 %v6918_v41  ;;  %v2375_v41 = vunpack.c.h.s8.bf16 %v951_v62 }
 0x6af   :  { %3997 = vmatpush1.bf16.msra.mxu0 %v2350_v35  ;;  %4489 = vmatpush1.bf16.msra.mxu1 %v2352_v58  ;;  %v2433_v35 = vunpack.c.l.s8.bf16 %v985_v21  ;;  %v982_v58 = vld [vmem:[#allocation5 + $0x1560] sm:$0xff] }
 0x6b0   :  { %3998 = vmatprep.subr.bf16.mxu0 %v2359_v27  ;;  %4490 = vmatprep.subr.bf16.mxu1 %v2361_v60  ;;  %v984_v27 = vld [vmem:[#allocation5 + $0x1570] sm:$0xff]  ;;  %v2430_v60 = vunpack.c.l.s8.bf16 %v982_v58 }
 0x6b1   :  { %4028 = vmatprep.mubr.bf16.mxu0 %v6920_v52  ;;  %4520 = vmatprep.mubr.bf16.mxu1 %v6920_v52  ;;  %v960_v52 = vld [vmem:[#allocation5 + $0x14b0] sm:$0xff]  ;;  %v2432_v62 = vunpack.c.l.s8.bf16 %v984_v27  ;;  %v2440_v1 = vunpack.c.h.s8.bf16 %v984_v27 }
 0x6b2   :  { %v2384_v14 = vunpack.c.l.s8.bf16 %v960_v52  ;;  %v2392_v25 = vunpack.c.h.s8.bf16 %v960_v52 }
 0x6b3   :  { %3999 = vmatpush1.bf16.msra.mxu0 %v2358_v31  ;;  %4491 = vmatpush1.bf16.msra.mxu1 %v2360_v63  ;;  %v2441_v31 = vunpack.c.h.s8.bf16 %v985_v21  ;;  %v991_v63 = vld [vmem:[#allocation5 + $0x15a8] sm:$0xff] }
 0x6b4   :  { %4000 = vmatprep.subr.bf16.mxu0 %v2367_v42  ;;  %4492 = vmatprep.subr.bf16.mxu1 %v2369_v0  ;;  %v993_v42 = vld [vmem:[#allocation5 + $0x15b8] sm:$0xff]  ;;  %v2438_v0 = vunpack.c.h.s8.bf16 %v982_v58  ;;  %v2447_v2 = vunpack.c.l.s8.bf16 %v991_v63  ;;  %v2455_v9 = vunpack.c.h.s8.bf16 %v991_v63 }
 0x6b7   :  { %4001 = vmatpush1.bf16.msra.mxu0 %v2366_v3  ;;  %4493 = vmatpush1.bf16.msra.mxu1 %v2368_v6  ;;  %v2449_v3 = vunpack.c.l.s8.bf16 %v993_v42  ;;  %v990_v6 = vld [vmem:[#allocation5 + $0x15a0] sm:$0xff] }
 0x6b8   :  { %4002 = vmatprep.subr.bf16.mxu0 %v2375_v41  ;;  %4494 = vmatprep.subr.bf16.mxu1 %v2377_v7  ;;  %v992_v41 = vld [vmem:[#allocation5 + $0x15b0] sm:$0xff]  ;;  %v2446_v7 = vunpack.c.l.s8.bf16 %v990_v6 }
 0x6b9   :  { %v2448_v8 = vunpack.c.l.s8.bf16 %v992_v41  ;;  %v2456_v12 = vunpack.c.h.s8.bf16 %v992_v41  ;;  %v1030_v41 = vld [vmem:[#allocation5 + $0x16e0] sm:$0xff] }
 0x6bb   :  { %4003 = vmatpush1.bf16.msra.mxu0 %v2374_v50  ;;  %4495 = vmatpush1.bf16.msra.mxu1 %v2376_v17  ;;  %v2457_v50 = vunpack.c.h.s8.bf16 %v993_v42  ;;  %v999_v17 = vld [vmem:[#allocation5 + $0x15e8] sm:$0xff] }
 0x6bc   :  { %4004 = vmatprep.subr.bf16.mxu0 %v2383_v10  ;;  %4496 = vmatprep.subr.bf16.mxu1 %v2385_v11  ;;  %v1001_v10 = vld [vmem:[#allocation5 + $0x15f8] sm:$0xff]  ;;  %v2454_v11 = vunpack.c.h.s8.bf16 %v990_v6  ;;  %v2463_v52 = vunpack.c.l.s8.bf16 %v999_v17  ;;  %v2471_v22 = vunpack.c.h.s8.bf16 %v999_v17  ;;  %v1031_v42 = vld [vmem:[#allocation5 + $0x16e8] sm:$0xff] }
 0x6bf   :  { %4005 = vmatpush1.bf16.msra.mxu0 %v2382_v13  ;;  %4497 = vmatpush1.bf16.msra.mxu1 %v2384_v14  ;;  %v2465_v13 = vunpack.c.l.s8.bf16 %v1001_v10  ;;  %v998_v14 = vld [vmem:[#allocation5 + $0x15e0] sm:$0xff] }
 0x6c0   :  { %4006 = vmatprep.subr.bf16.mxu0 %v2391_v61  ;;  %4498 = vmatprep.subr.bf16.mxu1 %v2393_v19  ;;  %v1000_v61 = vld [vmem:[#allocation5 + $0x15f0] sm:$0xff]  ;;  %v2462_v19 = vunpack.c.l.s8.bf16 %v998_v14 }
 0x6c1   :  { %v2464_v20 = vunpack.c.l.s8.bf16 %v1000_v61  ;;  %v2472_v28 = vunpack.c.h.s8.bf16 %v1000_v61  ;;  %v1038_v61 = vld [vmem:[#allocation5 + $0x1720] sm:$0xff] }
 0x6c3   :  { %4007 = vmatpush1.bf16.msra.mxu0 %v2390_v24  ;;  %4499 = vmatpush1.bf16.msra.mxu1 %v2392_v25  ;;  %v2473_v24 = vunpack.c.h.s8.bf16 %v1001_v10  ;;  %v1007_v25 = vld [vmem:[#allocation5 + $0x1628] sm:$0xff] }
 0x6c4   :  { %4008 = vmatprep.subr.bf16.mxu0 %v2399_v23  ;;  %4500 = vmatprep.subr.bf16.mxu1 %v2401_v26  ;;  %v1009_v23 = vld [vmem:[#allocation5 + $0x1638] sm:$0xff]  ;;  %v2470_v26 = vunpack.c.h.s8.bf16 %v998_v14  ;;  %v2479_v32 = vunpack.c.l.s8.bf16 %v1007_v25  ;;  %v2487_v37 = vunpack.c.h.s8.bf16 %v1007_v25  ;;  %v1039_v10 = vld [vmem:[#allocation5 + $0x1728] sm:$0xff] }
 0x6c7   :  { %4009 = vmatpush1.bf16.msra.mxu0 %v2398_v5  ;;  %4501 = vmatpush1.bf16.msra.mxu1 %v2400_v33  ;;  %v2481_v5 = vunpack.c.l.s8.bf16 %v1009_v23  ;;  %v1006_v33 = vld [vmem:[#allocation5 + $0x1620] sm:$0xff] }
 0x6c8   :  { %4010 = vmatprep.subr.bf16.mxu0 %v2407_v34  ;;  %4502 = vmatprep.subr.bf16.mxu1 %v2409_v38  ;;  %v1008_v34 = vld [vmem:[#allocation5 + $0x1630] sm:$0xff]  ;;  %v2478_v38 = vunpack.c.l.s8.bf16 %v1006_v33 }
 0x6c9   :  { %v2480_v36 = vunpack.c.l.s8.bf16 %v1008_v34  ;;  %v2488_v45 = vunpack.c.h.s8.bf16 %v1008_v34  ;;  %v1046_v34 = vld [vmem:[#allocation5 + $0x1760] sm:$0xff] }
 0x6cb   :  { %4011 = vmatpush1.bf16.msra.mxu0 %v2406_v18  ;;  %4503 = vmatpush1.bf16.msra.mxu1 %v2408_v44  ;;  %v2489_v18 = vunpack.c.h.s8.bf16 %v1009_v23  ;;  %v1015_v44 = vld [vmem:[#allocation5 + $0x1668] sm:$0xff] }
 0x6cc   :  { %4012 = vmatprep.subr.bf16.mxu0 %v2415_v40  ;;  %4504 = vmatprep.subr.bf16.mxu1 %v2417_v43  ;;  %v1017_v40 = vld [vmem:[#allocation5 + $0x1678] sm:$0xff]  ;;  %v2486_v43 = vunpack.c.h.s8.bf16 %v1006_v33  ;;  %v2495_v46 = vunpack.c.l.s8.bf16 %v1015_v44  ;;  %v1047_v23 = vld [vmem:[#allocation5 + $0x1768] sm:$0xff] }
 0x6cd   :  { %v2505_v21 = vunpack.c.h.s8.bf16 %v1017_v40 }
 0x6cf   :  { %4013 = vmatpush1.bf16.msra.mxu0 %v2414_v47  ;;  %4505 = vmatpush1.bf16.msra.mxu1 %v2416_v16  ;;  %v2497_v47 = vunpack.c.l.s8.bf16 %v1017_v40  ;;  %v1014_v16 = vld [vmem:[#allocation5 + $0x1660] sm:$0xff] }
 0x6d0   :  { %4014 = vmatprep.subr.bf16.mxu0 %v2423_v30  ;;  %4506 = vmatprep.subr.bf16.mxu1 %v2425_v29  ;;  %v1016_v30 = vld [vmem:[#allocation5 + $0x1670] sm:$0xff]  ;;  %v2494_v29 = vunpack.c.l.s8.bf16 %v1014_v16 }
 0x6d1   :  { %v2496_v48 = vunpack.c.l.s8.bf16 %v1016_v30 }
 0x6d3   :  { %4015 = vmatpush1.bf16.msra.mxu0 %v2422_v49  ;;  %4507 = vmatpush1.bf16.msra.mxu1 %v2424_v51  ;;  %v1023_v49 = vld [vmem:[#allocation5 + $0x16a8] sm:$0xff]  ;;  %v1025_v51 = vld [vmem:[#allocation5 + $0x16b8] sm:$0xff] }
 0x6d4   :  { %4016 = vmatprep.subr.bf16.mxu0 %v2431_v53  ;;  %4508 = vmatprep.subr.bf16.mxu1 %v2433_v35  ;;  %v2502_v53 = vunpack.c.h.s8.bf16 %v1014_v16  ;;  %v2504_v35 = vunpack.c.h.s8.bf16 %v1016_v30  ;;  %v2511_v58 = vunpack.c.l.s8.bf16 %v1023_v49  ;;  %v2513_v27 = vunpack.c.l.s8.bf16 %v1025_v51 }
 0x6d5   :  { %v2521_v63 = vunpack.c.h.s8.bf16 %v1025_v51 }
 0x6d7   :  { %4017 = vmatpush1.bf16.msra.mxu0 %v2430_v60  ;;  %4509 = vmatpush1.bf16.msra.mxu1 %v2432_v62  ;;  %v1022_v60 = vld [vmem:[#allocation5 + $0x16a0] sm:$0xff] }
 0x6d8   :  { %4018 = vmatprep.subr.bf16.mxu0 %v2439_v39  ;;  %4510 = vmatprep.subr.bf16.mxu1 %v2441_v31  ;;  %v2510_v62 = vunpack.c.l.s8.bf16 %v1022_v60  ;;  %v2519_v31 = vunpack.c.h.s8.bf16 %v1023_v49  ;;  %v6997_v49 = vld [vmem:[#allocation7] sm:$0xff] }
 0x6db   :  { %4019 = vmatpush1.bf16.msra.mxu0 %v2438_v0  ;;  %4511 = vmatpush1.bf16.msra.mxu1 %v2440_v1  ;;  %v1033_v0 = vld [vmem:[#allocation5 + $0x16f8] sm:$0xff]  ;;  %v2518_v1 = vunpack.c.h.s8.bf16 %v1022_v60  ;;  %v1063_v60 = vld [vmem:[#allocation5 + $0x17e8] sm:$0xff] }
 0x6dc   :  { %4020 = vmatprep.subr.bf16.mxu0 %v2447_v2  ;;  %4512 = vmatprep.subr.bf16.mxu1 %v2449_v3  ;;  %v2527_v3 = vunpack.c.l.s8.bf16 %v1031_v42  ;;  %v2529_v6 = vunpack.c.l.s8.bf16 %v1033_v0  ;;  %v2537_v17 = vunpack.c.h.s8.bf16 %v1033_v0  ;;  %v1062_v0 = vld [vmem:[#allocation5 + $0x17e0] sm:$0xff] }
 0x6df   :  { %4021 = vmatpush1.bf16.msra.mxu0 %v2446_v7  ;;  %4513 = vmatpush1.bf16.msra.mxu1 %v2448_v8  ;;  %v1032_v7 = vld [vmem:[#allocation5 + $0x16f0] sm:$0xff]  ;;  %v2526_v8 = vunpack.c.l.s8.bf16 %v1030_v41 }
 0x6e0   :  { %4022 = vmatprep.subr.bf16.mxu0 %v2455_v9  ;;  %4514 = vmatprep.subr.bf16.mxu1 %v2457_v50  ;;  %v2528_v9 = vunpack.c.l.s8.bf16 %v1032_v7  ;;  %v2535_v50 = vunpack.c.h.s8.bf16 %v1031_v42 }
 0x6e3   :  { %4023 = vmatpush1.bf16.msra.mxu0 %v2454_v11  ;;  %4515 = vmatpush1.bf16.msra.mxu1 %v2456_v12  ;;  %v1041_v11 = vld [vmem:[#allocation5 + $0x1738] sm:$0xff]  ;;  %v2534_v12 = vunpack.c.h.s8.bf16 %v1030_v41 }
 0x6e4   :  { %4024 = vmatprep.subr.bf16.mxu0 %v2463_v52  ;;  %4516 = vmatprep.subr.bf16.mxu1 %v2465_v13  ;;  %v2536_v52 = vunpack.c.h.s8.bf16 %v1032_v7  ;;  %v2543_v13 = vunpack.c.l.s8.bf16 %v1039_v10  ;;  %v2545_v14 = vunpack.c.l.s8.bf16 %v1041_v11  ;;  %v2553_v25 = vunpack.c.h.s8.bf16 %v1041_v11 }
 0x6e5   :  { %v2599_v7 = vunpack.c.h.s8.bf16 %v1063_v60 }
 0x6e7   :  { %4025 = vmatpush1.bf16.msra.mxu0 %v2462_v19  ;;  %4517 = vmatpush1.bf16.msra.mxu1 %v2464_v20  ;;  %v1040_v19 = vld [vmem:[#allocation5 + $0x1730] sm:$0xff]  ;;  %v2542_v20 = vunpack.c.l.s8.bf16 %v1038_v61 }
 0x6e8   :  { %4026 = vmatprep.subr.bf16.mxu0 %v2471_v22  ;;  %4518 = vmatprep.subr.bf16.mxu1 %v2473_v24  ;;  %v2544_v22 = vunpack.c.l.s8.bf16 %v1040_v19  ;;  %v2551_v24 = vunpack.c.h.s8.bf16 %v1039_v10  ;;  %v2598_v10 = vunpack.c.h.s8.bf16 %v1062_v0 }
 0x6eb   :  { %4027 = vmatpush1.bf16.msra.mxu0 %v2470_v26  ;;  %4519 = vmatpush1.bf16.msra.mxu1 %v2472_v28  ;;  %v1049_v26 = vld [vmem:[#allocation5 + $0x1778] sm:$0xff]  ;;  %v2550_v28 = vunpack.c.h.s8.bf16 %v1038_v61 }
 0x6ec   :  { %4037 = vmatprep.subr.bf16.mxu0 %v2479_v32  ;;  %4529 = vmatprep.subr.bf16.mxu1 %v2481_v5  ;;  %v2552_v32 = vunpack.c.h.s8.bf16 %v1040_v19  ;;  %v2559_v5 = vunpack.c.l.s8.bf16 %v1047_v23  ;;  %v2561_v33 = vunpack.c.l.s8.bf16 %v1049_v26  ;;  %v2569_v40 = vunpack.c.h.s8.bf16 %v1049_v26 }
 0x6ee   :  { %4029 = vmatmul.mubr.bf16.vlgmr.msra.gmra.mrb[4].mxu0 %v6926_v59  ;;  %4521 = vmatmul.mubr.bf16.vlgmr.msra.gmra.mrb[4].mxu1 %v6926_v59  ;;  %v2503_v59 = vunpack.c.h.s8.bf16 %v1015_v44  ;;  %v2567_v44 = vunpack.c.h.s8.bf16 %v1047_v23  ;;  %v4693_v23 = vld [vmem:[#allocation10 + $0x38] sm:$0xff] }
 0x6ef   :  { %4038 = vmatpush1.bf16.msra.mxu0 %v2478_v38  ;;  %4530 = vmatpush1.bf16.msra.mxu1 %v2480_v36  ;;  %v1048_v38 = vld [vmem:[#allocation5 + $0x1770] sm:$0xff]  ;;  %v4572_v36 = vlaneseq }
 0x6f0   :  { %4039 = vmatprep.subr.bf16.mxu0 %v2487_v37  ;;  %4531 = vmatprep.subr.bf16.mxu1 %v2489_v18  ;;  %v2558_v37 = vunpack.c.l.s8.bf16 %v1046_v34  ;;  %v2560_v18 = vunpack.c.l.s8.bf16 %v1048_v38  ;;  %v2568_v16 = vunpack.c.h.s8.bf16 %v1048_v38 }
 0x6f1   :  { %4069 = vmatprep.mubr.bf16.mxu0 %v6928_v4  ;;  %4561 = vmatprep.mubr.bf16.mxu1 %v6928_v4  ;;  %v1024_v4 = vld [vmem:[#allocation5 + $0x16b0] sm:$0xff] }
 0x6f2   :  { %v2512_v39 = vunpack.c.l.s8.bf16 %v1024_v4  ;;  %v2520_v2 = vunpack.c.h.s8.bf16 %v1024_v4  ;;  %v1065_v4 = vld [vmem:[#allocation5 + $0x17f8] sm:$0xff] }
 0x6f3   :  { %4040 = vmatpush1.bf16.msra.mxu0 %v2486_v43  ;;  %4532 = vmatpush1.bf16.msra.mxu1 %v2488_v45  ;;  %v6992_v43 = vshrl.u32 %v4572_v36, 7  ;;  %v1055_v45 = vld [vmem:[#allocation5 + $0x17a8] sm:$0xff]  ;;  %v2593_v42 = vunpack.c.l.s8.bf16 %v1065_v4 }
 0x6f4   :  { %4041 = vmatprep.subr.bf16.mxu0 %v2495_v46  ;;  %4533 = vmatprep.subr.bf16.mxu1 %v2497_v47  ;;  %v1057_v46 = vld [vmem:[#allocation5 + $0x17b8] sm:$0xff]  ;;  %v2566_v47 = vunpack.c.h.s8.bf16 %v1046_v34  ;;  %v2575_v30 = vunpack.c.l.s8.bf16 %v1055_v45  ;;  %v4692_v34 = vld [vmem:[#allocation10 + $0x30] sm:$0xff] }
 0x6f5   :  { %v4824_v36 = vunpack.c.l.s8.bf16 %v4692_v34 }
 0x6f7   :  { %4042 = vmatpush1.bf16.msra.mxu0 %v2494_v29  ;;  %4534 = vmatpush1.bf16.msra.mxu1 %v2496_v48  ;;  %v2577_v29 = vunpack.c.l.s8.bf16 %v1057_v46  ;;  %v1054_v48 = vld [vmem:[#allocation5 + $0x17a0] sm:$0xff] }
 0x6f8   :  { %4043 = vmatprep.subr.bf16.mxu0 %v2503_v59  ;;  %4535 = vmatprep.subr.bf16.mxu1 %v2505_v21  ;;  %v1056_v59 = vld [vmem:[#allocation5 + $0x17b0] sm:$0xff]  ;;  %v6995_v21 = vsub.s32 1, %v6992_v43  ;;  %v2574_v51 = vunpack.c.l.s8.bf16 %v1054_v48 }
 0x6fb   :  { %4044 = vmatpush1.bf16.msra.mxu0 %v2502_v53  ;;  %4536 = vmatpush1.bf16.msra.mxu1 %v2504_v35  ;;  %v2576_v53 = vunpack.c.l.s8.bf16 %v1056_v59  ;;  %v2583_v35 = vunpack.c.h.s8.bf16 %v1055_v45  ;;  %v4828_v45 = vunpack.c.h.s8.bf16 %v4692_v34 }
 0x6fc   :  { %4045 = vmatprep.subr.bf16.mxu0 %v2511_v58  ;;  %4537 = vmatprep.subr.bf16.mxu1 %v2513_v27  ;;  %v2585_v58 = vunpack.c.h.s8.bf16 %v1057_v46  ;;  %v4579_v27 = vrot.slane %v6997_v49, %v6995_v21 }
 0x6ff   :  { %4046 = vmatpush1.bf16.msra.mxu0 %v2510_v62  ;;  %4538 = vmatpush1.bf16.msra.mxu1 %v2512_v39  ;;  %v7001_v62 = vld [vmem:[#allocation8] sm:$0xff]  ;;  %v2582_v39 = vunpack.c.h.s8.bf16 %v1054_v48 }
 0x700   :  { %4047 = vmatprep.subr.bf16.mxu0 %v2519_v31  ;;  %4539 = vmatprep.subr.bf16.mxu1 %v2521_v63  ;;  %v2584_v31 = vunpack.c.h.s8.bf16 %v1056_v59  ;;  %v2591_v63 = vunpack.c.l.s8.bf16 %v1063_v60 }
 0x703   :  { %4048 = vmatpush1.bf16.msra.mxu0 %v2518_v1  ;;  %4540 = vmatpush1.bf16.msra.mxu1 %v2520_v2  ;;  %v1064_v1 = vld [vmem:[#allocation5 + $0x17f0] sm:$0xff]  ;;  %v4613_v2 = vmul.f32 %v4579_v27, %v6956_v56 }
 0x704   :  { %4049 = vmatprep.subr.bf16.mxu0 %v2527_v3  ;;  %4541 = vmatprep.subr.bf16.mxu1 %v2529_v6  ;;  %v4629_v3 = vrot.slane %v7001_v62, %v6995_v21  ;;  %v2590_v6 = vunpack.c.l.s8.bf16 %v1062_v0  ;;  %v2592_v41 = vunpack.c.l.s8.bf16 %v1064_v1  ;;  %v2600_v11 = vunpack.c.h.s8.bf16 %v1064_v1 }
 0x707   :  { %4050 = vmatpush1.bf16.msra.mxu0 %v2526_v8  ;;  %4542 = vmatpush1.bf16.msra.mxu1 %v2528_v9  ;;  %v2601_v8 = vunpack.c.h.s8.bf16 %v1065_v4  ;;  %v4663_v9 = vadd.f32 %v4629_v3, %v4613_v2  ;;  %v4698_v4 = vld [vmem:[#allocation10 + $0x60] sm:$0xff]  ;;  %v4703_v2 = vld [vmem:[#allocation10 + $0x88] sm:$0xff]  ;;  %v4705_v3 = vld [vmem:[#allocation10 + $0x98] sm:$0xff] }
 0x708   :  { %4051 = vmatprep.subr.bf16.mxu0 %v2535_v50  ;;  %4543 = vmatprep.subr.bf16.mxu1 %v2537_v17  ;;  %v4687_v50 = vld [vmem:[#allocation10 + $0x8] sm:$0xff]  ;;  %v4689_v17 = vld [vmem:[#allocation10 + $0x18] sm:$0xff] }
 0x709   :  { %v4815_v56 = vunpack.c.l.s8.bf16 %v4687_v50 }
 0x70b   :  { %4052 = vmatpush1.bf16.msra.mxu0 %v2534_v12  ;;  %4544 = vmatpush1.bf16.msra.mxu1 %v2536_v52  ;;  %v4817_v12 = vunpack.c.l.s8.bf16 %v4689_v17  ;;  %v4686_v52 = vld [vmem:[#allocation10] sm:$0xff] }
 0x70c   :  { %4053 = vmatprep.subr.bf16.mxu0 %v2543_v13  ;;  %4545 = vmatprep.subr.bf16.mxu1 %v2545_v14  ;;  %v4671_v13 = vmax.f32 %v4663_v9, 0.0  ;;  %v4688_v14 = vld [vmem:[#allocation10 + $0x10] sm:$0xff]  ;;  %v4814_v61 = vunpack.c.l.s8.bf16 %v4686_v52  ;;  %v4818_v26 = vunpack.c.h.s8.bf16 %v4686_v52  ;;  %v4849_v9 = vunpack.c.l.s8.bf16 %v4705_v3  ;;  %v4709_v52 = vld [vmem:[#allocation10 + $0xb8] sm:$0xff] }
 0x70d   :  { %v4816_v19 = vunpack.c.l.s8.bf16 %v4688_v14 }
 0x70f   :  { %4054 = vmatpush1.bf16.msra.mxu0 %v2542_v20  ;;  %4546 = vmatpush1.bf16.msra.mxu1 %v2544_v22  ;;  %v4679_v20 = vpack.c.bf16 %v4671_v13, %v4671_v13  ;;  %v4819_v22 = vunpack.c.h.s8.bf16 %v4687_v50  ;;  %v4704_v50 = vld [vmem:[#allocation10 + $0x90] sm:$0xff] }
 0x710   :  { %4055 = vmatprep.subr.bf16.mxu0 %v2551_v24  ;;  %4547 = vmatprep.subr.bf16.mxu1 %v2553_v25  ;;  %v4821_v24 = vunpack.c.h.s8.bf16 %v4689_v17  ;;  %v4691_v25 = vld [vmem:[#allocation10 + $0x28] sm:$0xff] }
 0x713   :  { %4056 = vmatpush1.bf16.msra.mxu0 %v2550_v28  ;;  %4548 = vmatpush1.bf16.msra.mxu1 %v2552_v32  ;;  %v4820_v28 = vunpack.c.h.s8.bf16 %v4688_v14  ;;  %v4823_v32 = vunpack.c.l.s8.bf16 %v4691_v25  ;;  %v4852_v14 = vunpack.c.h.s8.bf16 %v4704_v50 }
 0x714   :  { %4057 = vmatprep.subr.bf16.mxu0 %v2559_v5  ;;  %4549 = vmatprep.subr.bf16.mxu1 %v2561_v33  ;;  %v4690_v5 = vld [vmem:[#allocation10 + $0x20] sm:$0xff]  ;;  %v4825_v33 = vunpack.c.l.s8.bf16 %v4693_v23 }
 0x715   :  { %v4822_v38 = vunpack.c.l.s8.bf16 %v4690_v5 }
 0x717   :  { %4058 = vmatpush1.bf16.msra.mxu0 %v2558_v37  ;;  %4550 = vmatpush1.bf16.msra.mxu1 %v2560_v18  ;;  %v4827_v37 = vunpack.c.h.s8.bf16 %v4691_v25  ;;  %v4695_v18 = vld [vmem:[#allocation10 + $0x48] sm:$0xff] }
 0x718   :  { %4059 = vmatprep.subr.bf16.mxu0 %v2567_v44  ;;  %4551 = vmatprep.subr.bf16.mxu1 %v2569_v40  ;;  %v4697_v44 = vld [vmem:[#allocation10 + $0x58] sm:$0xff]  ;;  %v4826_v40 = vunpack.c.h.s8.bf16 %v4690_v5  ;;  %v4831_v46 = vunpack.c.l.s8.bf16 %v4695_v18  ;;  %v4835_v59 = vunpack.c.h.s8.bf16 %v4695_v18  ;;  %v7012_v18 = vsub.s32 3, %v6992_v43 }
 0x71b   :  { %4060 = vmatpush1.bf16.msra.mxu0 %v2566_v47  ;;  %4552 = vmatpush1.bf16.msra.mxu1 %v2568_v16  ;;  %v4694_v47 = vld [vmem:[#allocation10 + $0x40] sm:$0xff]  ;;  %v4833_v16 = vunpack.c.l.s8.bf16 %v4697_v44 }
 0x71c   :  { %4061 = vmatprep.subr.bf16.mxu0 %v2575_v30  ;;  %4553 = vmatprep.subr.bf16.mxu1 %v2577_v29  ;;  %v4696_v30 = vld [vmem:[#allocation10 + $0x50] sm:$0xff]  ;;  %v4830_v29 = vunpack.c.l.s8.bf16 %v4694_v47 }
 0x71d   :  { %v4832_v48 = vunpack.c.l.s8.bf16 %v4696_v30  ;;  %v4836_v27 = vunpack.c.h.s8.bf16 %v4696_v30  ;;  %v4587_v30 = vrot.slane %v6997_v49, %v7012_v18 }
 0x71f   :  { %4062 = vmatpush1.bf16.msra.mxu0 %v2574_v51  ;;  %4554 = vmatpush1.bf16.msra.mxu1 %v2576_v53  ;;  %v4837_v51 = vunpack.c.h.s8.bf16 %v4697_v44  ;;  %v4699_v53 = vld [vmem:[#allocation10 + $0x68] sm:$0xff] }
 0x720   :  { %4063 = vmatprep.subr.bf16.mxu0 %v2583_v35  ;;  %4555 = vmatprep.subr.bf16.mxu1 %v2585_v58  ;;  %v4701_v35 = vld [vmem:[#allocation10 + $0x78] sm:$0xff]  ;;  %v4834_v58 = vunpack.c.h.s8.bf16 %v4694_v47  ;;  %v4839_v60 = vunpack.c.l.s8.bf16 %v4699_v53  ;;  %v4843_v0 = vunpack.c.h.s8.bf16 %v4699_v53 }
 0x721   :  { %v4845_v1 = vunpack.c.h.s8.bf16 %v4701_v35 }
 0x723   :  { %4064 = vmatpush1.bf16.msra.mxu0 %v2582_v39  ;;  %4556 = vmatpush1.bf16.msra.mxu1 %v2584_v31  ;;  %v4841_v39 = vunpack.c.l.s8.bf16 %v4701_v35  ;;  %v4700_v31 = vld [vmem:[#allocation10 + $0x70] sm:$0xff] }
 0x724   :  { %4065 = vmatprep.subr.bf16.mxu0 %v2591_v63  ;;  %4557 = vmatprep.subr.bf16.mxu1 %v2593_v42  ;;  %v4838_v63 = vunpack.c.l.s8.bf16 %v4698_v4  ;;  %v4840_v42 = vunpack.c.l.s8.bf16 %v4700_v31 }
 0x727   :  { %4066 = vmatpush1.bf16.msra.mxu0 %v2590_v6  ;;  %4558 = vmatpush1.bf16.msra.mxu1 %v2592_v41  ;;  %v4842_v6 = vunpack.c.h.s8.bf16 %v4698_v4  ;;  %v4844_v41 = vunpack.c.h.s8.bf16 %v4700_v31  ;;  %v4615_v4 = vmul.f32 %v4587_v30, %v6958_v57 }
 0x728   :  { %4067 = vmatprep.subr.bf16.mxu0 %v2599_v7  ;;  %4559 = vmatprep.subr.bf16.mxu1 %v2601_v8  ;;  %v4847_v7 = vunpack.c.l.s8.bf16 %v4703_v2  ;;  %v4702_v8 = vld [vmem:[#allocation10 + $0x80] sm:$0xff] }
 0x729   :  { %v4846_v17 = vunpack.c.l.s8.bf16 %v4702_v8  ;;  %v4850_v13 = vunpack.c.h.s8.bf16 %v4702_v8  ;;  %v4718_v8 = vld [vmem:[#allocation10 + $0x100] sm:$0xff] }
 0x72b   :  { %4068 = vmatpush1.bf16.msra.mxu0 %v2598_v10  ;;  %4560 = vmatpush1.bf16.msra.mxu1 %v2600_v11  ;;  %v4848_v10 = vunpack.c.l.s8.bf16 %v4704_v50  ;;  %v4851_v11 = vunpack.c.h.s8.bf16 %v4703_v2  ;;  %v4720_v50 = vld [vmem:[#allocation10 + $0x110] sm:$0xff] }
 0x72c   :  { %5070 = vmatprep.subr.bf16.mxu0 %v4815_v56  ;;  %5234 = vmatprep.subr.bf16.mxu1 %v4817_v12  ;;  %v4853_v56 = vunpack.c.h.s8.bf16 %v4705_v3  ;;  %v4707_v12 = vld [vmem:[#allocation10 + $0xa8] sm:$0xff]  ;;  %v4721_v3 = vld [vmem:[#allocation10 + $0x118] sm:$0xff] }
 0x72e   :  { %4070 = vmatmul.mubr.bf16.vlgmr.msra.gmra.mrb[4].mxu0 %v6934_v15  ;;  %4562 = vmatmul.mubr.bf16.vlgmr.msra.gmra.mrb[4].mxu1 %v6934_v15  ;;  %v4829_v15 = vunpack.c.h.s8.bf16 %v4693_v23  ;;  %v4859_v23 = vunpack.c.h.s8.bf16 %v4707_v12 }
 0x72f   :  { %5071 = vmatpush1.bf16.msra.mxu0 %v4814_v61  ;;  %5102 = vmatprep.mubr.bf16.mxu0 %v4679_v20  ;;  %v4855_v61 = vunpack.c.l.s8.bf16 %v4707_v12 }
 0x730   :  { %5235 = vmatpush1.bf16.msra.mxu1 %v4816_v19  ;;  %5266 = vmatprep.mubr.bf16.mxu1 %v4679_v20  ;;  %v4706_v19 = vld [vmem:[#allocation10 + $0xa0] sm:$0xff]  ;;  %v4857_v20 = vunpack.c.l.s8.bf16 %v4709_v52 }
 0x731   :  { %5072 = vmatprep.subr.bf16.mxu0 %v4819_v22  ;;  %5236 = vmatprep.subr.bf16.mxu1 %v4821_v24  ;;  %v4708_v22 = vld [vmem:[#allocation10 + $0xb0] sm:$0xff]  ;;  %v4854_v24 = vunpack.c.l.s8.bf16 %v4706_v19  ;;  %v4858_v5 = vunpack.c.h.s8.bf16 %v4706_v19  ;;  %v4882_v19 = vunpack.c.h.s8.bf16 %v4718_v8 }
 0x732   :  { %v4856_v25 = vunpack.c.l.s8.bf16 %v4708_v22  ;;  %v4860_v34 = vunpack.c.h.s8.bf16 %v4708_v22 }
 0x733   :  { %5073 = vmatpush1.bf16.msra.mxu0 %v4818_v26  ;;  %v4861_v26 = vunpack.c.h.s8.bf16 %v4709_v52  ;;  %v4723_v52 = vld [vmem:[#allocation10 + $0x128] sm:$0xff] }
 0x734   :  { %5237 = vmatpush1.bf16.msra.mxu1 %v4820_v28  ;;  %5074 = vmatprep.subr.bf16.mxu0 %v4823_v32  ;;  %v4711_v28 = vld [vmem:[#allocation10 + $0xc8] sm:$0xff]  ;;  %v4713_v32 = vld [vmem:[#allocation10 + $0xd8] sm:$0xff]  ;;  %v4887_v22 = vunpack.c.l.s8.bf16 %v4723_v52 }
 0x735   :  { %5238 = vmatprep.subr.bf16.mxu1 %v4825_v33  ;;  %v7009_v33 = vsub.s32 0, %v6992_v43  ;;  %v4869_v47 = vunpack.c.h.s8.bf16 %v4713_v32 }
 0x737   :  { %5075 = vmatpush1.bf16.msra.mxu0 %v4822_v38  ;;  %v4863_v38 = vunpack.c.l.s8.bf16 %v4711_v28 }
 0x738   :  { %5239 = vmatpush1.bf16.msra.mxu1 %v4824_v36  ;;  %5076 = vmatprep.subr.bf16.mxu0 %v4827_v37  ;;  %v4710_v36 = vld [vmem:[#allocation10 + $0xc0] sm:$0xff]  ;;  %v4865_v37 = vunpack.c.l.s8.bf16 %v4713_v32  ;;  %v4891_v32 = vunpack.c.h.s8.bf16 %v4723_v52  ;;  %v4740_v52 = vld [vmem:[#allocation10 + $0x1b0] sm:$0xff] }
 0x739   :  { %5240 = vmatprep.subr.bf16.mxu1 %v4829_v15  ;;  %v4712_v15 = vld [vmem:[#allocation10 + $0xd0] sm:$0xff]  ;;  %v4862_v44 = vunpack.c.l.s8.bf16 %v4710_v36 }
 0x73a   :  { %v4868_v53 = vunpack.c.h.s8.bf16 %v4712_v15 }
 0x73b   :  { %5077 = vmatpush1.bf16.msra.mxu0 %v4826_v40  ;;  %v4575_v40 = vrot.slane %v6997_v49, %v7009_v33 }
 0x73c   :  { %5241 = vmatpush1.bf16.msra.mxu1 %v4828_v45  ;;  %5078 = vmatprep.subr.bf16.mxu0 %v4831_v46  ;;  %v4864_v45 = vunpack.c.l.s8.bf16 %v4712_v15  ;;  %v4867_v46 = vunpack.c.h.s8.bf16 %v4711_v28 }
 0x73d   :  { %5242 = vmatprep.subr.bf16.mxu1 %v4833_v16  ;;  %v4715_v16 = vld [vmem:[#allocation10 + $0xe8] sm:$0xff] }
 0x73e   :  { %v4871_v35 = vunpack.c.l.s8.bf16 %v4715_v16 }
 0x73f   :  { %5079 = vmatpush1.bf16.msra.mxu0 %v4830_v29  ;;  %v4717_v29 = vld [vmem:[#allocation10 + $0xf8] sm:$0xff] }
 0x740   :  { %5243 = vmatpush1.bf16.msra.mxu1 %v4832_v48  ;;  %5080 = vmatprep.subr.bf16.mxu0 %v4835_v59  ;;  %v4866_v48 = vunpack.c.h.s8.bf16 %v4710_v36  ;;  %v4612_v59 = vmul.f32 %v4575_v40, %v6952_v54 }
 0x741   :  { %5244 = vmatprep.subr.bf16.mxu1 %v4837_v51  ;;  %v4625_v51 = vrot.slane %v7001_v62, %v7009_v33 }
 0x743   :  { %5081 = vmatpush1.bf16.msra.mxu0 %v4834_v58  ;;  %v4714_v58 = vld [vmem:[#allocation10 + $0xe0] sm:$0xff] }
 0x744   :  { %5245 = vmatpush1.bf16.msra.mxu1 %v4836_v27  ;;  %5082 = vmatprep.subr.bf16.mxu0 %v4839_v60  ;;  %v4873_v27 = vunpack.c.l.s8.bf16 %v4717_v29  ;;  %v4716_v60 = vld [vmem:[#allocation10 + $0xf0] sm:$0xff]  ;;  %v4870_v31 = vunpack.c.l.s8.bf16 %v4714_v58 }
 0x745   :  { %5246 = vmatprep.subr.bf16.mxu1 %v4841_v39  ;;  %v4637_v39 = vrot.slane %v7001_v62, %v7012_v18  ;;  %v4872_v54 = vunpack.c.l.s8.bf16 %v4716_v60  ;;  %v4876_v57 = vunpack.c.h.s8.bf16 %v4716_v60 }
 0x747   :  { %5083 = vmatpush1.bf16.msra.mxu0 %v4838_v63  ;;  %v4662_v63 = vadd.f32 %v4625_v51, %v4612_v59  ;;  %v4665_v2 = vadd.f32 %v4637_v39, %v4615_v4 }
 0x748   :  { %5247 = vmatpush1.bf16.msra.mxu1 %v4840_v42  ;;  %5084 = vmatprep.subr.bf16.mxu0 %v4843_v0  ;;  %v4875_v42 = vunpack.c.h.s8.bf16 %v4715_v16  ;;  %v4877_v0 = vunpack.c.h.s8.bf16 %v4717_v29  ;;  %v4731_v29 = vld [vmem:[#allocation10 + $0x168] sm:$0xff] }
 0x749   :  { %5248 = vmatprep.subr.bf16.mxu1 %v4845_v1  ;;  %v4719_v1 = vld [vmem:[#allocation10 + $0x108] sm:$0xff]  ;;  %v4907_v39 = vunpack.c.h.s8.bf16 %v4731_v29 }
 0x74a   :  { %v4883_v12 = vunpack.c.h.s8.bf16 %v4719_v1 }
 0x74b   :  { %5085 = vmatpush1.bf16.msra.mxu0 %v4842_v6  ;;  %v4874_v6 = vunpack.c.h.s8.bf16 %v4714_v58 }
 0x74c   :  { %5249 = vmatpush1.bf16.msra.mxu1 %v4844_v41  ;;  %5086 = vmatprep.subr.bf16.mxu0 %v4847_v7  ;;  %v4670_v41 = vmax.f32 %v4662_v63, 0.0  ;;  %v4879_v7 = vunpack.c.l.s8.bf16 %v4719_v1  ;;  %v4735_v63 = vld [vmem:[#allocation10 + $0x188] sm:$0xff] }
 0x74d   :  { %5250 = vmatprep.subr.bf16.mxu1 %v4849_v9  ;;  %v4881_v9 = vunpack.c.l.s8.bf16 %v4721_v3  ;;  %v4911_v1 = vunpack.c.l.s8.bf16 %v4735_v63 }
 0x74f   :  { %5087 = vmatpush1.bf16.msra.mxu0 %v4846_v17  ;;  %v4673_v17 = vmax.f32 %v4665_v2, 0.0  ;;  %v4734_v2 = vld [vmem:[#allocation10 + $0x180] sm:$0xff] }
 0x750   :  { %5251 = vmatpush1.bf16.msra.mxu1 %v4848_v10  ;;  %5088 = vmatprep.subr.bf16.mxu0 %v4851_v11  ;;  %v4878_v10 = vunpack.c.l.s8.bf16 %v4718_v8  ;;  %v4678_v11 = vpack.c.bf16 %v4670_v41, %v4670_v41  ;;  %v4910_v41 = vunpack.c.l.s8.bf16 %v4734_v2 }
 0x751   :  { %5252 = vmatprep.subr.bf16.mxu1 %v4853_v56  ;;  %v4880_v56 = vunpack.c.l.s8.bf16 %v4720_v50 }
 0x753   :  { %5089 = vmatpush1.bf16.msra.mxu0 %v4850_v13  ;;  %v4681_v13 = vpack.c.bf16 %v4673_v17, %v4673_v17  ;;  %v4914_v17 = vunpack.c.h.s8.bf16 %v4734_v2 }
 0x754   :  { %5253 = vmatpush1.bf16.msra.mxu1 %v4852_v14  ;;  %5090 = vmatprep.subr.bf16.mxu0 %v4855_v61  ;;  %v4885_v14 = vunpack.c.h.s8.bf16 %v4721_v3  ;;  %v4725_v61 = vld [vmem:[#allocation10 + $0x138] sm:$0xff] }
 0x755   :  { %5254 = vmatprep.subr.bf16.mxu1 %v4857_v20  ;;  %v4884_v20 = vunpack.c.h.s8.bf16 %v4720_v50  ;;  %v4741_v50 = vld [vmem:[#allocation10 + $0x1b8] sm:$0xff] }
 0x757   :  { %5091 = vmatpush1.bf16.msra.mxu0 %v4854_v24  ;;  %v4722_v24 = vld [vmem:[#allocation10 + $0x120] sm:$0xff] }
 0x758   :  { %5255 = vmatpush1.bf16.msra.mxu1 %v4856_v25  ;;  %5092 = vmatprep.subr.bf16.mxu0 %v4859_v23  ;;  %v4889_v25 = vunpack.c.l.s8.bf16 %v4725_v61  ;;  %v4724_v23 = vld [vmem:[#allocation10 + $0x130] sm:$0xff]  ;;  %v4890_v36 = vunpack.c.h.s8.bf16 %v4722_v24 }
 0x759   :  { %5256 = vmatprep.subr.bf16.mxu1 %v4861_v26  ;;  %v4886_v26 = vunpack.c.l.s8.bf16 %v4722_v24  ;;  %v4888_v28 = vunpack.c.l.s8.bf16 %v4724_v23 }
 0x75b   :  { %5093 = vmatpush1.bf16.msra.mxu0 %v4858_v5  ;;  %v4893_v5 = vunpack.c.h.s8.bf16 %v4725_v61 }
 0x75c   :  { %5257 = vmatpush1.bf16.msra.mxu1 %v4860_v34  ;;  %5094 = vmatprep.subr.bf16.mxu0 %v4863_v38  ;;  %v4727_v34 = vld [vmem:[#allocation10 + $0x148] sm:$0xff]  ;;  %v4729_v38 = vld [vmem:[#allocation10 + $0x158] sm:$0xff] }
 0x75d   :  { %5258 = vmatprep.subr.bf16.mxu1 %v4865_v37  ;;  %v4892_v37 = vunpack.c.h.s8.bf16 %v4724_v23  ;;  %v4895_v15 = vunpack.c.l.s8.bf16 %v4727_v34  ;;  %v4897_v40 = vunpack.c.l.s8.bf16 %v4729_v38  ;;  %v4899_v16 = vunpack.c.h.s8.bf16 %v4727_v34 }
 0x75e   :  { %v4901_v30 = vunpack.c.h.s8.bf16 %v4729_v38  ;;  %v4924_v23 = vunpack.c.h.s8.bf16 %v4740_v52 }
 0x75f   :  { %5095 = vmatpush1.bf16.msra.mxu0 %v4862_v44  ;;  %v4726_v44 = vld [vmem:[#allocation10 + $0x140] sm:$0xff] }
 0x760   :  { %5259 = vmatpush1.bf16.msra.mxu1 %v4864_v45  ;;  %5096 = vmatprep.subr.bf16.mxu0 %v4867_v46  ;;  %v4728_v45 = vld [vmem:[#allocation10 + $0x150] sm:$0xff]  ;;  %v4894_v46 = vunpack.c.l.s8.bf16 %v4726_v44  ;;  %v4898_v59 = vunpack.c.h.s8.bf16 %v4726_v44  ;;  %v4747_v44 = vld [vmem:[#allocation10 + $0x1e8] sm:$0xff] }
 0x761   :  { %5260 = vmatprep.subr.bf16.mxu1 %v4869_v47  ;;  %v4896_v47 = vunpack.c.l.s8.bf16 %v4728_v45  ;;  %v4900_v51 = vunpack.c.h.s8.bf16 %v4728_v45 }
 0x763   :  { %5097 = vmatpush1.bf16.msra.mxu0 %v4866_v48  ;;  %v4733_v48 = vld [vmem:[#allocation10 + $0x178] sm:$0xff] }
 0x764   :  { %5261 = vmatpush1.bf16.msra.mxu1 %v4868_v53  ;;  %5098 = vmatprep.subr.bf16.mxu0 %v4871_v35  ;;  %v4903_v53 = vunpack.c.l.s8.bf16 %v4731_v29  ;;  %v4730_v35 = vld [vmem:[#allocation10 + $0x160] sm:$0xff]  ;;  %v4905_v58 = vunpack.c.l.s8.bf16 %v4733_v48 }
 0x765   :  { %5262 = vmatprep.subr.bf16.mxu1 %v4873_v27  ;;  %v4732_v27 = vld [vmem:[#allocation10 + $0x170] sm:$0xff]  ;;  %v4902_v60 = vunpack.c.l.s8.bf16 %v4730_v35 }
 0x766   :  { %v4904_v4 = vunpack.c.l.s8.bf16 %v4732_v27 }
 0x767   :  { %5099 = vmatpush1.bf16.msra.mxu0 %v4870_v31  ;;  %v4909_v31 = vunpack.c.h.s8.bf16 %v4733_v48  ;;  %v4748_v48 = vld [vmem:[#allocation10 + $0x1f0] sm:$0xff] }
 0x768   :  { %5263 = vmatpush1.bf16.msra.mxu1 %v4872_v54  ;;  %5100 = vmatprep.subr.bf16.mxu0 %v4875_v42  ;;  %v4737_v54 = vld [vmem:[#allocation10 + $0x198] sm:$0xff]  ;;  %v4906_v42 = vunpack.c.h.s8.bf16 %v4730_v35  ;;  %v4939_v35 = vunpack.c.h.s8.bf16 %v4747_v44 }
 0x769   :  { %5264 = vmatprep.subr.bf16.mxu1 %v4877_v0  ;;  %v4908_v0 = vunpack.c.h.s8.bf16 %v4732_v27  ;;  %v4913_v3 = vunpack.c.l.s8.bf16 %v4737_v54  ;;  %v4917_v8 = vunpack.c.h.s8.bf16 %v4737_v54  ;;  %v4753_v27 = vld [vmem:[#allocation10 + $0x218] sm:$0xff]  ;;  %v4752_v54 = vld [vmem:[#allocation10 + $0x210] sm:$0xff] }
 0x76b   :  { %5101 = vmatpush1.bf16.msra.mxu0 %v4874_v6  ;;  %v4736_v6 = vld [vmem:[#allocation10 + $0x190] sm:$0xff] }
 0x76c   :  { %5265 = vmatpush1.bf16.msra.mxu1 %v4876_v57  ;;  %5111 = vmatprep.subr.bf16.mxu0 %v4879_v7  ;;  %v4912_v57 = vunpack.c.l.s8.bf16 %v4736_v6  ;;  %v4915_v7 = vunpack.c.h.s8.bf16 %v4735_v63  ;;  %v4945_v63 = vunpack.c.l.s8.bf16 %v4753_v27 }
 0x76d   :  { %5275 = vmatprep.subr.bf16.mxu1 %v4881_v9  ;;  %v4739_v9 = vld [vmem:[#allocation10 + $0x1a8] sm:$0xff] }
 0x76e   :  { %5103 = vmatmul.mubr.bf16.vlgmr.msra.gmra.mrb[8].mxu0 %v4678_v11  ;;  %v4923_v61 = vunpack.c.h.s8.bf16 %v4739_v9 }
 0x76f   :  { %5267 = vmatmul.mubr.bf16.vlgmr.msra.gmra.mrb[8].mxu1 %v4678_v11  ;;  %5112 = vmatpush1.bf16.msra.mxu0 %v4878_v10  ;;  %v4916_v10 = vunpack.c.h.s8.bf16 %v4736_v6  ;;  %v4919_v11 = vunpack.c.l.s8.bf16 %v4739_v9  ;;  %v4755_v6 = vld [vmem:[#allocation10 + $0x228] sm:$0xff]  ;;  %v4754_v9 = vld [vmem:[#allocation10 + $0x220] sm:$0xff] }
 0x770   :  { %5143 = vmatprep.mubr.bf16.mxu0 %v4681_v13  ;;  %5276 = vmatpush1.bf16.msra.mxu1 %v4880_v56  ;;  %v4738_v56 = vld [vmem:[#allocation10 + $0x1a0] sm:$0xff] }
 0x771   :  { %5307 = vmatprep.mubr.bf16.mxu1 %v4681_v13  ;;  %5113 = vmatprep.subr.bf16.mxu0 %v4883_v12  ;;  %v4921_v12 = vunpack.c.l.s8.bf16 %v4741_v50  ;;  %v4918_v13 = vunpack.c.l.s8.bf16 %v4738_v56  ;;  %v4922_v24 = vunpack.c.h.s8.bf16 %v4738_v56  ;;  %v4955_v56 = vunpack.c.h.s8.bf16 %v4755_v6 }
 0x772   :  { %5277 = vmatprep.subr.bf16.mxu1 %v4885_v14  ;;  %v4920_v14 = vunpack.c.l.s8.bf16 %v4740_v52  ;;  %v4759_v52 = vld [vmem:[#allocation10 + $0x248] sm:$0xff] }
 0x773   :  { %5114 = vmatpush1.bf16.msra.mxu0 %v4882_v19  ;;  %v4925_v19 = vunpack.c.h.s8.bf16 %v4741_v50 }
 0x774   :  { %5278 = vmatpush1.bf16.msra.mxu1 %v4884_v20  ;;  %5115 = vmatprep.subr.bf16.mxu0 %v4887_v22  ;;  %v4743_v20 = vld [vmem:[#allocation10 + $0x1c8] sm:$0xff]  ;;  %v4745_v22 = vld [vmem:[#allocation10 + $0x1d8] sm:$0xff] }
 0x775   :  { %5279 = vmatprep.subr.bf16.mxu1 %v4889_v25  ;;  %v7025_v25 = vsub.s32 2, %v6992_v43 }
 0x777   :  { %5116 = vmatpush1.bf16.msra.mxu0 %v4886_v26  ;;  %v4927_v26 = vunpack.c.l.s8.bf16 %v4743_v20  ;;  %v4583_v38 = vrot.slane %v6997_v49, %v7025_v25  ;;  %v4746_v49 = vld [vmem:[#allocation10 + $0x1e0] sm:$0xff] }
 0x778   :  { %5280 = vmatpush1.bf16.msra.mxu1 %v4888_v28  ;;  %5117 = vmatprep.subr.bf16.mxu0 %v4891_v32  ;;  %v4742_v28 = vld [vmem:[#allocation10 + $0x1c0] sm:$0xff]  ;;  %v4929_v32 = vunpack.c.l.s8.bf16 %v4745_v22 }
 0x779   :  { %5281 = vmatprep.subr.bf16.mxu1 %v4893_v5  ;;  %v4744_v5 = vld [vmem:[#allocation10 + $0x1d0] sm:$0xff]  ;;  %v4926_v34 = vunpack.c.l.s8.bf16 %v4742_v28  ;;  %v4930_v45 = vunpack.c.h.s8.bf16 %v4742_v28  ;;  %v4963_v28 = vunpack.c.h.s8.bf16 %v4759_v52 }
 0x77b   :  { %5118 = vmatpush1.bf16.msra.mxu0 %v4890_v36  ;;  %v4928_v36 = vunpack.c.l.s8.bf16 %v4744_v5 }
 0x77c   :  { %5282 = vmatpush1.bf16.msra.mxu1 %v4892_v37  ;;  %5119 = vmatprep.subr.bf16.mxu0 %v4895_v15  ;;  %v4931_v37 = vunpack.c.h.s8.bf16 %v4743_v20  ;;  %v4933_v15 = vunpack.c.h.s8.bf16 %v4745_v22  ;;  %v4758_v20 = vld [vmem:[#allocation10 + $0x240] sm:$0xff] }
 0x77d   :  { %5283 = vmatprep.subr.bf16.mxu1 %v4897_v40  ;;  %v4749_v40 = vld [vmem:[#allocation10 + $0x1f8] sm:$0xff] }
 0x77e   :  { %v4937_v29 = vunpack.c.l.s8.bf16 %v4749_v40 }
 0x77f   :  { %5120 = vmatpush1.bf16.msra.mxu0 %v4894_v46  ;;  %v4614_v46 = vmul.f32 %v4583_v38, %v6954_v55  ;;  %v4941_v55 = vunpack.c.h.s8.bf16 %v4749_v40  ;;  %v4962_v38 = vunpack.c.h.s8.bf16 %v4758_v20  ;;  %v4764_v40 = vld [vmem:[#allocation10 + $0x270] sm:$0xff] }
 0x780   :  { %5284 = vmatpush1.bf16.msra.mxu1 %v4896_v47  ;;  %5121 = vmatprep.subr.bf16.mxu0 %v4899_v16  ;;  %v4633_v47 = vrot.slane %v7001_v62, %v7025_v25  ;;  %v4932_v16 = vunpack.c.h.s8.bf16 %v4744_v5  ;;  %v4938_v62 = vunpack.c.h.s8.bf16 %v4746_v49  ;;  %v4763_v5 = vld [vmem:[#allocation10 + $0x268] sm:$0xff] }
 0x781   :  { %5285 = vmatprep.subr.bf16.mxu1 %v4901_v30  ;;  %v4935_v30 = vunpack.c.l.s8.bf16 %v4747_v44 }
 0x783   :  { %5122 = vmatpush1.bf16.msra.mxu0 %v4898_v59  ;;  %v4934_v59 = vunpack.c.l.s8.bf16 %v4746_v49  ;;  %v4769_v49 = vld [vmem:[#allocation10 + $0x298] sm:$0xff] }
 0x784   :  { %5286 = vmatpush1.bf16.msra.mxu1 %v4900_v51  ;;  %5123 = vmatprep.subr.bf16.mxu0 %v4903_v53  ;;  %v4664_v51 = vadd.f32 %v4633_v47, %v4614_v46  ;;  %v4936_v53 = vunpack.c.l.s8.bf16 %v4748_v48  ;;  %v4968_v46 = vunpack.c.l.s8.bf16 %v4764_v40  ;;  %v4971_v47 = vunpack.c.h.s8.bf16 %v4763_v5 }
 0x785   :  { %5287 = vmatprep.subr.bf16.mxu1 %v4905_v58  ;;  %v4751_v58 = vld [vmem:[#allocation10 + $0x208] sm:$0xff] }
 0x786   :  { %v4947_v2 = vunpack.c.h.s8.bf16 %v4751_v58 }
 0x787   :  { %5124 = vmatpush1.bf16.msra.mxu0 %v4902_v60  ;;  %v4672_v60 = vmax.f32 %v4664_v51, 0.0  ;;  %v4766_v51 = vld [vmem:[#allocation10 + $0x280] sm:$0xff] }
 0x788   :  { %5288 = vmatpush1.bf16.msra.mxu1 %v4904_v4  ;;  %5125 = vmatprep.subr.bf16.mxu0 %v4907_v39  ;;  %v4940_v4 = vunpack.c.h.s8.bf16 %v4748_v48  ;;  %v4943_v39 = vunpack.c.l.s8.bf16 %v4751_v58  ;;  %v4972_v48 = vunpack.c.h.s8.bf16 %v4764_v40  ;;  %v4590_v40 = vsub.s32 4, %v6992_v43 }
 0x789   :  { %5289 = vmatprep.subr.bf16.mxu1 %v4909_v31  ;;  %v4750_v31 = vld [vmem:[#allocation10 + $0x200] sm:$0xff] }
 0x78b   :  { %5126 = vmatpush1.bf16.msra.mxu0 %v4906_v42  ;;  %v4942_v42 = vunpack.c.l.s8.bf16 %v4750_v31 }
 0x78c   :  { %5290 = vmatpush1.bf16.msra.mxu1 %v4908_v0  ;;  %5127 = vmatprep.subr.bf16.mxu0 %v4911_v1  ;;  %v4680_v0 = vpack.c.bf16 %v4672_v60, %v4672_v60  ;;  %v4944_v1 = vunpack.c.l.s8.bf16 %v4752_v54  ;;  %v4771_v60 = vld [vmem:[#allocation10 + $0x2a8] sm:$0xff] }
 0x78d   :  { %5291 = vmatprep.subr.bf16.mxu1 %v4913_v3  ;;  %v4949_v3 = vunpack.c.h.s8.bf16 %v4753_v27 }
 0x78f   :  { %5128 = vmatpush1.bf16.msra.mxu0 %v4910_v41  ;;  %v4757_v41 = vld [vmem:[#allocation10 + $0x238] sm:$0xff] }
 0x790   :  { %5292 = vmatpush1.bf16.msra.mxu1 %v4912_v57  ;;  %5129 = vmatprep.subr.bf16.mxu0 %v4915_v7  ;;  %v4946_v57 = vunpack.c.h.s8.bf16 %v4750_v31  ;;  %v4948_v7 = vunpack.c.h.s8.bf16 %v4752_v54  ;;  %v4953_v50 = vunpack.c.l.s8.bf16 %v4757_v41  ;;  %v4770_v54 = vld [vmem:[#allocation10 + $0x2a0] sm:$0xff] }
 0x791   :  { %5293 = vmatprep.subr.bf16.mxu1 %v4917_v8  ;;  %v4951_v8 = vunpack.c.l.s8.bf16 %v4755_v6 }
 0x793   :  { %5130 = vmatpush1.bf16.msra.mxu0 %v4914_v17  ;;  %v4756_v17 = vld [vmem:[#allocation10 + $0x230] sm:$0xff] }
 0x794   :  { %5294 = vmatpush1.bf16.msra.mxu1 %v4916_v10  ;;  %5131 = vmatprep.subr.bf16.mxu0 %v4919_v11  ;;  %v4950_v10 = vunpack.c.l.s8.bf16 %v4754_v9  ;;  %v4952_v11 = vunpack.c.l.s8.bf16 %v4756_v17 }
 0x795   :  { %5295 = vmatprep.subr.bf16.mxu1 %v4921_v12  ;;  %v4957_v12 = vunpack.c.h.s8.bf16 %v4757_v41  ;;  %v4775_v41 = vld [vmem:[#allocation10 + $0x2c8] sm:$0xff] }
 0x797   :  { %5132 = vmatpush1.bf16.msra.mxu0 %v4918_v13  ;;  %v4761_v13 = vld [vmem:[#allocation10 + $0x258] sm:$0xff] }
 0x798   :  { %5296 = vmatpush1.bf16.msra.mxu1 %v4920_v14  ;;  %5133 = vmatprep.subr.bf16.mxu0 %v4923_v61  ;;  %v4954_v14 = vunpack.c.h.s8.bf16 %v4754_v9  ;;  %v4956_v61 = vunpack.c.h.s8.bf16 %v4756_v17  ;;  %v4961_v22 = vunpack.c.l.s8.bf16 %v4761_v13  ;;  %v4991_v9 = vunpack.c.l.s8.bf16 %v4775_v41 }
 0x799   :  { %5297 = vmatprep.subr.bf16.mxu1 %v4925_v19  ;;  %v4959_v19 = vunpack.c.l.s8.bf16 %v4759_v52 }
 0x79b   :  { %5134 = vmatpush1.bf16.msra.mxu0 %v4922_v24  ;;  %v4760_v24 = vld [vmem:[#allocation10 + $0x250] sm:$0xff] }
 0x79c   :  { %5298 = vmatpush1.bf16.msra.mxu1 %v4924_v23  ;;  %5135 = vmatprep.subr.bf16.mxu0 %v4927_v26  ;;  %v4958_v23 = vunpack.c.l.s8.bf16 %v4758_v20  ;;  %v4960_v26 = vunpack.c.l.s8.bf16 %v4760_v24 }
 0x79d   :  { %5299 = vmatprep.subr.bf16.mxu1 %v4929_v32  ;;  %v4965_v32 = vunpack.c.h.s8.bf16 %v4761_v13  ;;  %v4779_v13 = vld [vmem:[#allocation10 + $0x2e8] sm:$0xff] }
 0x79e   :  { %v4999_v20 = vunpack.c.l.s8.bf16 %v4779_v13 }
 0x79f   :  { %5136 = vmatpush1.bf16.msra.mxu0 %v4926_v34  ;;  %v4765_v34 = vld [vmem:[#allocation10 + $0x278] sm:$0xff] }
 0x7a0   :  { %5300 = vmatpush1.bf16.msra.mxu1 %v4928_v36  ;;  %5137 = vmatprep.subr.bf16.mxu0 %v4931_v37  ;;  %v4964_v36 = vunpack.c.h.s8.bf16 %v4760_v24  ;;  %v4967_v37 = vunpack.c.l.s8.bf16 %v4763_v5  ;;  %v4969_v44 = vunpack.c.l.s8.bf16 %v4765_v34 }
 0x7a1   :  { %5301 = vmatprep.subr.bf16.mxu1 %v4933_v15  ;;  %v4762_v15 = vld [vmem:[#allocation10 + $0x260] sm:$0xff] }
 0x7a3   :  { %5138 = vmatpush1.bf16.msra.mxu0 %v4930_v45  ;;  %v4966_v45 = vunpack.c.l.s8.bf16 %v4762_v15 }
 0x7a4   :  { %5302 = vmatpush1.bf16.msra.mxu1 %v4932_v16  ;;  %5139 = vmatprep.subr.bf16.mxu0 %v4935_v30  ;;  %v4973_v16 = vunpack.c.h.s8.bf16 %v4765_v34  ;;  %v4767_v30 = vld [vmem:[#allocation10 + $0x288] sm:$0xff] }
 0x7a5   :  { %5303 = vmatprep.subr.bf16.mxu1 %v4937_v29  ;;  %v4970_v29 = vunpack.c.h.s8.bf16 %v4762_v15  ;;  %v4979_v27 = vunpack.c.h.s8.bf16 %v4767_v30  ;;  %v7032_v34 = vld [vmem:[#allocation10 + $0x308] sm:$0xff] }
 0x7a6   :  { %v5007_v15 = vunpack.c.l.s8.bf16 %v7032_v34 }
 0x7a7   :  { %5140 = vmatpush1.bf16.msra.mxu0 %v4934_v59  ;;  %v4975_v59 = vunpack.c.l.s8.bf16 %v4767_v30 }
 0x7a8   :  { %5304 = vmatpush1.bf16.msra.mxu1 %v4936_v53  ;;  %5141 = vmatprep.subr.bf16.mxu0 %v4939_v35  ;;  %v4977_v53 = vunpack.c.l.s8.bf16 %v4769_v49  ;;  %v4768_v35 = vld [vmem:[#allocation10 + $0x290] sm:$0xff] }
 0x7a9   :  { %5305 = vmatprep.subr.bf16.mxu1 %v4941_v55  ;;  %v4974_v55 = vunpack.c.l.s8.bf16 %v4766_v51  ;;  %v4976_v58 = vunpack.c.l.s8.bf16 %v4768_v35  ;;  %v4980_v31 = vunpack.c.h.s8.bf16 %v4768_v35 }
 0x7ab   :  { %5142 = vmatpush1.bf16.msra.mxu0 %v4938_v62  ;;  %v4981_v62 = vunpack.c.h.s8.bf16 %v4769_v49 }
 0x7ac   :  { %5306 = vmatpush1.bf16.msra.mxu1 %v4940_v4  ;;  %5152 = vmatprep.subr.bf16.mxu0 %v4943_v39  ;;  %v4773_v4 = vld [vmem:[#allocation10 + $0x2b8] sm:$0xff]  ;;  %v4978_v39 = vunpack.c.h.s8.bf16 %v4766_v51 }
 0x7ad   :  { %5316 = vmatprep.subr.bf16.mxu1 %v4945_v63  ;;  %v4983_v63 = vunpack.c.l.s8.bf16 %v4771_v60  ;;  %v4989_v6 = vunpack.c.h.s8.bf16 %v4773_v4 }
 0x7ae   :  { %5144 = vmatmul.mubr.bf16.vlgmr.msra.gmra.mrb[8].mxu0 %v4680_v0 }
 0x7af   :  { %5308 = vmatmul.mubr.bf16.vlgmr.msra.gmra.mrb[8].mxu1 %v4680_v0  ;;  %5153 = vmatpush1.bf16.msra.mxu0 %v4942_v42  ;;  %v4985_v42 = vunpack.c.l.s8.bf16 %v4773_v4  ;;  %v4772_v0 = vld [vmem:[#allocation10 + $0x2b0] sm:$0xff] }
 0x7b0   :  { %5317 = vmatpush1.bf16.msra.mxu1 %v4944_v1  ;;  %5154 = vmatprep.subr.bf16.mxu0 %v4947_v2  ;;  %v4982_v1 = vunpack.c.l.s8.bf16 %v4770_v54  ;;  %v4984_v2 = vunpack.c.l.s8.bf16 %v4772_v0 }
 0x7b1   :  { %5318 = vmatprep.subr.bf16.mxu1 %v4949_v3  ;;  %v4987_v3 = vunpack.c.h.s8.bf16 %v4771_v60 }
 0x7b3   :  { %5155 = vmatpush1.bf16.msra.mxu0 %v4946_v57  ;;  %v4777_v57 = vld [vmem:[#allocation10 + $0x2d8] sm:$0xff] }
 0x7b4   :  { %5319 = vmatpush1.bf16.msra.mxu1 %v4948_v7  ;;  %5156 = vmatprep.subr.bf16.mxu0 %v4951_v8  ;;  %v4986_v7 = vunpack.c.h.s8.bf16 %v4770_v54  ;;  %v4988_v8 = vunpack.c.h.s8.bf16 %v4772_v0  ;;  %v4993_v17 = vunpack.c.l.s8.bf16 %v4777_v57  ;;  %v4997_v52 = vunpack.c.h.s8.bf16 %v4777_v57 }
 0x7b5   :  { %5320 = vmatprep.subr.bf16.mxu1 %v4953_v50  ;;  %v4774_v50 = vld [vmem:[#allocation10 + $0x2c0] sm:$0xff] }
 0x7b7   :  { %5157 = vmatpush1.bf16.msra.mxu0 %v4950_v10  ;;  %v4776_v10 = vld [vmem:[#allocation10 + $0x2d0] sm:$0xff] }
 0x7b8   :  { %5321 = vmatpush1.bf16.msra.mxu1 %v4952_v11  ;;  %5158 = vmatprep.subr.bf16.mxu0 %v4955_v56  ;;  %v4990_v11 = vunpack.c.l.s8.bf16 %v4774_v50  ;;  %v4992_v56 = vunpack.c.l.s8.bf16 %v4776_v10 }
 0x7b9   :  { %5322 = vmatprep.subr.bf16.mxu1 %v4957_v12  ;;  %v4995_v12 = vunpack.c.h.s8.bf16 %v4775_v41 }
 0x7bb   :  { %5159 = vmatpush1.bf16.msra.mxu0 %v4954_v14  ;;  %v4781_v14 = vld [vmem:[#allocation10 + $0x2f8] sm:$0xff] }
 0x7bc   :  { %5323 = vmatpush1.bf16.msra.mxu1 %v4956_v61  ;;  %5160 = vmatprep.subr.bf16.mxu0 %v4959_v19  ;;  %v4994_v61 = vunpack.c.h.s8.bf16 %v4774_v50  ;;  %v4996_v19 = vunpack.c.h.s8.bf16 %v4776_v10  ;;  %v5001_v24 = vunpack.c.l.s8.bf16 %v4781_v14  ;;  %v5005_v5 = vunpack.c.h.s8.bf16 %v4781_v14  ;;  %v4787_v10 = vld [vmem:[#allocation10 + $0x328] sm:$0xff] }
 0x7bd   :  { %5324 = vmatprep.subr.bf16.mxu1 %v4961_v22  ;;  %v4778_v22 = vld [vmem:[#allocation10 + $0x2e0] sm:$0xff]  ;;  %v5011_v50 = vunpack.c.h.s8.bf16 %v7032_v34 }
 0x7bf   :  { %5161 = vmatpush1.bf16.msra.mxu0 %v4958_v23  ;;  %v4780_v23 = vld [vmem:[#allocation10 + $0x2f0] sm:$0xff] }
 0x7c0   :  { %5325 = vmatpush1.bf16.msra.mxu1 %v4960_v26  ;;  %5162 = vmatprep.subr.bf16.mxu0 %v4963_v28  ;;  %v4998_v26 = vunpack.c.l.s8.bf16 %v4778_v22  ;;  %v5000_v28 = vunpack.c.l.s8.bf16 %v4780_v23 }
 0x7c1   :  { %5326 = vmatprep.subr.bf16.mxu1 %v4965_v32  ;;  %v5003_v32 = vunpack.c.h.s8.bf16 %v4779_v13  ;;  %v5015_v13 = vunpack.c.l.s8.bf16 %v4787_v10 }
 0x7c3   :  { %5163 = vmatpush1.bf16.msra.mxu0 %v4962_v38  ;;  %v7034_v38 = vld [vmem:[#allocation10 + $0x318] sm:$0xff] }
 0x7c4   :  { %5327 = vmatpush1.bf16.msra.mxu1 %v4964_v36  ;;  %5164 = vmatprep.subr.bf16.mxu0 %v4967_v37  ;;  %v5002_v36 = vunpack.c.h.s8.bf16 %v4778_v22  ;;  %v5004_v37 = vunpack.c.h.s8.bf16 %v4780_v23 }
 0x7c5   :  { %5328 = vmatprep.subr.bf16.mxu1 %v4969_v44  ;;  %v5009_v44 = vunpack.c.l.s8.bf16 %v7034_v38 }
 0x7c7   :  { %5165 = vmatpush1.bf16.msra.mxu0 %v4966_v45  ;;  %v4594_v45 = vsub.s32 5, %v6992_v43 }
 0x7c8   :  { %5329 = vmatpush1.bf16.msra.mxu1 %v4968_v46  ;;  %5166 = vmatprep.subr.bf16.mxu0 %v4971_v47  ;;  %v4602_v46 = vsub.s32 7, %v6992_v43  ;;  %v7041_v47 = vld [vmem:[#allocation7] sm:$0xff] }
 0x7c9   :  { %5330 = vmatprep.subr.bf16.mxu1 %v4973_v16  ;;  %v4591_v16 = vrot.slane %v7041_v47, %v4590_v40  ;;  %v4595_v30 = vrot.slane %v7041_v47, %v4594_v45 }
 0x7ca   :  { %v4603_v49 = vrot.slane %v7041_v47, %v4602_v46 }
 0x7cb   :  { %5167 = vmatpush1.bf16.msra.mxu0 %v4970_v29  ;;  %v7046_v29 = vld [vmem:[#allocation8] sm:$0xff] }
 0x7cc   :  { %5331 = vmatpush1.bf16.msra.mxu1 %v4972_v48  ;;  %5168 = vmatprep.subr.bf16.mxu0 %v4975_v59  ;;  %v4641_v48 = vrot.slane %v7046_v29, %v4590_v40  ;;  %v4653_v35 = vrot.slane %v7046_v29, %v4602_v46  ;;  %v4795_v46 = vld [vmem:[#allocation10 + $0x368] sm:$0xff] }
 0x7cd   :  { %5332 = vmatprep.subr.bf16.mxu1 %v4977_v53  ;;  %v4645_v53 = vrot.slane %v7046_v29, %v4594_v45 }
 0x7cf   :  { %5169 = vmatpush1.bf16.msra.mxu0 %v4974_v55 }
 0x7d0   :  { %5333 = vmatpush1.bf16.msra.mxu1 %v4976_v58  ;;  %5170 = vmatprep.subr.bf16.mxu0 %v4979_v27 }
 0x7d1   :  { %5334 = vmatprep.subr.bf16.mxu1 %v4981_v62 }
 0x7d3   :  { %5171 = vmatpush1.bf16.msra.mxu0 %v4978_v39 }
 0x7d4   :  { %5335 = vmatpush1.bf16.msra.mxu1 %v4980_v31  ;;  %5172 = vmatprep.subr.bf16.mxu0 %v4983_v63 }
 0x7d5   :  { %5336 = vmatprep.subr.bf16.mxu1 %v4985_v42 }
 0x7d7   :  { %5173 = vmatpush1.bf16.msra.mxu0 %v4982_v1 }
 0x7d8   :  { %5337 = vmatpush1.bf16.msra.mxu1 %v4984_v2  ;;  %5174 = vmatprep.subr.bf16.mxu0 %v4987_v3  ;;  %v4782_v2 = vld [vmem:[#allocation10 + $0x300] sm:$0xff]  ;;  %v4784_v3 = vld [vmem:[#allocation10 + $0x310] sm:$0xff] }
 0x7d9   :  { %5338 = vmatprep.subr.bf16.mxu1 %v4989_v6 }
 0x7db   :  { %5175 = vmatpush1.bf16.msra.mxu0 %v4986_v7  ;;  %v5006_v7 = vunpack.c.l.s8.bf16 %v4782_v2 }
 0x7dc   :  { %5339 = vmatpush1.bf16.msra.mxu1 %v4988_v8  ;;  %5176 = vmatprep.subr.bf16.mxu0 %v4991_v9  ;;  %v5008_v8 = vunpack.c.l.s8.bf16 %v4784_v3 }
 0x7dd   :  { %5340 = vmatprep.subr.bf16.mxu1 %v4993_v17  ;;  %v5013_v17 = vunpack.c.h.s8.bf16 %v7034_v38 }
 0x7df   :  { %5177 = vmatpush1.bf16.msra.mxu0 %v4990_v11  ;;  %v4789_v11 = vld [vmem:[#allocation10 + $0x338] sm:$0xff] }
 0x7e0   :  { %5341 = vmatpush1.bf16.msra.mxu1 %v4992_v56  ;;  %5178 = vmatprep.subr.bf16.mxu0 %v4995_v12  ;;  %v5010_v12 = vunpack.c.h.s8.bf16 %v4782_v2  ;;  %v5017_v14 = vunpack.c.l.s8.bf16 %v4789_v11  ;;  %v5021_v23 = vunpack.c.h.s8.bf16 %v4789_v11 }
 0x7e1   :  { %5342 = vmatprep.subr.bf16.mxu1 %v4997_v52  ;;  %v5012_v52 = vunpack.c.h.s8.bf16 %v4784_v3 }
 0x7e3   :  { %5179 = vmatpush1.bf16.msra.mxu0 %v4994_v61  ;;  %v4786_v61 = vld [vmem:[#allocation10 + $0x320] sm:$0xff] }
 0x7e4   :  { %5343 = vmatpush1.bf16.msra.mxu1 %v4996_v19  ;;  %5180 = vmatprep.subr.bf16.mxu0 %v4999_v20  ;;  %v4788_v19 = vld [vmem:[#allocation10 + $0x330] sm:$0xff]  ;;  %v5014_v20 = vunpack.c.l.s8.bf16 %v4786_v61 }
 0x7e5   :  { %5344 = vmatprep.subr.bf16.mxu1 %v5001_v24  ;;  %v5016_v22 = vunpack.c.l.s8.bf16 %v4788_v19  ;;  %v5019_v24 = vunpack.c.h.s8.bf16 %v4787_v10  ;;  %v4804_v10 = vld [vmem:[#allocation10 + $0x3b0] sm:$0xff] }
 0x7e7   :  { %5181 = vmatpush1.bf16.msra.mxu0 %v4998_v26  ;;  %v4791_v26 = vld [vmem:[#allocation10 + $0x348] sm:$0xff] }
 0x7e8   :  { %5345 = vmatpush1.bf16.msra.mxu1 %v5000_v28  ;;  %5182 = vmatprep.subr.bf16.mxu0 %v5003_v32  ;;  %v4793_v28 = vld [vmem:[#allocation10 + $0x358] sm:$0xff]  ;;  %v5018_v32 = vunpack.c.h.s8.bf16 %v4786_v61  ;;  %v5023_v34 = vunpack.c.l.s8.bf16 %v4791_v26  ;;  %v5027_v40 = vunpack.c.h.s8.bf16 %v4791_v26  ;;  %v4808_v26 = vld [vmem:[#allocation10 + $0x3d0] sm:$0xff] }
 0x7e9   :  { %5346 = vmatprep.subr.bf16.mxu1 %v5005_v5  ;;  %v5020_v5 = vunpack.c.h.s8.bf16 %v4788_v19  ;;  %v5025_v38 = vunpack.c.l.s8.bf16 %v4793_v28  ;;  %v5029_v45 = vunpack.c.h.s8.bf16 %v4793_v28  ;;  %v5052_v19 = vunpack.c.h.s8.bf16 %v4804_v10 }
 0x7eb   :  { %5183 = vmatpush1.bf16.msra.mxu0 %v5002_v36  ;;  %v4790_v36 = vld [vmem:[#allocation10 + $0x340] sm:$0xff] }
 0x7ec   :  { %5347 = vmatpush1.bf16.msra.mxu1 %v5004_v37  ;;  %5193 = vmatprep.subr.bf16.mxu0 %v5007_v15  ;;  %v4792_v37 = vld [vmem:[#allocation10 + $0x350] sm:$0xff]  ;;  %v5022_v15 = vunpack.c.l.s8.bf16 %v4790_v36 }
 0x7ed   :  { %5357 = vmatprep.subr.bf16.mxu1 %v5009_v44  ;;  %v5024_v44 = vunpack.c.l.s8.bf16 %v4792_v37 }
 0x801   :  { %v4071_v59 = vpop.f32.mrb[4].mxu0  ;;  %v7049_v51 = vpop.f32.mrb[4].mxu1 }
 0x802   :  { %v4616_v55 = vmul.f32 %v4591_v16, %v4071_v59  ;;  %v4073_v58 = vpop.f32.mrb[5].mxu0  ;;  %v4565_v27 = vpop.f32.mrb[5].mxu1  ;;  %v4797_v16 = vld [vmem:[#allocation10 + $0x378] sm:$0xff] }
 0x803   :  { %v4617_v62 = vmul.f32 %v4595_v30, %v4073_v58  ;;  %v4619_v60 = vmul.f32 %v4603_v49, %v4565_v27  ;;  %v4075_v4 = vpop.f32.mrb[6].mxu0  ;;  %v4567_v39 = vpop.f32.mrb[6].mxu1  ;;  %v5026_v30 = vunpack.c.h.s8.bf16 %v4790_v36  ;;  %v5028_v49 = vunpack.c.h.s8.bf16 %v4792_v37  ;;  %v4811_v36 = vld [vmem:[#allocation10 + $0x3e8] sm:$0xff]  ;;  %v4813_v37 = vld [vmem:[#allocation10 + $0x3f8] sm:$0xff] }
 0x804   :  { %v4666_v31 = vadd.f32 %v4641_v48, %v4616_v55  ;;  %v4076_v63 = vpop.f32.mrb[7].mxu0  ;;  %v4568_v54 = vpop.f32.mrb[7].mxu1  ;;  %v5031_v48 = vunpack.c.l.s8.bf16 %v4795_v46  ;;  %v5033_v59 = vunpack.c.l.s8.bf16 %v4797_v16  ;;  %v5035_v27 = vunpack.c.h.s8.bf16 %v4795_v46  ;;  %v4801_v4 = vld [vmem:[#allocation10 + $0x398] sm:$0xff] }
 0x805   :  { %v4667_v42 = vadd.f32 %v4645_v53, %v4617_v62  ;;  %v4669_v0 = vadd.f32 %v4653_v35, %v4619_v60  ;;  %v4794_v53 = vld [vmem:[#allocation10 + $0x360] sm:$0xff]  ;;  %v4796_v35 = vld [vmem:[#allocation10 + $0x370] sm:$0xff]  ;;  %v5037_v62 = vunpack.c.h.s8.bf16 %v4797_v16  ;;  %v4799_v60 = vld [vmem:[#allocation10 + $0x388] sm:$0xff]  ;;  %v5041_v54 = vunpack.c.l.s8.bf16 %v4801_v4 }
 0x806   :  { %v4674_v1 = vmax.f32 %v4666_v31, 0.0  ;;  %v5030_v55 = vunpack.c.l.s8.bf16 %v4794_v53  ;;  %v5032_v58 = vunpack.c.l.s8.bf16 %v4796_v35  ;;  %v5034_v39 = vunpack.c.h.s8.bf16 %v4794_v53  ;;  %v4810_v16 = vld [vmem:[#allocation10 + $0x3e0] sm:$0xff] }
 0x807   :  { %v4675_v6 = vmax.f32 %v4667_v42, 0.0  ;;  %v4677_v41 = vmax.f32 %v4669_v0, 0.0  ;;  %v5036_v31 = vunpack.c.h.s8.bf16 %v4796_v35  ;;  %v5039_v63 = vunpack.c.l.s8.bf16 %v4799_v60  ;;  %v4798_v42 = vld [vmem:[#allocation10 + $0x380] sm:$0xff]  ;;  %v4800_v0 = vld [vmem:[#allocation10 + $0x390] sm:$0xff] }
 0x808   :  { %v4682_v9 = vpack.c.bf16 %v4674_v1, %v4674_v1  ;;  %v5038_v1 = vunpack.c.l.s8.bf16 %v4798_v42  ;;  %v5040_v2 = vunpack.c.l.s8.bf16 %v4800_v0  ;;  %v5043_v3 = vunpack.c.h.s8.bf16 %v4799_v60  ;;  %v5459_v35 = vld [vmem:[#allocation14 + $0x8] sm:$0xff] }
 0x809   :  { %v4683_v57 = vpack.c.bf16 %v4675_v6, %v4675_v6  ;;  %v4685_v56 = vpack.c.bf16 %v4677_v41, %v4677_v41  ;;  %v5045_v6 = vunpack.c.h.s8.bf16 %v4801_v4  ;;  %v4803_v41 = vld [vmem:[#allocation10 + $0x3a8] sm:$0xff]  ;;  %v5065_v46 = vunpack.c.l.s8.bf16 %v4813_v37 }
 0x80a   :  { %v5069_v53 = vunpack.c.h.s8.bf16 %v4813_v37  ;;  %v5493_v4 = vunpack.c.h.s8.bf16 %v5459_v35  ;;  %v5473_v37 = vld [vmem:[#allocation14 + $0x78] sm:$0xff] }
 0x80b   :  { %5184 = vmatprep.mubr.bf16.mxu0 %v4683_v57  ;;  %5348 = vmatprep.mubr.bf16.mxu1 %v4683_v57  ;;  %v4805_v57 = vld [vmem:[#allocation10 + $0x3b8] sm:$0xff] }
 0x80c   :  { %5185 = vmatmul.mubr.bf16.vlgmr.msra.gmra.mrb[8].mxu0 %v4682_v9  ;;  %5349 = vmatmul.mubr.bf16.vlgmr.msra.gmra.mrb[8].mxu1 %v4682_v9  ;;  %v5047_v9 = vunpack.c.l.s8.bf16 %v4803_v41 }
 0x80d   :  { %5194 = vmatpush1.bf16.msra.mxu0 %v5006_v7  ;;  %5358 = vmatpush1.bf16.msra.mxu1 %v5008_v8  ;;  %v5042_v7 = vunpack.c.h.s8.bf16 %v4798_v42  ;;  %v5044_v8 = vunpack.c.h.s8.bf16 %v4800_v0 }
 0x80e   :  { %5225 = vmatprep.mubr.bf16.mxu0 %v4685_v56  ;;  %5389 = vmatprep.mubr.bf16.mxu1 %v4685_v56  ;;  %v5048_v56 = vunpack.c.l.s8.bf16 %v4804_v10 }
 0x80f   :  { %5195 = vmatprep.subr.bf16.mxu0 %v5011_v50  ;;  %5359 = vmatprep.subr.bf16.mxu1 %v5013_v17  ;;  %v5049_v50 = vunpack.c.l.s8.bf16 %v4805_v57  ;;  %v4802_v17 = vld [vmem:[#allocation10 + $0x3a0] sm:$0xff] }
 0x810   :  { %v5046_v11 = vunpack.c.l.s8.bf16 %v4802_v17  ;;  %v5050_v61 = vunpack.c.h.s8.bf16 %v4802_v17 }
 0x811   :  { %5196 = vmatpush1.bf16.msra.mxu0 %v5010_v12  ;;  %5360 = vmatpush1.bf16.msra.mxu1 %v5012_v52  ;;  %v5051_v12 = vunpack.c.h.s8.bf16 %v4803_v41  ;;  %v5053_v52 = vunpack.c.h.s8.bf16 %v4805_v57 }
 0x812   :  { %5197 = vmatprep.subr.bf16.mxu0 %v5015_v13  ;;  %5361 = vmatprep.subr.bf16.mxu1 %v5017_v14  ;;  %v4807_v13 = vld [vmem:[#allocation10 + $0x3c8] sm:$0xff]  ;;  %v4809_v14 = vld [vmem:[#allocation10 + $0x3d8] sm:$0xff] }
 0x815   :  { %5198 = vmatpush1.bf16.msra.mxu0 %v5014_v20  ;;  %5362 = vmatpush1.bf16.msra.mxu1 %v5016_v22  ;;  %v4598_v20 = vsub.s32 6, %v6992_v43  ;;  %v5055_v22 = vunpack.c.l.s8.bf16 %v4807_v13 }
 0x816   :  { %5199 = vmatprep.subr.bf16.mxu0 %v5019_v24  ;;  %5363 = vmatprep.subr.bf16.mxu1 %v5021_v23  ;;  %v5057_v24 = vunpack.c.l.s8.bf16 %v4809_v14  ;;  %v4806_v23 = vld [vmem:[#allocation10 + $0x3c0] sm:$0xff] }
 0x817   :  { %v5054_v28 = vunpack.c.l.s8.bf16 %v4806_v23  ;;  %v5058_v43 = vunpack.c.h.s8.bf16 %v4806_v23 }
 0x819   :  { %5200 = vmatpush1.bf16.msra.mxu0 %v5018_v32  ;;  %5364 = vmatpush1.bf16.msra.mxu1 %v5020_v5  ;;  %v5056_v32 = vunpack.c.l.s8.bf16 %v4808_v26  ;;  %v4599_v5 = vrot.slane %v7041_v47, %v4598_v20  ;;  %v4812_v47 = vld [vmem:[#allocation10 + $0x3f0] sm:$0xff] }
 0x81a   :  { %5201 = vmatprep.subr.bf16.mxu0 %v5023_v34  ;;  %5365 = vmatprep.subr.bf16.mxu1 %v5025_v38  ;;  %v5059_v34 = vunpack.c.h.s8.bf16 %v4807_v13  ;;  %v5061_v38 = vunpack.c.h.s8.bf16 %v4809_v14 }
 0x81d   :  { %5202 = vmatpush1.bf16.msra.mxu0 %v5022_v15  ;;  %5366 = vmatpush1.bf16.msra.mxu1 %v5024_v44  ;;  %v5060_v15 = vunpack.c.h.s8.bf16 %v4808_v26  ;;  %v4618_v44 = vmul.f32 %v4599_v5, %v7049_v51  ;;  %v5066_v51 = vunpack.c.h.s8.bf16 %v4810_v16  ;;  %v5471_v26 = vld [vmem:[#allocation14 + $0x68] sm:$0xff]  ;;  %v5470_v5 = vld [vmem:[#allocation14 + $0x60] sm:$0xff] }
 0x81e   :  { %5203 = vmatprep.subr.bf16.mxu0 %v5027_v40  ;;  %5367 = vmatprep.subr.bf16.mxu1 %v5029_v45  ;;  %v4649_v40 = vrot.slane %v7046_v29, %v4598_v20  ;;  %v5063_v45 = vunpack.c.l.s8.bf16 %v4811_v36  ;;  %v5068_v29 = vunpack.c.h.s8.bf16 %v4812_v47 }
 0x821   :  { %5204 = vmatpush1.bf16.msra.mxu0 %v5026_v30  ;;  %5368 = vmatpush1.bf16.msra.mxu1 %v5028_v49  ;;  %v5062_v30 = vunpack.c.l.s8.bf16 %v4810_v16  ;;  %v5064_v49 = vunpack.c.l.s8.bf16 %v4812_v47  ;;  %v5672_v47 = vld [vmem:[#allocation19 + $0x20] sm:$0xff] }
 0x822   :  { %5205 = vmatprep.subr.bf16.mxu0 %v5031_v48  ;;  %5369 = vmatprep.subr.bf16.mxu1 %v5033_v59  ;;  %v4668_v48 = vadd.f32 %v4649_v40, %v4618_v44  ;;  %v5067_v59 = vunpack.c.h.s8.bf16 %v4811_v36  ;;  %v5516_v36 = vunpack.c.h.s8.bf16 %v5470_v5  ;;  %v5521_v40 = vunpack.c.h.s8.bf16 %v5473_v37 }
 0x825   :  { %5206 = vmatpush1.bf16.msra.mxu0 %v5030_v55  ;;  %5370 = vmatpush1.bf16.msra.mxu1 %v5032_v58  ;;  %v4676_v55 = vmax.f32 %v4668_v48, 0.0  ;;  %v5491_v58 = vunpack.c.l.s8.bf16 %v5459_v35 }
 0x826   :  { %5207 = vmatprep.subr.bf16.mxu0 %v5035_v27  ;;  %5371 = vmatprep.subr.bf16.mxu1 %v5037_v62  ;;  %v5458_v27 = vld [vmem:[#allocation14] sm:$0xff] }
 0x827   :  { %v5490_v62 = vunpack.c.l.s8.bf16 %v5458_v27  ;;  %v4684_v60 = vpack.c.bf16 %v4676_v55, %v4676_v55 }
 0x829   :  { %5208 = vmatpush1.bf16.msra.mxu0 %v5034_v39  ;;  %5372 = vmatpush1.bf16.msra.mxu1 %v5036_v31  ;;  %v5461_v39 = vld [vmem:[#allocation14 + $0x18] sm:$0xff]  ;;  %v5492_v31 = vunpack.c.h.s8.bf16 %v5458_v27 }
 0x82a   :  { %5209 = vmatprep.subr.bf16.mxu0 %v5039_v63  ;;  %5373 = vmatprep.subr.bf16.mxu1 %v5041_v54  ;;  %v5495_v63 = vunpack.c.l.s8.bf16 %v5461_v39  ;;  %v5460_v54 = vld [vmem:[#allocation14 + $0x10] sm:$0xff]  ;;  %v5497_v0 = vunpack.c.h.s8.bf16 %v5461_v39 }
 0x82b   :  { %v5494_v42 = vunpack.c.l.s8.bf16 %v5460_v54  ;;  %v5674_v27 = vld [vmem:[#allocation19 + $0x30] sm:$0xff] }
 0x82d   :  { %5210 = vmatpush1.bf16.msra.mxu0 %v5038_v1  ;;  %5374 = vmatpush1.bf16.msra.mxu1 %v5040_v2  ;;  %v5463_v1 = vld [vmem:[#allocation14 + $0x28] sm:$0xff]  ;;  %v5496_v2 = vunpack.c.h.s8.bf16 %v5460_v54  ;;  %v5424_v54 = vld [vmem:[#allocation13] sm:$0xf] }
 0x82e   :  { %5211 = vmatprep.subr.bf16.mxu0 %v5043_v3  ;;  %5375 = vmatprep.subr.bf16.mxu1 %v5045_v6  ;;  %v5499_v3 = vunpack.c.l.s8.bf16 %v5463_v1  ;;  %v5462_v6 = vld [vmem:[#allocation14 + $0x20] sm:$0xff]  ;;  %v5501_v57 = vunpack.c.h.s8.bf16 %v5463_v1 }
 0x82f   :  { %v5498_v41 = vunpack.c.l.s8.bf16 %v5462_v6 }
 0x831   :  { %5212 = vmatpush1.bf16.msra.mxu0 %v5042_v7  ;;  %5376 = vmatpush1.bf16.msra.mxu1 %v5044_v8  ;;  %v5465_v7 = vld [vmem:[#allocation14 + $0x38] sm:$0xff]  ;;  %v5500_v8 = vunpack.c.h.s8.bf16 %v5462_v6  ;;  %v5437_v6 = vrot.slane %v5424_v54, %v7025_v25 }
 0x832   :  { %5213 = vmatprep.subr.bf16.mxu0 %v5047_v9  ;;  %5377 = vmatprep.subr.bf16.mxu1 %v5049_v50  ;;  %v5503_v9 = vunpack.c.l.s8.bf16 %v5465_v7  ;;  %v5464_v50 = vld [vmem:[#allocation14 + $0x30] sm:$0xff]  ;;  %v5505_v10 = vunpack.c.h.s8.bf16 %v5465_v7  ;;  %v5433_v7 = vrot.slane %v5424_v54, %v6995_v21 }
 0x833   :  { %v5502_v17 = vunpack.c.l.s8.bf16 %v5464_v50 }
 0x835   :  { %5214 = vmatpush1.bf16.msra.mxu0 %v5046_v11  ;;  %5378 = vmatpush1.bf16.msra.mxu1 %v5048_v56  ;;  %v5467_v11 = vld [vmem:[#allocation14 + $0x48] sm:$0xff]  ;;  %v5504_v56 = vunpack.c.h.s8.bf16 %v5464_v50 }
 0x836   :  { %5215 = vmatprep.subr.bf16.mxu0 %v5051_v12  ;;  %5379 = vmatprep.subr.bf16.mxu1 %v5053_v52  ;;  %v5507_v12 = vunpack.c.l.s8.bf16 %v5467_v11  ;;  %v5466_v52 = vld [vmem:[#allocation14 + $0x40] sm:$0xff]  ;;  %v5509_v14 = vunpack.c.h.s8.bf16 %v5467_v11 }
 0x837   :  { %v5506_v13 = vunpack.c.l.s8.bf16 %v5466_v52 }
 0x839   :  { %5216 = vmatpush1.bf16.msra.mxu0 %v5050_v61  ;;  %5380 = vmatpush1.bf16.msra.mxu1 %v5052_v19  ;;  %v5469_v61 = vld [vmem:[#allocation14 + $0x58] sm:$0xff]  ;;  %v5508_v19 = vunpack.c.h.s8.bf16 %v5466_v52 }
 0x83a   :  { %5217 = vmatprep.subr.bf16.mxu0 %v5055_v22  ;;  %5381 = vmatprep.subr.bf16.mxu1 %v5057_v24  ;;  %v5511_v20 = vunpack.c.l.s8.bf16 %v5469_v61  ;;  %v5468_v22 = vld [vmem:[#allocation14 + $0x50] sm:$0xff]  ;;  %v5513_v23 = vunpack.c.h.s8.bf16 %v5469_v61 }
 0x83b   :  { %v5510_v24 = vunpack.c.l.s8.bf16 %v5468_v22 }
 0x83d   :  { %5218 = vmatpush1.bf16.msra.mxu0 %v5054_v28  ;;  %5382 = vmatpush1.bf16.msra.mxu1 %v5056_v32  ;;  %v5512_v28 = vunpack.c.h.s8.bf16 %v5468_v22  ;;  %v5515_v32 = vunpack.c.l.s8.bf16 %v5471_v26 }
 0x83e   :  { %5219 = vmatprep.subr.bf16.mxu0 %v5059_v34  ;;  %5383 = vmatprep.subr.bf16.mxu1 %v5061_v38  ;;  %v5514_v34 = vunpack.c.l.s8.bf16 %v5470_v5  ;;  %v5517_v38 = vunpack.c.h.s8.bf16 %v5471_v26 }
 0x841   :  { %5220 = vmatpush1.bf16.msra.mxu0 %v5058_v43  ;;  %5384 = vmatpush1.bf16.msra.mxu1 %v5060_v15  ;;  %v5519_v43 = vunpack.c.l.s8.bf16 %v5473_v37  ;;  %v5472_v15 = vld [vmem:[#allocation14 + $0x70] sm:$0xff] }
 0x842   :  { %5221 = vmatprep.subr.bf16.mxu0 %v5063_v45  ;;  %5385 = vmatprep.subr.bf16.mxu1 %v5065_v46  ;;  %v5518_v44 = vunpack.c.l.s8.bf16 %v5472_v15  ;;  %v5520_v45 = vunpack.c.h.s8.bf16 %v5472_v15  ;;  %v7059_v46 = vld [vmem:[#allocation14 + $0x88] sm:$0xff] }
 0x843   :  { %v5523_v16 = vunpack.c.l.s8.bf16 %v7059_v46  ;;  %v5525_v5 = vunpack.c.h.s8.bf16 %v7059_v46  ;;  %v5478_v46 = vld [vmem:[#allocation14 + $0xa0] sm:$0xff] }
 0x845   :  { %5222 = vmatpush1.bf16.msra.mxu0 %v5062_v30  ;;  %5386 = vmatpush1.bf16.msra.mxu1 %v5064_v49  ;;  %v5668_v30 = vld [vmem:[#allocation19] sm:$0xff]  ;;  %v5684_v49 = vunpack.c.l.s8.bf16 %v5672_v47 }
 0x846   :  { %5223 = vmatprep.subr.bf16.mxu0 %v5067_v59  ;;  %5387 = vmatprep.subr.bf16.mxu1 %v5069_v53  ;;  %v5676_v48 = vunpack.c.l.s8.bf16 %v5668_v30  ;;  %v5685_v59 = vunpack.c.h.s8.bf16 %v5672_v47  ;;  %v5673_v53 = vld [vmem:[#allocation19 + $0x28] sm:$0xff]  ;;  %v5677_v35 = vunpack.c.h.s8.bf16 %v5668_v30  ;;  %v5530_v47 = vunpack.c.l.s8.bf16 %v5478_v46 }
 0x849   :  { %5224 = vmatpush1.bf16.msra.mxu0 %v5066_v51  ;;  %5388 = vmatpush1.bf16.msra.mxu1 %v5068_v29  ;;  %v5686_v51 = vunpack.c.l.s8.bf16 %v5673_v53  ;;  %v5669_v29 = vld [vmem:[#allocation19 + $0x8] sm:$0xff] }
 0x84a   :  { %5554 = vmatprep.subr.bf16.mxu0 %v5491_v58  ;;  %5847 = vmatprep.subr.bf16.mxu1 %v5684_v49  ;;  %v5678_v55 = vunpack.c.l.s8.bf16 %v5669_v29  ;;  %v5687_v58 = vunpack.c.h.s8.bf16 %v5673_v53  ;;  %v5481_v49 = vld [vmem:[#allocation14 + $0xb8] sm:$0xff]  ;;  %v5480_v53 = vld [vmem:[#allocation14 + $0xb0] sm:$0xff] }
 0x84c   :  { %5226 = vmatmul.mubr.bf16.vlgmr.msra.gmra.mrb[8].mxu0 %v4684_v60  ;;  %5390 = vmatmul.mubr.bf16.vlgmr.msra.gmra.mrb[8].mxu1 %v4684_v60  ;;  %v5688_v60 = vunpack.c.l.s8.bf16 %v5674_v27 }
 0x84d   :  { %5555 = vmatpush1.bf16.msra.mxu0 %v5490_v62  ;;  %5848 = vmatpush3.bf16.msra.mxu1 %v5676_v48  ;;  %v5679_v62 = vunpack.c.h.s8.bf16 %v5669_v29  ;;  %v5532_v48 = vunpack.c.h.s8.bf16 %v5478_v46  ;;  %v5483_v29 = vld [vmem:[#allocation14 + $0xc8] sm:$0xff] }
 0x84e   :  { %5556 = vmatprep.subr.bf16.mxu0 %v5493_v4  ;;  %5849 = vmatprep.subr.bf16.mxu1 %v5685_v59  ;;  %v7062_v4 = vld [vmem:[#allocation19 + $0x10] sm:$0xff]  ;;  %v5535_v59 = vunpack.c.l.s8.bf16 %v5481_v49 }
 0x84f   :  { %v5680_v39 = vunpack.c.l.s8.bf16 %v7062_v4 }
 0x851   :  { %5557 = vmatpush1.bf16.msra.mxu0 %v5492_v31  ;;  %5850 = vmatpush3.bf16.msra.mxu1 %v5677_v35  ;;  %v5689_v31 = vunpack.c.h.s8.bf16 %v5674_v27  ;;  %v5534_v35 = vunpack.c.l.s8.bf16 %v5480_v53  ;;  %v5482_v27 = vld [vmem:[#allocation14 + $0xc0] sm:$0xff] }
 0x852   :  { %5558 = vmatprep.subr.bf16.mxu0 %v5495_v63  ;;  %5851 = vmatprep.subr.bf16.mxu1 %v5686_v51  ;;  %v5398_v63 = vld [vmem:[#allocation11] sm:$0xf]  ;;  %v5537_v51 = vunpack.c.h.s8.bf16 %v5481_v49 }
 0x853   :  { %v5407_v1 = vrot.slane %v5398_v63, %v6995_v21 }
 0x855   :  { %5559 = vmatpush1.bf16.msra.mxu0 %v5494_v42  ;;  %5852 = vmatpush3.bf16.msra.mxu1 %v5678_v55  ;;  %v5403_v42 = vrot.slane %v5398_v63, %v7009_v33  ;;  %v5536_v55 = vunpack.c.h.s8.bf16 %v5480_v53 }
 0x856   :  { %5560 = vmatprep.subr.bf16.mxu0 %v5497_v0  ;;  %5853 = vmatprep.subr.bf16.mxu1 %v5687_v58  ;;  %v5411_v0 = vrot.slane %v5398_v63, %v7025_v25  ;;  %v5539_v58 = vunpack.c.l.s8.bf16 %v5483_v29 }
 0x859   :  { %5561 = vmatpush1.bf16.msra.mxu0 %v5496_v2  ;;  %5854 = vmatpush3.bf16.msra.mxu1 %v5679_v62  ;;  %v5415_v2 = vrot.slane %v5398_v63, %v7012_v18  ;;  %v5538_v62 = vunpack.c.l.s8.bf16 %v5482_v27 }
 0x85a   :  { %5562 = vmatprep.subr.bf16.mxu0 %v5499_v3  ;;  %5855 = vmatprep.subr.bf16.mxu1 %v5688_v60  ;;  %v5429_v3 = vrot.slane %v5424_v54, %v7009_v33  ;;  %v5541_v60 = vunpack.c.h.s8.bf16 %v5483_v29 }
 0x85d   :  { %5563 = vmatpush1.bf16.msra.mxu0 %v5498_v41  ;;  %5856 = vmatpush3.bf16.msra.mxu1 %v5680_v39  ;;  %v5485_v39 = vld [vmem:[#allocation14 + $0xd8] sm:$0xff] }
 0x85e   :  { %5564 = vmatprep.subr.bf16.mxu0 %v5501_v57  ;;  %5857 = vmatprep.subr.bf16.mxu1 %v5689_v31  ;;  %v5540_v31 = vunpack.c.h.s8.bf16 %v5482_v27  ;;  %v5543_v63 = vunpack.c.l.s8.bf16 %v5485_v39  ;;  %v5843_v27 = vld [vmem:[#allocation20] ss:$0 sm:$0xff] }
 0x861   :  { %5565 = vmatpush1.bf16.msra.mxu0 %v5500_v8  ;;  %v5441_v8 = vrot.slane %v5424_v54, %v7012_v18  ;;  %v5484_v54 = vld [vmem:[#allocation14 + $0xd0] sm:$0xff] }
 0x862   :  { %5566 = vmatprep.subr.bf16.mxu0 %v5503_v9 }
 0x865   :  { %5567 = vmatpush1.bf16.msra.mxu0 %v5502_v17 }
 0x866   :  { %5568 = vmatprep.subr.bf16.mxu0 %v5505_v10 }
 0x869   :  { %5569 = vmatpush1.bf16.msra.mxu0 %v5504_v56 }
 0x86a   :  { %5570 = vmatprep.subr.bf16.mxu0 %v5507_v12 }
 0x86d   :  { %5571 = vmatpush1.bf16.msra.mxu0 %v5506_v13 }
 0x86e   :  { %5572 = vmatprep.subr.bf16.mxu0 %v5509_v14 }
 0x871   :  { %5573 = vmatpush1.bf16.msra.mxu0 %v5508_v19 }
 0x872   :  { %5574 = vmatprep.subr.bf16.mxu0 %v5511_v20 }
 0x875   :  { %5575 = vmatpush1.bf16.msra.mxu0 %v5510_v24  ;;  %v5474_v24 = vld [vmem:[#allocation14 + $0x80] sm:$0xff] }
 0x876   :  { %5576 = vmatprep.subr.bf16.mxu0 %v5513_v23 }
 0x879   :  { %5577 = vmatpush1.bf16.msra.mxu0 %v5512_v28  ;;  %v5522_v28 = vunpack.c.l.s8.bf16 %v5474_v24 }
 0x87a   :  { %5578 = vmatprep.subr.bf16.mxu0 %v5515_v32 }
 0x87d   :  { %5579 = vmatpush1.bf16.msra.mxu0 %v5514_v34 }
 0x87e   :  { %5580 = vmatprep.subr.bf16.mxu0 %v5517_v38  ;;  %v5477_v38 = vld [vmem:[#allocation14 + $0x98] sm:$0xff] }
 0x87f   :  { %v5527_v37 = vunpack.c.l.s8.bf16 %v5477_v38 }
 0x881   :  { %5581 = vmatpush1.bf16.msra.mxu0 %v5516_v36  ;;  %v5524_v36 = vunpack.c.h.s8.bf16 %v5474_v24  ;;  %v6549_v24 = vmov 0.0  }
 0x882   :  { %5582 = vmatprep.subr.bf16.mxu0 %v5519_v43  ;;  %v5476_v43 = vld [vmem:[#allocation14 + $0x90] sm:$0xff] }
 0x883   :  { %v5526_v15 = vunpack.c.l.s8.bf16 %v5476_v43 }
 0x885   :  { %5583 = vmatpush1.bf16.msra.mxu0 %v5518_v44  ;;  %v5529_v44 = vunpack.c.h.s8.bf16 %v5477_v38 }
 0x886   :  { %5584 = vmatprep.subr.bf16.mxu0 %v5521_v40  ;;  %v5479_v40 = vld [vmem:[#allocation14 + $0xa8] sm:$0xff] }
 0x887   :  { %v5533_v30 = vunpack.c.h.s8.bf16 %v5479_v40 }
 0x889   :  { %5585 = vmatpush1.bf16.msra.mxu0 %v5520_v45  ;;  %v5528_v45 = vunpack.c.h.s8.bf16 %v5476_v43 }
 0x88a   :  { %5595 = vmatprep.subr.bf16.mxu0 %v5523_v16  ;;  %v5531_v16 = vunpack.c.l.s8.bf16 %v5479_v40  ;;  %v5750_v40 = vld [vmem:[#allocation23] sm:$0xff] }
 0x88b   :  { %v5754_v46 = vunpack.c.l.s8.bf16 %v5750_v40 }
 0x91f   :  { %v5227_v41 = vpop.f32.mrb[8].mxu0  ;;  %v5391_v57 = vpop.f32.mrb[8].mxu1 }
 0x920   :  { %v5420_v9 = vmul.f32 %v5403_v42, %v5227_v41  ;;  %v5422_v50 = vmul.f32 %v5411_v0, %v5391_v57  ;;  %v5229_v17 = vpop.f32.mrb[9].mxu0  ;;  %v5393_v10 = vpop.f32.mrb[9].mxu1  ;;  %v5542_v42 = vunpack.c.l.s8.bf16 %v5484_v54  ;;  %v5545_v0 = vunpack.c.h.s8.bf16 %v5485_v39  ;;  %v5844_v39 = vld [vmem:[#allocation22] ss:$0 sm:$0xff] }
 0x921   :  { %v5421_v11 = vmul.f32 %v5407_v1, %v5229_v17  ;;  %v5423_v56 = vmul.f32 %v5415_v2, %v5393_v10  ;;  %v5231_v12 = vpop.f32.mrb[10].mxu0  ;;  %v5395_v52 = vpop.f32.mrb[10].mxu1  ;;  %v5487_v1 = vld [vmem:[#allocation14 + $0xe8] sm:$0xff]  ;;  %v5544_v2 = vunpack.c.h.s8.bf16 %v5484_v54 }
 0x922   :  { %v5446_v13 = vadd.f32 %v5429_v3, %v5420_v9  ;;  %v7073_v14 = vadd.f32 %v5437_v6, %v5422_v50  ;;  %v5232_v61 = vpop.f32.mrb[11].mxu0  ;;  %v5396_v19 = vpop.f32.mrb[11].mxu1  ;;  %v5547_v3 = vunpack.c.l.s8.bf16 %v5487_v1  ;;  %v5486_v6 = vld [vmem:[#allocation14 + $0xe0] sm:$0xff]  ;;  %v5549_v57 = vunpack.c.h.s8.bf16 %v5487_v1  ;;  %v5488_v50 = vld [vmem:[#allocation14 + $0xf0] sm:$0xff]  ;;  %v5845_v1 = vld [vmem:[#allocation25] ss:$0 sm:$0xff] }
 0x923   :  { %v5447_v25 = vadd.f32 %v5433_v7, %v5421_v11  ;;  %v5449_v20 = vadd.f32 %v5441_v8, %v5423_v56  ;;  %v5546_v41 = vunpack.c.l.s8.bf16 %v5486_v6  ;;  %v5489_v7 = vld [vmem:[#allocation14 + $0xf8] sm:$0xff]  ;;  %v5548_v8 = vunpack.c.h.s8.bf16 %v5486_v6 }
 0x924   :  { %v5450_v22 = vmax.f32 %v5446_v13, 0.0  ;;  %v5551_v9 = vunpack.c.l.s8.bf16 %v5489_v7  ;;  %v5550_v17 = vunpack.c.l.s8.bf16 %v5488_v50  ;;  %v5553_v10 = vunpack.c.h.s8.bf16 %v5489_v7  ;;  %v5675_v13 = vld [vmem:[#allocation19 + $0x38] sm:$0xff] }
 0x925   :  { %v5451_v23 = vmax.f32 %v5447_v25, 0.0  ;;  %v5453_v26 = vmax.f32 %v5449_v20, 0.0  ;;  %v5552_v11 = vunpack.c.h.s8.bf16 %v5488_v50  ;;  %v5452_v56 = vmax.f32 %v7073_v14, 0.0  ;;  %v5671_v19 = vld [vmem:[#allocation19 + $0x18] sm:$0xff] }
 0x926   :  { %v5454_v32 = vpack.c.bf16 %v5450_v22, %v5450_v22  ;;  %v5681_v52 = vunpack.c.h.s8.bf16 %v7062_v4  ;;  %v5690_v61 = vunpack.c.l.s8.bf16 %v5675_v13  ;;  %v5682_v25 = vunpack.c.l.s8.bf16 %v5671_v19  ;;  %v5636_v14 = vld [vmem:[#allocation16] sm:$0x3] }
 0x927   :  { %v5455_v18 = vpack.c.bf16 %v5451_v23, %v5451_v23  ;;  %v5457_v34 = vpack.c.bf16 %v5453_v26, %v5453_v26  ;;  %v5456_v12 = vpack.c.bf16 %v5452_v56, %v5452_v56  ;;  %v5691_v20 = vunpack.c.h.s8.bf16 %v5675_v13  ;;  %v5650_v23 = vld [vmem:[#allocation17] sm:$0x3] }
 0x928   :  { %5858 = vmatpush3.bf16.msra.mxu1 %v5681_v52  ;;  %v5683_v22 = vunpack.c.h.s8.bf16 %v5671_v19  ;;  %v5641_v26 = vrot.slane %v5636_v14, %v7009_v33  ;;  %v5655_v4 = vrot.slane %v5650_v23, %v7009_v33  ;;  %v5755_v33 = vunpack.c.h.s8.bf16 %v5750_v40 }
 0x929   :  { %5586 = vmatprep.mubr.bf16.mxu0 %v5455_v18  ;;  %5859 = vmatprep.subr.bf16.mxu1 %v5690_v61  ;;  %v5645_v18 = vrot.slane %v5636_v14, %v6995_v21 }
 0x92a   :  { %5587 = vmatmul.mubr.bf16.vlgmr.msra.gmra.mrb[12].mxu0 %v5454_v32  ;;  %v5659_v32 = vrot.slane %v5650_v23, %v6995_v21 }
 0x92b   :  { %5596 = vmatpush1.bf16.msra.mxu0 %v5522_v28  ;;  %5627 = vmatprep.mubr.bf16.mxu0 %v5457_v34 }
 0x92c   :  { %5597 = vmatprep.subr.bf16.mxu0 %v5525_v5  ;;  %5860 = vmatpush3.bf16.msra.mxu1 %v5682_v25 }
 0x92d   :  { %5861 = vmatprep.subr.bf16.mxu1 %v5691_v20 }
 0x92f   :  { %5598 = vmatpush1.bf16.msra.mxu0 %v5524_v36 }
 0x930   :  { %5599 = vmatprep.subr.bf16.mxu0 %v5527_v37  ;;  %5862 = vmatpush3.bf16.msra.mxu1 %v5683_v22 }
 0x931   :  { %5878 = vmatprep.subr.bf16.mxu1 %v6549_v24 }
 0x933   :  { %5600 = vmatpush1.bf16.msra.mxu0 %v5526_v15 }
 0x934   :  { %5601 = vmatprep.subr.bf16.mxu0 %v5529_v44 }
 0x937   :  { %5602 = vmatpush1.bf16.msra.mxu0 %v5528_v45 }
 0x938   :  { %5603 = vmatprep.subr.bf16.mxu0 %v5531_v16 }
 0x93b   :  { %5604 = vmatpush1.bf16.msra.mxu0 %v5530_v47 }
 0x93c   :  { %5605 = vmatprep.subr.bf16.mxu0 %v5533_v30  ;;  %v5751_v30 = vld [vmem:[#allocation23 + $0x8] sm:$0xff] }
 0x93d   :  { %v5756_v21 = vunpack.c.l.s8.bf16 %v5751_v30  ;;  %v5757_v49 = vunpack.c.h.s8.bf16 %v5751_v30 }
 0x93f   :  { %5606 = vmatpush1.bf16.msra.mxu0 %v5532_v48  ;;  %v5752_v48 = vld [vmem:[#allocation23 + $0x10] sm:$0xff] }
 0x940   :  { %5607 = vmatprep.subr.bf16.mxu0 %v5535_v59  ;;  %v5758_v59 = vunpack.c.l.s8.bf16 %v5752_v48  ;;  %v5759_v53 = vunpack.c.h.s8.bf16 %v5752_v48 }
 0x943   :  { %5608 = vmatpush1.bf16.msra.mxu0 %v5534_v35  ;;  %v5753_v35 = vld [vmem:[#allocation23 + $0x18] sm:$0xff] }
 0x944   :  { %5609 = vmatprep.subr.bf16.mxu0 %v5537_v51  ;;  %v5760_v51 = vunpack.c.l.s8.bf16 %v5753_v35  ;;  %v5761_v29 = vunpack.c.h.s8.bf16 %v5753_v35 }
 0x947   :  { %5610 = vmatpush1.bf16.msra.mxu0 %v5536_v55 }
 0x948   :  { %5611 = vmatprep.subr.bf16.mxu0 %v5539_v58 }
 0x94b   :  { %5612 = vmatpush1.bf16.msra.mxu0 %v5538_v62 }
 0x94c   :  { %5613 = vmatprep.subr.bf16.mxu0 %v5541_v60 }
 0x94f   :  { %5614 = vmatpush1.bf16.msra.mxu0 %v5540_v31 }
 0x950   :  { %5615 = vmatprep.subr.bf16.mxu0 %v5543_v63 }
 0x953   :  { %5616 = vmatpush1.bf16.msra.mxu0 %v5542_v42 }
 0x954   :  { %5617 = vmatprep.subr.bf16.mxu0 %v5545_v0 }
 0x957   :  { %5618 = vmatpush1.bf16.msra.mxu0 %v5544_v2 }
 0x958   :  { %5619 = vmatprep.subr.bf16.mxu0 %v5547_v3  ;;  %v5846_v3 = vld [vmem:[#allocation26] ss:$0 sm:$0xff] }
 0x95b   :  { %5620 = vmatpush1.bf16.msra.mxu0 %v5546_v41 }
 0x95c   :  { %5621 = vmatprep.subr.bf16.mxu0 %v5549_v57 }
 0x95f   :  { %5622 = vmatpush1.bf16.msra.mxu0 %v5548_v8 }
 0x960   :  { %5623 = vmatprep.subr.bf16.mxu0 %v5551_v9 }
 0x963   :  { %5624 = vmatpush1.bf16.msra.mxu0 %v5550_v17 }
 0x964   :  { %5625 = vmatprep.subr.bf16.mxu0 %v5553_v10 }
 0x967   :  { %5626 = vmatpush1.bf16.msra.mxu0 %v5552_v11 }
 0x96a   :  { %5628 = vmatmul.mubr.bf16.vlgmr.msra.gmra.mrb[12].mxu0 %v5456_v12 }
 0xa3d   :  { %v5629_v28 = vpop.f32.mrb[12].mxu0 }
 0xa3e   :  { %v5648_v5 = vmul.f32 %v5641_v26, %v5629_v28  ;;  %v5631_v34 = vpop.f32.mrb[13].mxu0 }
 0xa3f   :  { %v5649_v38 = vmul.f32 %v5645_v18, %v5631_v34  ;;  %v5633_v36 = vpop.f32.mrb[14].mxu0 }
 0xa40   :  { %v5662_v37 = vadd.f32 %v5655_v4, %v5648_v5  ;;  %v5634_v43 = vpop.f32.mrb[15].mxu0 }
 0xa41   :  { %v5663_v15 = vadd.f32 %v5659_v32, %v5649_v38 }
 0xa42   :  { %v5664_v44 = vmax.f32 %v5662_v37, 0.0 }
 0xa43   :  { %v5665_v45 = vmax.f32 %v5663_v15, 0.0 }
 0xa44   :  { %v5666_v47 = vpack.c.bf16 %v5664_v44, %v5664_v44 }
 0xa45   :  { %v5667_v16 = vpack.c.bf16 %v5665_v45, %v5665_v45 }
 0xa47   :  { %5724 = vmatprep.mubr.bf16.mxu1 %v5667_v16 }
 0xa48   :  { %5725 = vmatmul.mubr.bf16.vlgmr.msra.gmra.mrb[12].mxu1 %v5666_v47 }
 0xa49   :  { %5879 = vmatpush3.bf16.msra.mxu1 %v5754_v46  ;;  %5894 = vmatprep.mubr.msk.bf16.mxu1 %vm6550_vm0, %v6549_v24 }
 0xa4a   :  { %5880 = vmatprep.subr.bf16.mxu1 %v6549_v24 }
 0xa4d   :  { %5881 = vmatpush3.bf16.msra.mxu1 %v5755_v33 }
 0xa4e   :  { %5882 = vmatprep.subr.bf16.mxu1 %v6549_v24 }
 0xa51   :  { %5883 = vmatpush3.bf16.msra.mxu1 %v5756_v21 }
 0xa52   :  { %5884 = vmatprep.subr.bf16.mxu1 %v6549_v24 }
 0xa55   :  { %5885 = vmatpush3.bf16.msra.mxu1 %v5757_v49 }
 0xa56   :  { %5886 = vmatprep.subr.bf16.mxu1 %v6549_v24 }
 0xa59   :  { %5887 = vmatpush3.bf16.msra.mxu1 %v5758_v59 }
 0xa5a   :  { %5888 = vmatprep.subr.bf16.mxu1 %v6549_v24 }
 0xa5d   :  { %5889 = vmatpush3.bf16.msra.mxu1 %v5759_v53 }
 0xa5e   :  { %5890 = vmatprep.subr.bf16.mxu1 %v6549_v24 }
 0xa61   :  { %5891 = vmatpush3.bf16.msra.mxu1 %v5760_v51 }
 0xa62   :  { %5892 = vmatprep.subr.bf16.mxu1 %v6549_v24 }
 0xa65   :  { %5893 = vmatpush3.bf16.msra.mxu1 %v5761_v29 }
 0xb1b   :  { %v5863_v55 = vpop.f32.mrb[12].mxu1 }
 0xb1c   :  { %v5864_v58 = vpop.f32.mrb[13].mxu1 }
 0xb1d   :  { %v5865_v62 = vadd.f32 %v5864_v58, %v5863_v55  ;;  %v5866_v60 = vpop.f32.mrb[14].mxu1 }
 0xb1e   :  { %v5867_v31 = vpop.f32.mrb[15].mxu1 }
 0xb1f   :  { %v5739_v63 = vmul.f32 %v5865_v62, %v5843_v27 }
 0xb21   :  { %v5747_v54 = vadd.f32 %v5844_v39, %v5739_v63 }
 0xb23   :  { %v5748_v42 = vmax.f32 %v5747_v54, 0.0 }
 0xb25   :  { %v5749_v0 = vpack.c.bf16 %v5748_v42, %v5748_v42 }
 0xb27   :  { %5895 = vmatmul.mubr.bf16.vlgmr.msra.gmra.mrb[16].mxu1 %v5749_v0 }
 0xbfa   :  { %v5796_v2 = vpop.f32.mrb[16].mxu1 }
 0xbfb   :  { %v5809_v6 = vmul.f32 %v5845_v1, %v5796_v2  ;;  %v5896_v41 = vpop.f32.mrb[17].mxu1 }
 0xbfc   :  { %v5799_v57 = vpop.f32.mrb[18].mxu1 }
 0xbfd   :  { %v5817_v7 = vadd.f32 %v5846_v3, %v5809_v6  ;;  %v5897_v8 = vpop.f32.mrb[19].mxu1 }
 0xbff   :  { %v5818_v9 = vpack.c.bf16 %v5817_v7, %v5817_v7 }
 0xc01   :  { %5819 = vst [vmem:[#allocation28] sm:$0xf] %v5818_v9 }
 0xc02   :  { %6494 = shalt.err (!%p6491_p6)
}
 0xc03   :  { %s7116_s5 = sld [smem:[#allocation40_spill]] }
 0xc09   :  { %s6495_s6 = scalar_lea.hbm %s7116_s5, 64 }
 0xc0a   :  { %p6496_p7 = scmp.ne.s32.totalorder %s7116_s5, %s6495_s6  ;;  %p6499_p8 = scmp.lt.u32.totalorder %s6495_s6, %s7116_s5 }
 0xc0c   :  { %p6501_p9 = pnand %p6499_p8, %p6496_p7 }
 0xc0e   :  { %6504 = shalt.err (!%p6501_p9)
}
 0xc0f   :  { %5829 = dma.vmem_to_hbm [thread:$0]  %s5827_s7, 64, %s7116_s5, [#allocation4]  }
 0xc10   :  { %6523 = dma.done.wait [#allocation4], 64  }
 0xc11   :  { %6524 = vsyncadd [#allocation4], 4294967232 }
 0xc12   :  { %5833 = vsyncpa [#allocation3], 1 }
 0xc13   :  { %5834 = vsyncpa [#allocation6], 1 }
 0xc14   :  { %5835 = vsyncpa [#allocation9], 1 }
 0xc15   :  { %5836 = vsyncpa [#allocation12], 1 }
 0xc16   :  { %5837 = vsyncpa [#allocation15], 1 }
 0xc17   :  { %5838 = vsyncpa [#allocation18], 1 }
 0xc18   :  { %5839 = vsyncpa [#allocation21], 1 }
 0xc19   :  { %5840 = vsyncpa [#allocation24], 1 }
 0xc1a   :  { %5841 = vsyncpa [#allocation27], 1 }
 0xc1b   :  { %5842 = vsyncpa [#allocation4], 1 }

</bundles_post_ra>
